<compile_context>
chip_gen: v6e
topology: v6e:2x2x1
jax: 0.10.0
libtpu: 0.0.40
codegen_flags: <defaults>
</compile_context>

<pallas_src>
import functools

import jax
import jax.numpy as jnp
from jax.experimental import pallas as pl
from jax.experimental.pallas import tpu as pltpu

LANE = 128


def _round_up(x, m):
    return (x + m - 1) // m * m


def _choose_tile(size, unit, tmax):
    """Pad `size` to a multiple of `unit`; return (padded_size, tile) where tile is the
    largest multiple of `unit` <= tmax that divides padded_size."""
    p = _round_up(max(size, 1), unit)
    best = unit
    t = unit
    while t <= min(tmax, p):
        if p % t == 0:
            best = t
        t += unit
    return p, best


def _pad2(a, rows, cols):
    r, c = a.shape
    if (r, c) == (rows, cols):
        return a
    return jnp.pad(a, ((0, rows - r), (0, cols - c)))


# ----------------------------------------------------------------------------
# Fused matmul (+ folded BN scale/bias + residual + ReLU), tiled & pipelined
# ----------------------------------------------------------------------------
def _fused_matmul_kernel(*refs, relu, has_res):
    if has_res:
        a_ref, b_ref, s_ref, c_ref, r_ref, o_ref, acc_ref = refs
    else:
        a_ref, b_ref, s_ref, c_ref, o_ref, acc_ref = refs
        r_ref = None
    k = pl.program_id(2)

    @pl.when(k == 0)
    def _init():
        acc_ref[...] = jnp.zeros_like(acc_ref)

    acc_ref[...] += jnp.dot(a_ref[...], b_ref[...],
                            preferred_element_type=jnp.float32)

    @pl.when(k == pl.num_programs(2) - 1)
    def _epilogue():
        out = acc_ref[...] * s_ref[...] + c_ref[...]
        if r_ref is not None:
            out = out + r_ref[...].astype(jnp.float32)
        if relu:
            out = jnp.maximum(out, 0.0)
        o_ref[...] = out.astype(o_ref.dtype)


def fused_matmul(a, b, scale, bias, residual=None, relu=True,
                 out_dtype=jnp.bfloat16, tm_max=256, tk_max=512, tn_max=256):
    """act((a @ b) * scale + bias [+ residual]) as a tiled Pallas matmul.

    a: (M, K), b: (K, N), scale/bias: (N,), residual: (M, N) or None.
    Operands are cast to bf16 (MXU native); accumulation and the BN epilogue run in f32.
    Tile budget (tm<=256, tk<=512, tn<=256) is sized for v7x's 64 MiB VMEM with double
    buffering and is safe on v5e/v6e as well.  M/N grid axes are 'parallel' (megacore),
    K is the innermost 'arbitrary' reduction axis feeding the VMEM accumulator.
    """
    M, K = a.shape
    K2, N = b.shape
    assert K == K2
    Mp, tm = _choose_tile(M, 16, tm_max)
    Kp, tk = _choose_tile(K, LANE, tk_max)
    Np, tn = _choose_tile(N, LANE, tn_max)

    a_p = _pad2(a.astype(jnp.bfloat16), Mp, Kp)
    b_p = _pad2(b.astype(jnp.bfloat16), Kp, Np)
    s_p = _pad2(scale.reshape(1, N).astype(jnp.float32), 1, Np)
    c_p = _pad2(bias.reshape(1, N).astype(jnp.float32), 1, Np)

    has_res = residual is not None
    args = [a_p, b_p, s_p, c_p]
    in_specs = [
        pl.BlockSpec((tm, tk), lambda i, j, k: (i, k)),
        pl.BlockSpec((tk, tn), lambda i, j, k: (k, j)),
        pl.BlockSpec((1, tn), lambda i, j, k: (0, j)),
        pl.BlockSpec((1, tn), lambda i, j, k: (0, j)),
    ]
    if has_res:
        args.append(_pad2(residual.astype(jnp.bfloat16), Mp, Np))
        in_specs.append(pl.BlockSpec((tm, tn), lambda i, j, k: (i, j)))

    out = pl.pallas_call(
        functools.partial(_fused_matmul_kernel, relu=relu, has_res=has_res),
        out_shape=jax.ShapeDtypeStruct((Mp, Np), out_dtype),
        grid_spec=pltpu.PrefetchScalarGridSpec(
            num_scalar_prefetch=0,
            grid=(Mp // tm, Np // tn, Kp // tk),
            in_specs=in_specs,
            out_specs=pl.BlockSpec((tm, tn), lambda i, j, k: (i, j)),
            scratch_shapes=[pltpu.VMEM((tm, tn), jnp.float32)],
        ),
        compiler_params=pltpu.CompilerParams(
            dimension_semantics=("parallel", "parallel", "arbitrary")),
    )(*args)
    if (Mp, Np) != (M, N):
        out = out[:M, :N]
    return out


# ----------------------------------------------------------------------------
# Max-pool 3x3 / stride 2 / pad 1 (single-pass Pallas kernel, polyphase inputs)
# ----------------------------------------------------------------------------
def _maxpool_kernel(e00_ref, e01_ref, e10_ref, e11_ref, o_ref):
    ho, wo = o_ref.shape[1], o_ref.shape[2]

    def win(ref, di, dj):
        return ref[:, di:di + ho, dj:dj + wo, :].astype(jnp.float32)

    m = win(e00_ref, 0, 0)
    for ref, di, dj in ((e00_ref, 0, 1), (e00_ref, 1, 0), (e00_ref, 1, 1),
                        (e01_ref, 0, 0), (e01_ref, 1, 0),
                        (e10_ref, 0, 0), (e10_ref, 0, 1),
                        (e11_ref, 0, 0)):
        m = jnp.maximum(m, win(ref, di, dj))
    o_ref[...] = m.astype(o_ref.dtype)


def maxpool2d_3x3_s2(x_nhwc):
    """The -inf-padded input is split (in XLA) into its four stride-2 polyphase
    components, so the kernel only needs contiguous shifted reads — no 9x window
    materialization in HBM."""
    n, h, w, c = x_nhwc.shape
    assert h % 2 == 0 and w % 2 == 0 and c % LANE == 0
    ho, wo = h // 2, w // 2
    xp = jnp.pad(x_nhwc, ((0, 0), (1, 1), (1, 1), (0, 0)),
                 constant_values=-jnp.inf)
    phases = [xp[:, di::2, dj::2, :] for di in (0, 1) for dj in (0, 1)]
    spec = pl.BlockSpec((1, ho + 1, wo + 1, c), lambda i: (i, 0, 0, 0))
    return pl.pallas_call(
        _maxpool_kernel,
        out_shape=jax.ShapeDtypeStruct((n, ho, wo, c), x_nhwc.dtype),
        grid=(n,),
        in_specs=[spec] * 4,
        out_specs=pl.BlockSpec((1, ho, wo, c), lambda i: (i, 0, 0, 0)),
        compiler_params=pltpu.CompilerParams(dimension_semantics=("parallel",)),
    )(*phases)


# ----------------------------------------------------------------------------
# Fused global average pool + fc (512 -> 2), lane-padded output
# ----------------------------------------------------------------------------
def _avgpool_fc_kernel(x_ref, w_ref, b_ref, o_ref, *, inv_hw):
    feat = jnp.sum(x_ref[...].astype(jnp.float32), axis=1) * inv_hw     # (N, C)
    acc = jnp.dot(feat, w_ref[...], preferred_element_type=jnp.float32)  # (N, 128)
    o_ref[...] = acc + b_ref[...]


def avgpool_fc(x_nhwc, fc_w, fc_b):
    n, h, w, c = x_nhwc.shape
    n_cls = fc_w.shape[1]
    assert n_cls <= LANE
    x = x_nhwc.reshape(n, h * w, c)
    w_p = jnp.pad(fc_w.astype(jnp.float32),
                  ((0, c - fc_w.shape[0]), (0, LANE - n_cls)))
    b_p = jnp.pad(fc_b.astype(jnp.float32), (0, LANE - n_cls)).reshape(1, LANE)
    vmem = pl.BlockSpec(memory_space=pltpu.MemorySpace.VMEM)
    out = pl.pallas_call(
        functools.partial(_avgpool_fc_kernel, inv_hw=1.0 / (h * w)),
        out_shape=jax.ShapeDtypeStruct((n, LANE), jnp.float32),
        in_specs=[vmem, vmem, vmem],
        out_specs=vmem,
    )(x, w_p, b_p)
    return out[:, :n_cls]


# ----------------------------------------------------------------------------
# im2col / conv+BN glue
# ----------------------------------------------------------------------------
def _window_slices(x_nhwc, k, stride, pad, pad_value):
    n, h, w, c = x_nhwc.shape
    xp = jnp.pad(x_nhwc, ((0, 0), (pad, pad), (pad, pad), (0, 0)),
                 constant_values=pad_value)
    ho = (h + 2 * pad - k) // stride + 1
    wo = (w + 2 * pad - k) // stride + 1
    views = []
    for i in range(k):
        for j in range(k):
            views.append(xp[:, i:i + stride * ho:stride, j:j + stride * wo:stride, :])
    return views, (n, ho, wo)


# TODO(synk): the kh*kw shifted windows are still materialized by XLA (im2col) before the
# matmul; folding them into the matmul kernel's K-loop would remove the remaining ~9x
# patch HBM traffic for 3x3 convs.
def im2col(x_nhwc, k, stride, pad):
    views, (n, ho, wo) = _window_slices(x_nhwc, k, stride, pad, 0.0)
    c = x_nhwc.shape[-1]
    # (N, Ho, Wo, k*k, C) -> (N*Ho*Wo, k*k*C); feature order = (kh, kw, Cin)
    patches = jnp.stack(views, axis=3).reshape(n * ho * wo, k * k * c)
    return patches, (n, ho, wo)


def bn_fold(bn_params, eps=1e-5):
    gamma, beta, mean, var = bn_params
    s = gamma / jnp.sqrt(var + eps)
    return s, beta - mean * s


def conv_bn(x_nhwc, w_hwio, scale, bias, stride, pad, relu=True, residual=None):
    """Conv (im2col) + folded BN + optional residual + ReLU, all in one fused matmul.

    Output channels are zero-padded to a multiple of 128 so stores are lane-dense;
    padded channels stay exactly 0 through the whole network (scale/bias padded with 0)."""
    kh, kw, cin, cout = w_hwio.shape
    cin_x = x_nhwc.shape[-1]               # activations may carry padded channels
    cout_p = _round_up(cout, LANE)
    w = jnp.pad(w_hwio, ((0, 0), (0, 0), (0, cin_x - cin), (0, cout_p - cout)))
    scale_p = jnp.pad(scale, (0, cout_p - cout))
    bias_p = jnp.pad(bias, (0, cout_p - cout))
    patches, (n, ho, wo) = im2col(x_nhwc, kh, stride, pad)
    b = w.reshape(kh * kw * cin_x, cout_p)
    res_flat = residual.reshape(-1, cout_p) if residual is not None else None
    out = fused_matmul(patches, b, scale_p, bias_p, residual=res_flat, relu=relu)
    return out.reshape(n, ho, wo, cout_p)


# ----------------------------------------------------------------------------
# ResNet-18 building blocks
# ----------------------------------------------------------------------------
def basic_block(x, blk, stride):
    identity = x
    if 'ds_conv' in blk:
        ds_s, ds_b = bn_fold(blk['ds_bn'])
        identity = conv_bn(x, blk['ds_conv'], ds_s, ds_b, stride=stride, pad=0,
                           relu=False)
    s1, b1 = bn_fold(blk['bn1'])
    out = conv_bn(x, blk['conv1'], s1, b1, stride=stride, pad=1, relu=True)
    s2, b2 = bn_fold(blk['bn2'])
    # conv2 + bn2 + residual add + final ReLU fused in one Pallas matmul kernel
    out = conv_bn(out, blk['conv2'], s2, b2, stride=1, pad=1, relu=True,
                  residual=identity)
    return out


def violence_classifier_forward(params, x_nchw):
    x = jnp.transpose(x_nchw, (0, 2, 3, 1)).astype(jnp.bfloat16)   # NCHW -> NHWC bf16
    s, b = bn_fold(params['bn1'])
    x = conv_bn(x, params['conv1'], s, b, stride=2, pad=3, relu=True)
    x = maxpool2d_3x3_s2(x)
    for name, stride in (('layer1', 1), ('layer2', 2), ('layer3', 2), ('layer4', 2)):
        for bi, blk in enumerate(params[name]):
            x = basic_block(x, blk, stride if bi == 0 else 1)
    return avgpool_fc(x, params['fc_w'], params['fc_b'])           # (N, 2) f32


# ----------------------------------------------------------------------------
# Deterministic synthetic parameters (shapes of torchvision resnet18, fc->2)
# ----------------------------------------------------------------------------
def init_resnet18_params(key):
    keys = iter(jax.random.split(key, 256))

    def conv_w(kh, kw, cin, cout):
        fan_in = kh * kw * cin
        return jax.random.normal(next(keys), (kh, kw, cin, cout),
                                 jnp.float32) * (1.0 / fan_in ** 0.5)

    def bn_p(c):
        gamma = 1.0 + 0.1 * jax.random.normal(next(keys), (c,), jnp.float32)
        beta = 0.1 * jax.random.normal(next(keys), (c,), jnp.float32)
        mean = 0.1 * jax.random.normal(next(keys), (c,), jnp.float32)
        var = 1.0 + 0.1 * jnp.abs(jax.random.normal(next(keys), (c,), jnp.float32))
        return (gamma, beta, mean, var)

    params = {'conv1': conv_w(7, 7, 3, 64), 'bn1': bn_p(64)}
    cfgs = [('layer1', 64, 64, 1), ('layer2', 64, 128, 2),
            ('layer3', 128, 256, 2), ('layer4', 256, 512, 2)]
    for name, cin, cout, stride in cfgs:
        blocks = []
        for bi in range(2):
            in_c = cin if bi == 0 else cout
            st = stride if bi == 0 else 1
            blk = {'conv1': conv_w(3, 3, in_c, cout), 'bn1': bn_p(cout),
                   'conv2': conv_w(3, 3, cout, cout), 'bn2': bn_p(cout)}
            if st != 1 or in_c != cout:
                blk['ds_conv'] = conv_w(1, 1, in_c, cout)
                blk['ds_bn'] = bn_p(cout)
            blocks.append(blk)
        params[name] = blocks
    params['fc_w'] = 0.05 * jax.random.normal(next(keys), (512, 2), jnp.float32)
    params['fc_b'] = 0.05 * jax.random.normal(next(keys), (2,), jnp.float32)
    return params


# ----------------------------------------------------------------------------
# Main
# ----------------------------------------------------------------------------
if __name__ == "__main__":
    root = jax.random.PRNGKey(0)
    pkey, xkey = jax.random.split(root)
    params = init_resnet18_params(pkey)
    # Small but ResNet-consistent input: batch=2, 3 channels, 32x32 spatial.
    x = jax.random.normal(xkey, (2, 3, 32, 32), jnp.float32)

    fwd = jax.jit(violence_classifier_forward)
    logits = fwd(params, x)
    jax.block_until_ready(logits)
    assert logits.shape == (2, 2) and logits.dtype == jnp.float32
    print("KERNEL_OK")
</pallas_src>

<mosaic_0001>
module attributes {stable_mosaic.version = 11 : i64} {
  func.func @_fused_matmul_kernel(%arg0: i32, %arg1: i32, %arg2: i32, %arg3: memref<256x256xbf16, #tpu.memory_space<vmem>>, %arg4: memref<256x128xbf16, #tpu.memory_space<vmem>>, %arg5: memref<1x128xf32, #tpu.memory_space<vmem>>, %arg6: memref<1x128xf32, #tpu.memory_space<vmem>>, %arg7: memref<256x128xbf16, #tpu.memory_space<vmem>>, %arg8: memref<256x128xf32, #tpu.memory_space<vmem>>) attributes {dimension_semantics = [#tpu.dimension_semantics<parallel>, #tpu.dimension_semantics<parallel>, #tpu.dimension_semantics<arbitrary>], iteration_bounds = array<i64: 2, 1, 1>, scalar_prefetch = 0 : i64, scratch_operands = 1 : i64, tpu.core_type = #tpu.core_type<tc>, window_params = [{transform_indices = @transform_0, window_bounds = array<i64: 256, 256>}, {transform_indices = @transform_1, window_bounds = array<i64: 256, 128>}, {transform_indices = @transform_2, window_bounds = array<i64: 1, 128>}, {transform_indices = @transform_3, window_bounds = array<i64: 1, 128>}, {transform_indices = @transform_4, window_bounds = array<i64: 256, 128>}]} {
    %c0_i32 = arith.constant 0 : i32
    %0 = arith.cmpi eq, %arg2, %c0_i32 : i32
    %1 = arith.extui %0 : i1 to i32
    %c0_i32_0 = arith.constant 0 : i32
    %2 = arith.cmpi ne, %1, %c0_i32_0 : i32
    scf.if %2 {
      %cst_10 = arith.constant 0.000000e+00 : f32
      %12 = vector.broadcast %cst_10 : f32 to vector<256x128xf32>
      %c0_11 = arith.constant 0 : index
      %c0_12 = arith.constant 0 : index
      %13 = vector.load %arg8[%c0_11, %c0_12] : memref<256x128xf32, #tpu.memory_space<vmem>>, vector<256x128xf32>
      tpu.vector_store %arg8[%c0_11, %c0_12], %12 {strides = array<i32>} : memref<256x128xf32, #tpu.memory_space<vmem>>, vector<256x128xf32>,
    } else {
    }
    %c0 = arith.constant 0 : index
    %c0_1 = arith.constant 0 : index
    %3 = vector.load %arg8[%c0, %c0_1] : memref<256x128xf32, #tpu.memory_space<vmem>>, vector<256x128xf32>
    %c0_2 = arith.constant 0 : index
    %c0_3 = arith.constant 0 : index
    %4 = vector.load %arg3[%c0_2, %c0_3] : memref<256x256xbf16, #tpu.memory_space<vmem>>, vector<256x256xbf16>
    %c0_4 = arith.constant 0 : index
    %c0_5 = arith.constant 0 : index
    %5 = vector.load %arg4[%c0_4, %c0_5] : memref<256x128xbf16, #tpu.memory_space<vmem>>, vector<256x128xbf16>
    %cst = arith.constant dense<0.000000e+00> : vector<256x128xf32>
    %6 = tpu.matmul %4, %5, %cst {dimension_numbers = #tpu.dot_dimension_numbers<[1], [0], [0], [1], [0, 0, 1, 1], [], []>} : vector<256x256xbf16>, vector<256x128xbf16>, vector<256x128xf32> -> vector<256x128xf32>
    %7 = arith.addf %3, %6 : vector<256x128xf32>
    %c0_6 = arith.constant 0 : index
    %c0_7 = arith.constant 0 : index
    %8 = vector.load %arg8[%c0_6, %c0_7] : memref<256x128xf32, #tpu.memory_space<vmem>>, vector<256x128xf32>
    tpu.vector_store %arg8[%c0_6, %c0_7], %7 {strides = array<i32>} : memref<256x128xf32, #tpu.memory_space<vmem>>, vector<256x128xf32>,
    %c0_i32_8 = arith.constant 0 : i32
    %9 = arith.cmpi eq, %arg2, %c0_i32_8 : i32
    %10 = arith.extui %9 : i1 to i32
    %c0_i32_9 = arith.constant 0 : i32
    %11 = arith.cmpi ne, %10, %c0_i32_9 : i32
    scf.if %11 {
      %c0_10 = arith.constant 0 : index
      %c0_11 = arith.constant 0 : index
      %12 = vector.load %arg8[%c0_10, %c0_11] : memref<256x128xf32, #tpu.memory_space<vmem>>, vector<256x128xf32>
      %c0_12 = arith.constant 0 : index
      %c0_13 = arith.constant 0 : index
      %13 = vector.load %arg5[%c0_12, %c0_13] : memref<1x128xf32, #tpu.memory_space<vmem>>, vector<1x128xf32>
      %14 = vector.broadcast %13 : vector<1x128xf32> to vector<256x128xf32>
      %15 = arith.mulf %12, %14 : vector<256x128xf32>
      %c0_14 = arith.constant 0 : index
      %c0_15 = arith.constant 0 : index
      %16 = vector.load %arg6[%c0_14, %c0_15] : memref<1x128xf32, #tpu.memory_space<vmem>>, vector<1x128xf32>
      %17 = vector.broadcast %16 : vector<1x128xf32> to vector<256x128xf32>
      %18 = arith.addf %15, %17 : vector<256x128xf32>
      %cst_16 = arith.constant 0.000000e+00 : f32
      %19 = vector.broadcast %cst_16 : f32 to vector<256x128xf32>
      %20 = arith.maximumf %18, %19 : vector<256x128xf32>
      %21 = arith.truncf %20 : vector<256x128xf32> to vector<256x128xbf16>
      %c0_17 = arith.constant 0 : index
      %c0_18 = arith.constant 0 : index
      %22 = vector.load %arg7[%c0_17, %c0_18] : memref<256x128xbf16, #tpu.memory_space<vmem>>, vector<256x128xbf16>
      tpu.vector_store %arg7[%c0_17, %c0_18], %21 {strides = array<i32>} : memref<256x128xbf16, #tpu.memory_space<vmem>>, vector<256x128xbf16>,
    } else {
    }
    return
  }
  func.func @transform_0(%arg0: i32, %arg1: i32, %arg2: i32) -> (i32, i32) {
    %c0_i32 = arith.constant 0 : i32
    return %arg0, %arg2 : i32, i32
  }
  func.func @transform_1(%arg0: i32, %arg1: i32, %arg2: i32) -> (i32, i32) {
    %c0_i32 = arith.constant 0 : i32
    return %arg2, %arg1 : i32, i32
  }
  func.func @transform_2(%arg0: i32, %arg1: i32, %arg2: i32) -> (i32, i32) {
    %c0_i32 = arith.constant 0 : i32
    %c0_i32_0 = arith.constant 0 : i32
    return %c0_i32, %arg1 : i32, i32
  }
  func.func @transform_3(%arg0: i32, %arg1: i32, %arg2: i32) -> (i32, i32) {
    %c0_i32 = arith.constant 0 : i32
    %c0_i32_0 = arith.constant 0 : i32
    return %c0_i32, %arg1 : i32, i32
  }
  func.func @transform_4(%arg0: i32, %arg1: i32, %arg2: i32) -> (i32, i32) {
    %c0_i32 = arith.constant 0 : i32
    return %arg0, %arg1 : i32, i32
  }
}

module attributes {stable_mosaic.version = 11 : i64} {
  func.func @_maxpool_kernel(%arg0: i32, %arg1: memref<1x9x9x128xbf16, #tpu.memory_space<vmem>>, %arg2: memref<1x9x9x128xbf16, #tpu.memory_space<vmem>>, %arg3: memref<1x9x9x128xbf16, #tpu.memory_space<vmem>>, %arg4: memref<1x9x9x128xbf16, #tpu.memory_space<vmem>>, %arg5: memref<1x8x8x128xbf16, #tpu.memory_space<vmem>>) attributes {dimension_semantics = [#tpu.dimension_semantics<parallel>], iteration_bounds = array<i64: 2>, scalar_prefetch = 0 : i64, scratch_operands = 0 : i64, tpu.core_type = #tpu.core_type<tc>, window_params = [{transform_indices = @transform_0, window_bounds = array<i64: 1, 9, 9, 128>}, {transform_indices = @transform_1, window_bounds = array<i64: 1, 9, 9, 128>}, {transform_indices = @transform_2, window_bounds = array<i64: 1, 9, 9, 128>}, {transform_indices = @transform_3, window_bounds = array<i64: 1, 9, 9, 128>}, {transform_indices = @transform_4, window_bounds = array<i64: 1, 8, 8, 128>}]} {
    %c0 = arith.constant 0 : index
    %c0_0 = arith.constant 0 : index
    %c0_1 = arith.constant 0 : index
    %c0_2 = arith.constant 0 : index
    %0 = vector.load %arg1[%c0, %c0_0, %c0_1, %c0_2] : memref<1x9x9x128xbf16, #tpu.memory_space<vmem>>, vector<1x8x8x128xbf16>
    %1 = arith.extf %0 : vector<1x8x8x128xbf16> to vector<1x8x8x128xf32>
    %c0_3 = arith.constant 0 : index
    %c0_4 = arith.constant 0 : index
    %c1 = arith.constant 1 : index
    %c0_5 = arith.constant 0 : index
    %2 = vector.load %arg1[%c0_3, %c0_4, %c1, %c0_5] : memref<1x9x9x128xbf16, #tpu.memory_space<vmem>>, vector<1x8x8x128xbf16>
    %3 = arith.extf %2 : vector<1x8x8x128xbf16> to vector<1x8x8x128xf32>
    %4 = arith.maximumf %1, %3 : vector<1x8x8x128xf32>
    %c0_6 = arith.constant 0 : index
    %c1_7 = arith.constant 1 : index
    %c0_8 = arith.constant 0 : index
    %c0_9 = arith.constant 0 : index
    %5 = vector.load %arg1[%c0_6, %c1_7, %c0_8, %c0_9] : memref<1x9x9x128xbf16, #tpu.memory_space<vmem>>, vector<1x8x8x128xbf16>
    %6 = arith.extf %5 : vector<1x8x8x128xbf16> to vector<1x8x8x128xf32>
    %7 = arith.maximumf %4, %6 : vector<1x8x8x128xf32>
    %c0_10 = arith.constant 0 : index
    %c1_11 = arith.constant 1 : index
    %c1_12 = arith.constant 1 : index
    %c0_13 = arith.constant 0 : index
    %8 = vector.load %arg1[%c0_10, %c1_11, %c1_12, %c0_13] : memref<1x9x9x128xbf16, #tpu.memory_space<vmem>>, vector<1x8x8x128xbf16>
    %9 = arith.extf %8 : vector<1x8x8x128xbf16> to vector<1x8x8x128xf32>
    %10 = arith.maximumf %7, %9 : vector<1x8x8x128xf32>
    %c0_14 = arith.constant 0 : index
    %c0_15 = arith.constant 0 : index
    %c0_16 = arith.constant 0 : index
    %c0_17 = arith.constant 0 : index
    %11 = vector.load %arg2[%c0_14, %c0_15, %c0_16, %c0_17] : memref<1x9x9x128xbf16, #tpu.memory_space<vmem>>, vector<1x8x8x128xbf16>
    %12 = arith.extf %11 : vector<1x8x8x128xbf16> to vector<1x8x8x128xf32>
    %13 = arith.maximumf %10, %12 : vector<1x8x8x128xf32>
    %c0_18 = arith.constant 0 : index
    %c1_19 = arith.constant 1 : index
    %c0_20 = arith.constant 0 : index
    %c0_21 = arith.constant 0 : index
    %14 = vector.load %arg2[%c0_18, %c1_19, %c0_20, %c0_21] : memref<1x9x9x128xbf16, #tpu.memory_space<vmem>>, vector<1x8x8x128xbf16>
    %15 = arith.extf %14 : vector<1x8x8x128xbf16> to vector<1x8x8x128xf32>
    %16 = arith.maximumf %13, %15 : vector<1x8x8x128xf32>
    %c0_22 = arith.constant 0 : index
    %c0_23 = arith.constant 0 : index
    %c0_24 = arith.constant 0 : index
    %c0_25 = arith.constant 0 : index
    %17 = vector.load %arg3[%c0_22, %c0_23, %c0_24, %c0_25] : memref<1x9x9x128xbf16, #tpu.memory_space<vmem>>, vector<1x8x8x128xbf16>
    %18 = arith.extf %17 : vector<1x8x8x128xbf16> to vector<1x8x8x128xf32>
    %19 = arith.maximumf %16, %18 : vector<1x8x8x128xf32>
    %c0_26 = arith.constant 0 : index
    %c0_27 = arith.constant 0 : index
    %c1_28 = arith.constant 1 : index
    %c0_29 = arith.constant 0 : index
    %20 = vector.load %arg3[%c0_26, %c0_27, %c1_28, %c0_29] : memref<1x9x9x128xbf16, #tpu.memory_space<vmem>>, vector<1x8x8x128xbf16>
    %21 = arith.extf %20 : vector<1x8x8x128xbf16> to vector<1x8x8x128xf32>
    %22 = arith.maximumf %19, %21 : vector<1x8x8x128xf32>
    %c0_30 = arith.constant 0 : index
    %c0_31 = arith.constant 0 : index
    %c0_32 = arith.constant 0 : index
    %c0_33 = arith.constant 0 : index
    %23 = vector.load %arg4[%c0_30, %c0_31, %c0_32, %c0_33] : memref<1x9x9x128xbf16, #tpu.memory_space<vmem>>, vector<1x8x8x128xbf16>
    %24 = arith.extf %23 : vector<1x8x8x128xbf16> to vector<1x8x8x128xf32>
    %25 = arith.maximumf %22, %24 : vector<1x8x8x128xf32>
    %26 = arith.truncf %25 : vector<1x8x8x128xf32> to vector<1x8x8x128xbf16>
    %c0_34 = arith.constant 0 : index
    %c0_35 = arith.constant 0 : index
    %c0_36 = arith.constant 0 : index
    %c0_37 = arith.constant 0 : index
    %27 = vector.load %arg5[%c0_34, %c0_35, %c0_36, %c0_37] : memref<1x8x8x128xbf16, #tpu.memory_space<vmem>>, vector<1x8x8x128xbf16>
    tpu.vector_store %arg5[%c0_34, %c0_35, %c0_36, %c0_37], %26 {strides = array<i32>} : memref<1x8x8x128xbf16, #tpu.memory_space<vmem>>, vector<1x8x8x128xbf16>,
    return
  }
  func.func @transform_0(%arg0: i32) -> (i32, i32, i32, i32) {
    %c0_i32 = arith.constant 0 : i32
    %c0_i32_0 = arith.constant 0 : i32
    %c0_i32_1 = arith.constant 0 : i32
    %c0_i32_2 = arith.constant 0 : i32
    return %arg0, %c0_i32, %c0_i32_0, %c0_i32_1 : i32, i32, i32, i32
  }
  func.func @transform_1(%arg0: i32) -> (i32, i32, i32, i32) {
    %c0_i32 = arith.constant 0 : i32
    %c0_i32_0 = arith.constant 0 : i32
    %c0_i32_1 = arith.constant 0 : i32
    %c0_i32_2 = arith.constant 0 : i32
    return %arg0, %c0_i32, %c0_i32_0, %c0_i32_1 : i32, i32, i32, i32
  }
  func.func @transform_2(%arg0: i32) -> (i32, i32, i32, i32) {
    %c0_i32 = arith.constant 0 : i32
    %c0_i32_0 = arith.constant 0 : i32
    %c0_i32_1 = arith.constant 0 : i32
    %c0_i32_2 = arith.constant 0 : i32
    return %arg0, %c0_i32, %c0_i32_0, %c0_i32_1 : i32, i32, i32, i32
  }
  func.func @transform_3(%arg0: i32) -> (i32, i32, i32, i32) {
    %c0_i32 = arith.constant 0 : i32
    %c0_i32_0 = arith.constant 0 : i32
    %c0_i32_1 = arith.constant 0 : i32
    %c0_i32_2 = arith.constant 0 : i32
    return %arg0, %c0_i32, %c0_i32_0, %c0_i32_1 : i32, i32, i32, i32
  }
  func.func @transform_4(%arg0: i32) -> (i32, i32, i32, i32) {
    %c0_i32 = arith.constant 0 : i32
    %c0_i32_0 = arith.constant 0 : i32
    %c0_i32_1 = arith.constant 0 : i32
    %c0_i32_2 = arith.constant 0 : i32
    return %arg0, %c0_i32, %c0_i32_0, %c0_i32_1 : i32, i32, i32, i32
  }
}

module attributes {stable_mosaic.version = 11 : i64} {
  func.func @_fused_matmul_kernel(%arg0: i32, %arg1: i32, %arg2: i32, %arg3: memref<128x384xbf16, #tpu.memory_space<vmem>>, %arg4: memref<384x128xbf16, #tpu.memory_space<vmem>>, %arg5: memref<1x128xf32, #tpu.memory_space<vmem>>, %arg6: memref<1x128xf32, #tpu.memory_space<vmem>>, %arg7: memref<128x128xbf16, #tpu.memory_space<vmem>>, %arg8: memref<128x128xf32, #tpu.memory_space<vmem>>) attributes {dimension_semantics = [#tpu.dimension_semantics<parallel>, #tpu.dimension_semantics<parallel>, #tpu.dimension_semantics<arbitrary>], iteration_bounds = array<i64: 1, 1, 3>, scalar_prefetch = 0 : i64, scratch_operands = 1 : i64, tpu.core_type = #tpu.core_type<tc>, window_params = [{transform_indices = @transform_0, window_bounds = array<i64: 128, 384>}, {transform_indices = @transform_1, window_bounds = array<i64: 384, 128>}, {transform_indices = @transform_2, window_bounds = array<i64: 1, 128>}, {transform_indices = @transform_3, window_bounds = array<i64: 1, 128>}, {transform_indices = @transform_4, window_bounds = array<i64: 128, 128>}]} {
    %c0_i32 = arith.constant 0 : i32
    %0 = arith.cmpi eq, %arg2, %c0_i32 : i32
    %1 = arith.extui %0 : i1 to i32
    %c0_i32_0 = arith.constant 0 : i32
    %2 = arith.cmpi ne, %1, %c0_i32_0 : i32
    scf.if %2 {
      %cst_9 = arith.constant 0.000000e+00 : f32
      %12 = vector.broadcast %cst_9 : f32 to vector<128x128xf32>
      %c0_10 = arith.constant 0 : index
      %c0_11 = arith.constant 0 : index
      %13 = vector.load %arg8[%c0_10, %c0_11] : memref<128x128xf32, #tpu.memory_space<vmem>>, vector<128x128xf32>
      tpu.vector_store %arg8[%c0_10, %c0_11], %12 {strides = array<i32>} : memref<128x128xf32, #tpu.memory_space<vmem>>, vector<128x128xf32>,
    } else {
    }
    %c0 = arith.constant 0 : index
    %c0_1 = arith.constant 0 : index
    %3 = vector.load %arg8[%c0, %c0_1] : memref<128x128xf32, #tpu.memory_space<vmem>>, vector<128x128xf32>
    %c0_2 = arith.constant 0 : index
    %c0_3 = arith.constant 0 : index
    %4 = vector.load %arg3[%c0_2, %c0_3] : memref<128x384xbf16, #tpu.memory_space<vmem>>, vector<128x384xbf16>
    %c0_4 = arith.constant 0 : index
    %c0_5 = arith.constant 0 : index
    %5 = vector.load %arg4[%c0_4, %c0_5] : memref<384x128xbf16, #tpu.memory_space<vmem>>, vector<384x128xbf16>
    %cst = arith.constant dense<0.000000e+00> : vector<128x128xf32>
    %6 = tpu.matmul %4, %5, %cst {dimension_numbers = #tpu.dot_dimension_numbers<[1], [0], [0], [1], [0, 0, 1, 1], [], []>} : vector<128x384xbf16>, vector<384x128xbf16>, vector<128x128xf32> -> vector<128x128xf32>
    %7 = arith.addf %3, %6 : vector<128x128xf32>
    %c0_6 = arith.constant 0 : index
    %c0_7 = arith.constant 0 : index
    %8 = vector.load %arg8[%c0_6, %c0_7] : memref<128x128xf32, #tpu.memory_space<vmem>>, vector<128x128xf32>
    tpu.vector_store %arg8[%c0_6, %c0_7], %7 {strides = array<i32>} : memref<128x128xf32, #tpu.memory_space<vmem>>, vector<128x128xf32>,
    %c2_i32 = arith.constant 2 : i32
    %9 = arith.cmpi eq, %arg2, %c2_i32 : i32
    %10 = arith.extui %9 : i1 to i32
    %c0_i32_8 = arith.constant 0 : i32
    %11 = arith.cmpi ne, %10, %c0_i32_8 : i32
    scf.if %11 {
      %c0_9 = arith.constant 0 : index
      %c0_10 = arith.constant 0 : index
      %12 = vector.load %arg8[%c0_9, %c0_10] : memref<128x128xf32, #tpu.memory_space<vmem>>, vector<128x128xf32>
      %c0_11 = arith.constant 0 : index
      %c0_12 = arith.constant 0 : index
      %13 = vector.load %arg5[%c0_11, %c0_12] : memref<1x128xf32, #tpu.memory_space<vmem>>, vector<1x128xf32>
      %14 = vector.broadcast %13 : vector<1x128xf32> to vector<128x128xf32>
      %15 = arith.mulf %12, %14 : vector<128x128xf32>
      %c0_13 = arith.constant 0 : index
      %c0_14 = arith.constant 0 : index
      %16 = vector.load %arg6[%c0_13, %c0_14] : memref<1x128xf32, #tpu.memory_space<vmem>>, vector<1x128xf32>
      %17 = vector.broadcast %16 : vector<1x128xf32> to vector<128x128xf32>
      %18 = arith.addf %15, %17 : vector<128x128xf32>
      %cst_15 = arith.constant 0.000000e+00 : f32
      %19 = vector.broadcast %cst_15 : f32 to vector<128x128xf32>
      %20 = arith.maximumf %18, %19 : vector<128x128xf32>
      %21 = arith.truncf %20 : vector<128x128xf32> to vector<128x128xbf16>
      %c0_16 = arith.constant 0 : index
      %c0_17 = arith.constant 0 : index
      %22 = vector.load %arg7[%c0_16, %c0_17] : memref<128x128xbf16, #tpu.memory_space<vmem>>, vector<128x128xbf16>
      tpu.vector_store %arg7[%c0_16, %c0_17], %21 {strides = array<i32>} : memref<128x128xbf16, #tpu.memory_space<vmem>>, vector<128x128xbf16>,
    } else {
    }
    return
  }
  func.func @transform_0(%arg0: i32, %arg1: i32, %arg2: i32) -> (i32, i32) {
    %c0_i32 = arith.constant 0 : i32
    return %arg0, %arg2 : i32, i32
  }
  func.func @transform_1(%arg0: i32, %arg1: i32, %arg2: i32) -> (i32, i32) {
    %c0_i32 = arith.constant 0 : i32
    return %arg2, %arg1 : i32, i32
  }
  func.func @transform_2(%arg0: i32, %arg1: i32, %arg2: i32) -> (i32, i32) {
    %c0_i32 = arith.constant 0 : i32
    %c0_i32_0 = arith.constant 0 : i32
    return %c0_i32, %arg1 : i32, i32
  }
  func.func @transform_3(%arg0: i32, %arg1: i32, %arg2: i32) -> (i32, i32) {
    %c0_i32 = arith.constant 0 : i32
    %c0_i32_0 = arith.constant 0 : i32
    return %c0_i32, %arg1 : i32, i32
  }
  func.func @transform_4(%arg0: i32, %arg1: i32, %arg2: i32) -> (i32, i32) {
    %c0_i32 = arith.constant 0 : i32
    return %arg0, %arg1 : i32, i32
  }
}

module attributes {stable_mosaic.version = 11 : i64} {
  func.func @_fused_matmul_kernel(%arg0: i32, %arg1: i32, %arg2: i32, %arg3: memref<128x384xbf16, #tpu.memory_space<vmem>>, %arg4: memref<384x128xbf16, #tpu.memory_space<vmem>>, %arg5: memref<1x128xf32, #tpu.memory_space<vmem>>, %arg6: memref<1x128xf32, #tpu.memory_space<vmem>>, %arg7: memref<128x128xbf16, #tpu.memory_space<vmem>>, %arg8: memref<128x128xbf16, #tpu.memory_space<vmem>>, %arg9: memref<128x128xf32, #tpu.memory_space<vmem>>) attributes {dimension_semantics = [#tpu.dimension_semantics<parallel>, #tpu.dimension_semantics<parallel>, #tpu.dimension_semantics<arbitrary>], iteration_bounds = array<i64: 1, 1, 3>, scalar_prefetch = 0 : i64, scratch_operands = 1 : i64, tpu.core_type = #tpu.core_type<tc>, window_params = [{transform_indices = @transform_0, window_bounds = array<i64: 128, 384>}, {transform_indices = @transform_1, window_bounds = array<i64: 384, 128>}, {transform_indices = @transform_2, window_bounds = array<i64: 1, 128>}, {transform_indices = @transform_3, window_bounds = array<i64: 1, 128>}, {transform_indices = @transform_4, window_bounds = array<i64: 128, 128>}, {transform_indices = @transform_5, window_bounds = array<i64: 128, 128>}]} {
    %c0_i32 = arith.constant 0 : i32
    %0 = arith.cmpi eq, %arg2, %c0_i32 : i32
    %1 = arith.extui %0 : i1 to i32
    %c0_i32_0 = arith.constant 0 : i32
    %2 = arith.cmpi ne, %1, %c0_i32_0 : i32
    scf.if %2 {
      %cst_9 = arith.constant 0.000000e+00 : f32
      %12 = vector.broadcast %cst_9 : f32 to vector<128x128xf32>
      %c0_10 = arith.constant 0 : index
      %c0_11 = arith.constant 0 : index
      %13 = vector.load %arg9[%c0_10, %c0_11] : memref<128x128xf32, #tpu.memory_space<vmem>>, vector<128x128xf32>
      tpu.vector_store %arg9[%c0_10, %c0_11], %12 {strides = array<i32>} : memref<128x128xf32, #tpu.memory_space<vmem>>, vector<128x128xf32>,
    } else {
    }
    %c0 = arith.constant 0 : index
    %c0_1 = arith.constant 0 : index
    %3 = vector.load %arg9[%c0, %c0_1] : memref<128x128xf32, #tpu.memory_space<vmem>>, vector<128x128xf32>
    %c0_2 = arith.constant 0 : index
    %c0_3 = arith.constant 0 : index
    %4 = vector.load %arg3[%c0_2, %c0_3] : memref<128x384xbf16, #tpu.memory_space<vmem>>, vector<128x384xbf16>
    %c0_4 = arith.constant 0 : index
    %c0_5 = arith.constant 0 : index
    %5 = vector.load %arg4[%c0_4, %c0_5] : memref<384x128xbf16, #tpu.memory_space<vmem>>, vector<384x128xbf16>
    %cst = arith.constant dense<0.000000e+00> : vector<128x128xf32>
    %6 = tpu.matmul %4, %5, %cst {dimension_numbers = #tpu.dot_dimension_numbers<[1], [0], [0], [1], [0, 0, 1, 1], [], []>} : vector<128x384xbf16>, vector<384x128xbf16>, vector<128x128xf32> -> vector<128x128xf32>
    %7 = arith.addf %3, %6 : vector<128x128xf32>
    %c0_6 = arith.constant 0 : index
    %c0_7 = arith.constant 0 : index
    %8 = vector.load %arg9[%c0_6, %c0_7] : memref<128x128xf32, #tpu.memory_space<vmem>>, vector<128x128xf32>
    tpu.vector_store %arg9[%c0_6, %c0_7], %7 {strides = array<i32>} : memref<128x128xf32, #tpu.memory_space<vmem>>, vector<128x128xf32>,
    %c2_i32 = arith.constant 2 : i32
    %9 = arith.cmpi eq, %arg2, %c2_i32 : i32
    %10 = arith.extui %9 : i1 to i32
    %c0_i32_8 = arith.constant 0 : i32
    %11 = arith.cmpi ne, %10, %c0_i32_8 : i32
    scf.if %11 {
      %c0_9 = arith.constant 0 : index
      %c0_10 = arith.constant 0 : index
      %12 = vector.load %arg9[%c0_9, %c0_10] : memref<128x128xf32, #tpu.memory_space<vmem>>, vector<128x128xf32>
      %c0_11 = arith.constant 0 : index
      %c0_12 = arith.constant 0 : index
      %13 = vector.load %arg5[%c0_11, %c0_12] : memref<1x128xf32, #tpu.memory_space<vmem>>, vector<1x128xf32>
      %14 = vector.broadcast %13 : vector<1x128xf32> to vector<128x128xf32>
      %15 = arith.mulf %12, %14 : vector<128x128xf32>
      %c0_13 = arith.constant 0 : index
      %c0_14 = arith.constant 0 : index
      %16 = vector.load %arg6[%c0_13, %c0_14] : memref<1x128xf32, #tpu.memory_space<vmem>>, vector<1x128xf32>
      %17 = vector.broadcast %16 : vector<1x128xf32> to vector<128x128xf32>
      %18 = arith.addf %15, %17 : vector<128x128xf32>
      %c0_15 = arith.constant 0 : index
      %c0_16 = arith.constant 0 : index
      %19 = vector.load %arg7[%c0_15, %c0_16] : memref<128x128xbf16, #tpu.memory_space<vmem>>, vector<128x128xbf16>
      %20 = arith.extf %19 : vector<128x128xbf16> to vector<128x128xf32>
      %21 = arith.addf %18, %20 : vector<128x128xf32>
      %cst_17 = arith.constant 0.000000e+00 : f32
      %22 = vector.broadcast %cst_17 : f32 to vector<128x128xf32>
      %23 = arith.maximumf %21, %22 : vector<128x128xf32>
      %24 = arith.truncf %23 : vector<128x128xf32> to vector<128x128xbf16>
      %c0_18 = arith.constant 0 : index
      %c0_19 = arith.constant 0 : index
      %25 = vector.load %arg8[%c0_18, %c0_19] : memref<128x128xbf16, #tpu.memory_space<vmem>>, vector<128x128xbf16>
      tpu.vector_store %arg8[%c0_18, %c0_19], %24 {strides = array<i32>} : memref<128x128xbf16, #tpu.memory_space<vmem>>, vector<128x128xbf16>,
    } else {
    }
    return
  }
  func.func @transform_0(%arg0: i32, %arg1: i32, %arg2: i32) -> (i32, i32) {
    %c0_i32 = arith.constant 0 : i32
    return %arg0, %arg2 : i32, i32
  }
  func.func @transform_1(%arg0: i32, %arg1: i32, %arg2: i32) -> (i32, i32) {
    %c0_i32 = arith.constant 0 : i32
    return %arg2, %arg1 : i32, i32
  }
  func.func @transform_2(%arg0: i32, %arg1: i32, %arg2: i32) -> (i32, i32) {
    %c0_i32 = arith.constant 0 : i32
    %c0_i32_0 = arith.constant 0 : i32
    return %c0_i32, %arg1 : i32, i32
  }
  func.func @transform_3(%arg0: i32, %arg1: i32, %arg2: i32) -> (i32, i32) {
    %c0_i32 = arith.constant 0 : i32
    %c0_i32_0 = arith.constant 0 : i32
    return %c0_i32, %arg1 : i32, i32
  }
  func.func @transform_4(%arg0: i32, %arg1: i32, %arg2: i32) -> (i32, i32) {
    %c0_i32 = arith.constant 0 : i32
    return %arg0, %arg1 : i32, i32
  }
  func.func @transform_5(%arg0: i32, %arg1: i32, %arg2: i32) -> (i32, i32) {
    %c0_i32 = arith.constant 0 : i32
    return %arg0, %arg1 : i32, i32
  }
}

module attributes {stable_mosaic.version = 11 : i64} {
  func.func @_fused_matmul_kernel(%arg0: i32, %arg1: i32, %arg2: i32, %arg3: memref<32x384xbf16, #tpu.memory_space<vmem>>, %arg4: memref<384x128xbf16, #tpu.memory_space<vmem>>, %arg5: memref<1x128xf32, #tpu.memory_space<vmem>>, %arg6: memref<1x128xf32, #tpu.memory_space<vmem>>, %arg7: memref<32x128xbf16, #tpu.memory_space<vmem>>, %arg8: memref<32x128xf32, #tpu.memory_space<vmem>>) attributes {dimension_semantics = [#tpu.dimension_semantics<parallel>, #tpu.dimension_semantics<parallel>, #tpu.dimension_semantics<arbitrary>], iteration_bounds = array<i64: 1, 1, 3>, scalar_prefetch = 0 : i64, scratch_operands = 1 : i64, tpu.core_type = #tpu.core_type<tc>, window_params = [{transform_indices = @transform_0, window_bounds = array<i64: 32, 384>}, {transform_indices = @transform_1, window_bounds = array<i64: 384, 128>}, {transform_indices = @transform_2, window_bounds = array<i64: 1, 128>}, {transform_indices = @transform_3, window_bounds = array<i64: 1, 128>}, {transform_indices = @transform_4, window_bounds = array<i64: 32, 128>}]} {
    %c0_i32 = arith.constant 0 : i32
    %0 = arith.cmpi eq, %arg2, %c0_i32 : i32
    %1 = arith.extui %0 : i1 to i32
    %c0_i32_0 = arith.constant 0 : i32
    %2 = arith.cmpi ne, %1, %c0_i32_0 : i32
    scf.if %2 {
      %cst_9 = arith.constant 0.000000e+00 : f32
      %12 = vector.broadcast %cst_9 : f32 to vector<32x128xf32>
      %c0_10 = arith.constant 0 : index
      %c0_11 = arith.constant 0 : index
      %13 = vector.load %arg8[%c0_10, %c0_11] : memref<32x128xf32, #tpu.memory_space<vmem>>, vector<32x128xf32>
      tpu.vector_store %arg8[%c0_10, %c0_11], %12 {strides = array<i32>} : memref<32x128xf32, #tpu.memory_space<vmem>>, vector<32x128xf32>,
    } else {
    }
    %c0 = arith.constant 0 : index
    %c0_1 = arith.constant 0 : index
    %3 = vector.load %arg8[%c0, %c0_1] : memref<32x128xf32, #tpu.memory_space<vmem>>, vector<32x128xf32>
    %c0_2 = arith.constant 0 : index
    %c0_3 = arith.constant 0 : index
    %4 = vector.load %arg3[%c0_2, %c0_3] : memref<32x384xbf16, #tpu.memory_space<vmem>>, vector<32x384xbf16>
    %c0_4 = arith.constant 0 : index
    %c0_5 = arith.constant 0 : index
    %5 = vector.load %arg4[%c0_4, %c0_5] : memref<384x128xbf16, #tpu.memory_space<vmem>>, vector<384x128xbf16>
    %cst = arith.constant dense<0.000000e+00> : vector<32x128xf32>
    %6 = tpu.matmul %4, %5, %cst {dimension_numbers = #tpu.dot_dimension_numbers<[1], [0], [0], [1], [0, 0, 1, 1], [], []>} : vector<32x384xbf16>, vector<384x128xbf16>, vector<32x128xf32> -> vector<32x128xf32>
    %7 = arith.addf %3, %6 : vector<32x128xf32>
    %c0_6 = arith.constant 0 : index
    %c0_7 = arith.constant 0 : index
    %8 = vector.load %arg8[%c0_6, %c0_7] : memref<32x128xf32, #tpu.memory_space<vmem>>, vector<32x128xf32>
    tpu.vector_store %arg8[%c0_6, %c0_7], %7 {strides = array<i32>} : memref<32x128xf32, #tpu.memory_space<vmem>>, vector<32x128xf32>,
    %c2_i32 = arith.constant 2 : i32
    %9 = arith.cmpi eq, %arg2, %c2_i32 : i32
    %10 = arith.extui %9 : i1 to i32
    %c0_i32_8 = arith.constant 0 : i32
    %11 = arith.cmpi ne, %10, %c0_i32_8 : i32
    scf.if %11 {
      %c0_9 = arith.constant 0 : index
      %c0_10 = arith.constant 0 : index
      %12 = vector.load %arg8[%c0_9, %c0_10] : memref<32x128xf32, #tpu.memory_space<vmem>>, vector<32x128xf32>
      %c0_11 = arith.constant 0 : index
      %c0_12 = arith.constant 0 : index
      %13 = vector.load %arg5[%c0_11, %c0_12] : memref<1x128xf32, #tpu.memory_space<vmem>>, vector<1x128xf32>
      %14 = vector.broadcast %13 : vector<1x128xf32> to vector<32x128xf32>
      %15 = arith.mulf %12, %14 : vector<32x128xf32>
      %c0_13 = arith.constant 0 : index
      %c0_14 = arith.constant 0 : index
      %16 = vector.load %arg6[%c0_13, %c0_14] : memref<1x128xf32, #tpu.memory_space<vmem>>, vector<1x128xf32>
      %17 = vector.broadcast %16 : vector<1x128xf32> to vector<32x128xf32>
      %18 = arith.addf %15, %17 : vector<32x128xf32>
      %cst_15 = arith.constant 0.000000e+00 : f32
      %19 = vector.broadcast %cst_15 : f32 to vector<32x128xf32>
      %20 = arith.maximumf %18, %19 : vector<32x128xf32>
      %21 = arith.truncf %20 : vector<32x128xf32> to vector<32x128xbf16>
      %c0_16 = arith.constant 0 : index
      %c0_17 = arith.constant 0 : index
      %22 = vector.load %arg7[%c0_16, %c0_17] : memref<32x128xbf16, #tpu.memory_space<vmem>>, vector<32x128xbf16>
      tpu.vector_store %arg7[%c0_16, %c0_17], %21 {strides = array<i32>} : memref<32x128xbf16, #tpu.memory_space<vmem>>, vector<32x128xbf16>,
    } else {
    }
    return
  }
  func.func @transform_0(%arg0: i32, %arg1: i32, %arg2: i32) -> (i32, i32) {
    %c0_i32 = arith.constant 0 : i32
    return %arg0, %arg2 : i32, i32
  }
  func.func @transform_1(%arg0: i32, %arg1: i32, %arg2: i32) -> (i32, i32) {
    %c0_i32 = arith.constant 0 : i32
    return %arg2, %arg1 : i32, i32
  }
  func.func @transform_2(%arg0: i32, %arg1: i32, %arg2: i32) -> (i32, i32) {
    %c0_i32 = arith.constant 0 : i32
    %c0_i32_0 = arith.constant 0 : i32
    return %c0_i32, %arg1 : i32, i32
  }
  func.func @transform_3(%arg0: i32, %arg1: i32, %arg2: i32) -> (i32, i32) {
    %c0_i32 = arith.constant 0 : i32
    %c0_i32_0 = arith.constant 0 : i32
    return %c0_i32, %arg1 : i32, i32
  }
  func.func @transform_4(%arg0: i32, %arg1: i32, %arg2: i32) -> (i32, i32) {
    %c0_i32 = arith.constant 0 : i32
    return %arg0, %arg1 : i32, i32
  }
}

module attributes {stable_mosaic.version = 11 : i64} {
  func.func @_fused_matmul_kernel(%arg0: i32, %arg1: i32, %arg2: i32, %arg3: memref<32x128xbf16, #tpu.memory_space<vmem>>, %arg4: memref<128x128xbf16, #tpu.memory_space<vmem>>, %arg5: memref<1x128xf32, #tpu.memory_space<vmem>>, %arg6: memref<1x128xf32, #tpu.memory_space<vmem>>, %arg7: memref<32x128xbf16, #tpu.memory_space<vmem>>, %arg8: memref<32x128xf32, #tpu.memory_space<vmem>>) attributes {dimension_semantics = [#tpu.dimension_semantics<parallel>, #tpu.dimension_semantics<parallel>, #tpu.dimension_semantics<arbitrary>], iteration_bounds = array<i64: 1, 1, 1>, scalar_prefetch = 0 : i64, scratch_operands = 1 : i64, tpu.core_type = #tpu.core_type<tc>, window_params = [{transform_indices = @transform_0, window_bounds = array<i64: 32, 128>}, {transform_indices = @transform_1, window_bounds = array<i64: 128, 128>}, {transform_indices = @transform_2, window_bounds = array<i64: 1, 128>}, {transform_indices = @transform_3, window_bounds = array<i64: 1, 128>}, {transform_indices = @transform_4, window_bounds = array<i64: 32, 128>}]} {
    %c0_i32 = arith.constant 0 : i32
    %0 = arith.cmpi eq, %arg2, %c0_i32 : i32
    %1 = arith.extui %0 : i1 to i32
    %c0_i32_0 = arith.constant 0 : i32
    %2 = arith.cmpi ne, %1, %c0_i32_0 : i32
    scf.if %2 {
      %cst_10 = arith.constant 0.000000e+00 : f32
      %12 = vector.broadcast %cst_10 : f32 to vector<32x128xf32>
      %c0_11 = arith.constant 0 : index
      %c0_12 = arith.constant 0 : index
      %13 = vector.load %arg8[%c0_11, %c0_12] : memref<32x128xf32, #tpu.memory_space<vmem>>, vector<32x128xf32>
      tpu.vector_store %arg8[%c0_11, %c0_12], %12 {strides = array<i32>} : memref<32x128xf32, #tpu.memory_space<vmem>>, vector<32x128xf32>,
    } else {
    }
    %c0 = arith.constant 0 : index
    %c0_1 = arith.constant 0 : index
    %3 = vector.load %arg8[%c0, %c0_1] : memref<32x128xf32, #tpu.memory_space<vmem>>, vector<32x128xf32>
    %c0_2 = arith.constant 0 : index
    %c0_3 = arith.constant 0 : index
    %4 = vector.load %arg3[%c0_2, %c0_3] : memref<32x128xbf16, #tpu.memory_space<vmem>>, vector<32x128xbf16>
    %c0_4 = arith.constant 0 : index
    %c0_5 = arith.constant 0 : index
    %5 = vector.load %arg4[%c0_4, %c0_5] : memref<128x128xbf16, #tpu.memory_space<vmem>>, vector<128x128xbf16>
    %cst = arith.constant dense<0.000000e+00> : vector<32x128xf32>
    %6 = tpu.matmul %4, %5, %cst {dimension_numbers = #tpu.dot_dimension_numbers<[1], [0], [0], [1], [0, 0, 1, 1], [], []>} : vector<32x128xbf16>, vector<128x128xbf16>, vector<32x128xf32> -> vector<32x128xf32>
    %7 = arith.addf %3, %6 : vector<32x128xf32>
    %c0_6 = arith.constant 0 : index
    %c0_7 = arith.constant 0 : index
    %8 = vector.load %arg8[%c0_6, %c0_7] : memref<32x128xf32, #tpu.memory_space<vmem>>, vector<32x128xf32>
    tpu.vector_store %arg8[%c0_6, %c0_7], %7 {strides = array<i32>} : memref<32x128xf32, #tpu.memory_space<vmem>>, vector<32x128xf32>,
    %c0_i32_8 = arith.constant 0 : i32
    %9 = arith.cmpi eq, %arg2, %c0_i32_8 : i32
    %10 = arith.extui %9 : i1 to i32
    %c0_i32_9 = arith.constant 0 : i32
    %11 = arith.cmpi ne, %10, %c0_i32_9 : i32
    scf.if %11 {
      %c0_10 = arith.constant 0 : index
      %c0_11 = arith.constant 0 : index
      %12 = vector.load %arg8[%c0_10, %c0_11] : memref<32x128xf32, #tpu.memory_space<vmem>>, vector<32x128xf32>
      %c0_12 = arith.constant 0 : index
      %c0_13 = arith.constant 0 : index
      %13 = vector.load %arg5[%c0_12, %c0_13] : memref<1x128xf32, #tpu.memory_space<vmem>>, vector<1x128xf32>
      %14 = vector.broadcast %13 : vector<1x128xf32> to vector<32x128xf32>
      %15 = arith.mulf %12, %14 : vector<32x128xf32>
      %c0_14 = arith.constant 0 : index
      %c0_15 = arith.constant 0 : index
      %16 = vector.load %arg6[%c0_14, %c0_15] : memref<1x128xf32, #tpu.memory_space<vmem>>, vector<1x128xf32>
      %17 = vector.broadcast %16 : vector<1x128xf32> to vector<32x128xf32>
      %18 = arith.addf %15, %17 : vector<32x128xf32>
      %19 = arith.truncf %18 : vector<32x128xf32> to vector<32x128xbf16>
      %c0_16 = arith.constant 0 : index
      %c0_17 = arith.constant 0 : index
      %20 = vector.load %arg7[%c0_16, %c0_17] : memref<32x128xbf16, #tpu.memory_space<vmem>>, vector<32x128xbf16>
      tpu.vector_store %arg7[%c0_16, %c0_17], %19 {strides = array<i32>} : memref<32x128xbf16, #tpu.memory_space<vmem>>, vector<32x128xbf16>,
    } else {
    }
    return
  }
  func.func @transform_0(%arg0: i32, %arg1: i32, %arg2: i32) -> (i32, i32) {
    %c0_i32 = arith.constant 0 : i32
    return %arg0, %arg2 : i32, i32
  }
  func.func @transform_1(%arg0: i32, %arg1: i32, %arg2: i32) -> (i32, i32) {
    %c0_i32 = arith.constant 0 : i32
    return %arg2, %arg1 : i32, i32
  }
  func.func @transform_2(%arg0: i32, %arg1: i32, %arg2: i32) -> (i32, i32) {
    %c0_i32 = arith.constant 0 : i32
    %c0_i32_0 = arith.constant 0 : i32
    return %c0_i32, %arg1 : i32, i32
  }
  func.func @transform_3(%arg0: i32, %arg1: i32, %arg2: i32) -> (i32, i32) {
    %c0_i32 = arith.constant 0 : i32
    %c0_i32_0 = arith.constant 0 : i32
    return %c0_i32, %arg1 : i32, i32
  }
  func.func @transform_4(%arg0: i32, %arg1: i32, %arg2: i32) -> (i32, i32) {
    %c0_i32 = arith.constant 0 : i32
    return %arg0, %arg1 : i32, i32
  }
}

module attributes {stable_mosaic.version = 11 : i64} {
  func.func @_fused_matmul_kernel(%arg0: i32, %arg1: i32, %arg2: i32, %arg3: memref<32x384xbf16, #tpu.memory_space<vmem>>, %arg4: memref<384x128xbf16, #tpu.memory_space<vmem>>, %arg5: memref<1x128xf32, #tpu.memory_space<vmem>>, %arg6: memref<1x128xf32, #tpu.memory_space<vmem>>, %arg7: memref<32x128xbf16, #tpu.memory_space<vmem>>, %arg8: memref<32x128xbf16, #tpu.memory_space<vmem>>, %arg9: memref<32x128xf32, #tpu.memory_space<vmem>>) attributes {dimension_semantics = [#tpu.dimension_semantics<parallel>, #tpu.dimension_semantics<parallel>, #tpu.dimension_semantics<arbitrary>], iteration_bounds = array<i64: 1, 1, 3>, scalar_prefetch = 0 : i64, scratch_operands = 1 : i64, tpu.core_type = #tpu.core_type<tc>, window_params = [{transform_indices = @transform_0, window_bounds = array<i64: 32, 384>}, {transform_indices = @transform_1, window_bounds = array<i64: 384, 128>}, {transform_indices = @transform_2, window_bounds = array<i64: 1, 128>}, {transform_indices = @transform_3, window_bounds = array<i64: 1, 128>}, {transform_indices = @transform_4, window_bounds = array<i64: 32, 128>}, {transform_indices = @transform_5, window_bounds = array<i64: 32, 128>}]} {
    %c0_i32 = arith.constant 0 : i32
    %0 = arith.cmpi eq, %arg2, %c0_i32 : i32
    %1 = arith.extui %0 : i1 to i32
    %c0_i32_0 = arith.constant 0 : i32
    %2 = arith.cmpi ne, %1, %c0_i32_0 : i32
    scf.if %2 {
      %cst_9 = arith.constant 0.000000e+00 : f32
      %12 = vector.broadcast %cst_9 : f32 to vector<32x128xf32>
      %c0_10 = arith.constant 0 : index
      %c0_11 = arith.constant 0 : index
      %13 = vector.load %arg9[%c0_10, %c0_11] : memref<32x128xf32, #tpu.memory_space<vmem>>, vector<32x128xf32>
      tpu.vector_store %arg9[%c0_10, %c0_11], %12 {strides = array<i32>} : memref<32x128xf32, #tpu.memory_space<vmem>>, vector<32x128xf32>,
    } else {
    }
    %c0 = arith.constant 0 : index
    %c0_1 = arith.constant 0 : index
    %3 = vector.load %arg9[%c0, %c0_1] : memref<32x128xf32, #tpu.memory_space<vmem>>, vector<32x128xf32>
    %c0_2 = arith.constant 0 : index
    %c0_3 = arith.constant 0 : index
    %4 = vector.load %arg3[%c0_2, %c0_3] : memref<32x384xbf16, #tpu.memory_space<vmem>>, vector<32x384xbf16>
    %c0_4 = arith.constant 0 : index
    %c0_5 = arith.constant 0 : index
    %5 = vector.load %arg4[%c0_4, %c0_5] : memref<384x128xbf16, #tpu.memory_space<vmem>>, vector<384x128xbf16>
    %cst = arith.constant dense<0.000000e+00> : vector<32x128xf32>
    %6 = tpu.matmul %4, %5, %cst {dimension_numbers = #tpu.dot_dimension_numbers<[1], [0], [0], [1], [0, 0, 1, 1], [], []>} : vector<32x384xbf16>, vector<384x128xbf16>, vector<32x128xf32> -> vector<32x128xf32>
    %7 = arith.addf %3, %6 : vector<32x128xf32>
    %c0_6 = arith.constant 0 : index
    %c0_7 = arith.constant 0 : index
    %8 = vector.load %arg9[%c0_6, %c0_7] : memref<32x128xf32, #tpu.memory_space<vmem>>, vector<32x128xf32>
    tpu.vector_store %arg9[%c0_6, %c0_7], %7 {strides = array<i32>} : memref<32x128xf32, #tpu.memory_space<vmem>>, vector<32x128xf32>,
    %c2_i32 = arith.constant 2 : i32
    %9 = arith.cmpi eq, %arg2, %c2_i32 : i32
    %10 = arith.extui %9 : i1 to i32
    %c0_i32_8 = arith.constant 0 : i32
    %11 = arith.cmpi ne, %10, %c0_i32_8 : i32
    scf.if %11 {
      %c0_9 = arith.constant 0 : index
      %c0_10 = arith.constant 0 : index
      %12 = vector.load %arg9[%c0_9, %c0_10] : memref<32x128xf32, #tpu.memory_space<vmem>>, vector<32x128xf32>
      %c0_11 = arith.constant 0 : index
      %c0_12 = arith.constant 0 : index
      %13 = vector.load %arg5[%c0_11, %c0_12] : memref<1x128xf32, #tpu.memory_space<vmem>>, vector<1x128xf32>
      %14 = vector.broadcast %13 : vector<1x128xf32> to vector<32x128xf32>
      %15 = arith.mulf %12, %14 : vector<32x128xf32>
      %c0_13 = arith.constant 0 : index
      %c0_14 = arith.constant 0 : index
      %16 = vector.load %arg6[%c0_13, %c0_14] : memref<1x128xf32, #tpu.memory_space<vmem>>, vector<1x128xf32>
      %17 = vector.broadcast %16 : vector<1x128xf32> to vector<32x128xf32>
      %18 = arith.addf %15, %17 : vector<32x128xf32>
      %c0_15 = arith.constant 0 : index
      %c0_16 = arith.constant 0 : index
      %19 = vector.load %arg7[%c0_15, %c0_16] : memref<32x128xbf16, #tpu.memory_space<vmem>>, vector<32x128xbf16>
      %20 = arith.extf %19 : vector<32x128xbf16> to vector<32x128xf32>
      %21 = arith.addf %18, %20 : vector<32x128xf32>
      %cst_17 = arith.constant 0.000000e+00 : f32
      %22 = vector.broadcast %cst_17 : f32 to vector<32x128xf32>
      %23 = arith.maximumf %21, %22 : vector<32x128xf32>
      %24 = arith.truncf %23 : vector<32x128xf32> to vector<32x128xbf16>
      %c0_18 = arith.constant 0 : index
      %c0_19 = arith.constant 0 : index
      %25 = vector.load %arg8[%c0_18, %c0_19] : memref<32x128xbf16, #tpu.memory_space<vmem>>, vector<32x128xbf16>
      tpu.vector_store %arg8[%c0_18, %c0_19], %24 {strides = array<i32>} : memref<32x128xbf16, #tpu.memory_space<vmem>>, vector<32x128xbf16>,
    } else {
    }
    return
  }
  func.func @transform_0(%arg0: i32, %arg1: i32, %arg2: i32) -> (i32, i32) {
    %c0_i32 = arith.constant 0 : i32
    return %arg0, %arg2 : i32, i32
  }
  func.func @transform_1(%arg0: i32, %arg1: i32, %arg2: i32) -> (i32, i32) {
    %c0_i32 = arith.constant 0 : i32
    return %arg2, %arg1 : i32, i32
  }
  func.func @transform_2(%arg0: i32, %arg1: i32, %arg2: i32) -> (i32, i32) {
    %c0_i32 = arith.constant 0 : i32
    %c0_i32_0 = arith.constant 0 : i32
    return %c0_i32, %arg1 : i32, i32
  }
  func.func @transform_3(%arg0: i32, %arg1: i32, %arg2: i32) -> (i32, i32) {
    %c0_i32 = arith.constant 0 : i32
    %c0_i32_0 = arith.constant 0 : i32
    return %c0_i32, %arg1 : i32, i32
  }
  func.func @transform_4(%arg0: i32, %arg1: i32, %arg2: i32) -> (i32, i32) {
    %c0_i32 = arith.constant 0 : i32
    return %arg0, %arg1 : i32, i32
  }
  func.func @transform_5(%arg0: i32, %arg1: i32, %arg2: i32) -> (i32, i32) {
    %c0_i32 = arith.constant 0 : i32
    return %arg0, %arg1 : i32, i32
  }
}

module attributes {stable_mosaic.version = 11 : i64} {
  func.func @_fused_matmul_kernel(%arg0: i32, %arg1: i32, %arg2: i32, %arg3: memref<16x384xbf16, #tpu.memory_space<vmem>>, %arg4: memref<384x256xbf16, #tpu.memory_space<vmem>>, %arg5: memref<1x256xf32, #tpu.memory_space<vmem>>, %arg6: memref<1x256xf32, #tpu.memory_space<vmem>>, %arg7: memref<16x256xbf16, #tpu.memory_space<vmem>>, %arg8: memref<16x256xf32, #tpu.memory_space<vmem>>) attributes {dimension_semantics = [#tpu.dimension_semantics<parallel>, #tpu.dimension_semantics<parallel>, #tpu.dimension_semantics<arbitrary>], iteration_bounds = array<i64: 1, 1, 3>, scalar_prefetch = 0 : i64, scratch_operands = 1 : i64, tpu.core_type = #tpu.core_type<tc>, window_params = [{transform_indices = @transform_0, window_bounds = array<i64: 16, 384>}, {transform_indices = @transform_1, window_bounds = array<i64: 384, 256>}, {transform_indices = @transform_2, window_bounds = array<i64: 1, 256>}, {transform_indices = @transform_3, window_bounds = array<i64: 1, 256>}, {transform_indices = @transform_4, window_bounds = array<i64: 16, 256>}]} {
    %c0_i32 = arith.constant 0 : i32
    %0 = arith.cmpi eq, %arg2, %c0_i32 : i32
    %1 = arith.extui %0 : i1 to i32
    %c0_i32_0 = arith.constant 0 : i32
    %2 = arith.cmpi ne, %1, %c0_i32_0 : i32
    scf.if %2 {
      %cst_9 = arith.constant 0.000000e+00 : f32
      %12 = vector.broadcast %cst_9 : f32 to vector<16x256xf32>
      %c0_10 = arith.constant 0 : index
      %c0_11 = arith.constant 0 : index
      %13 = vector.load %arg8[%c0_10, %c0_11] : memref<16x256xf32, #tpu.memory_space<vmem>>, vector<16x256xf32>
      tpu.vector_store %arg8[%c0_10, %c0_11], %12 {strides = array<i32>} : memref<16x256xf32, #tpu.memory_space<vmem>>, vector<16x256xf32>,
    } else {
    }
    %c0 = arith.constant 0 : index
    %c0_1 = arith.constant 0 : index
    %3 = vector.load %arg8[%c0, %c0_1] : memref<16x256xf32, #tpu.memory_space<vmem>>, vector<16x256xf32>
    %c0_2 = arith.constant 0 : index
    %c0_3 = arith.constant 0 : index
    %4 = vector.load %arg3[%c0_2, %c0_3] : memref<16x384xbf16, #tpu.memory_space<vmem>>, vector<16x384xbf16>
    %c0_4 = arith.constant 0 : index
    %c0_5 = arith.constant 0 : index
    %5 = vector.load %arg4[%c0_4, %c0_5] : memref<384x256xbf16, #tpu.memory_space<vmem>>, vector<384x256xbf16>
    %cst = arith.constant dense<0.000000e+00> : vector<16x256xf32>
    %6 = tpu.matmul %4, %5, %cst {dimension_numbers = #tpu.dot_dimension_numbers<[1], [0], [0], [1], [0, 0, 1, 1], [], []>} : vector<16x384xbf16>, vector<384x256xbf16>, vector<16x256xf32> -> vector<16x256xf32>
    %7 = arith.addf %3, %6 : vector<16x256xf32>
    %c0_6 = arith.constant 0 : index
    %c0_7 = arith.constant 0 : index
    %8 = vector.load %arg8[%c0_6, %c0_7] : memref<16x256xf32, #tpu.memory_space<vmem>>, vector<16x256xf32>
    tpu.vector_store %arg8[%c0_6, %c0_7], %7 {strides = array<i32>} : memref<16x256xf32, #tpu.memory_space<vmem>>, vector<16x256xf32>,
    %c2_i32 = arith.constant 2 : i32
    %9 = arith.cmpi eq, %arg2, %c2_i32 : i32
    %10 = arith.extui %9 : i1 to i32
    %c0_i32_8 = arith.constant 0 : i32
    %11 = arith.cmpi ne, %10, %c0_i32_8 : i32
    scf.if %11 {
      %c0_9 = arith.constant 0 : index
      %c0_10 = arith.constant 0 : index
      %12 = vector.load %arg8[%c0_9, %c0_10] : memref<16x256xf32, #tpu.memory_space<vmem>>, vector<16x256xf32>
      %c0_11 = arith.constant 0 : index
      %c0_12 = arith.constant 0 : index
      %13 = vector.load %arg5[%c0_11, %c0_12] : memref<1x256xf32, #tpu.memory_space<vmem>>, vector<1x256xf32>
      %14 = vector.broadcast %13 : vector<1x256xf32> to vector<16x256xf32>
      %15 = arith.mulf %12, %14 : vector<16x256xf32>
      %c0_13 = arith.constant 0 : index
      %c0_14 = arith.constant 0 : index
      %16 = vector.load %arg6[%c0_13, %c0_14] : memref<1x256xf32, #tpu.memory_space<vmem>>, vector<1x256xf32>
      %17 = vector.broadcast %16 : vector<1x256xf32> to vector<16x256xf32>
      %18 = arith.addf %15, %17 : vector<16x256xf32>
      %cst_15 = arith.constant 0.000000e+00 : f32
      %19 = vector.broadcast %cst_15 : f32 to vector<16x256xf32>
      %20 = arith.maximumf %18, %19 : vector<16x256xf32>
      %21 = arith.truncf %20 : vector<16x256xf32> to vector<16x256xbf16>
      %c0_16 = arith.constant 0 : index
      %c0_17 = arith.constant 0 : index
      %22 = vector.load %arg7[%c0_16, %c0_17] : memref<16x256xbf16, #tpu.memory_space<vmem>>, vector<16x256xbf16>
      tpu.vector_store %arg7[%c0_16, %c0_17], %21 {strides = array<i32>} : memref<16x256xbf16, #tpu.memory_space<vmem>>, vector<16x256xbf16>,
    } else {
    }
    return
  }
  func.func @transform_0(%arg0: i32, %arg1: i32, %arg2: i32) -> (i32, i32) {
    %c0_i32 = arith.constant 0 : i32
    return %arg0, %arg2 : i32, i32
  }
  func.func @transform_1(%arg0: i32, %arg1: i32, %arg2: i32) -> (i32, i32) {
    %c0_i32 = arith.constant 0 : i32
    return %arg2, %arg1 : i32, i32
  }
  func.func @transform_2(%arg0: i32, %arg1: i32, %arg2: i32) -> (i32, i32) {
    %c0_i32 = arith.constant 0 : i32
    %c0_i32_0 = arith.constant 0 : i32
    return %c0_i32, %arg1 : i32, i32
  }
  func.func @transform_3(%arg0: i32, %arg1: i32, %arg2: i32) -> (i32, i32) {
    %c0_i32 = arith.constant 0 : i32
    %c0_i32_0 = arith.constant 0 : i32
    return %c0_i32, %arg1 : i32, i32
  }
  func.func @transform_4(%arg0: i32, %arg1: i32, %arg2: i32) -> (i32, i32) {
    %c0_i32 = arith.constant 0 : i32
    return %arg0, %arg1 : i32, i32
  }
}

module attributes {stable_mosaic.version = 11 : i64} {
  func.func @_fused_matmul_kernel(%arg0: i32, %arg1: i32, %arg2: i32, %arg3: memref<16x128xbf16, #tpu.memory_space<vmem>>, %arg4: memref<128x256xbf16, #tpu.memory_space<vmem>>, %arg5: memref<1x256xf32, #tpu.memory_space<vmem>>, %arg6: memref<1x256xf32, #tpu.memory_space<vmem>>, %arg7: memref<16x256xbf16, #tpu.memory_space<vmem>>, %arg8: memref<16x256xf32, #tpu.memory_space<vmem>>) attributes {dimension_semantics = [#tpu.dimension_semantics<parallel>, #tpu.dimension_semantics<parallel>, #tpu.dimension_semantics<arbitrary>], iteration_bounds = array<i64: 1, 1, 1>, scalar_prefetch = 0 : i64, scratch_operands = 1 : i64, tpu.core_type = #tpu.core_type<tc>, window_params = [{transform_indices = @transform_0, window_bounds = array<i64: 16, 128>}, {transform_indices = @transform_1, window_bounds = array<i64: 128, 256>}, {transform_indices = @transform_2, window_bounds = array<i64: 1, 256>}, {transform_indices = @transform_3, window_bounds = array<i64: 1, 256>}, {transform_indices = @transform_4, window_bounds = array<i64: 16, 256>}]} {
    %c0_i32 = arith.constant 0 : i32
    %0 = arith.cmpi eq, %arg2, %c0_i32 : i32
    %1 = arith.extui %0 : i1 to i32
    %c0_i32_0 = arith.constant 0 : i32
    %2 = arith.cmpi ne, %1, %c0_i32_0 : i32
    scf.if %2 {
      %cst_10 = arith.constant 0.000000e+00 : f32
      %12 = vector.broadcast %cst_10 : f32 to vector<16x256xf32>
      %c0_11 = arith.constant 0 : index
      %c0_12 = arith.constant 0 : index
      %13 = vector.load %arg8[%c0_11, %c0_12] : memref<16x256xf32, #tpu.memory_space<vmem>>, vector<16x256xf32>
      tpu.vector_store %arg8[%c0_11, %c0_12], %12 {strides = array<i32>} : memref<16x256xf32, #tpu.memory_space<vmem>>, vector<16x256xf32>,
    } else {
    }
    %c0 = arith.constant 0 : index
    %c0_1 = arith.constant 0 : index
    %3 = vector.load %arg8[%c0, %c0_1] : memref<16x256xf32, #tpu.memory_space<vmem>>, vector<16x256xf32>
    %c0_2 = arith.constant 0 : index
    %c0_3 = arith.constant 0 : index
    %4 = vector.load %arg3[%c0_2, %c0_3] : memref<16x128xbf16, #tpu.memory_space<vmem>>, vector<16x128xbf16>
    %c0_4 = arith.constant 0 : index
    %c0_5 = arith.constant 0 : index
    %5 = vector.load %arg4[%c0_4, %c0_5] : memref<128x256xbf16, #tpu.memory_space<vmem>>, vector<128x256xbf16>
    %cst = arith.constant dense<0.000000e+00> : vector<16x256xf32>
    %6 = tpu.matmul %4, %5, %cst {dimension_numbers = #tpu.dot_dimension_numbers<[1], [0], [0], [1], [0, 0, 1, 1], [], []>} : vector<16x128xbf16>, vector<128x256xbf16>, vector<16x256xf32> -> vector<16x256xf32>
    %7 = arith.addf %3, %6 : vector<16x256xf32>
    %c0_6 = arith.constant 0 : index
    %c0_7 = arith.constant 0 : index
    %8 = vector.load %arg8[%c0_6, %c0_7] : memref<16x256xf32, #tpu.memory_space<vmem>>, vector<16x256xf32>
    tpu.vector_store %arg8[%c0_6, %c0_7], %7 {strides = array<i32>} : memref<16x256xf32, #tpu.memory_space<vmem>>, vector<16x256xf32>,
    %c0_i32_8 = arith.constant 0 : i32
    %9 = arith.cmpi eq, %arg2, %c0_i32_8 : i32
    %10 = arith.extui %9 : i1 to i32
    %c0_i32_9 = arith.constant 0 : i32
    %11 = arith.cmpi ne, %10, %c0_i32_9 : i32
    scf.if %11 {
      %c0_10 = arith.constant 0 : index
      %c0_11 = arith.constant 0 : index
      %12 = vector.load %arg8[%c0_10, %c0_11] : memref<16x256xf32, #tpu.memory_space<vmem>>, vector<16x256xf32>
      %c0_12 = arith.constant 0 : index
      %c0_13 = arith.constant 0 : index
      %13 = vector.load %arg5[%c0_12, %c0_13] : memref<1x256xf32, #tpu.memory_space<vmem>>, vector<1x256xf32>
      %14 = vector.broadcast %13 : vector<1x256xf32> to vector<16x256xf32>
      %15 = arith.mulf %12, %14 : vector<16x256xf32>
      %c0_14 = arith.constant 0 : index
      %c0_15 = arith.constant 0 : index
      %16 = vector.load %arg6[%c0_14, %c0_15] : memref<1x256xf32, #tpu.memory_space<vmem>>, vector<1x256xf32>
      %17 = vector.broadcast %16 : vector<1x256xf32> to vector<16x256xf32>
      %18 = arith.addf %15, %17 : vector<16x256xf32>
      %19 = arith.truncf %18 : vector<16x256xf32> to vector<16x256xbf16>
      %c0_16 = arith.constant 0 : index
      %c0_17 = arith.constant 0 : index
      %20 = vector.load %arg7[%c0_16, %c0_17] : memref<16x256xbf16, #tpu.memory_space<vmem>>, vector<16x256xbf16>
      tpu.vector_store %arg7[%c0_16, %c0_17], %19 {strides = array<i32>} : memref<16x256xbf16, #tpu.memory_space<vmem>>, vector<16x256xbf16>,
    } else {
    }
    return
  }
  func.func @transform_0(%arg0: i32, %arg1: i32, %arg2: i32) -> (i32, i32) {
    %c0_i32 = arith.constant 0 : i32
    return %arg0, %arg2 : i32, i32
  }
  func.func @transform_1(%arg0: i32, %arg1: i32, %arg2: i32) -> (i32, i32) {
    %c0_i32 = arith.constant 0 : i32
    return %arg2, %arg1 : i32, i32
  }
  func.func @transform_2(%arg0: i32, %arg1: i32, %arg2: i32) -> (i32, i32) {
    %c0_i32 = arith.constant 0 : i32
    %c0_i32_0 = arith.constant 0 : i32
    return %c0_i32, %arg1 : i32, i32
  }
  func.func @transform_3(%arg0: i32, %arg1: i32, %arg2: i32) -> (i32, i32) {
    %c0_i32 = arith.constant 0 : i32
    %c0_i32_0 = arith.constant 0 : i32
    return %c0_i32, %arg1 : i32, i32
  }
  func.func @transform_4(%arg0: i32, %arg1: i32, %arg2: i32) -> (i32, i32) {
    %c0_i32 = arith.constant 0 : i32
    return %arg0, %arg1 : i32, i32
  }
}

module attributes {stable_mosaic.version = 11 : i64} {
  func.func @_fused_matmul_kernel(%arg0: i32, %arg1: i32, %arg2: i32, %arg3: memref<16x384xbf16, #tpu.memory_space<vmem>>, %arg4: memref<384x256xbf16, #tpu.memory_space<vmem>>, %arg5: memref<1x256xf32, #tpu.memory_space<vmem>>, %arg6: memref<1x256xf32, #tpu.memory_space<vmem>>, %arg7: memref<16x256xbf16, #tpu.memory_space<vmem>>, %arg8: memref<16x256xbf16, #tpu.memory_space<vmem>>, %arg9: memref<16x256xf32, #tpu.memory_space<vmem>>) attributes {dimension_semantics = [#tpu.dimension_semantics<parallel>, #tpu.dimension_semantics<parallel>, #tpu.dimension_semantics<arbitrary>], iteration_bounds = array<i64: 1, 1, 6>, scalar_prefetch = 0 : i64, scratch_operands = 1 : i64, tpu.core_type = #tpu.core_type<tc>, window_params = [{transform_indices = @transform_0, window_bounds = array<i64: 16, 384>}, {transform_indices = @transform_1, window_bounds = array<i64: 384, 256>}, {transform_indices = @transform_2, window_bounds = array<i64: 1, 256>}, {transform_indices = @transform_3, window_bounds = array<i64: 1, 256>}, {transform_indices = @transform_4, window_bounds = array<i64: 16, 256>}, {transform_indices = @transform_5, window_bounds = array<i64: 16, 256>}]} {
    %c0_i32 = arith.constant 0 : i32
    %0 = arith.cmpi eq, %arg2, %c0_i32 : i32
    %1 = arith.extui %0 : i1 to i32
    %c0_i32_0 = arith.constant 0 : i32
    %2 = arith.cmpi ne, %1, %c0_i32_0 : i32
    scf.if %2 {
      %cst_9 = arith.constant 0.000000e+00 : f32
      %12 = vector.broadcast %cst_9 : f32 to vector<16x256xf32>
      %c0_10 = arith.constant 0 : index
      %c0_11 = arith.constant 0 : index
      %13 = vector.load %arg9[%c0_10, %c0_11] : memref<16x256xf32, #tpu.memory_space<vmem>>, vector<16x256xf32>
      tpu.vector_store %arg9[%c0_10, %c0_11], %12 {strides = array<i32>} : memref<16x256xf32, #tpu.memory_space<vmem>>, vector<16x256xf32>,
    } else {
    }
    %c0 = arith.constant 0 : index
    %c0_1 = arith.constant 0 : index
    %3 = vector.load %arg9[%c0, %c0_1] : memref<16x256xf32, #tpu.memory_space<vmem>>, vector<16x256xf32>
    %c0_2 = arith.constant 0 : index
    %c0_3 = arith.constant 0 : index
    %4 = vector.load %arg3[%c0_2, %c0_3] : memref<16x384xbf16, #tpu.memory_space<vmem>>, vector<16x384xbf16>
    %c0_4 = arith.constant 0 : index
    %c0_5 = arith.constant 0 : index
    %5 = vector.load %arg4[%c0_4, %c0_5] : memref<384x256xbf16, #tpu.memory_space<vmem>>, vector<384x256xbf16>
    %cst = arith.constant dense<0.000000e+00> : vector<16x256xf32>
    %6 = tpu.matmul %4, %5, %cst {dimension_numbers = #tpu.dot_dimension_numbers<[1], [0], [0], [1], [0, 0, 1, 1], [], []>} : vector<16x384xbf16>, vector<384x256xbf16>, vector<16x256xf32> -> vector<16x256xf32>
    %7 = arith.addf %3, %6 : vector<16x256xf32>
    %c0_6 = arith.constant 0 : index
    %c0_7 = arith.constant 0 : index
    %8 = vector.load %arg9[%c0_6, %c0_7] : memref<16x256xf32, #tpu.memory_space<vmem>>, vector<16x256xf32>
    tpu.vector_store %arg9[%c0_6, %c0_7], %7 {strides = array<i32>} : memref<16x256xf32, #tpu.memory_space<vmem>>, vector<16x256xf32>,
    %c5_i32 = arith.constant 5 : i32
    %9 = arith.cmpi eq, %arg2, %c5_i32 : i32
    %10 = arith.extui %9 : i1 to i32
    %c0_i32_8 = arith.constant 0 : i32
    %11 = arith.cmpi ne, %10, %c0_i32_8 : i32
    scf.if %11 {
      %c0_9 = arith.constant 0 : index
      %c0_10 = arith.constant 0 : index
      %12 = vector.load %arg9[%c0_9, %c0_10] : memref<16x256xf32, #tpu.memory_space<vmem>>, vector<16x256xf32>
      %c0_11 = arith.constant 0 : index
      %c0_12 = arith.constant 0 : index
      %13 = vector.load %arg5[%c0_11, %c0_12] : memref<1x256xf32, #tpu.memory_space<vmem>>, vector<1x256xf32>
      %14 = vector.broadcast %13 : vector<1x256xf32> to vector<16x256xf32>
      %15 = arith.mulf %12, %14 : vector<16x256xf32>
      %c0_13 = arith.constant 0 : index
      %c0_14 = arith.constant 0 : index
      %16 = vector.load %arg6[%c0_13, %c0_14] : memref<1x256xf32, #tpu.memory_space<vmem>>, vector<1x256xf32>
      %17 = vector.broadcast %16 : vector<1x256xf32> to vector<16x256xf32>
      %18 = arith.addf %15, %17 : vector<16x256xf32>
      %c0_15 = arith.constant 0 : index
      %c0_16 = arith.constant 0 : index
      %19 = vector.load %arg7[%c0_15, %c0_16] : memref<16x256xbf16, #tpu.memory_space<vmem>>, vector<16x256xbf16>
      %20 = arith.extf %19 : vector<16x256xbf16> to vector<16x256xf32>
      %21 = arith.addf %18, %20 : vector<16x256xf32>
      %cst_17 = arith.constant 0.000000e+00 : f32
      %22 = vector.broadcast %cst_17 : f32 to vector<16x256xf32>
      %23 = arith.maximumf %21, %22 : vector<16x256xf32>
      %24 = arith.truncf %23 : vector<16x256xf32> to vector<16x256xbf16>
      %c0_18 = arith.constant 0 : index
      %c0_19 = arith.constant 0 : index
      %25 = vector.load %arg8[%c0_18, %c0_19] : memref<16x256xbf16, #tpu.memory_space<vmem>>, vector<16x256xbf16>
      tpu.vector_store %arg8[%c0_18, %c0_19], %24 {strides = array<i32>} : memref<16x256xbf16, #tpu.memory_space<vmem>>, vector<16x256xbf16>,
    } else {
    }
    return
  }
  func.func @transform_0(%arg0: i32, %arg1: i32, %arg2: i32) -> (i32, i32) {
    %c0_i32 = arith.constant 0 : i32
    return %arg0, %arg2 : i32, i32
  }
  func.func @transform_1(%arg0: i32, %arg1: i32, %arg2: i32) -> (i32, i32) {
    %c0_i32 = arith.constant 0 : i32
    return %arg2, %arg1 : i32, i32
  }
  func.func @transform_2(%arg0: i32, %arg1: i32, %arg2: i32) -> (i32, i32) {
    %c0_i32 = arith.constant 0 : i32
    %c0_i32_0 = arith.constant 0 : i32
    return %c0_i32, %arg1 : i32, i32
  }
  func.func @transform_3(%arg0: i32, %arg1: i32, %arg2: i32) -> (i32, i32) {
    %c0_i32 = arith.constant 0 : i32
    %c0_i32_0 = arith.constant 0 : i32
    return %c0_i32, %arg1 : i32, i32
  }
  func.func @transform_4(%arg0: i32, %arg1: i32, %arg2: i32) -> (i32, i32) {
    %c0_i32 = arith.constant 0 : i32
    return %arg0, %arg1 : i32, i32
  }
  func.func @transform_5(%arg0: i32, %arg1: i32, %arg2: i32) -> (i32, i32) {
    %c0_i32 = arith.constant 0 : i32
    return %arg0, %arg1 : i32, i32
  }
}

module attributes {stable_mosaic.version = 11 : i64} {
  func.func @_fused_matmul_kernel(%arg0: i32, %arg1: i32, %arg2: i32, %arg3: memref<16x384xbf16, #tpu.memory_space<vmem>>, %arg4: memref<384x256xbf16, #tpu.memory_space<vmem>>, %arg5: memref<1x256xf32, #tpu.memory_space<vmem>>, %arg6: memref<1x256xf32, #tpu.memory_space<vmem>>, %arg7: memref<16x256xbf16, #tpu.memory_space<vmem>>, %arg8: memref<16x256xf32, #tpu.memory_space<vmem>>) attributes {dimension_semantics = [#tpu.dimension_semantics<parallel>, #tpu.dimension_semantics<parallel>, #tpu.dimension_semantics<arbitrary>], iteration_bounds = array<i64: 1, 1, 6>, scalar_prefetch = 0 : i64, scratch_operands = 1 : i64, tpu.core_type = #tpu.core_type<tc>, window_params = [{transform_indices = @transform_0, window_bounds = array<i64: 16, 384>}, {transform_indices = @transform_1, window_bounds = array<i64: 384, 256>}, {transform_indices = @transform_2, window_bounds = array<i64: 1, 256>}, {transform_indices = @transform_3, window_bounds = array<i64: 1, 256>}, {transform_indices = @transform_4, window_bounds = array<i64: 16, 256>}]} {
    %c0_i32 = arith.constant 0 : i32
    %0 = arith.cmpi eq, %arg2, %c0_i32 : i32
    %1 = arith.extui %0 : i1 to i32
    %c0_i32_0 = arith.constant 0 : i32
    %2 = arith.cmpi ne, %1, %c0_i32_0 : i32
    scf.if %2 {
      %cst_9 = arith.constant 0.000000e+00 : f32
      %12 = vector.broadcast %cst_9 : f32 to vector<16x256xf32>
      %c0_10 = arith.constant 0 : index
      %c0_11 = arith.constant 0 : index
      %13 = vector.load %arg8[%c0_10, %c0_11] : memref<16x256xf32, #tpu.memory_space<vmem>>, vector<16x256xf32>
      tpu.vector_store %arg8[%c0_10, %c0_11], %12 {strides = array<i32>} : memref<16x256xf32, #tpu.memory_space<vmem>>, vector<16x256xf32>,
    } else {
    }
    %c0 = arith.constant 0 : index
    %c0_1 = arith.constant 0 : index
    %3 = vector.load %arg8[%c0, %c0_1] : memref<16x256xf32, #tpu.memory_space<vmem>>, vector<16x256xf32>
    %c0_2 = arith.constant 0 : index
    %c0_3 = arith.constant 0 : index
    %4 = vector.load %arg3[%c0_2, %c0_3] : memref<16x384xbf16, #tpu.memory_space<vmem>>, vector<16x384xbf16>
    %c0_4 = arith.constant 0 : index
    %c0_5 = arith.constant 0 : index
    %5 = vector.load %arg4[%c0_4, %c0_5] : memref<384x256xbf16, #tpu.memory_space<vmem>>, vector<384x256xbf16>
    %cst = arith.constant dense<0.000000e+00> : vector<16x256xf32>
    %6 = tpu.matmul %4, %5, %cst {dimension_numbers = #tpu.dot_dimension_numbers<[1], [0], [0], [1], [0, 0, 1, 1], [], []>} : vector<16x384xbf16>, vector<384x256xbf16>, vector<16x256xf32> -> vector<16x256xf32>
    %7 = arith.addf %3, %6 : vector<16x256xf32>
    %c0_6 = arith.constant 0 : index
    %c0_7 = arith.constant 0 : index
    %8 = vector.load %arg8[%c0_6, %c0_7] : memref<16x256xf32, #tpu.memory_space<vmem>>, vector<16x256xf32>
    tpu.vector_store %arg8[%c0_6, %c0_7], %7 {strides = array<i32>} : memref<16x256xf32, #tpu.memory_space<vmem>>, vector<16x256xf32>,
    %c5_i32 = arith.constant 5 : i32
    %9 = arith.cmpi eq, %arg2, %c5_i32 : i32
    %10 = arith.extui %9 : i1 to i32
    %c0_i32_8 = arith.constant 0 : i32
    %11 = arith.cmpi ne, %10, %c0_i32_8 : i32
    scf.if %11 {
      %c0_9 = arith.constant 0 : index
      %c0_10 = arith.constant 0 : index
      %12 = vector.load %arg8[%c0_9, %c0_10] : memref<16x256xf32, #tpu.memory_space<vmem>>, vector<16x256xf32>
      %c0_11 = arith.constant 0 : index
      %c0_12 = arith.constant 0 : index
      %13 = vector.load %arg5[%c0_11, %c0_12] : memref<1x256xf32, #tpu.memory_space<vmem>>, vector<1x256xf32>
      %14 = vector.broadcast %13 : vector<1x256xf32> to vector<16x256xf32>
      %15 = arith.mulf %12, %14 : vector<16x256xf32>
      %c0_13 = arith.constant 0 : index
      %c0_14 = arith.constant 0 : index
      %16 = vector.load %arg6[%c0_13, %c0_14] : memref<1x256xf32, #tpu.memory_space<vmem>>, vector<1x256xf32>
      %17 = vector.broadcast %16 : vector<1x256xf32> to vector<16x256xf32>
      %18 = arith.addf %15, %17 : vector<16x256xf32>
      %cst_15 = arith.constant 0.000000e+00 : f32
      %19 = vector.broadcast %cst_15 : f32 to vector<16x256xf32>
      %20 = arith.maximumf %18, %19 : vector<16x256xf32>
      %21 = arith.truncf %20 : vector<16x256xf32> to vector<16x256xbf16>
      %c0_16 = arith.constant 0 : index
      %c0_17 = arith.constant 0 : index
      %22 = vector.load %arg7[%c0_16, %c0_17] : memref<16x256xbf16, #tpu.memory_space<vmem>>, vector<16x256xbf16>
      tpu.vector_store %arg7[%c0_16, %c0_17], %21 {strides = array<i32>} : memref<16x256xbf16, #tpu.memory_space<vmem>>, vector<16x256xbf16>,
    } else {
    }
    return
  }
  func.func @transform_0(%arg0: i32, %arg1: i32, %arg2: i32) -> (i32, i32) {
    %c0_i32 = arith.constant 0 : i32
    return %arg0, %arg2 : i32, i32
  }
  func.func @transform_1(%arg0: i32, %arg1: i32, %arg2: i32) -> (i32, i32) {
    %c0_i32 = arith.constant 0 : i32
    return %arg2, %arg1 : i32, i32
  }
  func.func @transform_2(%arg0: i32, %arg1: i32, %arg2: i32) -> (i32, i32) {
    %c0_i32 = arith.constant 0 : i32
    %c0_i32_0 = arith.constant 0 : i32
    return %c0_i32, %arg1 : i32, i32
  }
  func.func @transform_3(%arg0: i32, %arg1: i32, %arg2: i32) -> (i32, i32) {
    %c0_i32 = arith.constant 0 : i32
    %c0_i32_0 = arith.constant 0 : i32
    return %c0_i32, %arg1 : i32, i32
  }
  func.func @transform_4(%arg0: i32, %arg1: i32, %arg2: i32) -> (i32, i32) {
    %c0_i32 = arith.constant 0 : i32
    return %arg0, %arg1 : i32, i32
  }
}

module attributes {stable_mosaic.version = 11 : i64} {
  func.func @_fused_matmul_kernel(%arg0: i32, %arg1: i32, %arg2: i32, %arg3: memref<16x384xbf16, #tpu.memory_space<vmem>>, %arg4: memref<384x256xbf16, #tpu.memory_space<vmem>>, %arg5: memref<1x256xf32, #tpu.memory_space<vmem>>, %arg6: memref<1x256xf32, #tpu.memory_space<vmem>>, %arg7: memref<16x256xbf16, #tpu.memory_space<vmem>>, %arg8: memref<16x256xf32, #tpu.memory_space<vmem>>) attributes {dimension_semantics = [#tpu.dimension_semantics<parallel>, #tpu.dimension_semantics<parallel>, #tpu.dimension_semantics<arbitrary>], iteration_bounds = array<i64: 1, 2, 6>, scalar_prefetch = 0 : i64, scratch_operands = 1 : i64, tpu.core_type = #tpu.core_type<tc>, window_params = [{transform_indices = @transform_0, window_bounds = array<i64: 16, 384>}, {transform_indices = @transform_1, window_bounds = array<i64: 384, 256>}, {transform_indices = @transform_2, window_bounds = array<i64: 1, 256>}, {transform_indices = @transform_3, window_bounds = array<i64: 1, 256>}, {transform_indices = @transform_4, window_bounds = array<i64: 16, 256>}]} {
    %c0_i32 = arith.constant 0 : i32
    %0 = arith.cmpi eq, %arg2, %c0_i32 : i32
    %1 = arith.extui %0 : i1 to i32
    %c0_i32_0 = arith.constant 0 : i32
    %2 = arith.cmpi ne, %1, %c0_i32_0 : i32
    scf.if %2 {
      %cst_9 = arith.constant 0.000000e+00 : f32
      %12 = vector.broadcast %cst_9 : f32 to vector<16x256xf32>
      %c0_10 = arith.constant 0 : index
      %c0_11 = arith.constant 0 : index
      %13 = vector.load %arg8[%c0_10, %c0_11] : memref<16x256xf32, #tpu.memory_space<vmem>>, vector<16x256xf32>
      tpu.vector_store %arg8[%c0_10, %c0_11], %12 {strides = array<i32>} : memref<16x256xf32, #tpu.memory_space<vmem>>, vector<16x256xf32>,
    } else {
    }
    %c0 = arith.constant 0 : index
    %c0_1 = arith.constant 0 : index
    %3 = vector.load %arg8[%c0, %c0_1] : memref<16x256xf32, #tpu.memory_space<vmem>>, vector<16x256xf32>
    %c0_2 = arith.constant 0 : index
    %c0_3 = arith.constant 0 : index
    %4 = vector.load %arg3[%c0_2, %c0_3] : memref<16x384xbf16, #tpu.memory_space<vmem>>, vector<16x384xbf16>
    %c0_4 = arith.constant 0 : index
    %c0_5 = arith.constant 0 : index
    %5 = vector.load %arg4[%c0_4, %c0_5] : memref<384x256xbf16, #tpu.memory_space<vmem>>, vector<384x256xbf16>
    %cst = arith.constant dense<0.000000e+00> : vector<16x256xf32>
    %6 = tpu.matmul %4, %5, %cst {dimension_numbers = #tpu.dot_dimension_numbers<[1], [0], [0], [1], [0, 0, 1, 1], [], []>} : vector<16x384xbf16>, vector<384x256xbf16>, vector<16x256xf32> -> vector<16x256xf32>
    %7 = arith.addf %3, %6 : vector<16x256xf32>
    %c0_6 = arith.constant 0 : index
    %c0_7 = arith.constant 0 : index
    %8 = vector.load %arg8[%c0_6, %c0_7] : memref<16x256xf32, #tpu.memory_space<vmem>>, vector<16x256xf32>
    tpu.vector_store %arg8[%c0_6, %c0_7], %7 {strides = array<i32>} : memref<16x256xf32, #tpu.memory_space<vmem>>, vector<16x256xf32>,
    %c5_i32 = arith.constant 5 : i32
    %9 = arith.cmpi eq, %arg2, %c5_i32 : i32
    %10 = arith.extui %9 : i1 to i32
    %c0_i32_8 = arith.constant 0 : i32
    %11 = arith.cmpi ne, %10, %c0_i32_8 : i32
    scf.if %11 {
      %c0_9 = arith.constant 0 : index
      %c0_10 = arith.constant 0 : index
      %12 = vector.load %arg8[%c0_9, %c0_10] : memref<16x256xf32, #tpu.memory_space<vmem>>, vector<16x256xf32>
      %c0_11 = arith.constant 0 : index
      %c0_12 = arith.constant 0 : index
      %13 = vector.load %arg5[%c0_11, %c0_12] : memref<1x256xf32, #tpu.memory_space<vmem>>, vector<1x256xf32>
      %14 = vector.broadcast %13 : vector<1x256xf32> to vector<16x256xf32>
      %15 = arith.mulf %12, %14 : vector<16x256xf32>
      %c0_13 = arith.constant 0 : index
      %c0_14 = arith.constant 0 : index
      %16 = vector.load %arg6[%c0_13, %c0_14] : memref<1x256xf32, #tpu.memory_space<vmem>>, vector<1x256xf32>
      %17 = vector.broadcast %16 : vector<1x256xf32> to vector<16x256xf32>
      %18 = arith.addf %15, %17 : vector<16x256xf32>
      %cst_15 = arith.constant 0.000000e+00 : f32
      %19 = vector.broadcast %cst_15 : f32 to vector<16x256xf32>
      %20 = arith.maximumf %18, %19 : vector<16x256xf32>
      %21 = arith.truncf %20 : vector<16x256xf32> to vector<16x256xbf16>
      %c0_16 = arith.constant 0 : index
      %c0_17 = arith.constant 0 : index
      %22 = vector.load %arg7[%c0_16, %c0_17] : memref<16x256xbf16, #tpu.memory_space<vmem>>, vector<16x256xbf16>
      tpu.vector_store %arg7[%c0_16, %c0_17], %21 {strides = array<i32>} : memref<16x256xbf16, #tpu.memory_space<vmem>>, vector<16x256xbf16>,
    } else {
    }
    return
  }
  func.func @transform_0(%arg0: i32, %arg1: i32, %arg2: i32) -> (i32, i32) {
    %c0_i32 = arith.constant 0 : i32
    return %arg0, %arg2 : i32, i32
  }
  func.func @transform_1(%arg0: i32, %arg1: i32, %arg2: i32) -> (i32, i32) {
    %c0_i32 = arith.constant 0 : i32
    return %arg2, %arg1 : i32, i32
  }
  func.func @transform_2(%arg0: i32, %arg1: i32, %arg2: i32) -> (i32, i32) {
    %c0_i32 = arith.constant 0 : i32
    %c0_i32_0 = arith.constant 0 : i32
    return %c0_i32, %arg1 : i32, i32
  }
  func.func @transform_3(%arg0: i32, %arg1: i32, %arg2: i32) -> (i32, i32) {
    %c0_i32 = arith.constant 0 : i32
    %c0_i32_0 = arith.constant 0 : i32
    return %c0_i32, %arg1 : i32, i32
  }
  func.func @transform_4(%arg0: i32, %arg1: i32, %arg2: i32) -> (i32, i32) {
    %c0_i32 = arith.constant 0 : i32
    return %arg0, %arg1 : i32, i32
  }
}

module attributes {stable_mosaic.version = 11 : i64} {
  func.func @_fused_matmul_kernel(%arg0: i32, %arg1: i32, %arg2: i32, %arg3: memref<16x256xbf16, #tpu.memory_space<vmem>>, %arg4: memref<256x256xbf16, #tpu.memory_space<vmem>>, %arg5: memref<1x256xf32, #tpu.memory_space<vmem>>, %arg6: memref<1x256xf32, #tpu.memory_space<vmem>>, %arg7: memref<16x256xbf16, #tpu.memory_space<vmem>>, %arg8: memref<16x256xf32, #tpu.memory_space<vmem>>) attributes {dimension_semantics = [#tpu.dimension_semantics<parallel>, #tpu.dimension_semantics<parallel>, #tpu.dimension_semantics<arbitrary>], iteration_bounds = array<i64: 1, 2, 1>, scalar_prefetch = 0 : i64, scratch_operands = 1 : i64, tpu.core_type = #tpu.core_type<tc>, window_params = [{transform_indices = @transform_0, window_bounds = array<i64: 16, 256>}, {transform_indices = @transform_1, window_bounds = array<i64: 256, 256>}, {transform_indices = @transform_2, window_bounds = array<i64: 1, 256>}, {transform_indices = @transform_3, window_bounds = array<i64: 1, 256>}, {transform_indices = @transform_4, window_bounds = array<i64: 16, 256>}]} {
    %c0_i32 = arith.constant 0 : i32
    %0 = arith.cmpi eq, %arg2, %c0_i32 : i32
    %1 = arith.extui %0 : i1 to i32
    %c0_i32_0 = arith.constant 0 : i32
    %2 = arith.cmpi ne, %1, %c0_i32_0 : i32
    scf.if %2 {
      %cst_10 = arith.constant 0.000000e+00 : f32
      %12 = vector.broadcast %cst_10 : f32 to vector<16x256xf32>
      %c0_11 = arith.constant 0 : index
      %c0_12 = arith.constant 0 : index
      %13 = vector.load %arg8[%c0_11, %c0_12] : memref<16x256xf32, #tpu.memory_space<vmem>>, vector<16x256xf32>
      tpu.vector_store %arg8[%c0_11, %c0_12], %12 {strides = array<i32>} : memref<16x256xf32, #tpu.memory_space<vmem>>, vector<16x256xf32>,
    } else {
    }
    %c0 = arith.constant 0 : index
    %c0_1 = arith.constant 0 : index
    %3 = vector.load %arg8[%c0, %c0_1] : memref<16x256xf32, #tpu.memory_space<vmem>>, vector<16x256xf32>
    %c0_2 = arith.constant 0 : index
    %c0_3 = arith.constant 0 : index
    %4 = vector.load %arg3[%c0_2, %c0_3] : memref<16x256xbf16, #tpu.memory_space<vmem>>, vector<16x256xbf16>
    %c0_4 = arith.constant 0 : index
    %c0_5 = arith.constant 0 : index
    %5 = vector.load %arg4[%c0_4, %c0_5] : memref<256x256xbf16, #tpu.memory_space<vmem>>, vector<256x256xbf16>
    %cst = arith.constant dense<0.000000e+00> : vector<16x256xf32>
    %6 = tpu.matmul %4, %5, %cst {dimension_numbers = #tpu.dot_dimension_numbers<[1], [0], [0], [1], [0, 0, 1, 1], [], []>} : vector<16x256xbf16>, vector<256x256xbf16>, vector<16x256xf32> -> vector<16x256xf32>
    %7 = arith.addf %3, %6 : vector<16x256xf32>
    %c0_6 = arith.constant 0 : index
    %c0_7 = arith.constant 0 : index
    %8 = vector.load %arg8[%c0_6, %c0_7] : memref<16x256xf32, #tpu.memory_space<vmem>>, vector<16x256xf32>
    tpu.vector_store %arg8[%c0_6, %c0_7], %7 {strides = array<i32>} : memref<16x256xf32, #tpu.memory_space<vmem>>, vector<16x256xf32>,
    %c0_i32_8 = arith.constant 0 : i32
    %9 = arith.cmpi eq, %arg2, %c0_i32_8 : i32
    %10 = arith.extui %9 : i1 to i32
    %c0_i32_9 = arith.constant 0 : i32
    %11 = arith.cmpi ne, %10, %c0_i32_9 : i32
    scf.if %11 {
      %c0_10 = arith.constant 0 : index
      %c0_11 = arith.constant 0 : index
      %12 = vector.load %arg8[%c0_10, %c0_11] : memref<16x256xf32, #tpu.memory_space<vmem>>, vector<16x256xf32>
      %c0_12 = arith.constant 0 : index
      %c0_13 = arith.constant 0 : index
      %13 = vector.load %arg5[%c0_12, %c0_13] : memref<1x256xf32, #tpu.memory_space<vmem>>, vector<1x256xf32>
      %14 = vector.broadcast %13 : vector<1x256xf32> to vector<16x256xf32>
      %15 = arith.mulf %12, %14 : vector<16x256xf32>
      %c0_14 = arith.constant 0 : index
      %c0_15 = arith.constant 0 : index
      %16 = vector.load %arg6[%c0_14, %c0_15] : memref<1x256xf32, #tpu.memory_space<vmem>>, vector<1x256xf32>
      %17 = vector.broadcast %16 : vector<1x256xf32> to vector<16x256xf32>
      %18 = arith.addf %15, %17 : vector<16x256xf32>
      %19 = arith.truncf %18 : vector<16x256xf32> to vector<16x256xbf16>
      %c0_16 = arith.constant 0 : index
      %c0_17 = arith.constant 0 : index
      %20 = vector.load %arg7[%c0_16, %c0_17] : memref<16x256xbf16, #tpu.memory_space<vmem>>, vector<16x256xbf16>
      tpu.vector_store %arg7[%c0_16, %c0_17], %19 {strides = array<i32>} : memref<16x256xbf16, #tpu.memory_space<vmem>>, vector<16x256xbf16>,
    } else {
    }
    return
  }
  func.func @transform_0(%arg0: i32, %arg1: i32, %arg2: i32) -> (i32, i32) {
    %c0_i32 = arith.constant 0 : i32
    return %arg0, %arg2 : i32, i32
  }
  func.func @transform_1(%arg0: i32, %arg1: i32, %arg2: i32) -> (i32, i32) {
    %c0_i32 = arith.constant 0 : i32
    return %arg2, %arg1 : i32, i32
  }
  func.func @transform_2(%arg0: i32, %arg1: i32, %arg2: i32) -> (i32, i32) {
    %c0_i32 = arith.constant 0 : i32
    %c0_i32_0 = arith.constant 0 : i32
    return %c0_i32, %arg1 : i32, i32
  }
  func.func @transform_3(%arg0: i32, %arg1: i32, %arg2: i32) -> (i32, i32) {
    %c0_i32 = arith.constant 0 : i32
    %c0_i32_0 = arith.constant 0 : i32
    return %c0_i32, %arg1 : i32, i32
  }
  func.func @transform_4(%arg0: i32, %arg1: i32, %arg2: i32) -> (i32, i32) {
    %c0_i32 = arith.constant 0 : i32
    return %arg0, %arg1 : i32, i32
  }
}

module attributes {stable_mosaic.version = 11 : i64} {
  func.func @_fused_matmul_kernel(%arg0: i32, %arg1: i32, %arg2: i32, %arg3: memref<16x512xbf16, #tpu.memory_space<vmem>>, %arg4: memref<512x256xbf16, #tpu.memory_space<vmem>>, %arg5: memref<1x256xf32, #tpu.memory_space<vmem>>, %arg6: memref<1x256xf32, #tpu.memory_space<vmem>>, %arg7: memref<16x256xbf16, #tpu.memory_space<vmem>>, %arg8: memref<16x256xbf16, #tpu.memory_space<vmem>>, %arg9: memref<16x256xf32, #tpu.memory_space<vmem>>) attributes {dimension_semantics = [#tpu.dimension_semantics<parallel>, #tpu.dimension_semantics<parallel>, #tpu.dimension_semantics<arbitrary>], iteration_bounds = array<i64: 1, 2, 9>, scalar_prefetch = 0 : i64, scratch_operands = 1 : i64, tpu.core_type = #tpu.core_type<tc>, window_params = [{transform_indices = @transform_0, window_bounds = array<i64: 16, 512>}, {transform_indices = @transform_1, window_bounds = array<i64: 512, 256>}, {transform_indices = @transform_2, window_bounds = array<i64: 1, 256>}, {transform_indices = @transform_3, window_bounds = array<i64: 1, 256>}, {transform_indices = @transform_4, window_bounds = array<i64: 16, 256>}, {transform_indices = @transform_5, window_bounds = array<i64: 16, 256>}]} {
    %c0_i32 = arith.constant 0 : i32
    %0 = arith.cmpi eq, %arg2, %c0_i32 : i32
    %1 = arith.extui %0 : i1 to i32
    %c0_i32_0 = arith.constant 0 : i32
    %2 = arith.cmpi ne, %1, %c0_i32_0 : i32
    scf.if %2 {
      %cst_9 = arith.constant 0.000000e+00 : f32
      %12 = vector.broadcast %cst_9 : f32 to vector<16x256xf32>
      %c0_10 = arith.constant 0 : index
      %c0_11 = arith.constant 0 : index
      %13 = vector.load %arg9[%c0_10, %c0_11] : memref<16x256xf32, #tpu.memory_space<vmem>>, vector<16x256xf32>
      tpu.vector_store %arg9[%c0_10, %c0_11], %12 {strides = array<i32>} : memref<16x256xf32, #tpu.memory_space<vmem>>, vector<16x256xf32>,
    } else {
    }
    %c0 = arith.constant 0 : index
    %c0_1 = arith.constant 0 : index
    %3 = vector.load %arg9[%c0, %c0_1] : memref<16x256xf32, #tpu.memory_space<vmem>>, vector<16x256xf32>
    %c0_2 = arith.constant 0 : index
    %c0_3 = arith.constant 0 : index
    %4 = vector.load %arg3[%c0_2, %c0_3] : memref<16x512xbf16, #tpu.memory_space<vmem>>, vector<16x512xbf16>
    %c0_4 = arith.constant 0 : index
    %c0_5 = arith.constant 0 : index
    %5 = vector.load %arg4[%c0_4, %c0_5] : memref<512x256xbf16, #tpu.memory_space<vmem>>, vector<512x256xbf16>
    %cst = arith.constant dense<0.000000e+00> : vector<16x256xf32>
    %6 = tpu.matmul %4, %5, %cst {dimension_numbers = #tpu.dot_dimension_numbers<[1], [0], [0], [1], [0, 0, 1, 1], [], []>} : vector<16x512xbf16>, vector<512x256xbf16>, vector<16x256xf32> -> vector<16x256xf32>
    %7 = arith.addf %3, %6 : vector<16x256xf32>
    %c0_6 = arith.constant 0 : index
    %c0_7 = arith.constant 0 : index
    %8 = vector.load %arg9[%c0_6, %c0_7] : memref<16x256xf32, #tpu.memory_space<vmem>>, vector<16x256xf32>
    tpu.vector_store %arg9[%c0_6, %c0_7], %7 {strides = array<i32>} : memref<16x256xf32, #tpu.memory_space<vmem>>, vector<16x256xf32>,
    %c8_i32 = arith.constant 8 : i32
    %9 = arith.cmpi eq, %arg2, %c8_i32 : i32
    %10 = arith.extui %9 : i1 to i32
    %c0_i32_8 = arith.constant 0 : i32
    %11 = arith.cmpi ne, %10, %c0_i32_8 : i32
    scf.if %11 {
      %c0_9 = arith.constant 0 : index
      %c0_10 = arith.constant 0 : index
      %12 = vector.load %arg9[%c0_9, %c0_10] : memref<16x256xf32, #tpu.memory_space<vmem>>, vector<16x256xf32>
      %c0_11 = arith.constant 0 : index
      %c0_12 = arith.constant 0 : index
      %13 = vector.load %arg5[%c0_11, %c0_12] : memref<1x256xf32, #tpu.memory_space<vmem>>, vector<1x256xf32>
      %14 = vector.broadcast %13 : vector<1x256xf32> to vector<16x256xf32>
      %15 = arith.mulf %12, %14 : vector<16x256xf32>
      %c0_13 = arith.constant 0 : index
      %c0_14 = arith.constant 0 : index
      %16 = vector.load %arg6[%c0_13, %c0_14] : memref<1x256xf32, #tpu.memory_space<vmem>>, vector<1x256xf32>
      %17 = vector.broadcast %16 : vector<1x256xf32> to vector<16x256xf32>
      %18 = arith.addf %15, %17 : vector<16x256xf32>
      %c0_15 = arith.constant 0 : index
      %c0_16 = arith.constant 0 : index
      %19 = vector.load %arg7[%c0_15, %c0_16] : memref<16x256xbf16, #tpu.memory_space<vmem>>, vector<16x256xbf16>
      %20 = arith.extf %19 : vector<16x256xbf16> to vector<16x256xf32>
      %21 = arith.addf %18, %20 : vector<16x256xf32>
      %cst_17 = arith.constant 0.000000e+00 : f32
      %22 = vector.broadcast %cst_17 : f32 to vector<16x256xf32>
      %23 = arith.maximumf %21, %22 : vector<16x256xf32>
      %24 = arith.truncf %23 : vector<16x256xf32> to vector<16x256xbf16>
      %c0_18 = arith.constant 0 : index
      %c0_19 = arith.constant 0 : index
      %25 = vector.load %arg8[%c0_18, %c0_19] : memref<16x256xbf16, #tpu.memory_space<vmem>>, vector<16x256xbf16>
      tpu.vector_store %arg8[%c0_18, %c0_19], %24 {strides = array<i32>} : memref<16x256xbf16, #tpu.memory_space<vmem>>, vector<16x256xbf16>,
    } else {
    }
    return
  }
  func.func @transform_0(%arg0: i32, %arg1: i32, %arg2: i32) -> (i32, i32) {
    %c0_i32 = arith.constant 0 : i32
    return %arg0, %arg2 : i32, i32
  }
  func.func @transform_1(%arg0: i32, %arg1: i32, %arg2: i32) -> (i32, i32) {
    %c0_i32 = arith.constant 0 : i32
    return %arg2, %arg1 : i32, i32
  }
  func.func @transform_2(%arg0: i32, %arg1: i32, %arg2: i32) -> (i32, i32) {
    %c0_i32 = arith.constant 0 : i32
    %c0_i32_0 = arith.constant 0 : i32
    return %c0_i32, %arg1 : i32, i32
  }
  func.func @transform_3(%arg0: i32, %arg1: i32, %arg2: i32) -> (i32, i32) {
    %c0_i32 = arith.constant 0 : i32
    %c0_i32_0 = arith.constant 0 : i32
    return %c0_i32, %arg1 : i32, i32
  }
  func.func @transform_4(%arg0: i32, %arg1: i32, %arg2: i32) -> (i32, i32) {
    %c0_i32 = arith.constant 0 : i32
    return %arg0, %arg1 : i32, i32
  }
  func.func @transform_5(%arg0: i32, %arg1: i32, %arg2: i32) -> (i32, i32) {
    %c0_i32 = arith.constant 0 : i32
    return %arg0, %arg1 : i32, i32
  }
}

module attributes {stable_mosaic.version = 11 : i64} {
  func.func @_fused_matmul_kernel(%arg0: i32, %arg1: i32, %arg2: i32, %arg3: memref<16x512xbf16, #tpu.memory_space<vmem>>, %arg4: memref<512x256xbf16, #tpu.memory_space<vmem>>, %arg5: memref<1x256xf32, #tpu.memory_space<vmem>>, %arg6: memref<1x256xf32, #tpu.memory_space<vmem>>, %arg7: memref<16x256xbf16, #tpu.memory_space<vmem>>, %arg8: memref<16x256xf32, #tpu.memory_space<vmem>>) attributes {dimension_semantics = [#tpu.dimension_semantics<parallel>, #tpu.dimension_semantics<parallel>, #tpu.dimension_semantics<arbitrary>], iteration_bounds = array<i64: 1, 2, 9>, scalar_prefetch = 0 : i64, scratch_operands = 1 : i64, tpu.core_type = #tpu.core_type<tc>, window_params = [{transform_indices = @transform_0, window_bounds = array<i64: 16, 512>}, {transform_indices = @transform_1, window_bounds = array<i64: 512, 256>}, {transform_indices = @transform_2, window_bounds = array<i64: 1, 256>}, {transform_indices = @transform_3, window_bounds = array<i64: 1, 256>}, {transform_indices = @transform_4, window_bounds = array<i64: 16, 256>}]} {
    %c0_i32 = arith.constant 0 : i32
    %0 = arith.cmpi eq, %arg2, %c0_i32 : i32
    %1 = arith.extui %0 : i1 to i32
    %c0_i32_0 = arith.constant 0 : i32
    %2 = arith.cmpi ne, %1, %c0_i32_0 : i32
    scf.if %2 {
      %cst_9 = arith.constant 0.000000e+00 : f32
      %12 = vector.broadcast %cst_9 : f32 to vector<16x256xf32>
      %c0_10 = arith.constant 0 : index
      %c0_11 = arith.constant 0 : index
      %13 = vector.load %arg8[%c0_10, %c0_11] : memref<16x256xf32, #tpu.memory_space<vmem>>, vector<16x256xf32>
      tpu.vector_store %arg8[%c0_10, %c0_11], %12 {strides = array<i32>} : memref<16x256xf32, #tpu.memory_space<vmem>>, vector<16x256xf32>,
    } else {
    }
    %c0 = arith.constant 0 : index
    %c0_1 = arith.constant 0 : index
    %3 = vector.load %arg8[%c0, %c0_1] : memref<16x256xf32, #tpu.memory_space<vmem>>, vector<16x256xf32>
    %c0_2 = arith.constant 0 : index
    %c0_3 = arith.constant 0 : index
    %4 = vector.load %arg3[%c0_2, %c0_3] : memref<16x512xbf16, #tpu.memory_space<vmem>>, vector<16x512xbf16>
    %c0_4 = arith.constant 0 : index
    %c0_5 = arith.constant 0 : index
    %5 = vector.load %arg4[%c0_4, %c0_5] : memref<512x256xbf16, #tpu.memory_space<vmem>>, vector<512x256xbf16>
    %cst = arith.constant dense<0.000000e+00> : vector<16x256xf32>
    %6 = tpu.matmul %4, %5, %cst {dimension_numbers = #tpu.dot_dimension_numbers<[1], [0], [0], [1], [0, 0, 1, 1], [], []>} : vector<16x512xbf16>, vector<512x256xbf16>, vector<16x256xf32> -> vector<16x256xf32>
    %7 = arith.addf %3, %6 : vector<16x256xf32>
    %c0_6 = arith.constant 0 : index
    %c0_7 = arith.constant 0 : index
    %8 = vector.load %arg8[%c0_6, %c0_7] : memref<16x256xf32, #tpu.memory_space<vmem>>, vector<16x256xf32>
    tpu.vector_store %arg8[%c0_6, %c0_7], %7 {strides = array<i32>} : memref<16x256xf32, #tpu.memory_space<vmem>>, vector<16x256xf32>,
    %c8_i32 = arith.constant 8 : i32
    %9 = arith.cmpi eq, %arg2, %c8_i32 : i32
    %10 = arith.extui %9 : i1 to i32
    %c0_i32_8 = arith.constant 0 : i32
    %11 = arith.cmpi ne, %10, %c0_i32_8 : i32
    scf.if %11 {
      %c0_9 = arith.constant 0 : index
      %c0_10 = arith.constant 0 : index
      %12 = vector.load %arg8[%c0_9, %c0_10] : memref<16x256xf32, #tpu.memory_space<vmem>>, vector<16x256xf32>
      %c0_11 = arith.constant 0 : index
      %c0_12 = arith.constant 0 : index
      %13 = vector.load %arg5[%c0_11, %c0_12] : memref<1x256xf32, #tpu.memory_space<vmem>>, vector<1x256xf32>
      %14 = vector.broadcast %13 : vector<1x256xf32> to vector<16x256xf32>
      %15 = arith.mulf %12, %14 : vector<16x256xf32>
      %c0_13 = arith.constant 0 : index
      %c0_14 = arith.constant 0 : index
      %16 = vector.load %arg6[%c0_13, %c0_14] : memref<1x256xf32, #tpu.memory_space<vmem>>, vector<1x256xf32>
      %17 = vector.broadcast %16 : vector<1x256xf32> to vector<16x256xf32>
      %18 = arith.addf %15, %17 : vector<16x256xf32>
      %cst_15 = arith.constant 0.000000e+00 : f32
      %19 = vector.broadcast %cst_15 : f32 to vector<16x256xf32>
      %20 = arith.maximumf %18, %19 : vector<16x256xf32>
      %21 = arith.truncf %20 : vector<16x256xf32> to vector<16x256xbf16>
      %c0_16 = arith.constant 0 : index
      %c0_17 = arith.constant 0 : index
      %22 = vector.load %arg7[%c0_16, %c0_17] : memref<16x256xbf16, #tpu.memory_space<vmem>>, vector<16x256xbf16>
      tpu.vector_store %arg7[%c0_16, %c0_17], %21 {strides = array<i32>} : memref<16x256xbf16, #tpu.memory_space<vmem>>, vector<16x256xbf16>,
    } else {
    }
    return
  }
  func.func @transform_0(%arg0: i32, %arg1: i32, %arg2: i32) -> (i32, i32) {
    %c0_i32 = arith.constant 0 : i32
    return %arg0, %arg2 : i32, i32
  }
  func.func @transform_1(%arg0: i32, %arg1: i32, %arg2: i32) -> (i32, i32) {
    %c0_i32 = arith.constant 0 : i32
    return %arg2, %arg1 : i32, i32
  }
  func.func @transform_2(%arg0: i32, %arg1: i32, %arg2: i32) -> (i32, i32) {
    %c0_i32 = arith.constant 0 : i32
    %c0_i32_0 = arith.constant 0 : i32
    return %c0_i32, %arg1 : i32, i32
  }
  func.func @transform_3(%arg0: i32, %arg1: i32, %arg2: i32) -> (i32, i32) {
    %c0_i32 = arith.constant 0 : i32
    %c0_i32_0 = arith.constant 0 : i32
    return %c0_i32, %arg1 : i32, i32
  }
  func.func @transform_4(%arg0: i32, %arg1: i32, %arg2: i32) -> (i32, i32) {
    %c0_i32 = arith.constant 0 : i32
    return %arg0, %arg1 : i32, i32
  }
}

module attributes {stable_mosaic.version = 11 : i64} {
  func.func @_avgpool_fc_kernel(%arg0: memref<2x1x512xbf16, #tpu.memory_space<vmem>>, %arg1: memref<512x128xf32, #tpu.memory_space<vmem>>, %arg2: memref<1x128xf32, #tpu.memory_space<vmem>>, %arg3: memref<2x128xf32, #tpu.memory_space<vmem>>) attributes {dimension_semantics = [], scalar_prefetch = 0 : i64, scratch_operands = 0 : i64, tpu.core_type = #tpu.core_type<tc>} {
    %c0 = arith.constant 0 : index
    %c0_0 = arith.constant 0 : index
    %c0_1 = arith.constant 0 : index
    %0 = vector.load %arg0[%c0, %c0_0, %c0_1] : memref<2x1x512xbf16, #tpu.memory_space<vmem>>, vector<2x1x512xbf16>
    %1 = arith.extf %0 : vector<2x1x512xbf16> to vector<2x1x512xf32>
    %cst = arith.constant dense<0.000000e+00> : vector<2x512xf32>
    %2 = vector.multi_reduction <add>, %1, %cst [1] : vector<2x1x512xf32> to vector<2x512xf32>
    %cst_2 = arith.constant 1.000000e+00 : f32
    %3 = vector.broadcast %cst_2 : f32 to vector<2x512xf32>
    %4 = arith.mulf %2, %3 : vector<2x512xf32>
    %c0_3 = arith.constant 0 : index
    %c0_4 = arith.constant 0 : index
    %5 = vector.load %arg1[%c0_3, %c0_4] : memref<512x128xf32, #tpu.memory_space<vmem>>, vector<512x128xf32>
    %cst_5 = arith.constant dense<0.000000e+00> : vector<2x128xf32>
    %6 = tpu.matmul %4, %5, %cst_5 {dimension_numbers = #tpu.dot_dimension_numbers<[1], [0], [0], [1], [0, 0, 1, 1], [], []>} : vector<2x512xf32>, vector<512x128xf32>, vector<2x128xf32> -> vector<2x128xf32>
    %c0_6 = arith.constant 0 : index
    %c0_7 = arith.constant 0 : index
    %7 = vector.load %arg2[%c0_6, %c0_7] : memref<1x128xf32, #tpu.memory_space<vmem>>, vector<1x128xf32>
    %8 = vector.broadcast %7 : vector<1x128xf32> to vector<2x128xf32>
    %9 = arith.addf %6, %8 : vector<2x128xf32>
    %c0_8 = arith.constant 0 : index
    %c0_9 = arith.constant 0 : index
    %10 = vector.load %arg3[%c0_8, %c0_9] : memref<2x128xf32, #tpu.memory_space<vmem>>, vector<2x128xf32>
    tpu.vector_store %arg3[%c0_8, %c0_9], %9 {strides = array<i32>} : memref<2x128xf32, #tpu.memory_space<vmem>>, vector<2x128xf32>,
    return
  }
}

</mosaic_0001>

<bundles_post_ra>
// kernel: violence_classifier_forward.23
= control target key start
LH: loop header
LB: loop body
LE: loop exit
PB: predicated region body
PF: predicated region fallthrough
CT: control target
= control target key end

     0   :  { %s823_s15 = smov 0   ;;  %s981_s0 = inlined_call_operand.vmem [shape: bf16[2,9,9,128], index: 0, kind: input, shape index: {}]   ;;  %s982_s1 = inlined_call_operand.vmem [shape: bf16[2,9,9,128], index: 1, kind: input, shape index: {}]   ;;  %s983_s2 = inlined_call_operand.vmem [shape: bf16[2,9,9,128], index: 2, kind: input, shape index: {}]   ;;  %s984_s3 = inlined_call_operand.vmem [shape: bf16[2,9,9,128], index: 3, kind: input, shape index: {}]   ;;  %s985_s4 = inlined_call_operand.vmem [shape: bf16[2,8,8,128], index: 4, kind: output, shape index: {}]  }
   0x1 LB: > { %s720_s16 = sadd.s32 4294967295, %s796_s15   ;;  %p724_p0 = scmp.ge.s32.totalorder %s796_s15, 1  ;;  %s796_s15 = sphi %s823_s15, %s14_s15  }
   0x2   : > { %p192_p1 = scmp.lt.s32.totalorder %s796_s15, 3 }
   0x4   : > { %p193_p2 = pnand %p724_p0, %p192_p1 }
   0x5   : > { %p233_p3 = scmp.lt.s32.totalorder (!%p193_p2), %s720_s16, 1 }
   0x6   : > { %196 = sbr.rel (%p193_p2) target bundleno = 72 (0x48), region = 36 }
   0xb   : > { %s987_s16 = smov (!%p233_p3, %s720_s16), 1  ;;  %vm306_vm0 = vcmask 1046528  }
   0xc   : > { %s834_s17 = smul.u32 72, %s987_s16  ;;  %s757_s30 = sshll.u32 %s987_s16, 5 }
   0xd   : > { %s257_s7 = scalar_lea.vmem %s985_s4, %s757_s30 }
   0xe   : > { %s840_s20 = scalar_lea.vmem %s981_s0, %s834_s17  ;;  %s894_s23 = scalar_lea.vmem %s982_s1, %s834_s17 }
   0xf   : > { %v258_v0 = vld [vmem:[%s840_s20] ss:$8 sps:$4 sm:$0xff]   ;;  %v260_v1 = vld [vmem:[%s840_s20 + $0x10] ss:$8 sps:$4 sm:$0xff]   ;;  %v274_v8 = vld [vmem:[%s840_s20 + $0x4] sm:$0x1]  ;;  %s922_s26 = scalar_lea.vmem %s983_s2, %s834_s17  ;;  %s252_s29 = scalar_lea.vmem %s984_s3, %s834_s17 }
  0x10   : > { %v262_v2 = vld [vmem:[%s840_s20 + $0x20] ss:$8 sps:$4 sm:$0xff]   ;;  %v264_v3 = vld [vmem:[%s840_s20 + $0x30] ss:$8 sps:$4 sm:$0xff]   ;;  %v266_v4 = vunpack.c.l.bf16 %v258_v0  ;;  %v267_v5 = vunpack.c.h.bf16 %v258_v0  ;;  %v268_v6 = vunpack.c.l.bf16 %v260_v1  ;;  %v269_v7 = vunpack.c.h.bf16 %v260_v1  ;;  %v275_v9 = vld [vmem:[%s840_s20 + $0xc] sm:$0x1] }
  0x11   : > { %v270_v10 = vunpack.c.l.bf16 %v262_v2  ;;  %v271_v11 = vunpack.c.h.bf16 %v262_v2  ;;  %v272_v12 = vunpack.c.l.bf16 %v264_v3  ;;  %v273_v13 = vunpack.c.h.bf16 %v264_v3  ;;  %v276_v14 = vld [vmem:[%s840_s20 + $0x14] sm:$0x1]  ;;  %v277_v15 = vld [vmem:[%s840_s20 + $0x1c] sm:$0x1]  ;;  %v278_v16 = vld [vmem:[%s840_s20 + $0x24] sm:$0x1] }
  0x12   : > { %v279_v17 = vld [vmem:[%s840_s20 + $0x2c] sm:$0x1]  ;;  %v280_v18 = vld [vmem:[%s840_s20 + $0x34] sm:$0x1]  ;;  %v281_v19 = vld [vmem:[%s840_s20 + $0x3c] sm:$0x1]  ;;  %v282_v20 = vunpack.c.l.bf16 %v274_v8  ;;  %v283_v21 = vunpack.c.l.bf16 %v275_v9  ;;  %v284_v22 = vunpack.c.l.bf16 %v276_v14  ;;  %v285_v23 = vunpack.c.l.bf16 %v277_v15 }
  0x13   : > { %v286_v24 = vunpack.c.l.bf16 %v278_v16  ;;  %v287_v25 = vunpack.c.l.bf16 %v279_v17  ;;  %v288_v26 = vunpack.c.l.bf16 %v280_v18  ;;  %v289_v27 = vunpack.c.l.bf16 %v281_v19  ;;  %v731_v48 = vld [vmem:[%s840_s20 + $0x8] ss:$8 sps:$4 sm:$0xff]   ;;  %v733_v53 = vld [vmem:[%s840_s20 + $0x18] ss:$8 sps:$4 sm:$0xff]   ;;  %v742_v14 = vld [vmem:[%s840_s20 + $0x24] sm:$0x1] }
  0x14   : > { %v307_v28 = vrot.slane %v266_v4, 1  ;;  %v308_v29 = vrot.slane %v282_v20, 1  ;;  %v310_v30 = vrot.slane %v267_v5, 1  ;;  %v311_v31 = vrot.slane %v283_v21, 1  ;;  %v735_v58 = vld [vmem:[%s840_s20 + $0x28] ss:$8 sps:$4 sm:$0xff]  }
  0x15   : > { %v313_v32 = vrot.slane %v268_v6, 1  ;;  %v314_v33 = vrot.slane %v284_v22, 1  ;;  %v316_v34 = vrot.slane %v269_v7, 1  ;;  %v317_v35 = vrot.slane %v285_v23, 1  ;;  %v737_v59 = vld [vmem:[%s840_s20 + $0x38] ss:$8 sps:$4 sm:$0xff]  }
  0x16   : > { %v309_v36 = vsel %vm306_vm0, %v307_v28, %v308_v29  ;;  %v312_v37 = vsel %vm306_vm0, %v310_v30, %v311_v31  ;;  %v319_v38 = vrot.slane %v270_v10, 1  ;;  %v320_v39 = vrot.slane %v286_v24, 1  ;;  %v743_v15 = vld [vmem:[%s840_s20 + $0x2c] sm:$0x1]  ;;  %v744_v17 = vld [vmem:[%s840_s20 + $0x34] sm:$0x1] }
  0x17   : > { %v315_v40 = vsel %vm306_vm0, %v313_v32, %v314_v33  ;;  %v318_v41 = vsel %vm306_vm0, %v316_v34, %v317_v35  ;;  %v322_v42 = vrot.slane %v271_v11, 1  ;;  %v323_v43 = vrot.slane %v287_v25, 1  ;;  %v745_v18 = vld [vmem:[%s840_s20 + $0x3c] sm:$0x1]  ;;  %v746_v19 = vld [vmem:[%s840_s20 + $0x44] sm:$0x1] }
  0x18   : > { %v321_v44 = vsel %vm306_vm0, %v319_v38, %v320_v39  ;;  %v325_v45 = vrot.slane %v272_v12, 1  ;;  %v326_v46 = vrot.slane %v288_v26, 1  ;;  %v328_v47 = vrot.slane %v273_v13, 1 }
  0x19   : > { %v324_v49 = vsel %vm306_vm0, %v322_v42, %v323_v43  ;;  %v329_v50 = vrot.slane %v289_v27, 1  ;;  %v339_v51 = vmax.f32 %v266_v4, %v309_v36  ;;  %v340_v52 = vmax.f32 %v267_v5, %v312_v37  ;;  %v739_v4 = vld [vmem:[%s840_s20 + $0xc] sm:$0x1]  ;;  %v740_v5 = vld [vmem:[%s840_s20 + $0x14] sm:$0x1] }
  0x1a   : > { %v327_v54 = vsel %vm306_vm0, %v325_v45, %v326_v46  ;;  %v341_v55 = vmax.f32 %v268_v6, %v315_v40  ;;  %v342_v56 = vmax.f32 %v269_v7, %v318_v41  ;;  %v343_v57 = vmax.f32 %v270_v10, %v321_v44  ;;  %v741_v10 = vld [vmem:[%s840_s20 + $0x1c] sm:$0x1] }
  0x1b   : > { %v330_v60 = vsel %vm306_vm0, %v328_v47, %v329_v50  ;;  %v344_v61 = vmax.f32 %v271_v11, %v324_v49  ;;  %v345_v62 = vmax.f32 %v272_v12, %v327_v54  ;;  %v356_v63 = vunpack.c.l.bf16 %v731_v48 }
  0x1c   : > { %v346_v0 = vmax.f32 %v273_v13, %v330_v60  ;;  %v357_v1 = vunpack.c.h.bf16 %v731_v48  ;;  %v358_v2 = vunpack.c.l.bf16 %v733_v53  ;;  %v359_v3 = vunpack.c.h.bf16 %v733_v53 }
  0x1d   : > { %v360_v6 = vunpack.c.l.bf16 %v735_v58  ;;  %v361_v7 = vunpack.c.h.bf16 %v735_v58  ;;  %v362_v8 = vunpack.c.l.bf16 %v737_v59  ;;  %v363_v9 = vunpack.c.h.bf16 %v737_v59 }
  0x1e   : > { %v871_v16 = vmax.f32 %v339_v51, %v356_v63  ;;  %v873_v11 = vmax.f32 %v340_v52, %v357_v1  ;;  %v875_v12 = vmax.f32 %v341_v55, %v358_v2  ;;  %v877_v13 = vmax.f32 %v342_v56, %v359_v3  ;;  %v444_v52 = vld [vmem:[%s894_s23] ss:$8 sps:$4 sm:$0xff]  }
  0x1f   : > { %v882_v20 = vmax.f32 %v343_v57, %v360_v6  ;;  %v884_v21 = vmax.f32 %v344_v61, %v361_v7  ;;  %v886_v22 = vmax.f32 %v345_v62, %v362_v8  ;;  %v888_v23 = vmax.f32 %v346_v0, %v363_v9  ;;  %v446_v57 = vld [vmem:[%s894_s23 + $0x10] ss:$8 sps:$4 sm:$0xff]   ;;  %v448_v62 = vld [vmem:[%s894_s23 + $0x20] ss:$8 sps:$4 sm:$0xff]  }
  0x20   : > { %v380_v24 = vunpack.c.l.bf16 %v739_v4  ;;  %v381_v25 = vunpack.c.l.bf16 %v740_v5  ;;  %v382_v26 = vunpack.c.l.bf16 %v741_v10  ;;  %v383_v27 = vunpack.c.l.bf16 %v742_v14 }
  0x21   : > { %v384_v28 = vunpack.c.l.bf16 %v743_v15  ;;  %v385_v29 = vunpack.c.l.bf16 %v744_v17  ;;  %v386_v30 = vunpack.c.l.bf16 %v745_v18  ;;  %v387_v31 = vunpack.c.l.bf16 %v746_v19  ;;  %v747_v15 = vld [vmem:[%s894_s23 + $0x8] ss:$8 sps:$4 sm:$0xff]   ;;  %v753_v19 = vld [vmem:[%s894_s23 + $0x38] ss:$8 sps:$4 sm:$0xff]  }
  0x22   : > { %v404_v32 = vrot.slane %v356_v63, 1  ;;  %v405_v33 = vrot.slane %v380_v24, 1  ;;  %v407_v34 = vrot.slane %v357_v1, 1  ;;  %v408_v35 = vrot.slane %v381_v25, 1  ;;  %v450_v63 = vld [vmem:[%s894_s23 + $0x30] ss:$8 sps:$4 sm:$0xff]  }
  0x23   : > { %v410_v36 = vrot.slane %v358_v2, 1  ;;  %v411_v37 = vrot.slane %v382_v26, 1  ;;  %v413_v38 = vrot.slane %v359_v3, 1  ;;  %v414_v39 = vrot.slane %v383_v27, 1  ;;  %v751_v18 = vld [vmem:[%s894_s23 + $0x28] ss:$8 sps:$4 sm:$0xff]  }
  0x24   : > { %v406_v40 = vsel %vm306_vm0, %v404_v32, %v405_v33  ;;  %v409_v41 = vsel %vm306_vm0, %v407_v34, %v408_v35  ;;  %v416_v42 = vrot.slane %v360_v6, 1  ;;  %v417_v43 = vrot.slane %v384_v28, 1  ;;  %v493_v32 = vld [vmem:[%s922_s26] ss:$8 sps:$4 sm:$0xff]   ;;  %v495_v33 = vld [vmem:[%s922_s26 + $0x10] ss:$8 sps:$4 sm:$0xff]  }
  0x25   : > { %v412_v44 = vsel %vm306_vm0, %v410_v36, %v411_v37  ;;  %v415_v45 = vsel %vm306_vm0, %v413_v38, %v414_v39  ;;  %v419_v46 = vrot.slane %v361_v7, 1  ;;  %v420_v47 = vrot.slane %v385_v29, 1  ;;  %v497_v38 = vld [vmem:[%s922_s26 + $0x20] ss:$8 sps:$4 sm:$0xff]   ;;  %v499_v39 = vld [vmem:[%s922_s26 + $0x30] ss:$8 sps:$4 sm:$0xff]  }
  0x26   : > { %v418_v48 = vsel %vm306_vm0, %v416_v42, %v417_v43  ;;  %v422_v49 = vrot.slane %v362_v8, 1  ;;  %v423_v50 = vrot.slane %v386_v30, 1  ;;  %v425_v51 = vrot.slane %v363_v9, 1 }
  0x27   : > { %v421_v53 = vsel %vm306_vm0, %v419_v46, %v420_v47  ;;  %v426_v54 = vrot.slane %v387_v31, 1  ;;  %v436_v55 = vmax.f32 %v871_v16, %v406_v40  ;;  %v437_v56 = vmax.f32 %v873_v11, %v409_v41  ;;  %v749_v16 = vld [vmem:[%s894_s23 + $0x18] ss:$8 sps:$4 sm:$0xff]  }
  0x28   : > { %v424_v58 = vsel %vm306_vm0, %v422_v49, %v423_v50  ;;  %v438_v59 = vmax.f32 %v875_v12, %v412_v44  ;;  %v439_v60 = vmax.f32 %v877_v13, %v415_v45  ;;  %v440_v61 = vmax.f32 %v882_v20, %v418_v48  ;;  %v517_v48 = vld [vmem:[%s922_s26 + $0x4] sm:$0x1]  ;;  %v518_v49 = vld [vmem:[%s922_s26 + $0xc] sm:$0x1] }
  0x29   : > { %v427_v0 = vsel %vm306_vm0, %v425_v51, %v426_v54  ;;  %v441_v1 = vmax.f32 %v884_v21, %v421_v53  ;;  %v442_v2 = vmax.f32 %v886_v22, %v424_v58  ;;  %v452_v3 = vunpack.c.l.bf16 %v444_v52  ;;  %v519_v54 = vld [vmem:[%s922_s26 + $0x14] sm:$0x1] }
  0x2a   : > { %v443_v4 = vmax.f32 %v888_v23, %v427_v0  ;;  %v453_v5 = vunpack.c.h.bf16 %v444_v52  ;;  %v454_v6 = vunpack.c.l.bf16 %v446_v57  ;;  %v455_v7 = vunpack.c.h.bf16 %v446_v57 }
  0x2b   : > { %v456_v8 = vunpack.c.l.bf16 %v448_v62  ;;  %v457_v9 = vunpack.c.h.bf16 %v448_v62  ;;  %v458_v10 = vunpack.c.l.bf16 %v450_v63  ;;  %v459_v14 = vunpack.c.h.bf16 %v450_v63  ;;  %v523_v62 = vld [vmem:[%s922_s26 + $0x34] sm:$0x1]  ;;  %v524_v63 = vld [vmem:[%s922_s26 + $0x3c] sm:$0x1] }
  0x2c   : > { %v460_v11 = vmax.f32 %v436_v55, %v452_v3  ;;  %v461_v12 = vmax.f32 %v437_v56, %v453_v5  ;;  %v462_v13 = vmax.f32 %v438_v59, %v454_v6  ;;  %v463_v17 = vmax.f32 %v439_v60, %v455_v7  ;;  %v520_v55 = vld [vmem:[%s922_s26 + $0x1c] sm:$0x1]  ;;  %v521_v56 = vld [vmem:[%s922_s26 + $0x24] sm:$0x1] }
  0x2d   : > { %v464_v20 = vmax.f32 %v440_v61, %v456_v8  ;;  %v465_v21 = vmax.f32 %v441_v1, %v457_v9  ;;  %v466_v22 = vmax.f32 %v442_v2, %v458_v10  ;;  %v467_v23 = vmax.f32 %v443_v4, %v459_v14  ;;  %v522_v61 = vld [vmem:[%s922_s26 + $0x2c] sm:$0x1] }
  0x2e   : > { %v477_v24 = vunpack.c.l.bf16 %v747_v15  ;;  %v478_v25 = vunpack.c.h.bf16 %v747_v15  ;;  %v479_v26 = vunpack.c.l.bf16 %v749_v16  ;;  %v480_v27 = vunpack.c.h.bf16 %v749_v16 }
  0x2f   : > { %v481_v28 = vunpack.c.l.bf16 %v751_v18  ;;  %v482_v29 = vunpack.c.h.bf16 %v751_v18  ;;  %v483_v30 = vunpack.c.l.bf16 %v753_v19  ;;  %v484_v31 = vunpack.c.h.bf16 %v753_v19 }
  0x30   : > { %v485_v34 = vmax.f32 %v460_v11, %v477_v24  ;;  %v486_v35 = vmax.f32 %v461_v12, %v478_v25  ;;  %v487_v36 = vmax.f32 %v462_v13, %v479_v26  ;;  %v488_v37 = vmax.f32 %v463_v17, %v480_v27 }
  0x31   : > { %v489_v40 = vmax.f32 %v464_v20, %v481_v28  ;;  %v490_v41 = vmax.f32 %v465_v21, %v482_v29  ;;  %v491_v42 = vmax.f32 %v466_v22, %v483_v30  ;;  %v492_v43 = vmax.f32 %v467_v23, %v484_v31 }
  0x32   : > { %v501_v44 = vunpack.c.l.bf16 %v493_v32  ;;  %v502_v45 = vunpack.c.h.bf16 %v493_v32  ;;  %v503_v46 = vunpack.c.l.bf16 %v495_v33  ;;  %v504_v47 = vunpack.c.h.bf16 %v495_v33  ;;  %v589_v32 = vld [vmem:[%s252_s29] ss:$8 sps:$4 sm:$0xff]  }
  0x33   : > { %v505_v50 = vunpack.c.l.bf16 %v497_v38  ;;  %v506_v51 = vunpack.c.h.bf16 %v497_v38  ;;  %v507_v52 = vunpack.c.l.bf16 %v499_v39  ;;  %v508_v53 = vunpack.c.h.bf16 %v499_v39 }
  0x34   : > { %v935_v57 = vmax.f32 %v485_v34, %v501_v44  ;;  %v937_v58 = vmax.f32 %v486_v35, %v502_v45  ;;  %v939_v59 = vmax.f32 %v487_v36, %v503_v46  ;;  %v941_v60 = vmax.f32 %v488_v37, %v504_v47  ;;  %v591_v37 = vld [vmem:[%s252_s29 + $0x10] ss:$8 sps:$4 sm:$0xff]  }
  0x35   : > { %v946_v0 = vmax.f32 %v489_v40, %v505_v50  ;;  %v948_v1 = vmax.f32 %v490_v41, %v506_v51  ;;  %v950_v2 = vmax.f32 %v491_v42, %v507_v52  ;;  %v952_v3 = vmax.f32 %v492_v43, %v508_v53  ;;  %v593_v42 = vld [vmem:[%s252_s29 + $0x20] ss:$8 sps:$4 sm:$0xff]   ;;  %v595_v43 = vld [vmem:[%s252_s29 + $0x30] ss:$8 sps:$4 sm:$0xff]  }
  0x36   : > { %v525_v4 = vunpack.c.l.bf16 %v517_v48  ;;  %v526_v5 = vunpack.c.l.bf16 %v518_v49  ;;  %v527_v6 = vunpack.c.l.bf16 %v519_v54  ;;  %v528_v7 = vunpack.c.l.bf16 %v520_v55 }
  0x37   : > { %v529_v8 = vunpack.c.l.bf16 %v521_v56  ;;  %v530_v9 = vunpack.c.l.bf16 %v522_v61  ;;  %v531_v10 = vunpack.c.l.bf16 %v523_v62  ;;  %v532_v14 = vunpack.c.l.bf16 %v524_v63 }
  0x38   : > { %v549_v15 = vrot.slane %v501_v44, 1  ;;  %v550_v16 = vrot.slane %v525_v4, 1  ;;  %v552_v11 = vrot.slane %v502_v45, 1  ;;  %v553_v12 = vrot.slane %v526_v5, 1 }
  0x39   : > { %v555_v13 = vrot.slane %v503_v46, 1  ;;  %v556_v17 = vrot.slane %v527_v6, 1  ;;  %v558_v18 = vrot.slane %v504_v47, 1  ;;  %v559_v19 = vrot.slane %v528_v7, 1 }
  0x3a   : > { %v551_v20 = vsel %vm306_vm0, %v549_v15, %v550_v16  ;;  %v554_v21 = vsel %vm306_vm0, %v552_v11, %v553_v12  ;;  %v561_v22 = vrot.slane %v505_v50, 1  ;;  %v562_v23 = vrot.slane %v529_v8, 1 }
  0x3b   : > { %v557_v24 = vsel %vm306_vm0, %v555_v13, %v556_v17  ;;  %v560_v25 = vsel %vm306_vm0, %v558_v18, %v559_v19  ;;  %v564_v26 = vrot.slane %v506_v51, 1  ;;  %v565_v27 = vrot.slane %v530_v9, 1 }
  0x3c   : > { %v563_v28 = vsel %vm306_vm0, %v561_v22, %v562_v23  ;;  %v567_v29 = vrot.slane %v507_v52, 1  ;;  %v568_v30 = vrot.slane %v531_v10, 1  ;;  %v570_v31 = vrot.slane %v508_v53, 1 }
  0x3d   : > { %v566_v33 = vsel %vm306_vm0, %v564_v26, %v565_v27  ;;  %v571_v34 = vrot.slane %v532_v14, 1  ;;  %v581_v35 = vmax.f32 %v935_v57, %v551_v20  ;;  %v582_v36 = vmax.f32 %v937_v58, %v554_v21 }
  0x3e   : > { %v569_v38 = vsel %vm306_vm0, %v567_v29, %v568_v30  ;;  %v583_v39 = vmax.f32 %v939_v59, %v557_v24  ;;  %v584_v40 = vmax.f32 %v941_v60, %v560_v25  ;;  %v585_v41 = vmax.f32 %v946_v0, %v563_v28 }
  0x3f   : > { %v572_v44 = vsel %vm306_vm0, %v570_v31, %v571_v34  ;;  %v586_v45 = vmax.f32 %v948_v1, %v566_v33  ;;  %v587_v46 = vmax.f32 %v950_v2, %v569_v38  ;;  %v597_v47 = vunpack.c.l.bf16 %v589_v32 }
  0x40   : > { %v588_v48 = vmax.f32 %v952_v3, %v572_v44  ;;  %v598_v49 = vunpack.c.h.bf16 %v589_v32  ;;  %v599_v50 = vunpack.c.l.bf16 %v591_v37  ;;  %v600_v51 = vunpack.c.h.bf16 %v591_v37 }
  0x41   : > { %v601_v52 = vunpack.c.l.bf16 %v593_v42  ;;  %v602_v53 = vunpack.c.h.bf16 %v593_v42  ;;  %v603_v54 = vunpack.c.l.bf16 %v595_v43  ;;  %v604_v55 = vunpack.c.h.bf16 %v595_v43 }
  0x42   : > { %v605_v56 = vmax.f32 %v581_v35, %v597_v47  ;;  %v606_v57 = vmax.f32 %v582_v36, %v598_v49  ;;  %v607_v58 = vmax.f32 %v583_v39, %v599_v50  ;;  %v608_v59 = vmax.f32 %v584_v40, %v600_v51 }
  0x43   : > { %v609_v60 = vmax.f32 %v585_v41, %v601_v52  ;;  %v610_v61 = vmax.f32 %v586_v45, %v602_v53  ;;  %v611_v62 = vmax.f32 %v587_v46, %v603_v54  ;;  %v612_v63 = vmax.f32 %v588_v48, %v604_v55 }
  0x44   : > { %v761_v0 = vpack.c.bf16 %v606_v57, %v605_v56  ;;  %v766_v1 = vpack.c.bf16 %v608_v59, %v607_v58 }
  0x45   : > { %v771_v2 = vpack.c.bf16 %v610_v61, %v609_v60  ;;  %v776_v3 = vpack.c.bf16 %v612_v63, %v611_v62 }
  0x46   : > { %762 = vst [vmem:[%s257_s7] sm:$0xff] %v761_v0   ;;  %778 = vst [vmem:[%s257_s7 + $0x8] sm:$0xff] %v766_v1  }
  0x47   : > { %779 = vst [vmem:[%s257_s7 + $0x10] sm:$0xff] %v771_v2   ;;  %780 = vst [vmem:[%s257_s7 + $0x18] sm:$0xff] %v776_v3  }
  0x48 PF: > { %s14_s15 = sadd.s32 1, %s796_s15  }
  0x49   : > { %p11_p4 = scmp.ge.s32.totalorder %s14_s15, 4  }
  0x4b   :  { %13 = sbr.rel (!%p11_p4) target bundleno = 1 (0x1), region = 77 }

// kernel: violence_classifier_forward.22
= control target key start
LH: loop header
LB: loop body
LE: loop exit
PB: predicated region body
PF: predicated region fallthrough
CT: control target
= control target key end

     0   :  { %s1843_s15 = smov 0   ;;  %s1845_s16 = smov 0   ;;  %s2054_s0 = inlined_call_operand.vmem [shape: bf16[512,256], index: 0, kind: input, shape index: {}]   ;;  %s2055_s1 = inlined_call_operand.vmem [shape: bf16[256,128], index: 1, kind: input, shape index: {}]   ;;  %s2056_s2 = inlined_call_operand.vmem [shape: f32[1,128], index: 2, kind: input, shape index: {}]   ;;  %s2057_s3 = inlined_call_operand.vmem [shape: f32[1,128], index: 3, kind: input, shape index: {}]   ;;  %s2058_s4 = inlined_call_operand.vmem [shape: bf16[512,128], index: 4, kind: output, shape index: {}]  }
   0x1   :  { %s1847_s17 = smov 0  }
   0x2 LB: > { %s33_s18 = sadd.s32 1, %s1812_s16  ;;  %p1360_p0 = scmp.ge.s32.totalorder %s1816_s17, 1  ;;  %s1816_s17 = sphi %s1847_s17, %s14_s17   ;;  %s1812_s16 = sphi %s1845_s16, %s2060_s16   ;;  %s1808_s15 = sphi %s1843_s15, %s2059_s15  }
   0x3   : > { %p35_p1 = scmp.ge.s32.totalorder %s33_s18, 2  ;;  %p224_p2 = scmp.lt.s32.totalorder %s1816_s17, 3 }
   0x5   : > { %s2062_s18 = smov (%p35_p1, %s33_s18), 0  ;;  %p225_p3 = pnand %p1360_p0, %p224_p2 }
   0x6   : > { %s1361_s21 = sshll.u32 (!%p225_p3), %s1808_s15, 5 }
   0x7   : > { %228 = sbr.rel (%p225_p3) target bundleno = 311 (0x137), region = 36  ;;  %p274_p4 = scmp.lt.s32.totalorder (!%p225_p3), %s1361_s21, 63 }
   0xc   : > { %v1730_v0 = vld [vmem:[%s2055_s1 + $0x78] sm:$0xff]   ;;  %v1732_v2 = vld [vmem:[%s2055_s1 + $0x70] sm:$0xff]   ;;  %v1734_v4 = vld [vmem:[%s2055_s1 + $0x68] sm:$0xff]   ;;  %s2064_s21 = smov (!%p274_p4, %s1361_s21), 63 }
   0xd   : > { %v1731_v1 = vld [vmem:[%s2055_s1 + $0x38] sm:$0xff]   ;;  %1578 = vmatprep.subr.bf16.mxu0 %v1730_v0  ;;  %1690 = vmatprep.subr.bf16.mxu1 %v1730_v0  ;;  %v1733_v3 = vld [vmem:[%s2055_s1 + $0x30] sm:$0xff]   ;;  %v1735_v5 = vld [vmem:[%s2055_s1 + $0x28] sm:$0xff]   ;;  %s1450_s10 = sshll.u32 %s2064_s21, 3  ;;  %s1365_s12 = sshll.u32 %s2064_s21, 2 }
   0xe   : > { %1579 = vmatpush3.bf16.msra.mxu0 %v1731_v1  ;;  %1698 = vmatpush3.bf16.msra.mxu1 %v1731_v1  ;;  %v1736_v6 = vld [vmem:[%s2055_s1 + $0x60] sm:$0xff]   ;;  %v1738_v8 = vld [vmem:[%s2055_s1 + $0x58] sm:$0xff]   ;;  %s1894_s15 = scalar_lea.vmem %s2054_s0, %s1450_s10  ;;  %v1740_v10 = vld [vmem:[%s2055_s1 + $0x50] sm:$0xff]  }
   0xf   : > { %1580 = vmatprep.subr.bf16.mxu0 %v1732_v2  ;;  %1691 = vmatprep.subr.bf16.mxu1 %v1732_v2  ;;  %v1737_v7 = vld [vmem:[%s2055_s1 + $0x20] sm:$0xff]   ;;  %v1739_v9 = vld [vmem:[%s2055_s1 + $0x18] sm:$0xff]   ;;  %v1741_v13 = vld [vmem:[%s2055_s1 + $0x10] sm:$0xff]  }
  0x10   : > { %v1748_v11 = vld [vmem:[%s1894_s15 + $0x4] ss:$8 sps:$4 sm:$0xff]   ;;  %v1746_v18 = vld [vmem:[%s1894_s15] ss:$8 sps:$4 sm:$0xff]   ;;  %v1752_v20 = vld [vmem:[%s1894_s15 + $0x14] ss:$8 sps:$4 sm:$0xff]  }
  0x11   : > { %v1751_v12 = vld [vmem:[%s1894_s15 + $0x84] ss:$8 sps:$4 sm:$0xff]   ;;  %729 = vmatprep.mubr.bf16.mxu0 %v1748_v11  ;;  %v1749_v19 = vld [vmem:[%s1894_s15 + $0x80] ss:$8 sps:$4 sm:$0xff]   ;;  %v1754_v21 = vld [vmem:[%s1894_s15 + $0x94] ss:$8 sps:$4 sm:$0xff]  }
  0x12   : > { %1581 = vmatpush3.bf16.msra.mxu0 %v1733_v3  ;;  %1699 = vmatpush3.bf16.msra.mxu1 %v1733_v3  ;;  %v1742_v14 = vld [vmem:[%s2055_s1 + $0x48] sm:$0xff]   ;;  %v1744_v16 = vld [vmem:[%s2055_s1 + $0x40] sm:$0xff]   ;;  %v1756_v22 = vld [vmem:[%s1894_s15 + $0x10] ss:$8 sps:$4 sm:$0xff]  }
  0x13   : > { %1582 = vmatprep.subr.bf16.mxu0 %v1734_v4  ;;  %1692 = vmatprep.subr.bf16.mxu1 %v1734_v4  ;;  %v1743_v15 = vld [vmem:[%s2055_s1 + $0x8] sm:$0xff]   ;;  %v1745_v17 = vld [vmem:[%s2055_s1] sm:$0xff]   ;;  %v1757_v23 = vld [vmem:[%s1894_s15 + $0x90] ss:$8 sps:$4 sm:$0xff]  }
  0x14   : > { %793 = vmatprep.mubr.bf16.mxu1 %v1751_v12  ;;  %v1758_v24 = vld [vmem:[%s1894_s15 + $0x24] ss:$8 sps:$4 sm:$0xff]   ;;  %v1762_v26 = vld [vmem:[%s1894_s15 + $0x20] ss:$8 sps:$4 sm:$0xff]   ;;  %v1764_v28 = vld [vmem:[%s1894_s15 + $0x34] ss:$8 sps:$4 sm:$0xff]  }
  0x15   : > { %v1760_v25 = vld [vmem:[%s1894_s15 + $0xa4] ss:$8 sps:$4 sm:$0xff]   ;;  %v1763_v27 = vld [vmem:[%s1894_s15 + $0xa0] ss:$8 sps:$4 sm:$0xff]   ;;  %v1766_v29 = vld [vmem:[%s1894_s15 + $0xb4] ss:$8 sps:$4 sm:$0xff]  }
  0x16   : > { %1583 = vmatpush3.bf16.msra.mxu0 %v1735_v5  ;;  %1700 = vmatpush3.bf16.msra.mxu1 %v1735_v5  ;;  %v1768_v30 = vld [vmem:[%s1894_s15 + $0x30] ss:$8 sps:$4 sm:$0xff]   ;;  %v1770_v32 = vld [vmem:[%s1894_s15 + $0x44] ss:$8 sps:$4 sm:$0xff]   ;;  %v1774_v34 = vld [vmem:[%s1894_s15 + $0x40] ss:$8 sps:$4 sm:$0xff]  }
  0x17   : > { %1584 = vmatprep.subr.bf16.mxu0 %v1736_v6  ;;  %1693 = vmatprep.subr.bf16.mxu1 %v1736_v6  ;;  %v1769_v31 = vld [vmem:[%s1894_s15 + $0xb0] ss:$8 sps:$4 sm:$0xff]   ;;  %v1772_v33 = vld [vmem:[%s1894_s15 + $0xc4] ss:$8 sps:$4 sm:$0xff]   ;;  %v1775_v35 = vld [vmem:[%s1894_s15 + $0xc0] ss:$8 sps:$4 sm:$0xff]  }
  0x18   : > { %v1776_v36 = vld [vmem:[%s1894_s15 + $0x54] ss:$8 sps:$4 sm:$0xff]   ;;  %v1780_v38 = vld [vmem:[%s1894_s15 + $0x50] ss:$8 sps:$4 sm:$0xff]   ;;  %v1782_v40 = vld [vmem:[%s1894_s15 + $0x64] ss:$8 sps:$4 sm:$0xff]  }
  0x19   : > { %v1778_v37 = vld [vmem:[%s1894_s15 + $0xd4] ss:$8 sps:$4 sm:$0xff]   ;;  %v1781_v39 = vld [vmem:[%s1894_s15 + $0xd0] ss:$8 sps:$4 sm:$0xff]   ;;  %v1784_v41 = vld [vmem:[%s1894_s15 + $0xe4] ss:$8 sps:$4 sm:$0xff]  }
  0x1a   : > { %1585 = vmatpush3.bf16.msra.mxu0 %v1737_v7  ;;  %1701 = vmatpush3.bf16.msra.mxu1 %v1737_v7  ;;  %v1786_v42 = vld [vmem:[%s1894_s15 + $0x60] ss:$8 sps:$4 sm:$0xff]   ;;  %v1788_v44 = vld [vmem:[%s1894_s15 + $0x74] ss:$8 sps:$4 sm:$0xff]   ;;  %v1792_v46 = vld [vmem:[%s1894_s15 + $0x70] ss:$8 sps:$4 sm:$0xff]  }
  0x1b   : > { %1586 = vmatprep.subr.bf16.mxu0 %v1738_v8  ;;  %1694 = vmatprep.subr.bf16.mxu1 %v1738_v8  ;;  %v1787_v43 = vld [vmem:[%s1894_s15 + $0xe0] ss:$8 sps:$4 sm:$0xff]   ;;  %v1790_v45 = vld [vmem:[%s1894_s15 + $0xf4] ss:$8 sps:$4 sm:$0xff]   ;;  %v1793_v47 = vld [vmem:[%s1894_s15 + $0xf0] ss:$8 sps:$4 sm:$0xff]   ;;  %s1971_s15 = scalar_lea.vmem %s2058_s4, %s1365_s12 }
  0x1c   : > { %v1952_v51 = vld [vmem:[%s2056_s2] ss:$0 sm:$0xff] }
  0x1d   : > { %v1959_v59 = vld [vmem:[%s2057_s3] ss:$0 sm:$0xff] }
  0x1e   : > { %1587 = vmatpush3.bf16.msra.mxu0 %v1739_v9  ;;  %1702 = vmatpush3.bf16.msra.mxu1 %v1739_v9 }
  0x1f   : > { %1588 = vmatprep.subr.bf16.mxu0 %v1740_v10  ;;  %1695 = vmatprep.subr.bf16.mxu1 %v1740_v10 }
  0x22   : > { %1589 = vmatpush3.bf16.msra.mxu0 %v1741_v13  ;;  %1703 = vmatpush3.bf16.msra.mxu1 %v1741_v13 }
  0x23   : > { %1590 = vmatprep.subr.bf16.mxu0 %v1742_v14  ;;  %1696 = vmatprep.subr.bf16.mxu1 %v1742_v14 }
  0x26   : > { %1591 = vmatpush3.bf16.msra.mxu0 %v1743_v15  ;;  %1704 = vmatpush3.bf16.msra.mxu1 %v1743_v15 }
  0x27   : > { %1592 = vmatprep.subr.bf16.mxu0 %v1744_v16  ;;  %1697 = vmatprep.subr.bf16.mxu1 %v1744_v16 }
  0x2a   : > { %1593 = vmatpush3.bf16.msra.mxu0 %v1745_v17  ;;  %1705 = vmatpush3.bf16.msra.mxu1 %v1745_v17 }
  0x2d   : > { %730 = vmatmul.mubr.bf16.vlgmr.msra.gmra.mxu0 %v1746_v18  ;;  %794 = vmatmul.mubr.bf16.vlgmr.msra.gmra.mxu1 %v1749_v19 }
  0x2e   : > { %737 = vmatprep.mubr.bf16.mxu0 %v1752_v20  ;;  %801 = vmatprep.mubr.bf16.mxu1 %v1754_v21 }
  0x35   : > { %738 = vmatmul.mubr.bf16.gmra.mxu0 %v1756_v22  ;;  %802 = vmatmul.mubr.bf16.gmra.mxu1 %v1757_v23 }
  0x36   : > { %745 = vmatprep.mubr.bf16.mxu0 %v1758_v24  ;;  %809 = vmatprep.mubr.bf16.mxu1 %v1760_v25 }
  0x3d   : > { %746 = vmatmul.mubr.bf16.gmra.mxu0 %v1762_v26  ;;  %810 = vmatmul.mubr.bf16.gmra.mxu1 %v1763_v27 }
  0x3e   : > { %753 = vmatprep.mubr.bf16.mxu0 %v1764_v28  ;;  %817 = vmatprep.mubr.bf16.mxu1 %v1766_v29 }
  0x45   : > { %754 = vmatmul.mubr.bf16.gmra.mxu0 %v1768_v30  ;;  %818 = vmatmul.mubr.bf16.gmra.mxu1 %v1769_v31 }
  0x46   : > { %761 = vmatprep.mubr.bf16.mxu0 %v1770_v32  ;;  %825 = vmatprep.mubr.bf16.mxu1 %v1772_v33 }
  0x4d   : > { %762 = vmatmul.mubr.bf16.gmra.mxu0 %v1774_v34  ;;  %826 = vmatmul.mubr.bf16.gmra.mxu1 %v1775_v35 }
  0x4e   : > { %769 = vmatprep.mubr.bf16.mxu0 %v1776_v36  ;;  %833 = vmatprep.mubr.bf16.mxu1 %v1778_v37 }
  0x55   : > { %770 = vmatmul.mubr.bf16.gmra.mxu0 %v1780_v38  ;;  %834 = vmatmul.mubr.bf16.gmra.mxu1 %v1781_v39 }
  0x56   : > { %777 = vmatprep.mubr.bf16.mxu0 %v1782_v40  ;;  %841 = vmatprep.mubr.bf16.mxu1 %v1784_v41 }
  0x5d   : > { %778 = vmatmul.mubr.bf16.gmra.mxu0 %v1786_v42  ;;  %842 = vmatmul.mubr.bf16.gmra.mxu1 %v1787_v43 }
  0x5e   : > { %785 = vmatprep.mubr.bf16.mxu0 %v1788_v44  ;;  %849 = vmatprep.mubr.bf16.mxu1 %v1790_v45 }
  0x65   : > { %786 = vmatmul.mubr.bf16.gmra.mxu0 %v1792_v46  ;;  %850 = vmatmul.mubr.bf16.gmra.mxu1 %v1793_v47 }
  0xed   : > { %v1594_v48 = vpop.f32.mrf.mxu0  ;;  %v1642_v49 = vpop.f32.mrf.mxu1 }
  0xef   : > { %v1595_v50 = vpop.f32.mrf.mxu0  ;;  %v1643_v52 = vpop.f32.mrf.mxu1 }
  0xf0   : > { %v1596_v53 = vadd.f32 %v1595_v50, %v1594_v48  ;;  %v1644_v54 = vadd.f32 %v1643_v52, %v1642_v49 }
  0xf1   : > { %v1597_v55 = vpop.f32.mrf.mxu0  ;;  %v1645_v56 = vpop.f32.mrf.mxu1 }
  0xf2   : > { %v964_v57 = vmul.f32 %v1596_v53, %v1952_v51  ;;  %v980_v58 = vmul.f32 %v1644_v54, %v1952_v51 }
  0xf3   : > { %v1598_v60 = vpop.f32.mrf.mxu0  ;;  %v1646_v61 = vpop.f32.mrf.mxu1 }
  0xf4   : > { %v1599_v62 = vadd.f32 %v1598_v60, %v1597_v55  ;;  %v1647_v63 = vadd.f32 %v1646_v61, %v1645_v56  ;;  %v1003_v2 = vadd.f32 %v1959_v59, %v964_v57  ;;  %v1019_v3 = vadd.f32 %v1959_v59, %v980_v58 }
  0xf5   : > { %v1600_v0 = vpop.f32.mrf.mxu0  ;;  %v1648_v1 = vpop.f32.mrf.mxu1 }
  0xf6   : > { %v965_v4 = vmul.f32 %v1599_v62, %v1952_v51  ;;  %v981_v5 = vmul.f32 %v1647_v63, %v1952_v51  ;;  %v1035_v14 = vmax.f32 %v1003_v2, 0.0  ;;  %v1051_v15 = vmax.f32 %v1019_v3, 0.0 }
  0xf7   : > { %v1601_v6 = vpop.f32.mrf.mxu0  ;;  %v1649_v7 = vpop.f32.mrf.mxu1 }
  0xf8   : > { %v1004_v8 = vadd.f32 %v1959_v59, %v965_v4  ;;  %v1020_v9 = vadd.f32 %v1959_v59, %v981_v5  ;;  %v1602_v10 = vadd.f32 %v1601_v6, %v1600_v0  ;;  %v1650_v11 = vadd.f32 %v1649_v7, %v1648_v1 }
  0xf9   : > { %v1603_v12 = vpop.f32.mrf.mxu0  ;;  %v1651_v13 = vpop.f32.mrf.mxu1 }
  0xfa   : > { %v1036_v16 = vmax.f32 %v1004_v8, 0.0  ;;  %v1052_v17 = vmax.f32 %v1020_v9, 0.0  ;;  %v966_v18 = vmul.f32 %v1602_v10, %v1952_v51  ;;  %v982_v19 = vmul.f32 %v1650_v11, %v1952_v51 }
  0xfb   : > { %v1604_v20 = vpop.f32.mrf.mxu0  ;;  %v1652_v21 = vpop.f32.mrf.mxu1 }
  0xfc   : > { %v1486_v22 = vpack.c.bf16 %v1036_v16, %v1035_v14  ;;  %v1526_v23 = vpack.c.bf16 %v1052_v17, %v1051_v15  ;;  %v1605_v24 = vadd.f32 %v1604_v20, %v1603_v12  ;;  %v1653_v25 = vadd.f32 %v1652_v21, %v1651_v13 }
  0xfd   : > { %v1606_v26 = vpop.f32.mrf.mxu0  ;;  %v1654_v27 = vpop.f32.mrf.mxu1  ;;  %v1005_v28 = vadd.f32 %v1959_v59, %v966_v18  ;;  %v1021_v29 = vadd.f32 %v1959_v59, %v982_v19 }
  0xfe   : > { %1487 = vst [vmem:[%s1971_s15] sm:$0xff] %v1486_v22   ;;  %1570 = vst [vmem:[%s1971_s15 + $0x40] sm:$0xff] %v1526_v23   ;;  %v967_v30 = vmul.f32 %v1605_v24, %v1952_v51  ;;  %v983_v31 = vmul.f32 %v1653_v25, %v1952_v51 }
  0xff   : > { %v1607_v32 = vpop.f32.mrf.mxu0  ;;  %v1655_v33 = vpop.f32.mrf.mxu1  ;;  %v1037_v42 = vmax.f32 %v1005_v28, 0.0  ;;  %v1053_v43 = vmax.f32 %v1021_v29, 0.0 }
 0x100   : > { %v1608_v34 = vadd.f32 %v1607_v32, %v1606_v26  ;;  %v1656_v35 = vadd.f32 %v1655_v33, %v1654_v27  ;;  %v1006_v36 = vadd.f32 %v1959_v59, %v967_v30  ;;  %v1022_v37 = vadd.f32 %v1959_v59, %v983_v31 }
 0x101   : > { %v1609_v38 = vpop.f32.mrf.mxu0  ;;  %v1657_v39 = vpop.f32.mrf.mxu1 }
 0x102   : > { %v968_v40 = vmul.f32 %v1608_v34, %v1952_v51  ;;  %v984_v41 = vmul.f32 %v1656_v35, %v1952_v51  ;;  %v1038_v44 = vmax.f32 %v1006_v36, 0.0  ;;  %v1054_v45 = vmax.f32 %v1022_v37, 0.0 }
 0x103   : > { %v1610_v46 = vpop.f32.mrf.mxu0  ;;  %v1658_v47 = vpop.f32.mrf.mxu1 }
 0x104   : > { %v1611_v48 = vadd.f32 %v1610_v46, %v1609_v38  ;;  %v1659_v49 = vadd.f32 %v1658_v47, %v1657_v39  ;;  %v1491_v50 = vpack.c.bf16 %v1038_v44, %v1037_v42  ;;  %v1531_v52 = vpack.c.bf16 %v1054_v45, %v1053_v43 }
 0x105   : > { %v1612_v53 = vpop.f32.mrf.mxu0  ;;  %v1660_v54 = vpop.f32.mrf.mxu1  ;;  %v1007_v55 = vadd.f32 %v1959_v59, %v968_v40  ;;  %v1023_v56 = vadd.f32 %v1959_v59, %v984_v41 }
 0x106   : > { %v969_v57 = vmul.f32 %v1611_v48, %v1952_v51  ;;  %v985_v58 = vmul.f32 %v1659_v49, %v1952_v51  ;;  %1563 = vst [vmem:[%s1971_s15 + $0x8] sm:$0xff] %v1491_v50   ;;  %1571 = vst [vmem:[%s1971_s15 + $0x48] sm:$0xff] %v1531_v52  }
 0x107   : > { %v1613_v60 = vpop.f32.mrf.mxu0  ;;  %v1661_v61 = vpop.f32.mrf.mxu1  ;;  %v1039_v4 = vmax.f32 %v1007_v55, 0.0  ;;  %v1055_v5 = vmax.f32 %v1023_v56, 0.0 }
 0x108   : > { %v1008_v62 = vadd.f32 %v1959_v59, %v969_v57  ;;  %v1024_v63 = vadd.f32 %v1959_v59, %v985_v58  ;;  %v1614_v0 = vadd.f32 %v1613_v60, %v1612_v53  ;;  %v1662_v1 = vadd.f32 %v1661_v61, %v1660_v54 }
 0x109   : > { %v1615_v2 = vpop.f32.mrf.mxu0  ;;  %v1663_v3 = vpop.f32.mrf.mxu1 }
 0x10a   : > { %v1040_v6 = vmax.f32 %v1008_v62, 0.0  ;;  %v1056_v7 = vmax.f32 %v1024_v63, 0.0  ;;  %v970_v8 = vmul.f32 %v1614_v0, %v1952_v51  ;;  %v986_v9 = vmul.f32 %v1662_v1, %v1952_v51 }
 0x10b   : > { %v1616_v10 = vpop.f32.mrf.mxu0  ;;  %v1664_v11 = vpop.f32.mrf.mxu1 }
 0x10c   : > { %v1496_v12 = vpack.c.bf16 %v1040_v6, %v1039_v4  ;;  %v1536_v13 = vpack.c.bf16 %v1056_v7, %v1055_v5  ;;  %v1617_v14 = vadd.f32 %v1616_v10, %v1615_v2  ;;  %v1665_v15 = vadd.f32 %v1664_v11, %v1663_v3 }
 0x10d   : > { %v1618_v16 = vpop.f32.mrf.mxu0  ;;  %v1666_v17 = vpop.f32.mrf.mxu1  ;;  %v1009_v18 = vadd.f32 %v1959_v59, %v970_v8  ;;  %v1025_v19 = vadd.f32 %v1959_v59, %v986_v9 }
 0x10e   : > { %1564 = vst [vmem:[%s1971_s15 + $0x10] sm:$0xff] %v1496_v12   ;;  %1572 = vst [vmem:[%s1971_s15 + $0x50] sm:$0xff] %v1536_v13   ;;  %v971_v20 = vmul.f32 %v1617_v14, %v1952_v51  ;;  %v987_v21 = vmul.f32 %v1665_v15, %v1952_v51 }
 0x10f   : > { %v1619_v22 = vpop.f32.mrf.mxu0  ;;  %v1667_v23 = vpop.f32.mrf.mxu1  ;;  %v1041_v32 = vmax.f32 %v1009_v18, 0.0  ;;  %v1057_v33 = vmax.f32 %v1025_v19, 0.0 }
 0x110   : > { %v1620_v24 = vadd.f32 %v1619_v22, %v1618_v16  ;;  %v1668_v25 = vadd.f32 %v1667_v23, %v1666_v17  ;;  %v1010_v26 = vadd.f32 %v1959_v59, %v971_v20  ;;  %v1026_v27 = vadd.f32 %v1959_v59, %v987_v21 }
 0x111   : > { %v1621_v28 = vpop.f32.mrf.mxu0  ;;  %v1669_v29 = vpop.f32.mrf.mxu1 }
 0x112   : > { %v972_v30 = vmul.f32 %v1620_v24, %v1952_v51  ;;  %v988_v31 = vmul.f32 %v1668_v25, %v1952_v51  ;;  %v1042_v34 = vmax.f32 %v1010_v26, 0.0  ;;  %v1058_v35 = vmax.f32 %v1026_v27, 0.0 }
 0x113   : > { %v1622_v36 = vpop.f32.mrf.mxu0  ;;  %v1670_v37 = vpop.f32.mrf.mxu1 }
 0x114   : > { %v1623_v38 = vadd.f32 %v1622_v36, %v1621_v28  ;;  %v1671_v39 = vadd.f32 %v1670_v37, %v1669_v29  ;;  %v1501_v40 = vpack.c.bf16 %v1042_v34, %v1041_v32  ;;  %v1541_v41 = vpack.c.bf16 %v1058_v35, %v1057_v33 }
 0x115   : > { %v1624_v42 = vpop.f32.mrf.mxu0  ;;  %v1672_v43 = vpop.f32.mrf.mxu1  ;;  %v1011_v44 = vadd.f32 %v1959_v59, %v972_v30  ;;  %v1027_v45 = vadd.f32 %v1959_v59, %v988_v31 }
 0x116   : > { %v973_v46 = vmul.f32 %v1623_v38, %v1952_v51  ;;  %v989_v47 = vmul.f32 %v1671_v39, %v1952_v51  ;;  %1565 = vst [vmem:[%s1971_s15 + $0x18] sm:$0xff] %v1501_v40   ;;  %1573 = vst [vmem:[%s1971_s15 + $0x58] sm:$0xff] %v1541_v41  }
 0x117   : > { %v1625_v48 = vpop.f32.mrf.mxu0  ;;  %v1673_v49 = vpop.f32.mrf.mxu1  ;;  %v1043_v57 = vmax.f32 %v1011_v44, 0.0  ;;  %v1059_v58 = vmax.f32 %v1027_v45, 0.0 }
 0x118   : > { %v1012_v50 = vadd.f32 %v1959_v59, %v973_v46  ;;  %v1028_v52 = vadd.f32 %v1959_v59, %v989_v47  ;;  %v1626_v53 = vadd.f32 %v1625_v48, %v1624_v42  ;;  %v1674_v54 = vadd.f32 %v1673_v49, %v1672_v43 }
 0x119   : > { %v1627_v55 = vpop.f32.mrf.mxu0  ;;  %v1675_v56 = vpop.f32.mrf.mxu1 }
 0x11a   : > { %v1044_v60 = vmax.f32 %v1012_v50, 0.0  ;;  %v1060_v61 = vmax.f32 %v1028_v52, 0.0  ;;  %v974_v62 = vmul.f32 %v1626_v53, %v1952_v51  ;;  %v990_v63 = vmul.f32 %v1674_v54, %v1952_v51 }
 0x11b   : > { %v1628_v0 = vpop.f32.mrf.mxu0  ;;  %v1676_v1 = vpop.f32.mrf.mxu1 }
 0x11c   : > { %v1506_v2 = vpack.c.bf16 %v1044_v60, %v1043_v57  ;;  %v1546_v3 = vpack.c.bf16 %v1060_v61, %v1059_v58  ;;  %v1629_v4 = vadd.f32 %v1628_v0, %v1627_v55  ;;  %v1677_v5 = vadd.f32 %v1676_v1, %v1675_v56 }
 0x11d   : > { %v1630_v6 = vpop.f32.mrf.mxu0  ;;  %v1678_v7 = vpop.f32.mrf.mxu1  ;;  %v1013_v8 = vadd.f32 %v1959_v59, %v974_v62  ;;  %v1029_v9 = vadd.f32 %v1959_v59, %v990_v63 }
 0x11e   : > { %1566 = vst [vmem:[%s1971_s15 + $0x20] sm:$0xff] %v1506_v2   ;;  %1574 = vst [vmem:[%s1971_s15 + $0x60] sm:$0xff] %v1546_v3   ;;  %v975_v10 = vmul.f32 %v1629_v4, %v1952_v51  ;;  %v991_v11 = vmul.f32 %v1677_v5, %v1952_v51 }
 0x11f   : > { %v1631_v12 = vpop.f32.mrf.mxu0  ;;  %v1679_v13 = vpop.f32.mrf.mxu1  ;;  %v1045_v22 = vmax.f32 %v1013_v8, 0.0  ;;  %v1061_v23 = vmax.f32 %v1029_v9, 0.0 }
 0x120   : > { %v1632_v14 = vadd.f32 %v1631_v12, %v1630_v6  ;;  %v1680_v15 = vadd.f32 %v1679_v13, %v1678_v7  ;;  %v1014_v16 = vadd.f32 %v1959_v59, %v975_v10  ;;  %v1030_v17 = vadd.f32 %v1959_v59, %v991_v11 }
 0x121   : > { %v1633_v18 = vpop.f32.mrf.mxu0  ;;  %v1681_v19 = vpop.f32.mrf.mxu1 }
 0x122   : > { %v976_v20 = vmul.f32 %v1632_v14, %v1952_v51  ;;  %v992_v21 = vmul.f32 %v1680_v15, %v1952_v51  ;;  %v1046_v24 = vmax.f32 %v1014_v16, 0.0  ;;  %v1062_v25 = vmax.f32 %v1030_v17, 0.0 }
 0x123   : > { %v1634_v26 = vpop.f32.mrf.mxu0  ;;  %v1682_v27 = vpop.f32.mrf.mxu1 }
 0x124   : > { %v1635_v28 = vadd.f32 %v1634_v26, %v1633_v18  ;;  %v1683_v29 = vadd.f32 %v1682_v27, %v1681_v19  ;;  %v1511_v30 = vpack.c.bf16 %v1046_v24, %v1045_v22  ;;  %v1551_v31 = vpack.c.bf16 %v1062_v25, %v1061_v23 }
 0x125   : > { %v1636_v32 = vpop.f32.mrf.mxu0  ;;  %v1684_v33 = vpop.f32.mrf.mxu1  ;;  %v1015_v34 = vadd.f32 %v1959_v59, %v976_v20  ;;  %v1031_v35 = vadd.f32 %v1959_v59, %v992_v21 }
 0x126   : > { %v977_v36 = vmul.f32 %v1635_v28, %v1952_v51  ;;  %v993_v37 = vmul.f32 %v1683_v29, %v1952_v51  ;;  %1567 = vst [vmem:[%s1971_s15 + $0x28] sm:$0xff] %v1511_v30   ;;  %1575 = vst [vmem:[%s1971_s15 + $0x68] sm:$0xff] %v1551_v31  }
 0x127   : > { %v1637_v38 = vpop.f32.mrf.mxu0  ;;  %v1685_v39 = vpop.f32.mrf.mxu1  ;;  %v1047_v46 = vmax.f32 %v1015_v34, 0.0  ;;  %v1063_v47 = vmax.f32 %v1031_v35, 0.0 }
 0x128   : > { %v1016_v40 = vadd.f32 %v1959_v59, %v977_v36  ;;  %v1032_v41 = vadd.f32 %v1959_v59, %v993_v37  ;;  %v1638_v42 = vadd.f32 %v1637_v38, %v1636_v32  ;;  %v1686_v43 = vadd.f32 %v1685_v39, %v1684_v33 }
 0x129   : > { %v1639_v44 = vpop.f32.mrf.mxu0  ;;  %v1687_v45 = vpop.f32.mrf.mxu1 }
 0x12a   : > { %v1048_v48 = vmax.f32 %v1016_v40, 0.0  ;;  %v1064_v49 = vmax.f32 %v1032_v41, 0.0  ;;  %v978_v50 = vmul.f32 %v1638_v42, %v1952_v51  ;;  %v994_v52 = vmul.f32 %v1686_v43, %v1952_v51 }
 0x12b   : > { %v1640_v53 = vpop.f32.mrf.mxu0  ;;  %v1688_v54 = vpop.f32.mrf.mxu1 }
 0x12c   : > { %v1516_v55 = vpack.c.bf16 %v1048_v48, %v1047_v46  ;;  %v1556_v56 = vpack.c.bf16 %v1064_v49, %v1063_v47  ;;  %v1641_v57 = vadd.f32 %v1640_v53, %v1639_v44  ;;  %v1689_v58 = vadd.f32 %v1688_v54, %v1687_v45 }
 0x12d   : > { %v1017_v60 = vadd.f32 %v1959_v59, %v978_v50  ;;  %v1033_v61 = vadd.f32 %v1959_v59, %v994_v52 }
 0x12e   : > { %1568 = vst [vmem:[%s1971_s15 + $0x30] sm:$0xff] %v1516_v55   ;;  %1576 = vst [vmem:[%s1971_s15 + $0x70] sm:$0xff] %v1556_v56   ;;  %v979_v62 = vmul.f32 %v1641_v57, %v1952_v51  ;;  %v995_v63 = vmul.f32 %v1689_v58, %v1952_v51 }
 0x12f   : > { %v1049_v2 = vmax.f32 %v1017_v60, 0.0  ;;  %v1065_v3 = vmax.f32 %v1033_v61, 0.0 }
 0x130   : > { %v1018_v0 = vadd.f32 %v1959_v59, %v979_v62  ;;  %v1034_v1 = vadd.f32 %v1959_v59, %v995_v63 }
 0x132   : > { %v1050_v4 = vmax.f32 %v1018_v0, 0.0  ;;  %v1066_v5 = vmax.f32 %v1034_v1, 0.0 }
 0x134   : > { %v1521_v6 = vpack.c.bf16 %v1050_v4, %v1049_v2  ;;  %v1561_v7 = vpack.c.bf16 %v1066_v5, %v1065_v3 }
 0x136   : > { %1569 = vst [vmem:[%s1971_s15 + $0x38] sm:$0xff] %v1521_v6   ;;  %1577 = vst [vmem:[%s1971_s15 + $0x78] sm:$0xff] %v1561_v7  }
 0x137 PF: > { %s14_s17 = sadd.s32 1, %s1816_s17   ;;  %s2059_s15 = smov %s1812_s16 }
 0x138   : > { %p11_p5 = scmp.ge.s32.totalorder %s14_s17, 4   ;;  %s2060_s16 = smov %s2062_s18 }
 0x13a   :  { %13 = sbr.rel (!%p11_p5) target bundleno = 2 (0x2), region = 83 }

// kernel: violence_classifier_forward.24
= control target key start
LH: loop header
LB: loop body
LE: loop exit
PB: predicated region body
PF: predicated region fallthrough
CT: control target
= control target key end

     0   :  { %s1743_s15 = smov 0   ;;  %s1745_s16 = smov 0   ;;  %s1996_s0 = inlined_call_operand.vmem [shape: bf16[128,1152], index: 0, kind: input, shape index: {}]   ;;  %s1997_s1 = inlined_call_operand.vmem [shape: bf16[1152,128], index: 1, kind: input, shape index: {}]   ;;  %s1998_s2 = inlined_call_operand.vmem [shape: f32[1,128], index: 2, kind: input, shape index: {}]   ;;  %s1999_s3 = inlined_call_operand.vmem [shape: f32[1,128], index: 3, kind: input, shape index: {}]   ;;  %s2000_s4 = inlined_call_operand.vmem [shape: bf16[128,128], index: 4, kind: output, shape index: {}]  }
   0x1   :  { %s1747_s17 = smov 0   ;;  %s1749_s18 = smov 0  }
   0x2   :  { %s1751_s19 = smov 0  }
   0x3 LB: > { %s26_s20 = sadd.s32 1, %s1711_s18  ;;  %p49_p1 = scmp.ne.s32.totalorder %s1703_s16, %s1699_s15  ;;  %s1715_s19 = sphi %s1751_s19, %s14_s19   ;;  %s1711_s18 = sphi %s1749_s18, %s2004_s18   ;;  %s1707_s17 = sphi %s1747_s17, %s2003_s17   ;;  %s1703_s16 = sphi %s1745_s16, %s2002_s16   ;;  %s1699_s15 = sphi %s1743_s15, %s2001_s15  }
   0x4   : > { %p27_p0 = scmp.ge.s32.totalorder %s26_s20, 3  ;;  %p50_p2 = scmp.eq.s32.totalorder %s1715_s19, 0 }
   0x5   : > { %s42_s22 = sadd.s32 1, %s1703_s16  ;;  %p1294_p5 = scmp.ge.s32.totalorder %s1715_s19, 3 }
   0x6   : > { %s2006_s20 = smov (%p27_p0, %s26_s20), 0  ;;  %p51_p3 = por %p50_p2, %p49_p1 }
   0x7   : > { %s38_s21 = ssub.s32 %s1711_s18, %s2006_s20  ;;  %195 = sbr.rel (%p1294_p5) target bundleno = 35 (0x23), region = 24 }
   0x8   : > { %p40_p4 = scmp.eq.s32.totalorder %s38_s21, 0 }
   0xa   : > { %s1778_s23 = scalar_select %p40_p4, %s1703_s16, %s42_s22  }
   0xc   : > { %198 = sbr.rel (!%p51_p3) target bundleno = 35 (0x23), region = 28  ;;  %s200_s24 = sand.u32 (%p51_p3), 1, %s1703_s16  }
   0xd   : > { %s1402_s25 = smul.u32 (%p51_p3), 12, %s1711_s18 }
   0xe   : > { %s1578_s26 = smul.u32 (%p51_p3), 192, %s200_s24 }
   0xf   : > { %s1786_s29 = scalar_lea.vmem (%p51_p3), %s1996_s0, %s1402_s25 }
  0x10   : > { %v223_v0 = vld [vmem:[%s1786_s29] sm:$0xff] (%p51_p3)  ;;  %v227_v2 = vld [vmem:[%s1786_s29 + $0x48] sm:$0xff] (%p51_p3)  ;;  %s1791_s30 = scalar_lea.vmem (%p51_p3), [#allocation3], %s1578_s26  ;;  %v231_v4 = vld [vmem:[%s1786_s29 + $0x90] sm:$0xff] (%p51_p3) }
  0x11   : > { %v225_v1 = vld [vmem:[%s1786_s29 + $0x24] sm:$0xff]  ;;  %224 = vst [vmem:[%s1791_s30] sm:$0xff] %v223_v0  ;;  %228 = vst [vmem:[%s1791_s30 + $0x18] sm:$0xff] %v227_v2  ;;  %v229_v3 = vld [vmem:[%s1786_s29 + $0x6c] sm:$0xff] }
  0x12   : > { %226 = vst [vmem:[%s1791_s30 + $0xc] sm:$0xff] %v225_v1  ;;  %v233_v5 = vld [vmem:[%s1786_s29 + $0xb4] sm:$0xff]  ;;  %230 = vst [vmem:[%s1791_s30 + $0x24] sm:$0xff] %v229_v3  ;;  %v237_v7 = vld [vmem:[%s1786_s29 + $0xfc] sm:$0xff] }
  0x13   : > { %232 = vst [vmem:[%s1791_s30 + $0x30] sm:$0xff] %v231_v4  ;;  %234 = vst [vmem:[%s1791_s30 + $0x3c] sm:$0xff] %v233_v5  ;;  %v235_v6 = vld [vmem:[%s1786_s29 + $0xd8] sm:$0xff]  ;;  %v239_v8 = vld [vmem:[%s1786_s29 + $0x120] sm:$0xff] }
  0x14   : > { %236 = vst [vmem:[%s1791_s30 + $0x48] sm:$0xff] %v235_v6  ;;  %238 = vst [vmem:[%s1791_s30 + $0x54] sm:$0xff] %v237_v7  ;;  %v241_v9 = vld [vmem:[%s1786_s29 + $0x144] sm:$0xff]  ;;  %v245_v11 = vld [vmem:[%s1786_s29 + $0x18c] sm:$0xff] }
  0x15   : > { %240 = vst [vmem:[%s1791_s30 + $0x60] sm:$0xff] %v239_v8  ;;  %v243_v10 = vld [vmem:[%s1786_s29 + $0x168] sm:$0xff]  ;;  %242 = vst [vmem:[%s1791_s30 + $0x6c] sm:$0xff] %v241_v9  ;;  %v247_v12 = vld [vmem:[%s1786_s29 + $0x1b0] sm:$0xff] }
  0x16   : > { %244 = vst [vmem:[%s1791_s30 + $0x78] sm:$0xff] %v243_v10  ;;  %246 = vst [vmem:[%s1791_s30 + $0x84] sm:$0xff] %v245_v11  ;;  %v249_v13 = vld [vmem:[%s1786_s29 + $0x1d4] sm:$0xff]  ;;  %v253_v15 = vld [vmem:[%s1786_s29 + $0x21c] sm:$0xff] }
  0x17   : > { %v251_v14 = vld [vmem:[%s1786_s29 + $0x1f8] sm:$0xff]  ;;  %248 = vst [vmem:[%s1791_s30 + $0x90] sm:$0xff] %v247_v12  ;;  %250 = vst [vmem:[%s1791_s30 + $0x9c] sm:$0xff] %v249_v13  ;;  %v1296_v16 = vld [vmem:[%s1786_s29 + $0x8] sm:$0xf] }
  0x18   : > { %252 = vst [vmem:[%s1791_s30 + $0xa8] sm:$0xff] %v251_v14  ;;  %v1298_v17 = vld [vmem:[%s1786_s29 + $0x2c] sm:$0xf]  ;;  %254 = vst [vmem:[%s1791_s30 + $0xb4] sm:$0xff] %v253_v15  ;;  %v1300_v18 = vld [vmem:[%s1786_s29 + $0x50] sm:$0xf] }
  0x19   : > { %1297 = vst [vmem:[%s1791_s30 + $0x8] sm:$0xf] %v1296_v16  ;;  %1299 = vst [vmem:[%s1791_s30 + $0x14] sm:$0xf] %v1298_v17  ;;  %v1302_v19 = vld [vmem:[%s1786_s29 + $0x74] sm:$0xf] }
  0x1a   : > { %v1304_v20 = vld [vmem:[%s1786_s29 + $0x98] sm:$0xf]  ;;  %1301 = vst [vmem:[%s1791_s30 + $0x20] sm:$0xf] %v1300_v18  ;;  %1303 = vst [vmem:[%s1791_s30 + $0x2c] sm:$0xf] %v1302_v19 }
  0x1b   : > { %1305 = vst [vmem:[%s1791_s30 + $0x38] sm:$0xf] %v1304_v20  ;;  %v1306_v21 = vld [vmem:[%s1786_s29 + $0xbc] sm:$0xf]  ;;  %v1308_v22 = vld [vmem:[%s1786_s29 + $0xe0] sm:$0xf] }
  0x1c   : > { %v1310_v23 = vld [vmem:[%s1786_s29 + $0x104] sm:$0xf]  ;;  %1307 = vst [vmem:[%s1791_s30 + $0x44] sm:$0xf] %v1306_v21  ;;  %1309 = vst [vmem:[%s1791_s30 + $0x50] sm:$0xf] %v1308_v22 }
  0x1d   : > { %1311 = vst [vmem:[%s1791_s30 + $0x5c] sm:$0xf] %v1310_v23  ;;  %v1312_v24 = vld [vmem:[%s1786_s29 + $0x128] sm:$0xf]  ;;  %v1314_v25 = vld [vmem:[%s1786_s29 + $0x14c] sm:$0xf] }
  0x1e   : > { %v1316_v26 = vld [vmem:[%s1786_s29 + $0x170] sm:$0xf]  ;;  %1313 = vst [vmem:[%s1791_s30 + $0x68] sm:$0xf] %v1312_v24  ;;  %1315 = vst [vmem:[%s1791_s30 + $0x74] sm:$0xf] %v1314_v25 }
  0x1f   : > { %1317 = vst [vmem:[%s1791_s30 + $0x80] sm:$0xf] %v1316_v26  ;;  %v1318_v27 = vld [vmem:[%s1786_s29 + $0x194] sm:$0xf]  ;;  %v1320_v28 = vld [vmem:[%s1786_s29 + $0x1b8] sm:$0xf] }
  0x20   : > { %v1322_v29 = vld [vmem:[%s1786_s29 + $0x1dc] sm:$0xf]  ;;  %1319 = vst [vmem:[%s1791_s30 + $0x8c] sm:$0xf] %v1318_v27  ;;  %1321 = vst [vmem:[%s1791_s30 + $0x98] sm:$0xf] %v1320_v28 }
  0x21   : > { %1323 = vst [vmem:[%s1791_s30 + $0xa4] sm:$0xf] %v1322_v29  ;;  %v1324_v30 = vld [vmem:[%s1786_s29 + $0x200] sm:$0xf]  ;;  %v1326_v31 = vld [vmem:[%s1786_s29 + $0x224] sm:$0xf] }
  0x22   : > { %1325 = vst [vmem:[%s1791_s30 + $0xb0] sm:$0xf] %v1324_v30  ;;  %1327 = vst [vmem:[%s1791_s30 + $0xbc] sm:$0xf] %v1326_v31 }
  0x23 PF: > { %p1328_p6 = scmp.ge.s32.totalorder %s1715_s19, 1  ;;  %p311_p7 = scmp.lt.s32.totalorder %s1715_s19, 4 }
  0x25   : > { %p312_p8 = pnand %p1328_p6, %p311_p7 }
  0x26   : > { %s318_s5 = sand.u32 (!%p312_p8), 1, %s1699_s15   ;;  %s362_s6 = smul.u32 (!%p312_p8), 48, %s1707_s17 }
  0x27   : > { %315 = sbr.rel (%p312_p8) target bundleno = 375 (0x177), region = 58  ;;  %p1330_p10 = scmp.ne.s32.totalorder (!%p312_p8), %s1707_s17, 0 }
  0x28   : > { %s1579_s7 = smul.u32 (!%p312_p8), 192, %s318_s5  ;;  %p363_p9 = scmp.lt.s32.totalorder (!%p312_p8), %s362_s6, 143 }
  0x2a   : > { %s1863_s12 = scalar_lea.vmem (!%p312_p8), [#allocation3], %s1579_s7 }
  0x2c   : > { %s2008_s6 = smov (!%p363_p9, %s362_s6), 143  ;;  %390 = sbr.rel (%p1330_p10) target bundleno = 58 (0x3a), region = 66 }
  0x2d   : > { %s1329_s8 = sshll.u32 %s2008_s6, 2 }
  0x2e   : > { %s1861_s11 = scalar_lea.vmem %s1997_s1, %s1329_s8 }
  0x31   : > { %v1717_v32 = vmov 0.0  }
  0x32   : > { %391 = vst [vmem:[#allocation2 + $0x30] sm:$0xff] %v1717_v32  ;;  %392 = vst [vmem:[#allocation2] sm:$0xff] %v1717_v32 }
  0x33   : > { %393 = vst [vmem:[#allocation2 + $0x58] sm:$0xff] %v1717_v32  ;;  %394 = vst [vmem:[#allocation2 + $0x18] sm:$0xff] %v1717_v32 }
  0x34   : > { %395 = vst [vmem:[#allocation2 + $0x50] sm:$0xff] %v1717_v32  ;;  %396 = vst [vmem:[#allocation2 + $0x68] sm:$0xff] %v1717_v32 }
  0x35   : > { %397 = vst [vmem:[#allocation2 + $0x8] sm:$0xff] %v1717_v32  ;;  %398 = vst [vmem:[#allocation2 + $0x48] sm:$0xff] %v1717_v32 }
  0x36   : > { %399 = vst [vmem:[#allocation2 + $0x40] sm:$0xff] %v1717_v32  ;;  %400 = vst [vmem:[#allocation2 + $0x20] sm:$0xff] %v1717_v32 }
  0x37   : > { %401 = vst [vmem:[#allocation2 + $0x10] sm:$0xff] %v1717_v32  ;;  %402 = vst [vmem:[#allocation2 + $0x38] sm:$0xff] %v1717_v32 }
  0x38   : > { %403 = vst [vmem:[#allocation2 + $0x60] sm:$0xff] %v1717_v32  ;;  %404 = vst [vmem:[#allocation2 + $0x70] sm:$0xff] %v1717_v32 }
  0x39   : > { %405 = vst [vmem:[#allocation2 + $0x78] sm:$0xff] %v1717_v32  ;;  %406 = vst [vmem:[#allocation2 + $0x28] sm:$0xff] %v1717_v32 }
  0x3a PF: > { %v1621_v33 = vld [vmem:[%s1861_s11 + $0x78] sm:$0xff]   ;;  %v1624_v36 = vld [vmem:[%s1861_s11 + $0x70] sm:$0xff]   ;;  %v1627_v39 = vld [vmem:[%s1861_s11 + $0x68] sm:$0xff]   ;;  %p1379_p11 = scmp.ne.s32.totalorder %s1707_s17, 2 }
  0x3b   : > { %v1622_v34 = vld [vmem:[%s1861_s11 + $0x38] sm:$0xff]   ;;  %1466 = vmatprep.subr.bf16.mxu0 %v1621_v33  ;;  %v1625_v37 = vld [vmem:[%s1861_s11 + $0x30] sm:$0xff]   ;;  %v1628_v40 = vld [vmem:[%s1861_s11 + $0x28] sm:$0xff]  }
  0x3c   : > { %v1623_v35 = vld [vmem:[%s1861_s11 + $0xb8] sm:$0xff]   ;;  %1467 = vmatpush3.bf16.msra.mxu0 %v1622_v34  ;;  %v1626_v38 = vld [vmem:[%s1861_s11 + $0xb0] sm:$0xff]   ;;  %v1629_v41 = vld [vmem:[%s1861_s11 + $0xa8] sm:$0xff]  }
  0x3d   : > { %1546 = vmatprep.subr.bf16.mxu1 %v1623_v35  ;;  %1468 = vmatprep.subr.bf16.mxu0 %v1624_v36  ;;  %v1630_v42 = vld [vmem:[%s1861_s11 + $0x60] sm:$0xff]   ;;  %v1633_v45 = vld [vmem:[%s1861_s11 + $0x58] sm:$0xff]   ;;  %v1636_v48 = vld [vmem:[%s1861_s11 + $0x50] sm:$0xff]  }
  0x3e   : > { %1547 = vmatpush3.bf16.msra.mxu1 %v1623_v35  ;;  %v1631_v43 = vld [vmem:[%s1861_s11 + $0x20] sm:$0xff]   ;;  %v1635_v46 = vld [vmem:[%s1861_s11 + $0x98] sm:$0xff]   ;;  %v1638_v49 = vld [vmem:[%s1861_s11 + $0x90] sm:$0xff]  }
  0x3f   : > { %1548 = vmatprep.subr.bf16.mxu1 %v1626_v38  ;;  %v1632_v44 = vld [vmem:[%s1861_s11 + $0xa0] sm:$0xff]   ;;  %v1634_v47 = vld [vmem:[%s1861_s11 + $0x18] sm:$0xff]   ;;  %v1637_v50 = vld [vmem:[%s1861_s11 + $0x10] sm:$0xff]  }
  0x40   : > { %1469 = vmatpush3.bf16.msra.mxu0 %v1625_v37  ;;  %v1639_v51 = vld [vmem:[%s1861_s11 + $0x48] sm:$0xff]   ;;  %v1642_v54 = vld [vmem:[%s1861_s11 + $0x40] sm:$0xff]   ;;  %v1657_v1 = vld [vmem:[%s1863_s12 + $0x50] ss:$12 sps:$4 sm:$0xff]  }
  0x41   : > { %1470 = vmatprep.subr.bf16.mxu0 %v1627_v39  ;;  %v1640_v52 = vld [vmem:[%s1861_s11 + $0x8] sm:$0xff]   ;;  %v1644_v55 = vld [vmem:[%s1861_s11 + $0x80] sm:$0xff]   ;;  %v1655_v3 = vld [vmem:[%s1863_s12 + $0x30] ss:$12 sps:$4 sm:$0xff]  }
  0x42   : > { %1549 = vmatpush3.bf16.msra.mxu1 %v1626_v38  ;;  %v1641_v53 = vld [vmem:[%s1861_s11 + $0x88] sm:$0xff]   ;;  %v1647_v56 = vld [vmem:[%s1863_s12 + $0x4] ss:$12 sps:$4 sm:$0xff]   ;;  %v1653_v0 = vld [vmem:[%s1863_s12 + $0x34] ss:$12 sps:$4 sm:$0xff]  }
  0x43   : > { %1550 = vmatprep.subr.bf16.mxu1 %v1629_v41  ;;  %v1648_v57 = vld [vmem:[%s1863_s12 + $0x8] ss:$12 sps:$4 sm:$0xff]   ;;  %v1643_v58 = vld [vmem:[%s1861_s11] sm:$0xff]   ;;  %807 = vmatprep.mubr.bf16.mxu0 %v1647_v56  ;;  %v1658_v4 = vld [vmem:[%s1863_s12 + $0x4c] ss:$12 sps:$4 sm:$0xff]  }
  0x44   : > { %1471 = vmatpush3.bf16.msra.mxu0 %v1628_v40  ;;  %1562 = vmatprep.mubr.bf16.mxu1 %v1648_v57  ;;  %v1645_v59 = vld [vmem:[%s1863_s12] ss:$12 sps:$4 sm:$0xff]   ;;  %v1650_v60 = vld [vmem:[%s1863_s12 + $0x1c] ss:$12 sps:$4 sm:$0xff]   ;;  %v1656_v62 = vld [vmem:[%s1863_s12 + $0x38] ss:$12 sps:$4 sm:$0xff]  }
  0x45   : > { %1472 = vmatprep.subr.bf16.mxu0 %v1630_v42  ;;  %v1649_v61 = vld [vmem:[%s1863_s12 + $0x20] ss:$12 sps:$4 sm:$0xff]   ;;  %v1652_v63 = vld [vmem:[%s1863_s12 + $0x18] ss:$12 sps:$4 sm:$0xff]   ;;  %v1664_v2 = vld [vmem:[%s1863_s12 + $0x68] ss:$12 sps:$4 sm:$0xff]  }
  0x46   : > { %1551 = vmatpush3.bf16.msra.mxu1 %v1629_v41  ;;  %v1665_v5 = vld [vmem:[%s1863_s12 + $0x80] ss:$12 sps:$4 sm:$0xff]   ;;  %v1672_v6 = vld [vmem:[%s1863_s12 + $0x98] ss:$12 sps:$4 sm:$0xff]   ;;  %v1660_v7 = vld [vmem:[%s1863_s12 + $0x48] ss:$12 sps:$4 sm:$0xff]  }
  0x47   : > { %1552 = vmatprep.subr.bf16.mxu1 %v1632_v44  ;;  %v1661_v8 = vld [vmem:[%s1863_s12 + $0x64] ss:$12 sps:$4 sm:$0xff]   ;;  %v1663_v10 = vld [vmem:[%s1863_s12 + $0x60] ss:$12 sps:$4 sm:$0xff]   ;;  %v1666_v11 = vld [vmem:[%s1863_s12 + $0x7c] ss:$12 sps:$4 sm:$0xff]  }
  0x48   : > { %1473 = vmatpush3.bf16.msra.mxu0 %v1631_v43  ;;  %v1673_v9 = vld [vmem:[%s1863_s12 + $0xb0] ss:$12 sps:$4 sm:$0xff]   ;;  %v1668_v12 = vld [vmem:[%s1863_s12 + $0x78] ss:$12 sps:$4 sm:$0xff]   ;;  %v1669_v13 = vld [vmem:[%s1863_s12 + $0x94] ss:$12 sps:$4 sm:$0xff]  }
  0x49   : > { %1474 = vmatprep.subr.bf16.mxu0 %v1633_v45  ;;  %v1671_v14 = vld [vmem:[%s1863_s12 + $0x90] ss:$12 sps:$4 sm:$0xff]   ;;  %v1674_v15 = vld [vmem:[%s1863_s12 + $0xac] ss:$12 sps:$4 sm:$0xff]   ;;  %v1676_v16 = vld [vmem:[%s1863_s12 + $0xa8] ss:$12 sps:$4 sm:$0xff]  }
  0x4a   : > { %1553 = vmatpush3.bf16.msra.mxu1 %v1632_v44  ;;  %v407_v22 = vld [vmem:[#allocation2 + $0x30] sm:$0xff]  ;;  %v408_v30 = vld [vmem:[#allocation2] sm:$0xff]  ;;  %v409_v37 = vld [vmem:[#allocation2 + $0x58] sm:$0xff] }
  0x4b   : > { %1554 = vmatprep.subr.bf16.mxu1 %v1635_v46  ;;  %v410_v44 = vld [vmem:[#allocation2 + $0x18] sm:$0xff] }
  0x4c   : > { %1475 = vmatpush3.bf16.msra.mxu0 %v1634_v47 }
  0x4d   : > { %1476 = vmatprep.subr.bf16.mxu0 %v1636_v48 }
  0x4e   : > { %1555 = vmatpush3.bf16.msra.mxu1 %v1635_v46 }
  0x4f   : > { %1556 = vmatprep.subr.bf16.mxu1 %v1638_v49 }
  0x50   : > { %1477 = vmatpush3.bf16.msra.mxu0 %v1637_v50 }
  0x51   : > { %1478 = vmatprep.subr.bf16.mxu0 %v1639_v51 }
  0x52   : > { %1557 = vmatpush3.bf16.msra.mxu1 %v1638_v49 }
  0x53   : > { %1558 = vmatprep.subr.bf16.mxu1 %v1641_v53 }
  0x54   : > { %1479 = vmatpush3.bf16.msra.mxu0 %v1640_v52  ;;  %v411_v52 = vld [vmem:[#allocation2 + $0x50] sm:$0xff] }
  0x55   : > { %1480 = vmatprep.subr.bf16.mxu0 %v1642_v54 }
  0x56   : > { %1559 = vmatpush3.bf16.msra.mxu1 %v1641_v53 }
  0x57   : > { %1560 = vmatprep.subr.bf16.mxu1 %v1644_v55 }
  0x58   : > { %1481 = vmatpush3.bf16.msra.mxu0 %v1643_v58 }
  0x5a   : > { %1561 = vmatpush3.bf16.msra.mxu1 %v1644_v55 }
  0x5b   : > { %808 = vmatmul.mubr.bf16.vlgmr.msra.gmra.mxu0 %v1645_v59  ;;  %v412_v59 = vld [vmem:[#allocation2 + $0x68] sm:$0xff] }
  0x5c   : > { %815 = vmatprep.mubr.bf16.mxu0 %v1650_v60 }
  0x5d   : > { %1563 = vmatmul.mubr.bf16.vlgmr.msra.gmra.mxu1 %v1649_v61 }
  0x5e   : > { %1566 = vmatprep.mubr.bf16.mxu1 %v1656_v62 }
  0x63   : > { %816 = vmatmul.mubr.bf16.gmra.mxu0 %v1652_v63 }
  0x64   : > { %823 = vmatprep.mubr.bf16.mxu0 %v1653_v0 }
  0x65   : > { %1567 = vmatmul.mubr.bf16.gmra.mxu1 %v1657_v1  ;;  %v413_v1 = vld [vmem:[#allocation2 + $0x8] sm:$0xff] }
  0x66   : > { %1570 = vmatprep.mubr.bf16.mxu1 %v1664_v2 }
  0x6b   : > { %824 = vmatmul.mubr.bf16.gmra.mxu0 %v1655_v3 }
  0x6c   : > { %831 = vmatprep.mubr.bf16.mxu0 %v1658_v4 }
  0x6d   : > { %1571 = vmatmul.mubr.bf16.gmra.mxu1 %v1665_v5 }
  0x6e   : > { %1574 = vmatprep.mubr.bf16.mxu1 %v1672_v6 }
  0x73   : > { %832 = vmatmul.mubr.bf16.gmra.mxu0 %v1660_v7 }
  0x74   : > { %839 = vmatprep.mubr.bf16.mxu0 %v1661_v8  ;;  %v414_v8 = vld [vmem:[#allocation2 + $0x48] sm:$0xff] }
  0x75   : > { %1575 = vmatmul.mubr.bf16.gmra.mxu1 %v1673_v9 }
  0x7b   : > { %840 = vmatmul.mubr.bf16.gmra.mxu0 %v1663_v10 }
  0x7c   : > { %847 = vmatprep.mubr.bf16.mxu0 %v1666_v11 }
  0x83   : > { %848 = vmatmul.mubr.bf16.gmra.mxu0 %v1668_v12 }
  0x84   : > { %855 = vmatprep.mubr.bf16.mxu0 %v1669_v13 }
  0x8b   : > { %856 = vmatmul.mubr.bf16.gmra.mxu0 %v1671_v14 }
  0x8c   : > { %863 = vmatprep.mubr.bf16.mxu0 %v1674_v15 }
  0x93   : > { %864 = vmatmul.mubr.bf16.gmra.mxu0 %v1676_v16  ;;  %v415_v16 = vld [vmem:[#allocation2 + $0x40] sm:$0xff] }
 0x11b   : > { %v1482_v17 = vpop.f32.mrf.mxu0 }
 0x11d   : > { %v1483_v18 = vpop.f32.mrf.mxu0  ;;  %v1564_v19 = vpop.f32.mrf.mxu1 }
 0x11e   : > { %v1484_v20 = vadd.f32 %v1483_v18, %v1482_v17 }
 0x11f   : > { %v1485_v21 = vpop.f32.mrf.mxu0  ;;  %v906_v23 = vpop.f32.mrf.mxu1 }
 0x120   : > { %v907_v24 = vadd.f32 %v1484_v20, %v906_v23  ;;  %v416_v23 = vld [vmem:[#allocation2 + $0x20] sm:$0xff] }
 0x121   : > { %v1486_v25 = vpop.f32.mrf.mxu0  ;;  %v1565_v26 = vpop.f32.mrf.mxu1 }
 0x122   : > { %v969_v27 = vadd.f32 %v907_v24, %v407_v22  ;;  %v1487_v28 = vadd.f32 %v1486_v25, %v1485_v21 }
 0x123   : > { %v1488_v29 = vpop.f32.mrf.mxu0  ;;  %v909_v31 = vpop.f32.mrf.mxu1 }
 0x124   : > { %985 = vst [vmem:[#allocation2 + $0x30] sm:$0xff] %v969_v27  ;;  %v910_v32 = vadd.f32 %v1487_v28, %v909_v31 }
 0x125   : > { %v1489_v33 = vpop.f32.mrf.mxu0  ;;  %v1568_v34 = vpop.f32.mrf.mxu1 }
 0x126   : > { %v970_v35 = vadd.f32 %v910_v32, %v408_v30  ;;  %v1490_v36 = vadd.f32 %v1489_v33, %v1488_v29  ;;  %v417_v29 = vld [vmem:[#allocation2 + $0x10] sm:$0xff] }
 0x127   : > { %v1491_v38 = vpop.f32.mrf.mxu0  ;;  %v922_v41 = vpop.f32.mrf.mxu1 }
 0x128   : > { %986 = vst [vmem:[#allocation2] sm:$0xff] %v970_v35  ;;  %v915_v39 = vadd.f32 %v1564_v19, %v1490_v36  ;;  %v418_v36 = vld [vmem:[#allocation2 + $0x38] sm:$0xff] }
 0x129   : > { %v1492_v40 = vpop.f32.mrf.mxu0  ;;  %v1569_v48 = vpop.f32.mrf.mxu1 }
 0x12a   : > { %v971_v42 = vadd.f32 %v915_v39, %v409_v37  ;;  %v1493_v43 = vadd.f32 %v1492_v40, %v1491_v38 }
 0x12b   : > { %v1494_v45 = vpop.f32.mrf.mxu0  ;;  %v925_v55 = vpop.f32.mrf.mxu1 }
 0x12c   : > { %987 = vst [vmem:[#allocation2 + $0x58] sm:$0xff] %v971_v42  ;;  %v918_v46 = vadd.f32 %v1565_v26, %v1493_v43 }
 0x12d   : > { %v1495_v47 = vpop.f32.mrf.mxu0  ;;  %v1572_v62 = vpop.f32.mrf.mxu1 }
 0x12e   : > { %v972_v49 = vadd.f32 %v918_v46, %v410_v44  ;;  %v1496_v50 = vadd.f32 %v1495_v47, %v1494_v45  ;;  %v419_v44 = vld [vmem:[#allocation2 + $0x60] sm:$0xff] }
 0x12f   : > { %v1497_v51 = vpop.f32.mrf.mxu0  ;;  %v938_v5 = vpop.f32.mrf.mxu1 }
 0x130   : > { %988 = vst [vmem:[#allocation2 + $0x18] sm:$0xff] %v972_v49  ;;  %v923_v53 = vadd.f32 %v1496_v50, %v922_v41 }
 0x131   : > { %v1498_v54 = vpop.f32.mrf.mxu0  ;;  %v1573_v12 = vpop.f32.mrf.mxu1 }
 0x132   : > { %v973_v56 = vadd.f32 %v923_v53, %v411_v52  ;;  %v1499_v57 = vadd.f32 %v1498_v54, %v1497_v51  ;;  %v420_v51 = vld [vmem:[#allocation2 + $0x70] sm:$0xff] }
 0x133   : > { %v1500_v58 = vpop.f32.mrf.mxu0  ;;  %v941_v19 = vpop.f32.mrf.mxu1 }
 0x134   : > { %989 = vst [vmem:[#allocation2 + $0x50] sm:$0xff] %v973_v56  ;;  %v926_v60 = vadd.f32 %v1499_v57, %v925_v55  ;;  %v421_v56 = vld [vmem:[#allocation2 + $0x78] sm:$0xff] }
 0x135   : > { %v1501_v61 = vpop.f32.mrf.mxu0  ;;  %v1576_v26 = vpop.f32.mrf.mxu1 }
 0x136   : > { %v974_v63 = vadd.f32 %v926_v60, %v412_v59  ;;  %v1502_v0 = vadd.f32 %v1501_v61, %v1500_v58 }
 0x137   : > { %v1503_v2 = vpop.f32.mrf.mxu0  ;;  %v954_v33 = vpop.f32.mrf.mxu1 }
 0x138   : > { %990 = vst [vmem:[#allocation2 + $0x68] sm:$0xff] %v974_v63  ;;  %v931_v3 = vadd.f32 %v1568_v34, %v1502_v0 }
 0x139   : > { %v1504_v4 = vpop.f32.mrf.mxu0  ;;  %v1577_v40 = vpop.f32.mrf.mxu1 }
 0x13a   : > { %v975_v6 = vadd.f32 %v931_v3, %v413_v1  ;;  %v1505_v7 = vadd.f32 %v1504_v4, %v1503_v2 }
 0x13b   : > { %v1506_v9 = vpop.f32.mrf.mxu0  ;;  %v957_v47 = vpop.f32.mrf.mxu1 }
 0x13c   : > { %991 = vst [vmem:[#allocation2 + $0x8] sm:$0xff] %v975_v6  ;;  %v934_v10 = vadd.f32 %v1569_v48, %v1505_v7 }
 0x13d   : > { %v1507_v11 = vpop.f32.mrf.mxu0 }
 0x13e   : > { %v976_v13 = vadd.f32 %v934_v10, %v414_v8  ;;  %v1508_v14 = vadd.f32 %v1507_v11, %v1506_v9 }
 0x13f   : > { %v1509_v15 = vpop.f32.mrf.mxu0 }
 0x140   : > { %992 = vst [vmem:[#allocation2 + $0x48] sm:$0xff] %v976_v13  ;;  %v939_v17 = vadd.f32 %v1508_v14, %v938_v5 }
 0x141   : > { %v1510_v18 = vpop.f32.mrf.mxu0 }
 0x142   : > { %v977_v20 = vadd.f32 %v939_v17, %v415_v16  ;;  %v1511_v21 = vadd.f32 %v1510_v18, %v1509_v15 }
 0x143   : > { %v1512_v22 = vpop.f32.mrf.mxu0 }
 0x144   : > { %993 = vst [vmem:[#allocation2 + $0x40] sm:$0xff] %v977_v20  ;;  %v942_v24 = vadd.f32 %v1511_v21, %v941_v19 }
 0x145   : > { %v1513_v25 = vpop.f32.mrf.mxu0 }
 0x146   : > { %v978_v27 = vadd.f32 %v942_v24, %v416_v23  ;;  %v1514_v28 = vadd.f32 %v1513_v25, %v1512_v22 }
 0x147   : > { %v1515_v30 = vpop.f32.mrf.mxu0 }
 0x148   : > { %994 = vst [vmem:[#allocation2 + $0x20] sm:$0xff] %v978_v27  ;;  %v947_v31 = vadd.f32 %v1572_v62, %v1514_v28  ;;  %v422_v62 = vld [vmem:[#allocation2 + $0x28] sm:$0xff] }
 0x149   : > { %v1516_v32 = vpop.f32.mrf.mxu0 }
 0x14a   : > { %v979_v34 = vadd.f32 %v947_v31, %v417_v29  ;;  %v1517_v35 = vadd.f32 %v1516_v32, %v1515_v30 }
 0x14b   : > { %v1518_v37 = vpop.f32.mrf.mxu0 }
 0x14c   : > { %995 = vst [vmem:[#allocation2 + $0x10] sm:$0xff] %v979_v34  ;;  %v950_v38 = vadd.f32 %v1573_v12, %v1517_v35 }
 0x14d   : > { %v1519_v39 = vpop.f32.mrf.mxu0 }
 0x14e   : > { %v980_v41 = vadd.f32 %v950_v38, %v418_v36  ;;  %v1520_v42 = vadd.f32 %v1519_v39, %v1518_v37 }
 0x14f   : > { %v1521_v43 = vpop.f32.mrf.mxu0 }
 0x150   : > { %996 = vst [vmem:[#allocation2 + $0x38] sm:$0xff] %v980_v41  ;;  %v955_v45 = vadd.f32 %v1520_v42, %v954_v33 }
 0x151   : > { %v1522_v46 = vpop.f32.mrf.mxu0 }
 0x152   : > { %v981_v48 = vadd.f32 %v955_v45, %v419_v44  ;;  %v1523_v49 = vadd.f32 %v1522_v46, %v1521_v43 }
 0x153   : > { %v1524_v50 = vpop.f32.mrf.mxu0 }
 0x154   : > { %997 = vst [vmem:[#allocation2 + $0x60] sm:$0xff] %v981_v48  ;;  %v958_v52 = vadd.f32 %v1523_v49, %v957_v47 }
 0x155   : > { %v1525_v53 = vpop.f32.mrf.mxu0 }
 0x156   : > { %v982_v54 = vadd.f32 %v958_v52, %v420_v51  ;;  %v1526_v55 = vadd.f32 %v1525_v53, %v1524_v50 }
 0x157   : > { %v1527_v57 = vpop.f32.mrf.mxu0 }
 0x158   : > { %998 = vst [vmem:[#allocation2 + $0x70] sm:$0xff] %v982_v54  ;;  %v963_v58 = vadd.f32 %v1576_v26, %v1526_v55 }
 0x159   : > { %v1528_v59 = vpop.f32.mrf.mxu0 }
 0x15a   : > { %v983_v60 = vadd.f32 %v963_v58, %v421_v56  ;;  %v1529_v61 = vadd.f32 %v1528_v59, %v1527_v57 }
 0x15c   : > { %999 = vst [vmem:[#allocation2 + $0x78] sm:$0xff] %v983_v60  ;;  %v966_v63 = vadd.f32 %v1577_v40, %v1529_v61  ;;  %1004 = sbr.rel (%p1379_p11) target bundleno = 375 (0x177), region = 70 }
 0x15e   : > { %v984_v0 = vadd.f32 %v966_v63, %v422_v62 }
 0x160   : > { %1000 = vst [vmem:[#allocation2 + $0x28] sm:$0xff] %v984_v0 }
 0x161   : > { %v1005_v1 = vld [vmem:[#allocation2 + $0x30] sm:$0xff]  ;;  %v1006_v2 = vld [vmem:[#allocation2] sm:$0xff]  ;;  %v1007_v7 = vld [vmem:[#allocation2 + $0x58] sm:$0xff] }
 0x162   : > { %v1918_v3 = vld [vmem:[%s1998_s2] ss:$0 sm:$0xff]  ;;  %v1008_v8 = vld [vmem:[#allocation2 + $0x18] sm:$0xff]  ;;  %v1009_v11 = vld [vmem:[#allocation2 + $0x50] sm:$0xff] }
 0x163   : > { %v1028_v4 = vmul.f32 %v1918_v3, %v1005_v1  ;;  %v1029_v5 = vmul.f32 %v1918_v3, %v1006_v2  ;;  %v1925_v6 = vld [vmem:[%s1999_s3] ss:$0 sm:$0xff]  ;;  %v1030_v9 = vmul.f32 %v1918_v3, %v1007_v7  ;;  %v1031_v10 = vmul.f32 %v1918_v3, %v1008_v8  ;;  %v1010_v12 = vld [vmem:[#allocation2 + $0x68] sm:$0xff]  ;;  %v1015_v33 = vld [vmem:[#allocation2 + $0x10] sm:$0xff] }
 0x164   : > { %v1011_v13 = vld [vmem:[#allocation2 + $0x8] sm:$0xff]  ;;  %v1032_v16 = vmul.f32 %v1918_v3, %v1009_v11  ;;  %v1033_v17 = vmul.f32 %v1918_v3, %v1010_v12  ;;  %v1013_v23 = vld [vmem:[#allocation2 + $0x40] sm:$0xff]  ;;  %v1016_v34 = vld [vmem:[#allocation2 + $0x38] sm:$0xff]  ;;  %v1038_v48 = vmul.f32 %v1918_v3, %v1015_v33 }
 0x165   : > { %v1051_v14 = vadd.f32 %v1925_v6, %v1028_v4  ;;  %v1052_v15 = vadd.f32 %v1925_v6, %v1029_v5  ;;  %v1012_v18 = vld [vmem:[#allocation2 + $0x48] sm:$0xff]  ;;  %v1053_v19 = vadd.f32 %v1925_v6, %v1030_v9  ;;  %v1054_v20 = vadd.f32 %v1925_v6, %v1031_v10  ;;  %v1014_v28 = vld [vmem:[#allocation2 + $0x20] sm:$0xff]  ;;  %v1018_v40 = vld [vmem:[#allocation2 + $0x70] sm:$0xff] }
 0x166   : > { %v1034_v21 = vmul.f32 %v1918_v3, %v1011_v13  ;;  %v1035_v22 = vmul.f32 %v1918_v3, %v1012_v18  ;;  %v1055_v26 = vadd.f32 %v1925_v6, %v1032_v16  ;;  %v1056_v27 = vadd.f32 %v1925_v6, %v1033_v17  ;;  %v1017_v39 = vld [vmem:[#allocation2 + $0x60] sm:$0xff]  ;;  %v1019_v45 = vld [vmem:[#allocation2 + $0x78] sm:$0xff] }
 0x167   : > { %v1067_v24 = vmax.f32 %v1051_v14, 0.0  ;;  %v1068_v25 = vmax.f32 %v1052_v15, 0.0  ;;  %v1069_v29 = vmax.f32 %v1053_v19, 0.0  ;;  %v1070_v30 = vmax.f32 %v1054_v20, 0.0  ;;  %v1020_v50 = vld [vmem:[#allocation2 + $0x28] sm:$0xff] }
 0x168   : > { %v1057_v31 = vadd.f32 %v1925_v6, %v1034_v21  ;;  %v1058_v32 = vadd.f32 %v1925_v6, %v1035_v22  ;;  %v1071_v36 = vmax.f32 %v1055_v26, 0.0  ;;  %v1072_v37 = vmax.f32 %v1056_v27, 0.0 }
 0x169   : > { %v1422_v35 = vpack.c.bf16 %v1068_v25, %v1067_v24  ;;  %v1036_v38 = vmul.f32 %v1918_v3, %v1013_v23  ;;  %v1427_v41 = vpack.c.bf16 %v1070_v30, %v1069_v29  ;;  %v1037_v44 = vmul.f32 %v1918_v3, %v1014_v28 }
 0x16a   : > { %v1073_v42 = vmax.f32 %v1057_v31, 0.0  ;;  %v1074_v43 = vmax.f32 %v1058_v32, 0.0  ;;  %v1432_v46 = vpack.c.bf16 %v1072_v37, %v1071_v36  ;;  %v1039_v49 = vmul.f32 %v1918_v3, %v1016_v34 }
 0x16b   : > { %1423 = vst [vmem:[%s2000_s4] sm:$0xff] %v1422_v35   ;;  %v1059_v47 = vadd.f32 %v1925_v6, %v1036_v38  ;;  %1459 = vst [vmem:[%s2000_s4 + $0x8] sm:$0xff] %v1427_v41   ;;  %v1060_v52 = vadd.f32 %v1925_v6, %v1037_v44  ;;  %v1040_v53 = vmul.f32 %v1918_v3, %v1017_v39 }
 0x16c   : > { %v1437_v51 = vpack.c.bf16 %v1074_v43, %v1073_v42  ;;  %v1041_v54 = vmul.f32 %v1918_v3, %v1018_v40  ;;  %1460 = vst [vmem:[%s2000_s4 + $0x10] sm:$0xff] %v1432_v46   ;;  %v1061_v56 = vadd.f32 %v1925_v6, %v1038_v48  ;;  %v1062_v57 = vadd.f32 %v1925_v6, %v1039_v49 }
 0x16d   : > { %v1075_v55 = vmax.f32 %v1059_v47, 0.0  ;;  %v1042_v58 = vmul.f32 %v1918_v3, %v1019_v45  ;;  %v1076_v59 = vmax.f32 %v1060_v52, 0.0  ;;  %v1063_v60 = vadd.f32 %v1925_v6, %v1040_v53 }
 0x16e   : > { %1461 = vst [vmem:[%s2000_s4 + $0x18] sm:$0xff] %v1437_v51   ;;  %v1064_v61 = vadd.f32 %v1925_v6, %v1041_v54  ;;  %v1043_v62 = vmul.f32 %v1918_v3, %v1020_v50  ;;  %v1077_v63 = vmax.f32 %v1061_v56, 0.0  ;;  %v1078_v0 = vmax.f32 %v1062_v57, 0.0 }
 0x16f   : > { %v1065_v1 = vadd.f32 %v1925_v6, %v1042_v58  ;;  %v1442_v2 = vpack.c.bf16 %v1076_v59, %v1075_v55  ;;  %v1079_v4 = vmax.f32 %v1063_v60, 0.0 }
 0x170   : > { %v1080_v5 = vmax.f32 %v1064_v61, 0.0  ;;  %v1066_v7 = vadd.f32 %v1925_v6, %v1043_v62  ;;  %v1447_v8 = vpack.c.bf16 %v1078_v0, %v1077_v63 }
 0x171   : > { %v1081_v9 = vmax.f32 %v1065_v1, 0.0  ;;  %1462 = vst [vmem:[%s2000_s4 + $0x20] sm:$0xff] %v1442_v2  }
 0x172   : > { %v1452_v10 = vpack.c.bf16 %v1080_v5, %v1079_v4  ;;  %v1082_v11 = vmax.f32 %v1066_v7, 0.0  ;;  %1463 = vst [vmem:[%s2000_s4 + $0x28] sm:$0xff] %v1447_v8  }
 0x174   : > { %1464 = vst [vmem:[%s2000_s4 + $0x30] sm:$0xff] %v1452_v10   ;;  %v1457_v3 = vpack.c.bf16 %v1082_v11, %v1081_v9 }
 0x176   : > { %1465 = vst [vmem:[%s2000_s4 + $0x38] sm:$0xff] %v1457_v3  }
 0x177 PF: > { %s14_s19 = sadd.s32 1, %s1715_s19   ;;  %s2001_s15 = smov %s1703_s16 }
 0x178   : > { %p11_p12 = scmp.ge.s32.totalorder %s14_s19, 5   ;;  %s2002_s16 = smov %s1778_s23 }
 0x179   : > { %s2003_s17 = smov %s1711_s18  ;;  %s2004_s18 = smov %s2006_s20 }
 0x17a   :  { %13 = sbr.rel (!%p11_p12) target bundleno = 3 (0x3), region = 120 }

// kernel: violence_classifier_forward.25
= control target key start
LH: loop header
LB: loop body
LE: loop exit
PB: predicated region body
PF: predicated region fallthrough
CT: control target
= control target key end

     0   :  { %s1914_s18 = smov 0   ;;  %s1916_s19 = smov 0   ;;  %s2191_s0 = inlined_call_operand.vmem [shape: bf16[128,1152], index: 0, kind: input, shape index: {}]   ;;  %s2192_s1 = inlined_call_operand.vmem [shape: bf16[1152,128], index: 1, kind: input, shape index: {}]   ;;  %s2193_s2 = inlined_call_operand.vmem [shape: f32[1,128], index: 2, kind: input, shape index: {}]   ;;  %s2194_s3 = inlined_call_operand.vmem [shape: f32[1,128], index: 3, kind: input, shape index: {}]   ;;  %s2195_s4 = inlined_call_operand.vmem [shape: bf16[128,128], index: 4, kind: input, shape index: {}]   ;;  %s2196_s5 = inlined_call_operand.vmem [shape: bf16[128,128], index: 5, kind: output, shape index: {}]  }
   0x1   :  { %s1918_s20 = smov 0   ;;  %s1920_s21 = smov 0  }
   0x2   :  { %s1922_s22 = smov 0  }
   0x3 LB: > { %s27_s23 = sadd.s32 1, %s1877_s21  ;;  %p50_p1 = scmp.ne.s32.totalorder %s1869_s19, %s1865_s18  ;;  %s1881_s22 = sphi %s1922_s22, %s15_s22   ;;  %s1877_s21 = sphi %s1920_s21, %s2200_s21   ;;  %s1873_s20 = sphi %s1918_s20, %s2199_s20   ;;  %s1869_s19 = sphi %s1916_s19, %s2198_s19   ;;  %s1865_s18 = sphi %s1914_s18, %s2197_s18  }
   0x4   : > { %p28_p0 = scmp.ge.s32.totalorder %s27_s23, 3  ;;  %p51_p2 = scmp.eq.s32.totalorder %s1881_s22, 0 }
   0x5   : > { %s43_s25 = sadd.s32 1, %s1869_s19  ;;  %p1421_p5 = scmp.ge.s32.totalorder %s1881_s22, 3 }
   0x6   : > { %s2202_s23 = smov (%p28_p0, %s27_s23), 0  ;;  %p52_p3 = por %p51_p2, %p50_p1 }
   0x7   : > { %s39_s24 = ssub.s32 %s1877_s21, %s2202_s23  ;;  %236 = sbr.rel (%p1421_p5) target bundleno = 35 (0x23), region = 28 }
   0x8   : > { %p41_p4 = scmp.eq.s32.totalorder %s39_s24, 0 }
   0xa   : > { %s1949_s26 = scalar_select %p41_p4, %s1869_s19, %s43_s25  }
   0xc   : > { %239 = sbr.rel (!%p52_p3) target bundleno = 35 (0x23), region = 32  ;;  %s241_s27 = sand.u32 (%p52_p3), 1, %s1869_s19  }
   0xd   : > { %s1529_s28 = smul.u32 (%p52_p3), 12, %s1877_s21 }
   0xe   : > { %s1744_s29 = smul.u32 (%p52_p3), 192, %s241_s27 }
   0xf   : > { %s1957_s7 = scalar_lea.vmem (%p52_p3), %s2191_s0, %s1529_s28 }
  0x10   : > { %v264_v0 = vld [vmem:[%s1957_s7] sm:$0xff] (%p52_p3)  ;;  %v268_v2 = vld [vmem:[%s1957_s7 + $0x48] sm:$0xff] (%p52_p3)  ;;  %s1962_s8 = scalar_lea.vmem (%p52_p3), [#allocation3], %s1744_s29  ;;  %v272_v4 = vld [vmem:[%s1957_s7 + $0x90] sm:$0xff] (%p52_p3) }
  0x11   : > { %v266_v1 = vld [vmem:[%s1957_s7 + $0x24] sm:$0xff]  ;;  %265 = vst [vmem:[%s1962_s8] sm:$0xff] %v264_v0  ;;  %269 = vst [vmem:[%s1962_s8 + $0x18] sm:$0xff] %v268_v2  ;;  %v270_v3 = vld [vmem:[%s1957_s7 + $0x6c] sm:$0xff] }
  0x12   : > { %267 = vst [vmem:[%s1962_s8 + $0xc] sm:$0xff] %v266_v1  ;;  %v274_v5 = vld [vmem:[%s1957_s7 + $0xb4] sm:$0xff]  ;;  %271 = vst [vmem:[%s1962_s8 + $0x24] sm:$0xff] %v270_v3  ;;  %v278_v7 = vld [vmem:[%s1957_s7 + $0xfc] sm:$0xff] }
  0x13   : > { %273 = vst [vmem:[%s1962_s8 + $0x30] sm:$0xff] %v272_v4  ;;  %275 = vst [vmem:[%s1962_s8 + $0x3c] sm:$0xff] %v274_v5  ;;  %v276_v6 = vld [vmem:[%s1957_s7 + $0xd8] sm:$0xff]  ;;  %v280_v8 = vld [vmem:[%s1957_s7 + $0x120] sm:$0xff] }
  0x14   : > { %277 = vst [vmem:[%s1962_s8 + $0x48] sm:$0xff] %v276_v6  ;;  %279 = vst [vmem:[%s1962_s8 + $0x54] sm:$0xff] %v278_v7  ;;  %v282_v9 = vld [vmem:[%s1957_s7 + $0x144] sm:$0xff]  ;;  %v286_v11 = vld [vmem:[%s1957_s7 + $0x18c] sm:$0xff] }
  0x15   : > { %281 = vst [vmem:[%s1962_s8 + $0x60] sm:$0xff] %v280_v8  ;;  %v284_v10 = vld [vmem:[%s1957_s7 + $0x168] sm:$0xff]  ;;  %283 = vst [vmem:[%s1962_s8 + $0x6c] sm:$0xff] %v282_v9  ;;  %v288_v12 = vld [vmem:[%s1957_s7 + $0x1b0] sm:$0xff] }
  0x16   : > { %285 = vst [vmem:[%s1962_s8 + $0x78] sm:$0xff] %v284_v10  ;;  %287 = vst [vmem:[%s1962_s8 + $0x84] sm:$0xff] %v286_v11  ;;  %v290_v13 = vld [vmem:[%s1957_s7 + $0x1d4] sm:$0xff]  ;;  %v294_v15 = vld [vmem:[%s1957_s7 + $0x21c] sm:$0xff] }
  0x17   : > { %v292_v14 = vld [vmem:[%s1957_s7 + $0x1f8] sm:$0xff]  ;;  %289 = vst [vmem:[%s1962_s8 + $0x90] sm:$0xff] %v288_v12  ;;  %291 = vst [vmem:[%s1962_s8 + $0x9c] sm:$0xff] %v290_v13  ;;  %v1423_v16 = vld [vmem:[%s1957_s7 + $0x8] sm:$0xf] }
  0x18   : > { %293 = vst [vmem:[%s1962_s8 + $0xa8] sm:$0xff] %v292_v14  ;;  %v1425_v17 = vld [vmem:[%s1957_s7 + $0x2c] sm:$0xf]  ;;  %295 = vst [vmem:[%s1962_s8 + $0xb4] sm:$0xff] %v294_v15  ;;  %v1427_v18 = vld [vmem:[%s1957_s7 + $0x50] sm:$0xf] }
  0x19   : > { %1424 = vst [vmem:[%s1962_s8 + $0x8] sm:$0xf] %v1423_v16  ;;  %1426 = vst [vmem:[%s1962_s8 + $0x14] sm:$0xf] %v1425_v17  ;;  %v1429_v19 = vld [vmem:[%s1957_s7 + $0x74] sm:$0xf] }
  0x1a   : > { %v1431_v20 = vld [vmem:[%s1957_s7 + $0x98] sm:$0xf]  ;;  %1428 = vst [vmem:[%s1962_s8 + $0x20] sm:$0xf] %v1427_v18  ;;  %1430 = vst [vmem:[%s1962_s8 + $0x2c] sm:$0xf] %v1429_v19 }
  0x1b   : > { %1432 = vst [vmem:[%s1962_s8 + $0x38] sm:$0xf] %v1431_v20  ;;  %v1433_v21 = vld [vmem:[%s1957_s7 + $0xbc] sm:$0xf]  ;;  %v1435_v22 = vld [vmem:[%s1957_s7 + $0xe0] sm:$0xf] }
  0x1c   : > { %v1437_v23 = vld [vmem:[%s1957_s7 + $0x104] sm:$0xf]  ;;  %1434 = vst [vmem:[%s1962_s8 + $0x44] sm:$0xf] %v1433_v21  ;;  %1436 = vst [vmem:[%s1962_s8 + $0x50] sm:$0xf] %v1435_v22 }
  0x1d   : > { %1438 = vst [vmem:[%s1962_s8 + $0x5c] sm:$0xf] %v1437_v23  ;;  %v1439_v24 = vld [vmem:[%s1957_s7 + $0x128] sm:$0xf]  ;;  %v1441_v25 = vld [vmem:[%s1957_s7 + $0x14c] sm:$0xf] }
  0x1e   : > { %v1443_v26 = vld [vmem:[%s1957_s7 + $0x170] sm:$0xf]  ;;  %1440 = vst [vmem:[%s1962_s8 + $0x68] sm:$0xf] %v1439_v24  ;;  %1442 = vst [vmem:[%s1962_s8 + $0x74] sm:$0xf] %v1441_v25 }
  0x1f   : > { %1444 = vst [vmem:[%s1962_s8 + $0x80] sm:$0xf] %v1443_v26  ;;  %v1445_v27 = vld [vmem:[%s1957_s7 + $0x194] sm:$0xf]  ;;  %v1447_v28 = vld [vmem:[%s1957_s7 + $0x1b8] sm:$0xf] }
  0x20   : > { %v1449_v29 = vld [vmem:[%s1957_s7 + $0x1dc] sm:$0xf]  ;;  %1446 = vst [vmem:[%s1962_s8 + $0x8c] sm:$0xf] %v1445_v27  ;;  %1448 = vst [vmem:[%s1962_s8 + $0x98] sm:$0xf] %v1447_v28 }
  0x21   : > { %1450 = vst [vmem:[%s1962_s8 + $0xa4] sm:$0xf] %v1449_v29  ;;  %v1451_v30 = vld [vmem:[%s1957_s7 + $0x200] sm:$0xf]  ;;  %v1453_v31 = vld [vmem:[%s1957_s7 + $0x224] sm:$0xf] }
  0x22   : > { %1452 = vst [vmem:[%s1962_s8 + $0xb0] sm:$0xf] %v1451_v30  ;;  %1454 = vst [vmem:[%s1962_s8 + $0xbc] sm:$0xf] %v1453_v31 }
  0x23 PF: > { %p1455_p6 = scmp.ge.s32.totalorder %s1881_s22, 1  ;;  %p352_p7 = scmp.lt.s32.totalorder %s1881_s22, 4 }
  0x25   : > { %p353_p8 = pnand %p1455_p6, %p352_p7 }
  0x26   : > { %s359_s9 = sand.u32 (!%p353_p8), 1, %s1865_s18   ;;  %s413_s10 = smul.u32 (!%p353_p8), 48, %s1873_s20 }
  0x27   : > { %356 = sbr.rel (%p353_p8) target bundleno = 383 (0x17f), region = 62  ;;  %p1457_p10 = scmp.ne.s32.totalorder (!%p353_p8), %s1873_s20, 0 }
  0x28   : > { %s1745_s11 = smul.u32 (!%p353_p8), 192, %s359_s9  ;;  %p414_p9 = scmp.lt.s32.totalorder (!%p353_p8), %s413_s10, 143 }
  0x2a   : > { %s2034_s16 = scalar_lea.vmem (!%p353_p8), [#allocation3], %s1745_s11 }
  0x2c   : > { %s2204_s10 = smov (!%p414_p9, %s413_s10), 143  ;;  %450 = sbr.rel (%p1457_p10) target bundleno = 58 (0x3a), region = 70 }
  0x2d   : > { %s1456_s12 = sshll.u32 %s2204_s10, 2 }
  0x2e   : > { %s2032_s15 = scalar_lea.vmem %s2192_s1, %s1456_s12 }
  0x31   : > { %v1883_v32 = vmov 0.0  }
  0x32   : > { %451 = vst [vmem:[#allocation2 + $0x30] sm:$0xff] %v1883_v32  ;;  %452 = vst [vmem:[#allocation2] sm:$0xff] %v1883_v32 }
  0x33   : > { %453 = vst [vmem:[#allocation2 + $0x58] sm:$0xff] %v1883_v32  ;;  %454 = vst [vmem:[#allocation2 + $0x18] sm:$0xff] %v1883_v32 }
  0x34   : > { %455 = vst [vmem:[#allocation2 + $0x50] sm:$0xff] %v1883_v32  ;;  %456 = vst [vmem:[#allocation2 + $0x68] sm:$0xff] %v1883_v32 }
  0x35   : > { %457 = vst [vmem:[#allocation2 + $0x8] sm:$0xff] %v1883_v32  ;;  %458 = vst [vmem:[#allocation2 + $0x48] sm:$0xff] %v1883_v32 }
  0x36   : > { %459 = vst [vmem:[#allocation2 + $0x40] sm:$0xff] %v1883_v32  ;;  %460 = vst [vmem:[#allocation2 + $0x20] sm:$0xff] %v1883_v32 }
  0x37   : > { %461 = vst [vmem:[#allocation2 + $0x10] sm:$0xff] %v1883_v32  ;;  %462 = vst [vmem:[#allocation2 + $0x38] sm:$0xff] %v1883_v32 }
  0x38   : > { %463 = vst [vmem:[#allocation2 + $0x60] sm:$0xff] %v1883_v32  ;;  %464 = vst [vmem:[#allocation2 + $0x70] sm:$0xff] %v1883_v32 }
  0x39   : > { %465 = vst [vmem:[#allocation2 + $0x78] sm:$0xff] %v1883_v32  ;;  %466 = vst [vmem:[#allocation2 + $0x28] sm:$0xff] %v1883_v32 }
  0x3a PF: > { %v1787_v33 = vld [vmem:[%s2032_s15 + $0x78] sm:$0xff]   ;;  %v1790_v36 = vld [vmem:[%s2032_s15 + $0x70] sm:$0xff]   ;;  %v1793_v39 = vld [vmem:[%s2032_s15 + $0x68] sm:$0xff]   ;;  %p1506_p11 = scmp.ne.s32.totalorder %s1873_s20, 2 }
  0x3b   : > { %v1788_v34 = vld [vmem:[%s2032_s15 + $0x38] sm:$0xff]   ;;  %1632 = vmatprep.subr.bf16.mxu0 %v1787_v33  ;;  %v1791_v37 = vld [vmem:[%s2032_s15 + $0x30] sm:$0xff]   ;;  %v1794_v40 = vld [vmem:[%s2032_s15 + $0x28] sm:$0xff]  }
  0x3c   : > { %v1789_v35 = vld [vmem:[%s2032_s15 + $0xb8] sm:$0xff]   ;;  %1633 = vmatpush3.bf16.msra.mxu0 %v1788_v34  ;;  %v1792_v38 = vld [vmem:[%s2032_s15 + $0xb0] sm:$0xff]   ;;  %v1795_v41 = vld [vmem:[%s2032_s15 + $0xa8] sm:$0xff]  }
  0x3d   : > { %1712 = vmatprep.subr.bf16.mxu1 %v1789_v35  ;;  %1634 = vmatprep.subr.bf16.mxu0 %v1790_v36  ;;  %v1796_v42 = vld [vmem:[%s2032_s15 + $0x60] sm:$0xff]   ;;  %v1799_v45 = vld [vmem:[%s2032_s15 + $0x58] sm:$0xff]   ;;  %v1802_v48 = vld [vmem:[%s2032_s15 + $0x50] sm:$0xff]  }
  0x3e   : > { %1713 = vmatpush3.bf16.msra.mxu1 %v1789_v35  ;;  %v1797_v43 = vld [vmem:[%s2032_s15 + $0x20] sm:$0xff]   ;;  %v1801_v46 = vld [vmem:[%s2032_s15 + $0x98] sm:$0xff]   ;;  %v1804_v49 = vld [vmem:[%s2032_s15 + $0x90] sm:$0xff]  }
  0x3f   : > { %1714 = vmatprep.subr.bf16.mxu1 %v1792_v38  ;;  %v1798_v44 = vld [vmem:[%s2032_s15 + $0xa0] sm:$0xff]   ;;  %v1800_v47 = vld [vmem:[%s2032_s15 + $0x18] sm:$0xff]   ;;  %v1803_v50 = vld [vmem:[%s2032_s15 + $0x10] sm:$0xff]  }
  0x40   : > { %1635 = vmatpush3.bf16.msra.mxu0 %v1791_v37  ;;  %v1805_v51 = vld [vmem:[%s2032_s15 + $0x48] sm:$0xff]   ;;  %v1808_v54 = vld [vmem:[%s2032_s15 + $0x40] sm:$0xff]   ;;  %v1823_v1 = vld [vmem:[%s2034_s16 + $0x50] ss:$12 sps:$4 sm:$0xff]  }
  0x41   : > { %1636 = vmatprep.subr.bf16.mxu0 %v1793_v39  ;;  %v1806_v52 = vld [vmem:[%s2032_s15 + $0x8] sm:$0xff]   ;;  %v1810_v55 = vld [vmem:[%s2032_s15 + $0x80] sm:$0xff]   ;;  %v1821_v3 = vld [vmem:[%s2034_s16 + $0x30] ss:$12 sps:$4 sm:$0xff]  }
  0x42   : > { %1715 = vmatpush3.bf16.msra.mxu1 %v1792_v38  ;;  %v1807_v53 = vld [vmem:[%s2032_s15 + $0x88] sm:$0xff]   ;;  %v1813_v56 = vld [vmem:[%s2034_s16 + $0x4] ss:$12 sps:$4 sm:$0xff]   ;;  %v1819_v0 = vld [vmem:[%s2034_s16 + $0x34] ss:$12 sps:$4 sm:$0xff]  }
  0x43   : > { %1716 = vmatprep.subr.bf16.mxu1 %v1795_v41  ;;  %v1814_v57 = vld [vmem:[%s2034_s16 + $0x8] ss:$12 sps:$4 sm:$0xff]   ;;  %v1809_v58 = vld [vmem:[%s2032_s15] sm:$0xff]   ;;  %867 = vmatprep.mubr.bf16.mxu0 %v1813_v56  ;;  %v1824_v4 = vld [vmem:[%s2034_s16 + $0x4c] ss:$12 sps:$4 sm:$0xff]  }
  0x44   : > { %1637 = vmatpush3.bf16.msra.mxu0 %v1794_v40  ;;  %1728 = vmatprep.mubr.bf16.mxu1 %v1814_v57  ;;  %v1811_v59 = vld [vmem:[%s2034_s16] ss:$12 sps:$4 sm:$0xff]   ;;  %v1816_v60 = vld [vmem:[%s2034_s16 + $0x1c] ss:$12 sps:$4 sm:$0xff]   ;;  %v1822_v62 = vld [vmem:[%s2034_s16 + $0x38] ss:$12 sps:$4 sm:$0xff]  }
  0x45   : > { %1638 = vmatprep.subr.bf16.mxu0 %v1796_v42  ;;  %v1815_v61 = vld [vmem:[%s2034_s16 + $0x20] ss:$12 sps:$4 sm:$0xff]   ;;  %v1818_v63 = vld [vmem:[%s2034_s16 + $0x18] ss:$12 sps:$4 sm:$0xff]   ;;  %v1830_v2 = vld [vmem:[%s2034_s16 + $0x68] ss:$12 sps:$4 sm:$0xff]  }
  0x46   : > { %1717 = vmatpush3.bf16.msra.mxu1 %v1795_v41  ;;  %v1831_v5 = vld [vmem:[%s2034_s16 + $0x80] ss:$12 sps:$4 sm:$0xff]   ;;  %v1838_v6 = vld [vmem:[%s2034_s16 + $0x98] ss:$12 sps:$4 sm:$0xff]   ;;  %v1826_v7 = vld [vmem:[%s2034_s16 + $0x48] ss:$12 sps:$4 sm:$0xff]  }
  0x47   : > { %1718 = vmatprep.subr.bf16.mxu1 %v1798_v44  ;;  %v1827_v8 = vld [vmem:[%s2034_s16 + $0x64] ss:$12 sps:$4 sm:$0xff]   ;;  %v1829_v10 = vld [vmem:[%s2034_s16 + $0x60] ss:$12 sps:$4 sm:$0xff]   ;;  %v1832_v11 = vld [vmem:[%s2034_s16 + $0x7c] ss:$12 sps:$4 sm:$0xff]  }
  0x48   : > { %1639 = vmatpush3.bf16.msra.mxu0 %v1797_v43  ;;  %v1839_v9 = vld [vmem:[%s2034_s16 + $0xb0] ss:$12 sps:$4 sm:$0xff]   ;;  %v1834_v12 = vld [vmem:[%s2034_s16 + $0x78] ss:$12 sps:$4 sm:$0xff]   ;;  %v1835_v13 = vld [vmem:[%s2034_s16 + $0x94] ss:$12 sps:$4 sm:$0xff]  }
  0x49   : > { %1640 = vmatprep.subr.bf16.mxu0 %v1799_v45  ;;  %v1837_v14 = vld [vmem:[%s2034_s16 + $0x90] ss:$12 sps:$4 sm:$0xff]   ;;  %v1840_v15 = vld [vmem:[%s2034_s16 + $0xac] ss:$12 sps:$4 sm:$0xff]   ;;  %v1842_v16 = vld [vmem:[%s2034_s16 + $0xa8] ss:$12 sps:$4 sm:$0xff]  }
  0x4a   : > { %1719 = vmatpush3.bf16.msra.mxu1 %v1798_v44  ;;  %v467_v22 = vld [vmem:[#allocation2 + $0x30] sm:$0xff]  ;;  %v468_v30 = vld [vmem:[#allocation2] sm:$0xff]  ;;  %v469_v37 = vld [vmem:[#allocation2 + $0x58] sm:$0xff] }
  0x4b   : > { %1720 = vmatprep.subr.bf16.mxu1 %v1801_v46  ;;  %v470_v44 = vld [vmem:[#allocation2 + $0x18] sm:$0xff] }
  0x4c   : > { %1641 = vmatpush3.bf16.msra.mxu0 %v1800_v47 }
  0x4d   : > { %1642 = vmatprep.subr.bf16.mxu0 %v1802_v48 }
  0x4e   : > { %1721 = vmatpush3.bf16.msra.mxu1 %v1801_v46 }
  0x4f   : > { %1722 = vmatprep.subr.bf16.mxu1 %v1804_v49 }
  0x50   : > { %1643 = vmatpush3.bf16.msra.mxu0 %v1803_v50 }
  0x51   : > { %1644 = vmatprep.subr.bf16.mxu0 %v1805_v51 }
  0x52   : > { %1723 = vmatpush3.bf16.msra.mxu1 %v1804_v49 }
  0x53   : > { %1724 = vmatprep.subr.bf16.mxu1 %v1807_v53 }
  0x54   : > { %1645 = vmatpush3.bf16.msra.mxu0 %v1806_v52  ;;  %v471_v52 = vld [vmem:[#allocation2 + $0x50] sm:$0xff] }
  0x55   : > { %1646 = vmatprep.subr.bf16.mxu0 %v1808_v54 }
  0x56   : > { %1725 = vmatpush3.bf16.msra.mxu1 %v1807_v53 }
  0x57   : > { %1726 = vmatprep.subr.bf16.mxu1 %v1810_v55 }
  0x58   : > { %1647 = vmatpush3.bf16.msra.mxu0 %v1809_v58 }
  0x5a   : > { %1727 = vmatpush3.bf16.msra.mxu1 %v1810_v55 }
  0x5b   : > { %868 = vmatmul.mubr.bf16.vlgmr.msra.gmra.mxu0 %v1811_v59  ;;  %v472_v59 = vld [vmem:[#allocation2 + $0x68] sm:$0xff] }
  0x5c   : > { %875 = vmatprep.mubr.bf16.mxu0 %v1816_v60 }
  0x5d   : > { %1729 = vmatmul.mubr.bf16.vlgmr.msra.gmra.mxu1 %v1815_v61 }
  0x5e   : > { %1732 = vmatprep.mubr.bf16.mxu1 %v1822_v62 }
  0x63   : > { %876 = vmatmul.mubr.bf16.gmra.mxu0 %v1818_v63 }
  0x64   : > { %883 = vmatprep.mubr.bf16.mxu0 %v1819_v0 }
  0x65   : > { %1733 = vmatmul.mubr.bf16.gmra.mxu1 %v1823_v1  ;;  %v473_v1 = vld [vmem:[#allocation2 + $0x8] sm:$0xff] }
  0x66   : > { %1736 = vmatprep.mubr.bf16.mxu1 %v1830_v2 }
  0x6b   : > { %884 = vmatmul.mubr.bf16.gmra.mxu0 %v1821_v3 }
  0x6c   : > { %891 = vmatprep.mubr.bf16.mxu0 %v1824_v4 }
  0x6d   : > { %1737 = vmatmul.mubr.bf16.gmra.mxu1 %v1831_v5 }
  0x6e   : > { %1740 = vmatprep.mubr.bf16.mxu1 %v1838_v6 }
  0x73   : > { %892 = vmatmul.mubr.bf16.gmra.mxu0 %v1826_v7 }
  0x74   : > { %899 = vmatprep.mubr.bf16.mxu0 %v1827_v8  ;;  %v474_v8 = vld [vmem:[#allocation2 + $0x48] sm:$0xff] }
  0x75   : > { %1741 = vmatmul.mubr.bf16.gmra.mxu1 %v1839_v9 }
  0x7b   : > { %900 = vmatmul.mubr.bf16.gmra.mxu0 %v1829_v10 }
  0x7c   : > { %907 = vmatprep.mubr.bf16.mxu0 %v1832_v11 }
  0x83   : > { %908 = vmatmul.mubr.bf16.gmra.mxu0 %v1834_v12 }
  0x84   : > { %915 = vmatprep.mubr.bf16.mxu0 %v1835_v13 }
  0x8b   : > { %916 = vmatmul.mubr.bf16.gmra.mxu0 %v1837_v14 }
  0x8c   : > { %923 = vmatprep.mubr.bf16.mxu0 %v1840_v15 }
  0x93   : > { %924 = vmatmul.mubr.bf16.gmra.mxu0 %v1842_v16  ;;  %v475_v16 = vld [vmem:[#allocation2 + $0x40] sm:$0xff] }
 0x11b   : > { %v1648_v17 = vpop.f32.mrf.mxu0 }
 0x11d   : > { %v1649_v18 = vpop.f32.mrf.mxu0  ;;  %v1730_v19 = vpop.f32.mrf.mxu1 }
 0x11e   : > { %v1650_v20 = vadd.f32 %v1649_v18, %v1648_v17 }
 0x11f   : > { %v1651_v21 = vpop.f32.mrf.mxu0  ;;  %v966_v23 = vpop.f32.mrf.mxu1 }
 0x120   : > { %v967_v24 = vadd.f32 %v1650_v20, %v966_v23  ;;  %v476_v23 = vld [vmem:[#allocation2 + $0x20] sm:$0xff] }
 0x121   : > { %v1652_v25 = vpop.f32.mrf.mxu0  ;;  %v1731_v26 = vpop.f32.mrf.mxu1 }
 0x122   : > { %v1029_v27 = vadd.f32 %v967_v24, %v467_v22  ;;  %v1653_v28 = vadd.f32 %v1652_v25, %v1651_v21 }
 0x123   : > { %v1654_v29 = vpop.f32.mrf.mxu0  ;;  %v969_v31 = vpop.f32.mrf.mxu1 }
 0x124   : > { %1045 = vst [vmem:[#allocation2 + $0x30] sm:$0xff] %v1029_v27  ;;  %v970_v32 = vadd.f32 %v1653_v28, %v969_v31 }
 0x125   : > { %v1655_v33 = vpop.f32.mrf.mxu0  ;;  %v1734_v34 = vpop.f32.mrf.mxu1 }
 0x126   : > { %v1030_v35 = vadd.f32 %v970_v32, %v468_v30  ;;  %v1656_v36 = vadd.f32 %v1655_v33, %v1654_v29  ;;  %v477_v29 = vld [vmem:[#allocation2 + $0x10] sm:$0xff] }
 0x127   : > { %v1657_v38 = vpop.f32.mrf.mxu0  ;;  %v982_v41 = vpop.f32.mrf.mxu1 }
 0x128   : > { %1046 = vst [vmem:[#allocation2] sm:$0xff] %v1030_v35  ;;  %v975_v39 = vadd.f32 %v1730_v19, %v1656_v36  ;;  %v478_v36 = vld [vmem:[#allocation2 + $0x38] sm:$0xff] }
 0x129   : > { %v1658_v40 = vpop.f32.mrf.mxu0  ;;  %v1735_v48 = vpop.f32.mrf.mxu1 }
 0x12a   : > { %v1031_v42 = vadd.f32 %v975_v39, %v469_v37  ;;  %v1659_v43 = vadd.f32 %v1658_v40, %v1657_v38 }
 0x12b   : > { %v1660_v45 = vpop.f32.mrf.mxu0  ;;  %v985_v55 = vpop.f32.mrf.mxu1 }
 0x12c   : > { %1047 = vst [vmem:[#allocation2 + $0x58] sm:$0xff] %v1031_v42  ;;  %v978_v46 = vadd.f32 %v1731_v26, %v1659_v43 }
 0x12d   : > { %v1661_v47 = vpop.f32.mrf.mxu0  ;;  %v1738_v62 = vpop.f32.mrf.mxu1 }
 0x12e   : > { %v1032_v49 = vadd.f32 %v978_v46, %v470_v44  ;;  %v1662_v50 = vadd.f32 %v1661_v47, %v1660_v45  ;;  %v479_v44 = vld [vmem:[#allocation2 + $0x60] sm:$0xff] }
 0x12f   : > { %v1663_v51 = vpop.f32.mrf.mxu0  ;;  %v998_v5 = vpop.f32.mrf.mxu1 }
 0x130   : > { %1048 = vst [vmem:[#allocation2 + $0x18] sm:$0xff] %v1032_v49  ;;  %v983_v53 = vadd.f32 %v1662_v50, %v982_v41 }
 0x131   : > { %v1664_v54 = vpop.f32.mrf.mxu0  ;;  %v1739_v12 = vpop.f32.mrf.mxu1 }
 0x132   : > { %v1033_v56 = vadd.f32 %v983_v53, %v471_v52  ;;  %v1665_v57 = vadd.f32 %v1664_v54, %v1663_v51  ;;  %v480_v51 = vld [vmem:[#allocation2 + $0x70] sm:$0xff] }
 0x133   : > { %v1666_v58 = vpop.f32.mrf.mxu0  ;;  %v1001_v19 = vpop.f32.mrf.mxu1 }
 0x134   : > { %1049 = vst [vmem:[#allocation2 + $0x50] sm:$0xff] %v1033_v56  ;;  %v986_v60 = vadd.f32 %v1665_v57, %v985_v55  ;;  %v481_v56 = vld [vmem:[#allocation2 + $0x78] sm:$0xff] }
 0x135   : > { %v1667_v61 = vpop.f32.mrf.mxu0  ;;  %v1742_v26 = vpop.f32.mrf.mxu1 }
 0x136   : > { %v1034_v63 = vadd.f32 %v986_v60, %v472_v59  ;;  %v1668_v0 = vadd.f32 %v1667_v61, %v1666_v58 }
 0x137   : > { %v1669_v2 = vpop.f32.mrf.mxu0  ;;  %v1014_v33 = vpop.f32.mrf.mxu1 }
 0x138   : > { %1050 = vst [vmem:[#allocation2 + $0x68] sm:$0xff] %v1034_v63  ;;  %v991_v3 = vadd.f32 %v1734_v34, %v1668_v0 }
 0x139   : > { %v1670_v4 = vpop.f32.mrf.mxu0  ;;  %v1743_v40 = vpop.f32.mrf.mxu1 }
 0x13a   : > { %v1035_v6 = vadd.f32 %v991_v3, %v473_v1  ;;  %v1671_v7 = vadd.f32 %v1670_v4, %v1669_v2 }
 0x13b   : > { %v1672_v9 = vpop.f32.mrf.mxu0  ;;  %v1017_v47 = vpop.f32.mrf.mxu1 }
 0x13c   : > { %1051 = vst [vmem:[#allocation2 + $0x8] sm:$0xff] %v1035_v6  ;;  %v994_v10 = vadd.f32 %v1735_v48, %v1671_v7 }
 0x13d   : > { %v1673_v11 = vpop.f32.mrf.mxu0 }
 0x13e   : > { %v1036_v13 = vadd.f32 %v994_v10, %v474_v8  ;;  %v1674_v14 = vadd.f32 %v1673_v11, %v1672_v9 }
 0x13f   : > { %v1675_v15 = vpop.f32.mrf.mxu0 }
 0x140   : > { %1052 = vst [vmem:[#allocation2 + $0x48] sm:$0xff] %v1036_v13  ;;  %v999_v17 = vadd.f32 %v1674_v14, %v998_v5 }
 0x141   : > { %v1676_v18 = vpop.f32.mrf.mxu0 }
 0x142   : > { %v1037_v20 = vadd.f32 %v999_v17, %v475_v16  ;;  %v1677_v21 = vadd.f32 %v1676_v18, %v1675_v15 }
 0x143   : > { %v1678_v22 = vpop.f32.mrf.mxu0 }
 0x144   : > { %1053 = vst [vmem:[#allocation2 + $0x40] sm:$0xff] %v1037_v20  ;;  %v1002_v24 = vadd.f32 %v1677_v21, %v1001_v19 }
 0x145   : > { %v1679_v25 = vpop.f32.mrf.mxu0 }
 0x146   : > { %v1038_v27 = vadd.f32 %v1002_v24, %v476_v23  ;;  %v1680_v28 = vadd.f32 %v1679_v25, %v1678_v22 }
 0x147   : > { %v1681_v30 = vpop.f32.mrf.mxu0 }
 0x148   : > { %1054 = vst [vmem:[#allocation2 + $0x20] sm:$0xff] %v1038_v27  ;;  %v1007_v31 = vadd.f32 %v1738_v62, %v1680_v28  ;;  %v482_v62 = vld [vmem:[#allocation2 + $0x28] sm:$0xff] }
 0x149   : > { %v1682_v32 = vpop.f32.mrf.mxu0 }
 0x14a   : > { %v1039_v34 = vadd.f32 %v1007_v31, %v477_v29  ;;  %v1683_v35 = vadd.f32 %v1682_v32, %v1681_v30 }
 0x14b   : > { %v1684_v37 = vpop.f32.mrf.mxu0 }
 0x14c   : > { %1055 = vst [vmem:[#allocation2 + $0x10] sm:$0xff] %v1039_v34  ;;  %v1010_v38 = vadd.f32 %v1739_v12, %v1683_v35 }
 0x14d   : > { %v1685_v39 = vpop.f32.mrf.mxu0 }
 0x14e   : > { %v1040_v41 = vadd.f32 %v1010_v38, %v478_v36  ;;  %v1686_v42 = vadd.f32 %v1685_v39, %v1684_v37 }
 0x14f   : > { %v1687_v43 = vpop.f32.mrf.mxu0 }
 0x150   : > { %1056 = vst [vmem:[#allocation2 + $0x38] sm:$0xff] %v1040_v41  ;;  %v1015_v45 = vadd.f32 %v1686_v42, %v1014_v33 }
 0x151   : > { %v1688_v46 = vpop.f32.mrf.mxu0 }
 0x152   : > { %v1041_v48 = vadd.f32 %v1015_v45, %v479_v44  ;;  %v1689_v49 = vadd.f32 %v1688_v46, %v1687_v43 }
 0x153   : > { %v1690_v50 = vpop.f32.mrf.mxu0 }
 0x154   : > { %1057 = vst [vmem:[#allocation2 + $0x60] sm:$0xff] %v1041_v48  ;;  %v1018_v52 = vadd.f32 %v1689_v49, %v1017_v47 }
 0x155   : > { %v1691_v53 = vpop.f32.mrf.mxu0 }
 0x156   : > { %v1042_v54 = vadd.f32 %v1018_v52, %v480_v51  ;;  %v1692_v55 = vadd.f32 %v1691_v53, %v1690_v50 }
 0x157   : > { %v1693_v57 = vpop.f32.mrf.mxu0 }
 0x158   : > { %1058 = vst [vmem:[#allocation2 + $0x70] sm:$0xff] %v1042_v54  ;;  %v1023_v58 = vadd.f32 %v1742_v26, %v1692_v55 }
 0x159   : > { %v1694_v59 = vpop.f32.mrf.mxu0 }
 0x15a   : > { %v1043_v60 = vadd.f32 %v1023_v58, %v481_v56  ;;  %v1695_v61 = vadd.f32 %v1694_v59, %v1693_v57 }
 0x15c   : > { %1059 = vst [vmem:[#allocation2 + $0x78] sm:$0xff] %v1043_v60  ;;  %v1026_v63 = vadd.f32 %v1743_v40, %v1695_v61  ;;  %1064 = sbr.rel (%p1506_p11) target bundleno = 383 (0x17f), region = 74 }
 0x15e   : > { %v1044_v0 = vadd.f32 %v1026_v63, %v482_v62 }
 0x160   : > { %1060 = vst [vmem:[#allocation2 + $0x28] sm:$0xff] %v1044_v0 }
 0x161   : > { %v1065_v1 = vld [vmem:[#allocation2 + $0x30] sm:$0xff]  ;;  %v1066_v2 = vld [vmem:[#allocation2] sm:$0xff]  ;;  %v1067_v8 = vld [vmem:[#allocation2 + $0x58] sm:$0xff] }
 0x162   : > { %v2089_v3 = vld [vmem:[%s2193_s2] ss:$0 sm:$0xff]  ;;  %v1068_v11 = vld [vmem:[#allocation2 + $0x18] sm:$0xff]  ;;  %v1618_v13 = vld [vmem:[%s2195_s4 + $0x8] sm:$0xff]  }
 0x163   : > { %v1088_v4 = vmul.f32 %v2089_v3, %v1065_v1  ;;  %v1089_v5 = vmul.f32 %v2089_v3, %v1066_v2  ;;  %v2096_v6 = vld [vmem:[%s2194_s3] ss:$0 sm:$0xff]  ;;  %v1090_v12 = vmul.f32 %v2089_v3, %v1067_v8  ;;  %v1069_v14 = vld [vmem:[#allocation2 + $0x50] sm:$0xff]  ;;  %v1091_v17 = vmul.f32 %v2089_v3, %v1068_v11  ;;  %v1070_v19 = vld [vmem:[#allocation2 + $0x68] sm:$0xff] }
 0x164   : > { %v1547_v7 = vld [vmem:[%s2195_s4] sm:$0xff]   ;;  %v1552_v18 = vunpack.c.l.bf16 %v1618_v13  ;;  %v1619_v20 = vld [vmem:[%s2195_s4 + $0x10] sm:$0xff]   ;;  %v1553_v22 = vunpack.c.h.bf16 %v1618_v13  ;;  %v1092_v23 = vmul.f32 %v2089_v3, %v1069_v14  ;;  %v1093_v24 = vmul.f32 %v2089_v3, %v1070_v19  ;;  %v1071_v25 = vld [vmem:[#allocation2 + $0x8] sm:$0xff] }
 0x165   : > { %v1548_v9 = vunpack.c.l.bf16 %v1547_v7  ;;  %v1549_v10 = vunpack.c.h.bf16 %v1547_v7  ;;  %v1111_v15 = vadd.f32 %v2096_v6, %v1088_v4  ;;  %v1112_v16 = vadd.f32 %v2096_v6, %v1089_v5  ;;  %v1072_v30 = vld [vmem:[#allocation2 + $0x48] sm:$0xff]  ;;  %v1620_v35 = vld [vmem:[%s2195_s4 + $0x18] sm:$0xff]   ;;  %v1073_v44 = vld [vmem:[#allocation2 + $0x40] sm:$0xff] }
 0x166   : > { %v1113_v21 = vadd.f32 %v2096_v6, %v1090_v12  ;;  %v1114_v28 = vadd.f32 %v2096_v6, %v1091_v17  ;;  %v1556_v29 = vunpack.c.l.bf16 %v1619_v20  ;;  %v1115_v32 = vadd.f32 %v2096_v6, %v1092_v23  ;;  %v1074_v45 = vld [vmem:[#allocation2 + $0x20] sm:$0xff]  ;;  %v1075_v55 = vld [vmem:[#allocation2 + $0x10] sm:$0xff]  ;;  %v1076_v60 = vld [vmem:[#allocation2 + $0x38] sm:$0xff] }
 0x167   : > { %v1159_v26 = vadd.f32 %v1548_v9, %v1111_v15  ;;  %v1160_v27 = vadd.f32 %v1549_v10, %v1112_v16  ;;  %v1116_v33 = vadd.f32 %v2096_v6, %v1093_v24  ;;  %v1557_v34 = vunpack.c.h.bf16 %v1619_v20  ;;  %v1621_v50 = vld [vmem:[%s2195_s4 + $0x20] sm:$0xff]   ;;  %v1622_v61 = vld [vmem:[%s2195_s4 + $0x28] sm:$0xff]   ;;  %v1078_v9 = vld [vmem:[#allocation2 + $0x70] sm:$0xff] }
 0x168   : > { %v1161_v31 = vadd.f32 %v1552_v18, %v1113_v21  ;;  %v1162_v38 = vadd.f32 %v1553_v22, %v1114_v28  ;;  %v1094_v39 = vmul.f32 %v2089_v3, %v1071_v25  ;;  %v1163_v41 = vadd.f32 %v1556_v29, %v1115_v32  ;;  %v1077_v2 = vld [vmem:[#allocation2 + $0x60] sm:$0xff]  ;;  %v1623_v10 = vld [vmem:[%s2195_s4 + $0x30] sm:$0xff]   ;;  %v1079_v19 = vld [vmem:[#allocation2 + $0x78] sm:$0xff] }
 0x169   : > { %v1175_v36 = vmax.f32 %v1159_v26, 0.0  ;;  %v1176_v37 = vmax.f32 %v1160_v27, 0.0  ;;  %v1164_v42 = vadd.f32 %v1557_v34, %v1116_v33  ;;  %v1095_v43 = vmul.f32 %v2089_v3, %v1072_v30  ;;  %v1080_v24 = vld [vmem:[#allocation2 + $0x28] sm:$0xff]  ;;  %v1624_v29 = vld [vmem:[%s2195_s4 + $0x38] sm:$0xff]  }
 0x16a   : > { %v1177_v40 = vmax.f32 %v1161_v31, 0.0  ;;  %v1178_v47 = vmax.f32 %v1162_v38, 0.0  ;;  %v1117_v48 = vadd.f32 %v2096_v6, %v1094_v39  ;;  %v1560_v49 = vunpack.c.l.bf16 %v1620_v35 }
 0x16b   : > { %v1581_v46 = vpack.c.bf16 %v1176_v37, %v1175_v36  ;;  %v1179_v51 = vmax.f32 %v1163_v41, 0.0  ;;  %v1180_v52 = vmax.f32 %v1164_v42, 0.0  ;;  %v1118_v53 = vadd.f32 %v2096_v6, %v1095_v43 }
 0x16c   : > { %v1561_v54 = vunpack.c.h.bf16 %v1620_v35  ;;  %v1586_v56 = vpack.c.bf16 %v1178_v47, %v1177_v40  ;;  %v1165_v57 = vadd.f32 %v1560_v49, %v1117_v48  ;;  %v1096_v58 = vmul.f32 %v2089_v3, %v1073_v44 }
 0x16d   : > { %1582 = vst [vmem:[%s2196_s5] sm:$0xff] %v1581_v46   ;;  %v1097_v59 = vmul.f32 %v2089_v3, %v1074_v45  ;;  %v1591_v62 = vpack.c.bf16 %v1180_v52, %v1179_v51  ;;  %v1564_v0 = vunpack.c.l.bf16 %v1621_v50  ;;  %v1565_v1 = vunpack.c.h.bf16 %v1621_v50 }
 0x16e   : > { %v1166_v63 = vadd.f32 %v1561_v54, %v1118_v53  ;;  %1625 = vst [vmem:[%s2196_s5 + $0x8] sm:$0xff] %v1586_v56   ;;  %v1181_v4 = vmax.f32 %v1165_v57, 0.0  ;;  %v1119_v5 = vadd.f32 %v2096_v6, %v1096_v58  ;;  %v1098_v8 = vmul.f32 %v2089_v3, %v1075_v55 }
 0x16f   : > { %v1120_v7 = vadd.f32 %v2096_v6, %v1097_v59  ;;  %1626 = vst [vmem:[%s2196_s5 + $0x10] sm:$0xff] %v1591_v62   ;;  %v1099_v12 = vmul.f32 %v2089_v3, %v1076_v60  ;;  %v1568_v13 = vunpack.c.l.bf16 %v1622_v61  ;;  %v1569_v14 = vunpack.c.h.bf16 %v1622_v61 }
 0x170   : > { %v1182_v11 = vmax.f32 %v1166_v63, 0.0  ;;  %v1167_v15 = vadd.f32 %v1564_v0, %v1119_v5  ;;  %v1121_v17 = vadd.f32 %v2096_v6, %v1098_v8  ;;  %v1100_v18 = vmul.f32 %v2089_v3, %v1077_v2 }
 0x171   : > { %v1168_v16 = vadd.f32 %v1565_v1, %v1120_v7  ;;  %v1122_v21 = vadd.f32 %v2096_v6, %v1099_v12  ;;  %v1101_v22 = vmul.f32 %v2089_v3, %v1078_v9  ;;  %v1572_v23 = vunpack.c.l.bf16 %v1623_v10 }
 0x172   : > { %v1596_v20 = vpack.c.bf16 %v1182_v11, %v1181_v4  ;;  %v1183_v25 = vmax.f32 %v1167_v15, 0.0  ;;  %v1169_v27 = vadd.f32 %v1568_v13, %v1121_v17  ;;  %v1123_v28 = vadd.f32 %v2096_v6, %v1100_v18 }
 0x173   : > { %v1184_v26 = vmax.f32 %v1168_v16, 0.0  ;;  %v1170_v30 = vadd.f32 %v1569_v14, %v1122_v21  ;;  %v1124_v31 = vadd.f32 %v2096_v6, %v1101_v22  ;;  %v1573_v32 = vunpack.c.h.bf16 %v1623_v10 }
 0x174   : > { %1627 = vst [vmem:[%s2196_s5 + $0x18] sm:$0xff] %v1596_v20   ;;  %v1102_v33 = vmul.f32 %v2089_v3, %v1079_v19  ;;  %v1185_v35 = vmax.f32 %v1169_v27, 0.0  ;;  %v1171_v36 = vadd.f32 %v1572_v23, %v1123_v28  ;;  %v1103_v37 = vmul.f32 %v2089_v3, %v1080_v24 }
 0x175   : > { %v1601_v34 = vpack.c.bf16 %v1184_v26, %v1183_v25  ;;  %v1186_v38 = vmax.f32 %v1170_v30, 0.0  ;;  %v1172_v39 = vadd.f32 %v1573_v32, %v1124_v31  ;;  %v1576_v41 = vunpack.c.l.bf16 %v1624_v29 }
 0x176   : > { %v1125_v40 = vadd.f32 %v2096_v6, %v1102_v33  ;;  %v1187_v42 = vmax.f32 %v1171_v36, 0.0  ;;  %v1126_v43 = vadd.f32 %v2096_v6, %v1103_v37  ;;  %v1577_v44 = vunpack.c.h.bf16 %v1624_v29 }
 0x177   : > { %1628 = vst [vmem:[%s2196_s5 + $0x20] sm:$0xff] %v1601_v34   ;;  %v1606_v45 = vpack.c.bf16 %v1186_v38, %v1185_v35  ;;  %v1188_v46 = vmax.f32 %v1172_v39, 0.0 }
 0x178   : > { %v1173_v47 = vadd.f32 %v1576_v41, %v1125_v40  ;;  %v1174_v48 = vadd.f32 %v1577_v44, %v1126_v43 }
 0x179   : > { %1629 = vst [vmem:[%s2196_s5 + $0x28] sm:$0xff] %v1606_v45   ;;  %v1611_v3 = vpack.c.bf16 %v1188_v46, %v1187_v42 }
 0x17a   : > { %v1189_v49 = vmax.f32 %v1173_v47, 0.0  ;;  %v1190_v50 = vmax.f32 %v1174_v48, 0.0 }
 0x17b   : > { %1630 = vst [vmem:[%s2196_s5 + $0x30] sm:$0xff] %v1611_v3  }
 0x17c   : > { %v1616_v51 = vpack.c.bf16 %v1190_v50, %v1189_v49 }
 0x17e   : > { %1631 = vst [vmem:[%s2196_s5 + $0x38] sm:$0xff] %v1616_v51  }
 0x17f PF: > { %s15_s22 = sadd.s32 1, %s1881_s22   ;;  %s2197_s18 = smov %s1869_s19 }
 0x180   : > { %p12_p12 = scmp.ge.s32.totalorder %s15_s22, 5   ;;  %s2198_s19 = smov %s1949_s26 }
 0x181   : > { %s2199_s20 = smov %s1877_s21  ;;  %s2200_s21 = smov %s2202_s23 }
 0x182   :  { %14 = sbr.rel (!%p12_p12) target bundleno = 3 (0x3), region = 127 }

// kernel: violence_classifier_forward.29
= control target key start
LH: loop header
LB: loop body
LE: loop exit
PB: predicated region body
PF: predicated region fallthrough
CT: control target
= control target key end

     0   :  { %s1143_s15 = smov 0   ;;  %s1145_s16 = smov 0   ;;  %s1256_s0 = inlined_call_operand.vmem [shape: bf16[32,1152], index: 0, kind: input, shape index: {}]   ;;  %s1257_s1 = inlined_call_operand.vmem [shape: bf16[1152,128], index: 1, kind: input, shape index: {}]   ;;  %s1258_s2 = inlined_call_operand.vmem [shape: f32[1,128], index: 2, kind: input, shape index: {}]   ;;  %s1259_s3 = inlined_call_operand.vmem [shape: f32[1,128], index: 3, kind: input, shape index: {}]   ;;  %s1260_s4 = inlined_call_operand.vmem [shape: bf16[32,128], index: 4, kind: output, shape index: {}]  }
   0x1   :  { %s1147_s17 = smov 0   ;;  %s1149_s18 = smov 0  }
   0x2   :  { %s1151_s19 = smov 0  }
   0x3 LB: > { %s26_s20 = sadd.s32 1, %s1111_s18  ;;  %p49_p1 = scmp.ne.s32.totalorder %s1103_s16, %s1099_s15  ;;  %s1115_s19 = sphi %s1151_s19, %s14_s19   ;;  %s1111_s18 = sphi %s1149_s18, %s1264_s18   ;;  %s1107_s17 = sphi %s1147_s17, %s1263_s17   ;;  %s1103_s16 = sphi %s1145_s16, %s1262_s16   ;;  %s1099_s15 = sphi %s1143_s15, %s1261_s15  }
   0x4   : > { %p27_p0 = scmp.ge.s32.totalorder %s26_s20, 3  ;;  %p50_p2 = scmp.eq.s32.totalorder %s1115_s19, 0 }
   0x5   : > { %s42_s22 = sadd.s32 1, %s1103_s16  ;;  %p874_p5 = scmp.ge.s32.totalorder %s1115_s19, 3 }
   0x6   : > { %s1266_s20 = smov (%p27_p0, %s26_s20), 0  ;;  %p51_p3 = por %p50_p2, %p49_p1 }
   0x7   : > { %s38_s21 = ssub.s32 %s1111_s18, %s1266_s20  ;;  %195 = sbr.rel (%p874_p5) target bundleno = 21 (0x15), region = 24 }
   0x8   : > { %p40_p4 = scmp.eq.s32.totalorder %s38_s21, 0 }
   0xa   : > { %s1178_s23 = scalar_select %p40_p4, %s1103_s16, %s42_s22  }
   0xc   : > { %198 = sbr.rel (!%p51_p3) target bundleno = 21 (0x15), region = 28  ;;  %s200_s24 = sand.u32 (%p51_p3), 1, %s1103_s16  }
   0xd   : > { %s928_s25 = smul.u32 (%p51_p3), 12, %s1111_s18 }
   0xe   : > { %s1002_s26 = smul.u32 (%p51_p3), 48, %s200_s24 }
   0xf   : > { %s208_s29 = scalar_lea.vmem (%p51_p3), %s1256_s0, %s928_s25 }
  0x10   : > { %v223_v0 = vld [vmem:[%s208_s29] sm:$0xff] (%p51_p3)  ;;  %v227_v2 = vld [vmem:[%s208_s29 + $0x48] sm:$0xff] (%p51_p3)  ;;  %s202_s30 = scalar_lea.vmem (%p51_p3), [#allocation3], %s1002_s26  ;;  %v880_v6 = vld [vmem:[%s208_s29 + $0x50] sm:$0xf] (%p51_p3) }
  0x11   : > { %v225_v1 = vld [vmem:[%s208_s29 + $0x24] sm:$0xff]  ;;  %224 = vst [vmem:[%s202_s30] sm:$0xff] %v223_v0  ;;  %228 = vst [vmem:[%s202_s30 + $0x18] sm:$0xff] %v227_v2  ;;  %v229_v3 = vld [vmem:[%s208_s29 + $0x6c] sm:$0xff] }
  0x12   : > { %226 = vst [vmem:[%s202_s30 + $0xc] sm:$0xff] %v225_v1  ;;  %v876_v4 = vld [vmem:[%s208_s29 + $0x8] sm:$0xf]  ;;  %v878_v5 = vld [vmem:[%s208_s29 + $0x2c] sm:$0xf]  ;;  %230 = vst [vmem:[%s202_s30 + $0x24] sm:$0xff] %v229_v3 }
  0x13   : > { %877 = vst [vmem:[%s202_s30 + $0x8] sm:$0xf] %v876_v4  ;;  %879 = vst [vmem:[%s202_s30 + $0x14] sm:$0xf] %v878_v5  ;;  %v882_v7 = vld [vmem:[%s208_s29 + $0x74] sm:$0xf] }
  0x14   : > { %881 = vst [vmem:[%s202_s30 + $0x20] sm:$0xf] %v880_v6  ;;  %883 = vst [vmem:[%s202_s30 + $0x2c] sm:$0xf] %v882_v7 }
  0x15 PF: > { %p884_p6 = scmp.ge.s32.totalorder %s1115_s19, 1  ;;  %p263_p7 = scmp.lt.s32.totalorder %s1115_s19, 4 }
  0x17   : > { %p264_p8 = pnand %p884_p6, %p263_p7 }
  0x18   : > { %s270_s5 = sand.u32 (!%p264_p8), 1, %s1099_s15   ;;  %s314_s6 = smul.u32 (!%p264_p8), 48, %s1107_s17 }
  0x19   : > { %267 = sbr.rel (%p264_p8) target bundleno = 301 (0x12d), region = 58  ;;  %p886_p10 = scmp.ne.s32.totalorder (!%p264_p8), %s1107_s17, 0 }
  0x1a   : > { %s1003_s7 = smul.u32 (!%p264_p8), 48, %s270_s5  ;;  %p315_p9 = scmp.lt.s32.totalorder (!%p264_p8), %s314_s6, 143 }
  0x1c   : > { %s1195_s12 = scalar_lea.vmem (!%p264_p8), [#allocation3], %s1003_s7 }
  0x1e   : > { %s1268_s6 = smov (!%p315_p9, %s314_s6), 143  ;;  %342 = sbr.rel (%p886_p10) target bundleno = 38 (0x26), region = 66 }
  0x1f   : > { %s885_s8 = sshll.u32 %s1268_s6, 2 }
  0x20   : > { %s1193_s11 = scalar_lea.vmem %s1257_s1, %s885_s8 }
  0x23   : > { %v1117_v8 = vmov 0.0  }
  0x24   : > { %343 = vst [vmem:[#allocation2 + $0x10] sm:$0xff] %v1117_v8  ;;  %344 = vst [vmem:[#allocation2] sm:$0xff] %v1117_v8 }
  0x25   : > { %345 = vst [vmem:[#allocation2 + $0x18] sm:$0xff] %v1117_v8  ;;  %346 = vst [vmem:[#allocation2 + $0x8] sm:$0xff] %v1117_v8 }
  0x26 PF: > { %v1045_v9 = vld [vmem:[%s1193_s11 + $0x78] sm:$0xff]   ;;  %v1048_v12 = vld [vmem:[%s1193_s11 + $0x70] sm:$0xff]   ;;  %v1051_v15 = vld [vmem:[%s1193_s11 + $0x68] sm:$0xff]   ;;  %p917_p11 = scmp.ne.s32.totalorder %s1107_s17, 2 }
  0x27   : > { %v1046_v10 = vld [vmem:[%s1193_s11 + $0x38] sm:$0xff]   ;;  %944 = vmatprep.subr.bf16.mxu0 %v1045_v9  ;;  %v1049_v13 = vld [vmem:[%s1193_s11 + $0x30] sm:$0xff]   ;;  %v1052_v16 = vld [vmem:[%s1193_s11 + $0x28] sm:$0xff]  }
  0x28   : > { %v1047_v11 = vld [vmem:[%s1193_s11 + $0xb8] sm:$0xff]   ;;  %945 = vmatpush3.bf16.msra.mxu0 %v1046_v10  ;;  %v1050_v14 = vld [vmem:[%s1193_s11 + $0xb0] sm:$0xff]   ;;  %v1053_v17 = vld [vmem:[%s1193_s11 + $0xa8] sm:$0xff]  }
  0x29   : > { %982 = vmatprep.subr.bf16.mxu1 %v1047_v11  ;;  %946 = vmatprep.subr.bf16.mxu0 %v1048_v12  ;;  %v1054_v18 = vld [vmem:[%s1193_s11 + $0x60] sm:$0xff]   ;;  %v1057_v21 = vld [vmem:[%s1193_s11 + $0x58] sm:$0xff]   ;;  %v1060_v24 = vld [vmem:[%s1193_s11 + $0x50] sm:$0xff]  }
  0x2a   : > { %983 = vmatpush3.bf16.msra.mxu1 %v1047_v11  ;;  %v1055_v19 = vld [vmem:[%s1193_s11 + $0x20] sm:$0xff]   ;;  %v1059_v22 = vld [vmem:[%s1193_s11 + $0x98] sm:$0xff]   ;;  %v1062_v25 = vld [vmem:[%s1193_s11 + $0x90] sm:$0xff]  }
  0x2b   : > { %984 = vmatprep.subr.bf16.mxu1 %v1050_v14  ;;  %v1056_v20 = vld [vmem:[%s1193_s11 + $0xa0] sm:$0xff]   ;;  %v1058_v23 = vld [vmem:[%s1193_s11 + $0x18] sm:$0xff]   ;;  %v1061_v26 = vld [vmem:[%s1193_s11 + $0x10] sm:$0xff]  }
  0x2c   : > { %947 = vmatpush3.bf16.msra.mxu0 %v1049_v13  ;;  %v1063_v27 = vld [vmem:[%s1193_s11 + $0x48] sm:$0xff]   ;;  %v1066_v30 = vld [vmem:[%s1193_s11 + $0x40] sm:$0xff]   ;;  %v347_v44 = vld [vmem:[#allocation2 + $0x10] sm:$0xff] }
  0x2d   : > { %948 = vmatprep.subr.bf16.mxu0 %v1051_v15  ;;  %v1064_v28 = vld [vmem:[%s1193_s11 + $0x8] sm:$0xff]   ;;  %v1068_v31 = vld [vmem:[%s1193_s11 + $0x80] sm:$0xff]   ;;  %v349_v58 = vld [vmem:[#allocation2 + $0x18] sm:$0xff] }
  0x2e   : > { %985 = vmatpush3.bf16.msra.mxu1 %v1050_v14  ;;  %v1065_v29 = vld [vmem:[%s1193_s11 + $0x88] sm:$0xff]   ;;  %v1071_v32 = vld [vmem:[%s1195_s12 + $0x4] ss:$12 sps:$4 sm:$0xff]  }
  0x2f   : > { %986 = vmatprep.subr.bf16.mxu1 %v1053_v17  ;;  %v1072_v33 = vld [vmem:[%s1195_s12 + $0x8] ss:$12 sps:$4 sm:$0xff]   ;;  %615 = vmatprep.mubr.bf16.mxu0 %v1071_v32  ;;  %v1069_v35 = vld [vmem:[%s1195_s12] ss:$12 sps:$4 sm:$0xff]   ;;  %v1076_v38 = vld [vmem:[%s1195_s12 + $0x18] ss:$12 sps:$4 sm:$0xff]  }
  0x30   : > { %949 = vmatpush3.bf16.msra.mxu0 %v1052_v16  ;;  %v1067_v34 = vld [vmem:[%s1193_s11] sm:$0xff]   ;;  %998 = vmatprep.mubr.bf16.mxu1 %v1072_v33  ;;  %v1074_v36 = vld [vmem:[%s1195_s12 + $0x1c] ss:$12 sps:$4 sm:$0xff]  }
  0x31   : > { %950 = vmatprep.subr.bf16.mxu0 %v1054_v18  ;;  %v1073_v37 = vld [vmem:[%s1195_s12 + $0x20] ss:$12 sps:$4 sm:$0xff]  }
  0x32   : > { %987 = vmatpush3.bf16.msra.mxu1 %v1053_v17  ;;  %v348_v52 = vld [vmem:[#allocation2] sm:$0xff]  ;;  %v350_v0 = vld [vmem:[#allocation2 + $0x8] sm:$0xff] }
  0x33   : > { %988 = vmatprep.subr.bf16.mxu1 %v1056_v20 }
  0x34   : > { %951 = vmatpush3.bf16.msra.mxu0 %v1055_v19 }
  0x35   : > { %952 = vmatprep.subr.bf16.mxu0 %v1057_v21 }
  0x36   : > { %989 = vmatpush3.bf16.msra.mxu1 %v1056_v20 }
  0x37   : > { %990 = vmatprep.subr.bf16.mxu1 %v1059_v22 }
  0x38   : > { %953 = vmatpush3.bf16.msra.mxu0 %v1058_v23 }
  0x39   : > { %954 = vmatprep.subr.bf16.mxu0 %v1060_v24 }
  0x3a   : > { %991 = vmatpush3.bf16.msra.mxu1 %v1059_v22 }
  0x3b   : > { %992 = vmatprep.subr.bf16.mxu1 %v1062_v25 }
  0x3c   : > { %955 = vmatpush3.bf16.msra.mxu0 %v1061_v26 }
  0x3d   : > { %956 = vmatprep.subr.bf16.mxu0 %v1063_v27 }
  0x3e   : > { %993 = vmatpush3.bf16.msra.mxu1 %v1062_v25 }
  0x3f   : > { %994 = vmatprep.subr.bf16.mxu1 %v1065_v29 }
  0x40   : > { %957 = vmatpush3.bf16.msra.mxu0 %v1064_v28 }
  0x41   : > { %958 = vmatprep.subr.bf16.mxu0 %v1066_v30 }
  0x42   : > { %995 = vmatpush3.bf16.msra.mxu1 %v1065_v29 }
  0x43   : > { %996 = vmatprep.subr.bf16.mxu1 %v1068_v31 }
  0x44   : > { %959 = vmatpush3.bf16.msra.mxu0 %v1067_v34 }
  0x46   : > { %997 = vmatpush3.bf16.msra.mxu1 %v1068_v31 }
  0x47   : > { %616 = vmatmul.mubr.bf16.vlgmr.msra.gmra.mxu0 %v1069_v35 }
  0x48   : > { %623 = vmatprep.mubr.bf16.mxu0 %v1074_v36 }
  0x49   : > { %999 = vmatmul.mubr.bf16.vlgmr.msra.gmra.mxu1 %v1073_v37 }
  0x4f   : > { %624 = vmatmul.mubr.bf16.gmra.mxu0 %v1076_v38 }
 0x107   : > { %v960_v39 = vpop.f32.mrf.mxu0 }
 0x109   : > { %v961_v40 = vpop.f32.mrf.mxu0  ;;  %v1000_v41 = vpop.f32.mrf.mxu1 }
 0x10a   : > { %v962_v42 = vadd.f32 %v961_v40, %v960_v39 }
 0x10b   : > { %v963_v43 = vpop.f32.mrf.mxu0  ;;  %v666_v45 = vpop.f32.mrf.mxu1 }
 0x10c   : > { %v667_v46 = vadd.f32 %v962_v42, %v666_v45 }
 0x10d   : > { %v964_v47 = vpop.f32.mrf.mxu0  ;;  %v1001_v48 = vpop.f32.mrf.mxu1 }
 0x10e   : > { %v681_v49 = vadd.f32 %v667_v46, %v347_v44  ;;  %v965_v50 = vadd.f32 %v964_v47, %v963_v43 }
 0x10f   : > { %v966_v51 = vpop.f32.mrf.mxu0  ;;  %v669_v53 = vpop.f32.mrf.mxu1 }
 0x110   : > { %685 = vst [vmem:[#allocation2 + $0x10] sm:$0xff] %v681_v49  ;;  %v670_v54 = vadd.f32 %v965_v50, %v669_v53 }
 0x111   : > { %v967_v55 = vpop.f32.mrf.mxu0 }
 0x112   : > { %v682_v56 = vadd.f32 %v670_v54, %v348_v52  ;;  %v968_v57 = vadd.f32 %v967_v55, %v966_v51 }
 0x113   : > { %v969_v59 = vpop.f32.mrf.mxu0 }
 0x114   : > { %686 = vst [vmem:[#allocation2] sm:$0xff] %v682_v56  ;;  %v675_v60 = vadd.f32 %v1000_v41, %v968_v57 }
 0x115   : > { %v970_v61 = vpop.f32.mrf.mxu0 }
 0x116   : > { %v683_v62 = vadd.f32 %v675_v60, %v349_v58  ;;  %v971_v63 = vadd.f32 %v970_v61, %v969_v59 }
 0x118   : > { %687 = vst [vmem:[#allocation2 + $0x18] sm:$0xff] %v683_v62  ;;  %v678_v1 = vadd.f32 %v1001_v48, %v971_v63  ;;  %692 = sbr.rel (%p917_p11) target bundleno = 301 (0x12d), region = 70 }
 0x11a   : > { %v684_v2 = vadd.f32 %v678_v1, %v350_v0 }
 0x11c   : > { %688 = vst [vmem:[#allocation2 + $0x8] sm:$0xff] %v684_v2 }
 0x11d   : > { %v693_v3 = vld [vmem:[#allocation2 + $0x10] sm:$0xff]  ;;  %v694_v4 = vld [vmem:[#allocation2] sm:$0xff] }
 0x11e   : > { %v918_v5 = vld [vmem:[%s1258_s2] ss:$0 sm:$0xff] }
 0x11f   : > { %v704_v6 = vmul.f32 %v918_v5, %v693_v3  ;;  %v705_v7 = vmul.f32 %v918_v5, %v694_v4  ;;  %v919_v8 = vld [vmem:[%s1259_s3] ss:$0 sm:$0xff]  ;;  %v695_v9 = vld [vmem:[#allocation2 + $0x18] sm:$0xff] }
 0x120   : > { %v706_v11 = vmul.f32 %v918_v5, %v695_v9 }
 0x121   : > { %v715_v13 = vadd.f32 %v919_v8, %v704_v6  ;;  %v716_v14 = vadd.f32 %v919_v8, %v705_v7 }
 0x122   : > { %v717_v15 = vadd.f32 %v919_v8, %v706_v11 }
 0x123   : > { %v696_v10 = vld [vmem:[#allocation2 + $0x8] sm:$0xff]  ;;  %v719_v17 = vmax.f32 %v715_v13, 0.0  ;;  %v720_v18 = vmax.f32 %v716_v14, 0.0 }
 0x124   : > { %v707_v12 = vmul.f32 %v918_v5, %v696_v10  ;;  %v721_v19 = vmax.f32 %v717_v15, 0.0 }
 0x125   : > { %v936_v21 = vpack.c.bf16 %v720_v18, %v719_v17 }
 0x126   : > { %v718_v16 = vadd.f32 %v919_v8, %v707_v12 }
 0x127   : > { %937 = vst [vmem:[%s1260_s4] sm:$0xff] %v936_v21  }
 0x128   : > { %v722_v20 = vmax.f32 %v718_v16, 0.0 }
 0x12a   : > { %v941_v22 = vpack.c.bf16 %v722_v20, %v721_v19 }
 0x12c   : > { %943 = vst [vmem:[%s1260_s4 + $0x8] sm:$0xff] %v941_v22  }
 0x12d PF: > { %s14_s19 = sadd.s32 1, %s1115_s19   ;;  %s1261_s15 = smov %s1103_s16 }
 0x12e   : > { %p11_p12 = scmp.ge.s32.totalorder %s14_s19, 5   ;;  %s1262_s16 = smov %s1178_s23 }
 0x12f   : > { %s1263_s17 = smov %s1111_s18  ;;  %s1264_s18 = smov %s1266_s20 }
 0x130   :  { %13 = sbr.rel (!%p11_p12) target bundleno = 3 (0x3), region = 120 }

// kernel: violence_classifier_forward.28
= control target key start
LH: loop header
LB: loop body
LE: loop exit
PB: predicated region body
PF: predicated region fallthrough
CT: control target
= control target key end

     0   :  { %s358_s1 = inlined_call_operand.vmem [shape: bf16[128,128], index: 1, kind: input, shape index: {}]   ;;  %s359_s0 = inlined_call_operand.vmem [shape: bf16[32,128], index: 0, kind: input, shape index: {}]   ;;  %s360_s2 = inlined_call_operand.vmem [shape: f32[1,128], index: 2, kind: input, shape index: {}]   ;;  %s361_s3 = inlined_call_operand.vmem [shape: f32[1,128], index: 3, kind: input, shape index: {}]   ;;  %s362_s4 = inlined_call_operand.vmem [shape: bf16[32,128], index: 4, kind: output, shape index: {}]  }
   0x1   :  { %v281_v0 = vld [vmem:[%s358_s1 + $0x38] sm:$0xff]   ;;  %v282_v1 = vld [vmem:[%s358_s1 + $0x30] sm:$0xff]   ;;  %v283_v2 = vld [vmem:[%s358_s1 + $0x28] sm:$0xff]  }
   0x2   :  { %261 = vmatprep.subr.bf16.mxu0 %v281_v0  ;;  %v284_v3 = vld [vmem:[%s358_s1 + $0x20] sm:$0xff]   ;;  %v285_v5 = vld [vmem:[%s358_s1 + $0x18] sm:$0xff]   ;;  %v286_v6 = vld [vmem:[%s358_s1 + $0x10] sm:$0xff]  }
   0x3   :  { %262 = vmatpush3.bf16.msra.mxu0 %v281_v0  ;;  %v289_v4 = vld [vmem:[%s359_s0] sm:$0xff]   ;;  %v287_v7 = vld [vmem:[%s358_s1 + $0x8] sm:$0xff]  }
   0x4   :  { %263 = vmatprep.subr.bf16.mxu0 %v282_v1  ;;  %277 = vmatprep.mubr.bf16.mxu0 %v289_v4  ;;  %v288_v8 = vld [vmem:[%s358_s1] sm:$0xff]   ;;  %v290_v9 = vld [vmem:[%s359_s0 + $0x8] sm:$0xff]  }
   0x5   :  { %v230_v11 = vld [vmem:[%s360_s2] ss:$0 sm:$0xff] }
   0x6   :  { %v231_v14 = vld [vmem:[%s361_s3] ss:$0 sm:$0xff] }
   0x7   :  { %264 = vmatpush3.bf16.msra.mxu0 %v282_v1 }
   0x8   :  { %265 = vmatprep.subr.bf16.mxu0 %v283_v2 }
   0xb   :  { %266 = vmatpush3.bf16.msra.mxu0 %v283_v2 }
   0xc   :  { %267 = vmatprep.subr.bf16.mxu0 %v284_v3 }
   0xf   :  { %268 = vmatpush3.bf16.msra.mxu0 %v284_v3 }
  0x10   :  { %269 = vmatprep.subr.bf16.mxu0 %v285_v5 }
  0x13   :  { %270 = vmatpush3.bf16.msra.mxu0 %v285_v5 }
  0x14   :  { %271 = vmatprep.subr.bf16.mxu0 %v286_v6 }
  0x17   :  { %272 = vmatpush3.bf16.msra.mxu0 %v286_v6 }
  0x18   :  { %273 = vmatprep.subr.bf16.mxu0 %v287_v7 }
  0x1b   :  { %274 = vmatpush3.bf16.msra.mxu0 %v287_v7 }
  0x1c   :  { %275 = vmatprep.subr.bf16.mxu0 %v288_v8 }
  0x1f   :  { %276 = vmatpush3.bf16.msra.mxu0 %v288_v8 }
  0x22   :  { %278 = vmatmul.mubr.bf16.vlgmr.msra.gmra.mxu0 %v290_v9 }
  0xe2   :  { %v279_v10 = vpop.f32.mrf.mxu0 }
  0xe3   :  { %v183_v13 = vmul.f32 %v279_v10, %v230_v11 }
  0xe4   :  { %v144_v12 = vpop.f32.mrf.mxu0 }
  0xe5   :  { %v181_v16 = vmul.f32 %v230_v11, %v144_v12  ;;  %v194_v19 = vadd.f32 %v231_v14, %v183_v13 }
  0xe6   :  { %v280_v15 = vpop.f32.mrf.mxu0 }
  0xe7   :  { %v184_v17 = vmul.f32 %v280_v15, %v230_v11  ;;  %v192_v22 = vadd.f32 %v231_v14, %v181_v16 }
  0xe8   :  { %v147_v18 = vpop.f32.mrf.mxu0 }
  0xe9   :  { %v195_v20 = vadd.f32 %v231_v14, %v184_v17  ;;  %v182_v21 = vmul.f32 %v230_v11, %v147_v18 }
  0xeb   :  { %v248_v23 = vpack.c.bf16 %v195_v20, %v194_v19  ;;  %v193_v24 = vadd.f32 %v231_v14, %v182_v21 }
  0xed   :  { %250 = vst [vmem:[%s362_s4 + $0x8] sm:$0xff] %v248_v23   ;;  %v243_v25 = vpack.c.bf16 %v193_v24, %v192_v22 }
  0xef   :  { %244 = vst [vmem:[%s362_s4] sm:$0xff] %v243_v25  }

// kernel: violence_classifier_forward.30
= control target key start
LH: loop header
LB: loop body
LE: loop exit
PB: predicated region body
PF: predicated region fallthrough
CT: control target
= control target key end

     0   :  { %s1248_s18 = smov 0   ;;  %s1250_s19 = smov 0   ;;  %s1367_s0 = inlined_call_operand.vmem [shape: bf16[32,1152], index: 0, kind: input, shape index: {}]   ;;  %s1368_s1 = inlined_call_operand.vmem [shape: bf16[1152,128], index: 1, kind: input, shape index: {}]   ;;  %s1369_s2 = inlined_call_operand.vmem [shape: f32[1,128], index: 2, kind: input, shape index: {}]   ;;  %s1370_s3 = inlined_call_operand.vmem [shape: f32[1,128], index: 3, kind: input, shape index: {}]   ;;  %s1371_s4 = inlined_call_operand.vmem [shape: bf16[32,128], index: 4, kind: input, shape index: {}]   ;;  %s1372_s5 = inlined_call_operand.vmem [shape: bf16[32,128], index: 5, kind: output, shape index: {}]  }
   0x1   :  { %s1252_s20 = smov 0   ;;  %s1254_s21 = smov 0  }
   0x2   :  { %s1256_s22 = smov 0  }
   0x3 LB: > { %s27_s23 = sadd.s32 1, %s1211_s21  ;;  %p50_p1 = scmp.ne.s32.totalorder %s1203_s19, %s1199_s18  ;;  %s1215_s22 = sphi %s1256_s22, %s15_s22   ;;  %s1211_s21 = sphi %s1254_s21, %s1376_s21   ;;  %s1207_s20 = sphi %s1252_s20, %s1375_s20   ;;  %s1203_s19 = sphi %s1250_s19, %s1374_s19   ;;  %s1199_s18 = sphi %s1248_s18, %s1373_s18  }
   0x4   : > { %p28_p0 = scmp.ge.s32.totalorder %s27_s23, 3  ;;  %p51_p2 = scmp.eq.s32.totalorder %s1215_s22, 0 }
   0x5   : > { %s43_s25 = sadd.s32 1, %s1203_s19  ;;  %p965_p5 = scmp.ge.s32.totalorder %s1215_s22, 3 }
   0x6   : > { %s1378_s23 = smov (%p28_p0, %s27_s23), 0  ;;  %p52_p3 = por %p51_p2, %p50_p1 }
   0x7   : > { %s39_s24 = ssub.s32 %s1211_s21, %s1378_s23  ;;  %236 = sbr.rel (%p965_p5) target bundleno = 21 (0x15), region = 28 }
   0x8   : > { %p41_p4 = scmp.eq.s32.totalorder %s39_s24, 0 }
   0xa   : > { %s1283_s26 = scalar_select %p41_p4, %s1203_s19, %s43_s25  }
   0xc   : > { %239 = sbr.rel (!%p52_p3) target bundleno = 21 (0x15), region = 32  ;;  %s241_s27 = sand.u32 (%p52_p3), 1, %s1203_s19  }
   0xd   : > { %s1019_s28 = smul.u32 (%p52_p3), 12, %s1211_s21 }
   0xe   : > { %s1102_s29 = smul.u32 (%p52_p3), 48, %s241_s27 }
   0xf   : > { %s249_s7 = scalar_lea.vmem (%p52_p3), %s1367_s0, %s1019_s28 }
  0x10   : > { %v264_v0 = vld [vmem:[%s249_s7] sm:$0xff] (%p52_p3)  ;;  %v268_v2 = vld [vmem:[%s249_s7 + $0x48] sm:$0xff] (%p52_p3)  ;;  %s243_s8 = scalar_lea.vmem (%p52_p3), [#allocation3], %s1102_s29  ;;  %v971_v6 = vld [vmem:[%s249_s7 + $0x50] sm:$0xf] (%p52_p3) }
  0x11   : > { %v266_v1 = vld [vmem:[%s249_s7 + $0x24] sm:$0xff]  ;;  %265 = vst [vmem:[%s243_s8] sm:$0xff] %v264_v0  ;;  %269 = vst [vmem:[%s243_s8 + $0x18] sm:$0xff] %v268_v2  ;;  %v270_v3 = vld [vmem:[%s249_s7 + $0x6c] sm:$0xff] }
  0x12   : > { %267 = vst [vmem:[%s243_s8 + $0xc] sm:$0xff] %v266_v1  ;;  %v967_v4 = vld [vmem:[%s249_s7 + $0x8] sm:$0xf]  ;;  %v969_v5 = vld [vmem:[%s249_s7 + $0x2c] sm:$0xf]  ;;  %271 = vst [vmem:[%s243_s8 + $0x24] sm:$0xff] %v270_v3 }
  0x13   : > { %968 = vst [vmem:[%s243_s8 + $0x8] sm:$0xf] %v967_v4  ;;  %970 = vst [vmem:[%s243_s8 + $0x14] sm:$0xf] %v969_v5  ;;  %v973_v7 = vld [vmem:[%s249_s7 + $0x74] sm:$0xf] }
  0x14   : > { %972 = vst [vmem:[%s243_s8 + $0x20] sm:$0xf] %v971_v6  ;;  %974 = vst [vmem:[%s243_s8 + $0x2c] sm:$0xf] %v973_v7 }
  0x15 PF: > { %p975_p6 = scmp.ge.s32.totalorder %s1215_s22, 1  ;;  %p304_p7 = scmp.lt.s32.totalorder %s1215_s22, 4 }
  0x17   : > { %p305_p8 = pnand %p975_p6, %p304_p7 }
  0x18   : > { %s311_s9 = sand.u32 (!%p305_p8), 1, %s1199_s18   ;;  %s365_s10 = smul.u32 (!%p305_p8), 48, %s1207_s20 }
  0x19   : > { %308 = sbr.rel (%p305_p8) target bundleno = 303 (0x12f), region = 62  ;;  %p977_p10 = scmp.ne.s32.totalorder (!%p305_p8), %s1207_s20, 0 }
  0x1a   : > { %s1103_s11 = smul.u32 (!%p305_p8), 48, %s311_s9  ;;  %p366_p9 = scmp.lt.s32.totalorder (!%p305_p8), %s365_s10, 143 }
  0x1c   : > { %s1300_s16 = scalar_lea.vmem (!%p305_p8), [#allocation3], %s1103_s11 }
  0x1e   : > { %s1380_s10 = smov (!%p366_p9, %s365_s10), 143  ;;  %402 = sbr.rel (%p977_p10) target bundleno = 38 (0x26), region = 70 }
  0x1f   : > { %s976_s12 = sshll.u32 %s1380_s10, 2 }
  0x20   : > { %s1298_s15 = scalar_lea.vmem %s1368_s1, %s976_s12 }
  0x23   : > { %v1217_v8 = vmov 0.0  }
  0x24   : > { %403 = vst [vmem:[#allocation2 + $0x10] sm:$0xff] %v1217_v8  ;;  %404 = vst [vmem:[#allocation2] sm:$0xff] %v1217_v8 }
  0x25   : > { %405 = vst [vmem:[#allocation2 + $0x18] sm:$0xff] %v1217_v8  ;;  %406 = vst [vmem:[#allocation2 + $0x8] sm:$0xff] %v1217_v8 }
  0x26 PF: > { %v1145_v9 = vld [vmem:[%s1298_s15 + $0x78] sm:$0xff]   ;;  %v1148_v12 = vld [vmem:[%s1298_s15 + $0x70] sm:$0xff]   ;;  %v1151_v15 = vld [vmem:[%s1298_s15 + $0x68] sm:$0xff]   ;;  %p1008_p11 = scmp.ne.s32.totalorder %s1207_s20, 2 }
  0x27   : > { %v1146_v10 = vld [vmem:[%s1298_s15 + $0x38] sm:$0xff]   ;;  %1044 = vmatprep.subr.bf16.mxu0 %v1145_v9  ;;  %v1149_v13 = vld [vmem:[%s1298_s15 + $0x30] sm:$0xff]   ;;  %v1152_v16 = vld [vmem:[%s1298_s15 + $0x28] sm:$0xff]  }
  0x28   : > { %v1147_v11 = vld [vmem:[%s1298_s15 + $0xb8] sm:$0xff]   ;;  %1045 = vmatpush3.bf16.msra.mxu0 %v1146_v10  ;;  %v1150_v14 = vld [vmem:[%s1298_s15 + $0xb0] sm:$0xff]   ;;  %v1153_v17 = vld [vmem:[%s1298_s15 + $0xa8] sm:$0xff]  }
  0x29   : > { %1082 = vmatprep.subr.bf16.mxu1 %v1147_v11  ;;  %1046 = vmatprep.subr.bf16.mxu0 %v1148_v12  ;;  %v1154_v18 = vld [vmem:[%s1298_s15 + $0x60] sm:$0xff]   ;;  %v1157_v21 = vld [vmem:[%s1298_s15 + $0x58] sm:$0xff]   ;;  %v1160_v24 = vld [vmem:[%s1298_s15 + $0x50] sm:$0xff]  }
  0x2a   : > { %1083 = vmatpush3.bf16.msra.mxu1 %v1147_v11  ;;  %v1155_v19 = vld [vmem:[%s1298_s15 + $0x20] sm:$0xff]   ;;  %v1159_v22 = vld [vmem:[%s1298_s15 + $0x98] sm:$0xff]   ;;  %v1162_v25 = vld [vmem:[%s1298_s15 + $0x90] sm:$0xff]  }
  0x2b   : > { %1084 = vmatprep.subr.bf16.mxu1 %v1150_v14  ;;  %v1156_v20 = vld [vmem:[%s1298_s15 + $0xa0] sm:$0xff]   ;;  %v1158_v23 = vld [vmem:[%s1298_s15 + $0x18] sm:$0xff]   ;;  %v1161_v26 = vld [vmem:[%s1298_s15 + $0x10] sm:$0xff]  }
  0x2c   : > { %1047 = vmatpush3.bf16.msra.mxu0 %v1149_v13  ;;  %v1163_v27 = vld [vmem:[%s1298_s15 + $0x48] sm:$0xff]   ;;  %v1166_v30 = vld [vmem:[%s1298_s15 + $0x40] sm:$0xff]   ;;  %v407_v44 = vld [vmem:[#allocation2 + $0x10] sm:$0xff] }
  0x2d   : > { %1048 = vmatprep.subr.bf16.mxu0 %v1151_v15  ;;  %v1164_v28 = vld [vmem:[%s1298_s15 + $0x8] sm:$0xff]   ;;  %v1168_v31 = vld [vmem:[%s1298_s15 + $0x80] sm:$0xff]   ;;  %v409_v58 = vld [vmem:[#allocation2 + $0x18] sm:$0xff] }
  0x2e   : > { %1085 = vmatpush3.bf16.msra.mxu1 %v1150_v14  ;;  %v1165_v29 = vld [vmem:[%s1298_s15 + $0x88] sm:$0xff]   ;;  %v1171_v32 = vld [vmem:[%s1300_s16 + $0x4] ss:$12 sps:$4 sm:$0xff]  }
  0x2f   : > { %1086 = vmatprep.subr.bf16.mxu1 %v1153_v17  ;;  %v1172_v33 = vld [vmem:[%s1300_s16 + $0x8] ss:$12 sps:$4 sm:$0xff]   ;;  %675 = vmatprep.mubr.bf16.mxu0 %v1171_v32  ;;  %v1169_v35 = vld [vmem:[%s1300_s16] ss:$12 sps:$4 sm:$0xff]   ;;  %v1176_v38 = vld [vmem:[%s1300_s16 + $0x18] ss:$12 sps:$4 sm:$0xff]  }
  0x30   : > { %1049 = vmatpush3.bf16.msra.mxu0 %v1152_v16  ;;  %v1167_v34 = vld [vmem:[%s1298_s15] sm:$0xff]   ;;  %1098 = vmatprep.mubr.bf16.mxu1 %v1172_v33  ;;  %v1174_v36 = vld [vmem:[%s1300_s16 + $0x1c] ss:$12 sps:$4 sm:$0xff]  }
  0x31   : > { %1050 = vmatprep.subr.bf16.mxu0 %v1154_v18  ;;  %v1173_v37 = vld [vmem:[%s1300_s16 + $0x20] ss:$12 sps:$4 sm:$0xff]  }
  0x32   : > { %1087 = vmatpush3.bf16.msra.mxu1 %v1153_v17  ;;  %v408_v52 = vld [vmem:[#allocation2] sm:$0xff]  ;;  %v410_v0 = vld [vmem:[#allocation2 + $0x8] sm:$0xff] }
  0x33   : > { %1088 = vmatprep.subr.bf16.mxu1 %v1156_v20 }
  0x34   : > { %1051 = vmatpush3.bf16.msra.mxu0 %v1155_v19 }
  0x35   : > { %1052 = vmatprep.subr.bf16.mxu0 %v1157_v21 }
  0x36   : > { %1089 = vmatpush3.bf16.msra.mxu1 %v1156_v20 }
  0x37   : > { %1090 = vmatprep.subr.bf16.mxu1 %v1159_v22 }
  0x38   : > { %1053 = vmatpush3.bf16.msra.mxu0 %v1158_v23 }
  0x39   : > { %1054 = vmatprep.subr.bf16.mxu0 %v1160_v24 }
  0x3a   : > { %1091 = vmatpush3.bf16.msra.mxu1 %v1159_v22 }
  0x3b   : > { %1092 = vmatprep.subr.bf16.mxu1 %v1162_v25 }
  0x3c   : > { %1055 = vmatpush3.bf16.msra.mxu0 %v1161_v26 }
  0x3d   : > { %1056 = vmatprep.subr.bf16.mxu0 %v1163_v27 }
  0x3e   : > { %1093 = vmatpush3.bf16.msra.mxu1 %v1162_v25 }
  0x3f   : > { %1094 = vmatprep.subr.bf16.mxu1 %v1165_v29 }
  0x40   : > { %1057 = vmatpush3.bf16.msra.mxu0 %v1164_v28 }
  0x41   : > { %1058 = vmatprep.subr.bf16.mxu0 %v1166_v30 }
  0x42   : > { %1095 = vmatpush3.bf16.msra.mxu1 %v1165_v29 }
  0x43   : > { %1096 = vmatprep.subr.bf16.mxu1 %v1168_v31 }
  0x44   : > { %1059 = vmatpush3.bf16.msra.mxu0 %v1167_v34 }
  0x46   : > { %1097 = vmatpush3.bf16.msra.mxu1 %v1168_v31 }
  0x47   : > { %676 = vmatmul.mubr.bf16.vlgmr.msra.gmra.mxu0 %v1169_v35 }
  0x48   : > { %683 = vmatprep.mubr.bf16.mxu0 %v1174_v36 }
  0x49   : > { %1099 = vmatmul.mubr.bf16.vlgmr.msra.gmra.mxu1 %v1173_v37 }
  0x4f   : > { %684 = vmatmul.mubr.bf16.gmra.mxu0 %v1176_v38 }
 0x107   : > { %v1060_v39 = vpop.f32.mrf.mxu0 }
 0x109   : > { %v1061_v40 = vpop.f32.mrf.mxu0  ;;  %v1100_v41 = vpop.f32.mrf.mxu1 }
 0x10a   : > { %v1062_v42 = vadd.f32 %v1061_v40, %v1060_v39 }
 0x10b   : > { %v1063_v43 = vpop.f32.mrf.mxu0  ;;  %v726_v45 = vpop.f32.mrf.mxu1 }
 0x10c   : > { %v727_v46 = vadd.f32 %v1062_v42, %v726_v45 }
 0x10d   : > { %v1064_v47 = vpop.f32.mrf.mxu0  ;;  %v1101_v48 = vpop.f32.mrf.mxu1 }
 0x10e   : > { %v741_v49 = vadd.f32 %v727_v46, %v407_v44  ;;  %v1065_v50 = vadd.f32 %v1064_v47, %v1063_v43 }
 0x10f   : > { %v1066_v51 = vpop.f32.mrf.mxu0  ;;  %v729_v53 = vpop.f32.mrf.mxu1 }
 0x110   : > { %745 = vst [vmem:[#allocation2 + $0x10] sm:$0xff] %v741_v49  ;;  %v730_v54 = vadd.f32 %v1065_v50, %v729_v53 }
 0x111   : > { %v1067_v55 = vpop.f32.mrf.mxu0 }
 0x112   : > { %v742_v56 = vadd.f32 %v730_v54, %v408_v52  ;;  %v1068_v57 = vadd.f32 %v1067_v55, %v1066_v51 }
 0x113   : > { %v1069_v59 = vpop.f32.mrf.mxu0 }
 0x114   : > { %746 = vst [vmem:[#allocation2] sm:$0xff] %v742_v56  ;;  %v735_v60 = vadd.f32 %v1100_v41, %v1068_v57 }
 0x115   : > { %v1070_v61 = vpop.f32.mrf.mxu0 }
 0x116   : > { %v743_v62 = vadd.f32 %v735_v60, %v409_v58  ;;  %v1071_v63 = vadd.f32 %v1070_v61, %v1069_v59 }
 0x118   : > { %747 = vst [vmem:[#allocation2 + $0x18] sm:$0xff] %v743_v62  ;;  %v738_v1 = vadd.f32 %v1101_v48, %v1071_v63  ;;  %752 = sbr.rel (%p1008_p11) target bundleno = 303 (0x12f), region = 74 }
 0x11a   : > { %v744_v2 = vadd.f32 %v738_v1, %v410_v0 }
 0x11c   : > { %748 = vst [vmem:[#allocation2 + $0x8] sm:$0xff] %v744_v2 }
 0x11d   : > { %v753_v3 = vld [vmem:[#allocation2 + $0x10] sm:$0xff]  ;;  %v754_v4 = vld [vmem:[#allocation2] sm:$0xff]  ;;  %v1042_v15 = vld [vmem:[%s1371_s4 + $0x8] sm:$0xff]  }
 0x11e   : > { %v1009_v5 = vld [vmem:[%s1369_s2] ss:$0 sm:$0xff]  ;;  %v1030_v19 = vunpack.c.l.bf16 %v1042_v15  ;;  %v1031_v21 = vunpack.c.h.bf16 %v1042_v15 }
 0x11f   : > { %v764_v6 = vmul.f32 %v1009_v5, %v753_v3  ;;  %v765_v7 = vmul.f32 %v1009_v5, %v754_v4  ;;  %v1010_v8 = vld [vmem:[%s1370_s3] ss:$0 sm:$0xff]  ;;  %v755_v10 = vld [vmem:[#allocation2 + $0x18] sm:$0xff] }
 0x120   : > { %v1025_v9 = vld [vmem:[%s1371_s4] sm:$0xff]   ;;  %v766_v14 = vmul.f32 %v1009_v5, %v755_v10 }
 0x121   : > { %v1026_v11 = vunpack.c.l.bf16 %v1025_v9  ;;  %v1027_v12 = vunpack.c.h.bf16 %v1025_v9  ;;  %v775_v16 = vadd.f32 %v1010_v8, %v764_v6  ;;  %v776_v17 = vadd.f32 %v1010_v8, %v765_v7 }
 0x122   : > { %v777_v20 = vadd.f32 %v1010_v8, %v766_v14 }
 0x123   : > { %v756_v13 = vld [vmem:[#allocation2 + $0x8] sm:$0xff]  ;;  %v787_v22 = vadd.f32 %v1026_v11, %v775_v16  ;;  %v788_v23 = vadd.f32 %v1027_v12, %v776_v17 }
 0x124   : > { %v767_v18 = vmul.f32 %v1009_v5, %v756_v13  ;;  %v789_v25 = vadd.f32 %v1030_v19, %v777_v20 }
 0x125   : > { %v791_v26 = vmax.f32 %v787_v22, 0.0  ;;  %v792_v27 = vmax.f32 %v788_v23, 0.0 }
 0x126   : > { %v778_v24 = vadd.f32 %v1010_v8, %v767_v18  ;;  %v793_v29 = vmax.f32 %v789_v25, 0.0 }
 0x127   : > { %v1035_v30 = vpack.c.bf16 %v792_v27, %v791_v26 }
 0x128   : > { %v790_v28 = vadd.f32 %v1031_v21, %v778_v24 }
 0x129   : > { %1036 = vst [vmem:[%s1372_s5] sm:$0xff] %v1035_v30  }
 0x12a   : > { %v794_v31 = vmax.f32 %v790_v28, 0.0 }
 0x12c   : > { %v1040_v32 = vpack.c.bf16 %v794_v31, %v793_v29 }
 0x12e   : > { %1043 = vst [vmem:[%s1372_s5 + $0x8] sm:$0xff] %v1040_v32  }
 0x12f PF: > { %s15_s22 = sadd.s32 1, %s1215_s22   ;;  %s1373_s18 = smov %s1203_s19 }
 0x130   : > { %p12_p12 = scmp.ge.s32.totalorder %s15_s22, 5   ;;  %s1374_s19 = smov %s1283_s26 }
 0x131   : > { %s1375_s20 = smov %s1211_s21  ;;  %s1376_s21 = smov %s1378_s23 }
 0x132   :  { %14 = sbr.rel (!%p12_p12) target bundleno = 3 (0x3), region = 127 }

// kernel: violence_classifier_forward.34
= control target key start
LH: loop header
LB: loop body
LE: loop exit
PB: predicated region body
PF: predicated region fallthrough
CT: control target
= control target key end

     0   :  { %s1228_s15 = smov 0   ;;  %s1230_s16 = smov 0   ;;  %s1362_s0 = inlined_call_operand.vmem [shape: bf16[16,1152], index: 0, kind: input, shape index: {}]   ;;  %s1363_s1 = inlined_call_operand.vmem [shape: bf16[1152,256], index: 1, kind: input, shape index: {}]   ;;  %s1364_s2 = inlined_call_operand.vmem [shape: f32[1,256], index: 2, kind: input, shape index: {}]   ;;  %s1365_s3 = inlined_call_operand.vmem [shape: f32[1,256], index: 3, kind: input, shape index: {}]   ;;  %s1366_s4 = inlined_call_operand.vmem [shape: bf16[16,256], index: 4, kind: output, shape index: {}]  }
   0x1   :  { %s1232_s17 = smov 0   ;;  %s1234_s18 = smov 0  }
   0x2   :  { %s1236_s19 = smov 0  }
   0x3 LB: > { %s26_s20 = sadd.s32 1, %s1195_s18  ;;  %p49_p1 = scmp.ne.s32.totalorder %s1187_s16, %s1183_s15  ;;  %s1199_s19 = sphi %s1236_s19, %s14_s19   ;;  %s1195_s18 = sphi %s1234_s18, %s1370_s18   ;;  %s1191_s17 = sphi %s1232_s17, %s1369_s17   ;;  %s1187_s16 = sphi %s1230_s16, %s1368_s16   ;;  %s1183_s15 = sphi %s1228_s15, %s1367_s15  }
   0x4   : > { %p27_p0 = scmp.ge.s32.totalorder %s26_s20, 3  ;;  %p50_p2 = scmp.eq.s32.totalorder %s1199_s19, 0 }
   0x5   : > { %s42_s22 = sadd.s32 1, %s1187_s16  ;;  %p969_p5 = scmp.ge.s32.totalorder %s1199_s19, 3 }
   0x6   : > { %s1372_s20 = smov (%p27_p0, %s26_s20), 0  ;;  %p51_p3 = por %p50_p2, %p49_p1 }
   0x7   : > { %s38_s21 = ssub.s32 %s1195_s18, %s1372_s20  ;;  %199 = sbr.rel (%p969_p5) target bundleno = 19 (0x13), region = 24 }
   0x8   : > { %p40_p4 = scmp.eq.s32.totalorder %s38_s21, 0 }
   0xa   : > { %s1263_s23 = scalar_select %p40_p4, %s1187_s16, %s42_s22  }
   0xc   : > { %202 = sbr.rel (!%p51_p3) target bundleno = 19 (0x13), region = 28  ;;  %s204_s24 = sand.u32 (%p51_p3), 1, %s1187_s16  }
   0xd   : > { %s1037_s25 = smul.u32 (%p51_p3), 12, %s1195_s18 }
   0xe   : > { %s1041_s26 = smul.u32 (%p51_p3), 24, %s204_s24 }
   0xf   : > { %s212_s29 = scalar_lea.vmem (%p51_p3), %s1362_s0, %s1037_s25 }
  0x10   : > { %v227_v0 = vld [vmem:[%s212_s29] sm:$0xff] (%p51_p3)  ;;  %v971_v2 = vld [vmem:[%s212_s29 + $0x8] sm:$0xf] (%p51_p3)  ;;  %s206_s30 = scalar_lea.vmem (%p51_p3), [#allocation3], %s1041_s26  ;;  %v973_v3 = vld [vmem:[%s212_s29 + $0x2c] sm:$0xf] (%p51_p3) }
  0x11   : > { %v229_v1 = vld [vmem:[%s212_s29 + $0x24] sm:$0xff]  ;;  %228 = vst [vmem:[%s206_s30] sm:$0xff] %v227_v0  ;;  %972 = vst [vmem:[%s206_s30 + $0x8] sm:$0xf] %v971_v2 }
  0x12   : > { %230 = vst [vmem:[%s206_s30 + $0xc] sm:$0xff] %v229_v1  ;;  %974 = vst [vmem:[%s206_s30 + $0x14] sm:$0xf] %v973_v3 }
  0x13 PF: > { %p975_p6 = scmp.ge.s32.totalorder %s1199_s19, 1  ;;  %p262_p7 = scmp.lt.s32.totalorder %s1199_s19, 4 }
  0x15   : > { %p263_p8 = pnand %p975_p6, %p262_p7 }
  0x16   : > { %s269_s5 = sand.u32 (!%p263_p8), 1, %s1183_s15   ;;  %s319_s6 = smul.u32 (!%p263_p8), 48, %s1191_s17 }
  0x17   : > { %266 = sbr.rel (%p263_p8) target bundleno = 322 (0x142), region = 58  ;;  %p978_p10 = scmp.ne.s32.totalorder (!%p263_p8), %s1191_s17, 0 }
  0x18   : > { %s1042_s7 = smul.u32 (!%p263_p8), 24, %s269_s5  ;;  %p321_p9 = scmp.lt.s32.totalorder (!%p263_p8), %s319_s6, 143 }
  0x1a   : > { %s1280_s12 = scalar_lea.vmem (!%p263_p8), [#allocation3], %s1042_s7 }
  0x1c   : > { %s1374_s6 = smov (!%p321_p9, %s319_s6), 143  ;;  %357 = sbr.rel (%p978_p10) target bundleno = 36 (0x24), region = 66 }
  0x1d   : > { %s1038_s8 = sshll.u32 %s1374_s6, 3 }
  0x1e   : > { %s1278_s11 = scalar_lea.vmem %s1363_s1, %s1038_s8 }
  0x21   : > { %v1201_v4 = vmov 0.0  }
  0x22   : > { %358 = vst [vmem:[#allocation2 + $0x10] sm:$0xff] %v1201_v4  ;;  %359 = vst [vmem:[#allocation2] sm:$0xff] %v1201_v4 }
  0x23   : > { %360 = vst [vmem:[#allocation2 + $0x18] sm:$0xff] %v1201_v4  ;;  %361 = vst [vmem:[#allocation2 + $0x8] sm:$0xff] %v1201_v4 }
  0x24 PF: > { %v1085_v5 = vld [vmem:[%s1278_s11 + $0x74] ss:$8 sps:$4 sm:$0xff]   ;;  %v1087_v6 = vld [vmem:[%s1278_s11 + $0x70] ss:$8 sps:$4 sm:$0xff]   ;;  %v1202_v7 = vmov 0   ;;  %p1030_p11 = scmp.ne.s32.totalorder %s1191_s17, 2 }
  0x25   : > { %749 = vmatprep.mubr.bf16.mxu1 %v1202_v7  ;;  %674 = vmatprep.subr.bf16.mxu0 %v1085_v5  ;;  %v1088_v8 = vld [vmem:[%s1278_s11 + $0x64] ss:$8 sps:$4 sm:$0xff]   ;;  %v1090_v9 = vld [vmem:[%s1278_s11 + $0x60] ss:$8 sps:$4 sm:$0xff]   ;;  %v1091_v10 = vld [vmem:[%s1278_s11 + $0x54] ss:$8 sps:$4 sm:$0xff]  }
  0x26   : > { %675 = vmatpush1.bf16.msra.mxu0 %v1087_v6  ;;  %v1093_v11 = vld [vmem:[%s1278_s11 + $0x50] ss:$8 sps:$4 sm:$0xff]   ;;  %v1094_v12 = vld [vmem:[%s1278_s11 + $0x44] ss:$8 sps:$4 sm:$0xff]   ;;  %v1106_v13 = vld [vmem:[%s1278_s11 + $0x174] ss:$8 sps:$4 sm:$0xff]  }
  0x27   : > { %676 = vmatprep.subr.bf16.mxu0 %v1088_v8  ;;  %v1108_v14 = vld [vmem:[%s1278_s11 + $0x170] ss:$8 sps:$4 sm:$0xff]   ;;  %v1096_v15 = vld [vmem:[%s1278_s11 + $0x40] ss:$8 sps:$4 sm:$0xff]   ;;  %v1097_v16 = vld [vmem:[%s1278_s11 + $0x34] ss:$8 sps:$4 sm:$0xff]   ;;  %717 = vmatprep.subr.bf16.mxu1 %v1106_v13 }
  0x28   : > { %v1112_v17 = vld [vmem:[%s1278_s11 + $0x164] ss:$8 sps:$4 sm:$0xff]   ;;  %718 = vmatpush1.bf16.msra.mxu1 %v1108_v14  ;;  %v1114_v18 = vld [vmem:[%s1278_s11 + $0x160] ss:$8 sps:$4 sm:$0xff]   ;;  %v1099_v19 = vld [vmem:[%s1278_s11 + $0x30] ss:$8 sps:$4 sm:$0xff]  }
  0x29   : > { %719 = vmatprep.subr.bf16.mxu1 %v1112_v17  ;;  %v1118_v20 = vld [vmem:[%s1278_s11 + $0x154] ss:$8 sps:$4 sm:$0xff]   ;;  %v1100_v21 = vld [vmem:[%s1278_s11 + $0x24] ss:$8 sps:$4 sm:$0xff]   ;;  %v1120_v22 = vld [vmem:[%s1278_s11 + $0x150] ss:$8 sps:$4 sm:$0xff]  }
  0x2a   : > { %677 = vmatpush1.bf16.msra.mxu0 %v1090_v9  ;;  %v1124_v23 = vld [vmem:[%s1278_s11 + $0x144] ss:$8 sps:$4 sm:$0xff]   ;;  %v1102_v24 = vld [vmem:[%s1278_s11 + $0x20] ss:$8 sps:$4 sm:$0xff]   ;;  %v1103_v25 = vld [vmem:[%s1278_s11 + $0x14] ss:$8 sps:$4 sm:$0xff]  }
  0x2b   : > { %678 = vmatprep.subr.bf16.mxu0 %v1091_v10  ;;  %v1126_v26 = vld [vmem:[%s1278_s11 + $0x140] ss:$8 sps:$4 sm:$0xff]   ;;  %v1130_v27 = vld [vmem:[%s1278_s11 + $0x134] ss:$8 sps:$4 sm:$0xff]   ;;  %v1105_v28 = vld [vmem:[%s1278_s11 + $0x10] ss:$8 sps:$4 sm:$0xff]  }
  0x2c   : > { %720 = vmatpush1.bf16.msra.mxu1 %v1114_v18  ;;  %v1109_v29 = vld [vmem:[%s1278_s11 + $0x4] ss:$8 sps:$4 sm:$0xff]   ;;  %v1132_v30 = vld [vmem:[%s1278_s11 + $0x130] ss:$8 sps:$4 sm:$0xff]   ;;  %v1111_v32 = vld [vmem:[%s1278_s11] ss:$8 sps:$4 sm:$0xff]  }
  0x2d   : > { %721 = vmatprep.subr.bf16.mxu1 %v1118_v20  ;;  %v1136_v31 = vld [vmem:[%s1278_s11 + $0x124] ss:$8 sps:$4 sm:$0xff]   ;;  %v1115_v33 = vld [vmem:[%s1278_s11 + $0xf4] ss:$8 sps:$4 sm:$0xff]   ;;  %v1138_v34 = vld [vmem:[%s1278_s11 + $0x120] ss:$8 sps:$4 sm:$0xff]  }
  0x2e   : > { %679 = vmatpush1.bf16.msra.mxu0 %v1093_v11  ;;  %v1142_v35 = vld [vmem:[%s1278_s11 + $0x114] ss:$8 sps:$4 sm:$0xff]   ;;  %v1117_v36 = vld [vmem:[%s1278_s11 + $0xf0] ss:$8 sps:$4 sm:$0xff]   ;;  %v1121_v37 = vld [vmem:[%s1278_s11 + $0xe4] ss:$8 sps:$4 sm:$0xff]  }
  0x2f   : > { %680 = vmatprep.subr.bf16.mxu0 %v1094_v12  ;;  %v1144_v38 = vld [vmem:[%s1278_s11 + $0x110] ss:$8 sps:$4 sm:$0xff]   ;;  %v1148_v39 = vld [vmem:[%s1278_s11 + $0x104] ss:$8 sps:$4 sm:$0xff]   ;;  %v1123_v41 = vld [vmem:[%s1278_s11 + $0xe0] ss:$8 sps:$4 sm:$0xff]  }
  0x30   : > { %722 = vmatpush1.bf16.msra.mxu1 %v1120_v22  ;;  %v1160_v40 = vld [vmem:[%s1280_s12 + $0x4] ss:$12 sps:$4 sm:$0xff]   ;;  %v1154_v46 = vld [vmem:[%s1280_s12 + $0x8] ss:$12 sps:$4 sm:$0xff]   ;;  %v1158_v56 = vld [vmem:[%s1280_s12] ss:$12 sps:$4 sm:$0xff]  }
  0x31   : > { %723 = vmatprep.subr.bf16.mxu1 %v1124_v23  ;;  %v1127_v42 = vld [vmem:[%s1278_s11 + $0xd4] ss:$8 sps:$4 sm:$0xff]   ;;  %706 = vmatprep.mubr.bf16.mxu0 %v1160_v40  ;;  %v1150_v43 = vld [vmem:[%s1278_s11 + $0x100] ss:$8 sps:$4 sm:$0xff]   ;;  %v1129_v44 = vld [vmem:[%s1278_s11 + $0xd0] ss:$8 sps:$4 sm:$0xff]  }
  0x32   : > { %681 = vmatpush1.bf16.msra.mxu0 %v1096_v15  ;;  %v1133_v45 = vld [vmem:[%s1278_s11 + $0xc4] ss:$8 sps:$4 sm:$0xff]   ;;  %v1135_v47 = vld [vmem:[%s1278_s11 + $0xc0] ss:$8 sps:$4 sm:$0xff]   ;;  %v1139_v48 = vld [vmem:[%s1278_s11 + $0xb4] ss:$8 sps:$4 sm:$0xff]  }
  0x33   : > { %682 = vmatprep.subr.bf16.mxu0 %v1097_v16  ;;  %v1141_v49 = vld [vmem:[%s1278_s11 + $0xb0] ss:$8 sps:$4 sm:$0xff]   ;;  %v1145_v50 = vld [vmem:[%s1278_s11 + $0xa4] ss:$8 sps:$4 sm:$0xff]   ;;  %v1147_v51 = vld [vmem:[%s1278_s11 + $0xa0] ss:$8 sps:$4 sm:$0xff]  }
  0x34   : > { %724 = vmatpush1.bf16.msra.mxu1 %v1126_v26  ;;  %v1151_v52 = vld [vmem:[%s1278_s11 + $0x94] ss:$8 sps:$4 sm:$0xff]   ;;  %v1153_v53 = vld [vmem:[%s1278_s11 + $0x90] ss:$8 sps:$4 sm:$0xff]   ;;  %v1155_v54 = vld [vmem:[%s1278_s11 + $0x84] ss:$8 sps:$4 sm:$0xff]  }
  0x35   : > { %725 = vmatprep.subr.bf16.mxu1 %v1130_v27  ;;  %v1157_v55 = vld [vmem:[%s1278_s11 + $0x80] ss:$8 sps:$4 sm:$0xff]   ;;  %v362_v59 = vld [vmem:[#allocation2 + $0x10] sm:$0xff]  ;;  %v364_v3 = vld [vmem:[#allocation2 + $0x18] sm:$0xff] }
  0x36   : > { %683 = vmatpush1.bf16.msra.mxu0 %v1099_v19  ;;  %v363_v63 = vld [vmem:[#allocation2] sm:$0xff]  ;;  %v365_v8 = vld [vmem:[#allocation2 + $0x8] sm:$0xff] }
  0x37   : > { %684 = vmatprep.subr.bf16.mxu0 %v1100_v21 }
  0x38   : > { %726 = vmatpush1.bf16.msra.mxu1 %v1132_v30 }
  0x39   : > { %727 = vmatprep.subr.bf16.mxu1 %v1136_v31 }
  0x3a   : > { %685 = vmatpush1.bf16.msra.mxu0 %v1102_v24 }
  0x3b   : > { %686 = vmatprep.subr.bf16.mxu0 %v1103_v25 }
  0x3c   : > { %728 = vmatpush1.bf16.msra.mxu1 %v1138_v34 }
  0x3d   : > { %729 = vmatprep.subr.bf16.mxu1 %v1142_v35 }
  0x3e   : > { %687 = vmatpush1.bf16.msra.mxu0 %v1105_v28 }
  0x3f   : > { %688 = vmatprep.subr.bf16.mxu0 %v1109_v29 }
  0x40   : > { %730 = vmatpush1.bf16.msra.mxu1 %v1144_v38 }
  0x41   : > { %731 = vmatprep.subr.bf16.mxu1 %v1148_v39 }
  0x42   : > { %689 = vmatpush1.bf16.msra.mxu0 %v1111_v32 }
  0x43   : > { %690 = vmatprep.subr.bf16.mxu0 %v1115_v33 }
  0x44   : > { %732 = vmatpush1.bf16.msra.mxu1 %v1150_v43 }
  0x46   : > { %691 = vmatpush2.bf16.msra.mxu0 %v1117_v36 }
  0x47   : > { %692 = vmatprep.subr.bf16.mxu0 %v1121_v37  ;;  %750 = vmatmul.mubr.bf16.vlgmr.msra.gmra.mxu1 %v1154_v46 }
  0x4a   : > { %693 = vmatpush2.bf16.msra.mxu0 %v1123_v41 }
  0x4b   : > { %694 = vmatprep.subr.bf16.mxu0 %v1127_v42 }
  0x4e   : > { %695 = vmatpush2.bf16.msra.mxu0 %v1129_v44 }
  0x4f   : > { %696 = vmatprep.subr.bf16.mxu0 %v1133_v45 }
  0x52   : > { %697 = vmatpush2.bf16.msra.mxu0 %v1135_v47 }
  0x53   : > { %698 = vmatprep.subr.bf16.mxu0 %v1139_v48 }
  0x56   : > { %699 = vmatpush2.bf16.msra.mxu0 %v1141_v49 }
  0x57   : > { %700 = vmatprep.subr.bf16.mxu0 %v1145_v50 }
  0x5a   : > { %701 = vmatpush2.bf16.msra.mxu0 %v1147_v51 }
  0x5b   : > { %702 = vmatprep.subr.bf16.mxu0 %v1151_v52 }
  0x5e   : > { %703 = vmatpush2.bf16.msra.mxu0 %v1153_v53 }
  0x5f   : > { %704 = vmatprep.subr.bf16.mxu0 %v1155_v54 }
  0x62   : > { %705 = vmatpush2.bf16.msra.mxu0 %v1157_v55 }
  0x65   : > { %707 = vmatmul.mubr.bf16.vlgmr.msra.gmra.mxu0 %v1158_v56 }
 0x107   : > { %v751_v57 = vpop.f32.mrf.mxu1 }
 0x109   : > { %v753_v58 = vpop.f32.mrf.mxu1 }
 0x10b   : > { %v755_v62 = vpop.f32.mrf.mxu1 }
 0x10d   : > { %v757_v7 = vpop.f32.mrf.mxu1 }
 0x125   : > { %v708_v60 = vpop.f32.mrf.mxu0 }
 0x126   : > { %v752_v61 = vadd.f32 %v751_v57, %v708_v60 }
 0x127   : > { %v710_v0 = vpop.f32.mrf.mxu0 }
 0x128   : > { %v760_v1 = vadd.f32 %v752_v61, %v362_v59  ;;  %v754_v2 = vadd.f32 %v753_v58, %v710_v0 }
 0x129   : > { %v712_v4 = vpop.f32.mrf.mxu0 }
 0x12a   : > { %764 = vst [vmem:[#allocation2 + $0x10] sm:$0xff] %v760_v1  ;;  %v761_v5 = vadd.f32 %v754_v2, %v363_v63  ;;  %v756_v6 = vadd.f32 %v755_v62, %v712_v4 }
 0x12b   : > { %v714_v9 = vpop.f32.mrf.mxu0 }
 0x12c   : > { %765 = vst [vmem:[#allocation2] sm:$0xff] %v761_v5  ;;  %v762_v10 = vadd.f32 %v756_v6, %v364_v3  ;;  %v758_v11 = vadd.f32 %v757_v7, %v714_v9  ;;  %771 = sbr.rel (%p1030_p11) target bundleno = 322 (0x142), region = 70 }
 0x12e   : > { %766 = vst [vmem:[#allocation2 + $0x18] sm:$0xff] %v762_v10  ;;  %v763_v12 = vadd.f32 %v758_v11, %v365_v8 }
 0x130   : > { %767 = vst [vmem:[#allocation2 + $0x8] sm:$0xff] %v763_v12 }
 0x131   : > { %v778_v13 = vlaneseq  ;;  %v776_v15 = vld [vmem:[%s1364_s2] sm:$0x3]  ;;  %v772_v17 = vld [vmem:[#allocation2 + $0x10] sm:$0xff] }
 0x132   : > { %v792_v16 = vld [vmem:[%s1365_s3] sm:$0x3] }
 0x133   : > { %v779_v14 = vshrl.u32 %v778_v13, 7  ;;  %v773_v20 = vld [vmem:[#allocation2] sm:$0xff] }
 0x135   : > { %v780_v18 = vsub.s32 0, %v779_v14  ;;  %v784_v19 = vsub.s32 1, %v779_v14  ;;  %v774_v21 = vld [vmem:[#allocation2 + $0x18] sm:$0xff] }
 0x137   : > { %v775_v22 = vld [vmem:[#allocation2 + $0x8] sm:$0xff]  ;;  %v781_v23 = vrot.slane %v776_v15, %v780_v18  ;;  %v785_v24 = vrot.slane %v776_v15, %v784_v19  ;;  %v797_v25 = vrot.slane %v792_v16, %v780_v18  ;;  %v801_v26 = vrot.slane %v792_v16, %v784_v19 }
 0x139   : > { %v788_v27 = vmul.f32 %v781_v23, %v772_v17  ;;  %v789_v28 = vmul.f32 %v785_v24, %v773_v20  ;;  %v790_v29 = vmul.f32 %v781_v23, %v774_v21  ;;  %v791_v30 = vmul.f32 %v785_v24, %v775_v22 }
 0x13b   : > { %v804_v31 = vadd.f32 %v797_v25, %v788_v27  ;;  %v805_v32 = vadd.f32 %v801_v26, %v789_v28  ;;  %v806_v33 = vadd.f32 %v797_v25, %v790_v29  ;;  %v807_v34 = vadd.f32 %v801_v26, %v791_v30 }
 0x13d   : > { %v808_v35 = vmax.f32 %v804_v31, 0.0  ;;  %v809_v36 = vmax.f32 %v805_v32, 0.0  ;;  %v810_v37 = vmax.f32 %v806_v33, 0.0  ;;  %v811_v38 = vmax.f32 %v807_v34, 0.0 }
 0x13f   : > { %v1039_v39 = vpack.c.bf16 %v809_v36, %v808_v35  ;;  %v1040_v40 = vpack.c.bf16 %v811_v38, %v810_v37 }
 0x141   : > { %824 = vst [vmem:[%s1366_s4] sm:$0xff] %v1039_v39  ;;  %825 = vst [vmem:[%s1366_s4 + $0x8] sm:$0xff] %v1040_v40 }
 0x142 PF: > { %s14_s19 = sadd.s32 1, %s1199_s19   ;;  %s1367_s15 = smov %s1187_s16 }
 0x143   : > { %p11_p12 = scmp.ge.s32.totalorder %s14_s19, 5   ;;  %s1368_s16 = smov %s1263_s23 }
 0x144   : > { %s1369_s17 = smov %s1195_s18  ;;  %s1370_s18 = smov %s1372_s20 }
 0x145   :  { %13 = sbr.rel (!%p11_p12) target bundleno = 3 (0x3), region = 120 }

// kernel: violence_classifier_forward.33
= control target key start
LH: loop header
LB: loop body
LE: loop exit
PB: predicated region body
PF: predicated region fallthrough
CT: control target
= control target key end

     0   :  { %v289_v1 = vmov 0   ;;  %v194_v18 = vlaneseq  ;;  %s378_s1 = inlined_call_operand.vmem [shape: bf16[128,256], index: 1, kind: input, shape index: {}]   ;;  %s379_s0 = inlined_call_operand.vmem [shape: bf16[16,128], index: 0, kind: input, shape index: {}]   ;;  %s380_s2 = inlined_call_operand.vmem [shape: f32[1,256], index: 2, kind: input, shape index: {}]   ;;  %s381_s3 = inlined_call_operand.vmem [shape: f32[1,256], index: 3, kind: input, shape index: {}]   ;;  %s382_s4 = inlined_call_operand.vmem [shape: bf16[16,256], index: 4, kind: output, shape index: {}]  }
   0x1   :  { %v264_v0 = vld [vmem:[%s378_s1 + $0x74] ss:$8 sps:$4 sm:$0xff]   ;;  %166 = vmatprep.mubr.bf16.mxu0 %v289_v1  ;;  %v266_v2 = vld [vmem:[%s378_s1 + $0x70] ss:$8 sps:$4 sm:$0xff]   ;;  %v267_v3 = vld [vmem:[%s378_s1 + $0x64] ss:$8 sps:$4 sm:$0xff]  }
   0x2   :  { %134 = vmatprep.subr.bf16.mxu0 %v264_v0  ;;  %v269_v4 = vld [vmem:[%s378_s1 + $0x60] ss:$8 sps:$4 sm:$0xff]   ;;  %v270_v5 = vld [vmem:[%s378_s1 + $0x54] ss:$8 sps:$4 sm:$0xff]   ;;  %v272_v6 = vld [vmem:[%s378_s1 + $0x50] ss:$8 sps:$4 sm:$0xff]  }
   0x3   :  { %135 = vmatpush1.bf16.msra.mxu0 %v266_v2  ;;  %v273_v7 = vld [vmem:[%s378_s1 + $0x44] ss:$8 sps:$4 sm:$0xff]   ;;  %v275_v8 = vld [vmem:[%s378_s1 + $0x40] ss:$8 sps:$4 sm:$0xff]   ;;  %v276_v9 = vld [vmem:[%s378_s1 + $0x34] ss:$8 sps:$4 sm:$0xff]  }
   0x4   :  { %136 = vmatprep.subr.bf16.mxu0 %v267_v3  ;;  %v278_v10 = vld [vmem:[%s378_s1 + $0x30] ss:$8 sps:$4 sm:$0xff]   ;;  %v279_v11 = vld [vmem:[%s378_s1 + $0x24] ss:$8 sps:$4 sm:$0xff]   ;;  %v281_v12 = vld [vmem:[%s378_s1 + $0x20] ss:$8 sps:$4 sm:$0xff]  }
   0x5   :  { %v282_v13 = vld [vmem:[%s378_s1 + $0x14] ss:$8 sps:$4 sm:$0xff]   ;;  %v284_v14 = vld [vmem:[%s378_s1 + $0x10] ss:$8 sps:$4 sm:$0xff]   ;;  %v285_v15 = vld [vmem:[%s378_s1 + $0x4] ss:$8 sps:$4 sm:$0xff]  }
   0x6   :  { %v287_v16 = vld [vmem:[%s378_s1] ss:$8 sps:$4 sm:$0xff]   ;;  %v195_v19 = vshrl.u32 %v194_v18, 7 }
   0x7   :  { %137 = vmatpush1.bf16.msra.mxu0 %v269_v4  ;;  %v288_v17 = vld [vmem:[%s379_s0] sm:$0xff]  }
   0x8   :  { %138 = vmatprep.subr.bf16.mxu0 %v270_v5  ;;  %v196_v20 = vsub.s32 0, %v195_v19  ;;  %v192_v21 = vld [vmem:[%s380_s2] sm:$0x3]  ;;  %v200_v22 = vsub.s32 1, %v195_v19 }
   0x9   :  { %v208_v24 = vld [vmem:[%s381_s3] sm:$0x3] }
   0xa   :  { %v197_v23 = vrot.slane %v192_v21, %v196_v20  ;;  %v201_v25 = vrot.slane %v192_v21, %v200_v22  ;;  %v213_v28 = vrot.slane %v208_v24, %v196_v20  ;;  %v217_v29 = vrot.slane %v208_v24, %v200_v22 }
   0xb   :  { %139 = vmatpush1.bf16.msra.mxu0 %v272_v6 }
   0xc   :  { %140 = vmatprep.subr.bf16.mxu0 %v273_v7 }
   0xf   :  { %141 = vmatpush1.bf16.msra.mxu0 %v275_v8 }
  0x10   :  { %142 = vmatprep.subr.bf16.mxu0 %v276_v9 }
  0x13   :  { %143 = vmatpush1.bf16.msra.mxu0 %v278_v10 }
  0x14   :  { %144 = vmatprep.subr.bf16.mxu0 %v279_v11 }
  0x17   :  { %145 = vmatpush1.bf16.msra.mxu0 %v281_v12 }
  0x18   :  { %146 = vmatprep.subr.bf16.mxu0 %v282_v13 }
  0x1b   :  { %147 = vmatpush1.bf16.msra.mxu0 %v284_v14 }
  0x1c   :  { %148 = vmatprep.subr.bf16.mxu0 %v285_v15 }
  0x1f   :  { %149 = vmatpush1.bf16.msra.mxu0 %v287_v16 }
  0x22   :  { %167 = vmatmul.mubr.bf16.vlgmr.msra.gmra.mxu0 %v288_v17 }
  0xe2   :  { %v168_v26 = vpop.f32.mrf.mxu0 }
  0xe3   :  { %v204_v27 = vmul.f32 %v197_v23, %v168_v26 }
  0xe4   :  { %v170_v30 = vpop.f32.mrf.mxu0 }
  0xe5   :  { %v205_v31 = vmul.f32 %v201_v25, %v170_v30  ;;  %v220_v33 = vadd.f32 %v213_v28, %v204_v27 }
  0xe6   :  { %v172_v32 = vpop.f32.mrf.mxu0 }
  0xe7   :  { %v221_v34 = vadd.f32 %v217_v29, %v205_v31  ;;  %v206_v35 = vmul.f32 %v197_v23, %v172_v32 }
  0xe8   :  { %v174_v36 = vpop.f32.mrf.mxu0 }
  0xe9   :  { %v261_v37 = vpack.c.bf16 %v221_v34, %v220_v33  ;;  %v207_v38 = vmul.f32 %v201_v25, %v174_v36  ;;  %v222_v39 = vadd.f32 %v213_v28, %v206_v35 }
  0xeb   :  { %236 = vst [vmem:[%s382_s4] sm:$0xff] %v261_v37  ;;  %v223_v40 = vadd.f32 %v217_v29, %v207_v38 }
  0xed   :  { %v262_v41 = vpack.c.bf16 %v223_v40, %v222_v39 }
  0xef   :  { %237 = vst [vmem:[%s382_s4 + $0x8] sm:$0xff] %v262_v41 }

// kernel: violence_classifier_forward.35
= control target key start
LH: loop header
LB: loop body
LE: loop exit
PB: predicated region body
PF: predicated region fallthrough
CT: control target
= control target key end

     0   :  { %s1333_s18 = smov 0   ;;  %s1335_s19 = smov 0   ;;  %s1473_s0 = inlined_call_operand.vmem [shape: bf16[16,2304], index: 0, kind: input, shape index: {}]   ;;  %s1474_s1 = inlined_call_operand.vmem [shape: bf16[2304,256], index: 1, kind: input, shape index: {}]   ;;  %s1475_s2 = inlined_call_operand.vmem [shape: f32[1,256], index: 2, kind: input, shape index: {}]   ;;  %s1476_s3 = inlined_call_operand.vmem [shape: f32[1,256], index: 3, kind: input, shape index: {}]   ;;  %s1477_s4 = inlined_call_operand.vmem [shape: bf16[16,256], index: 4, kind: input, shape index: {}]   ;;  %s1478_s5 = inlined_call_operand.vmem [shape: bf16[16,256], index: 5, kind: output, shape index: {}]  }
   0x1   :  { %s1337_s20 = smov 0   ;;  %s1339_s21 = smov 0  }
   0x2   :  { %s1341_s22 = smov 0  }
   0x3 LB: > { %s27_s23 = sadd.s32 1, %s1295_s21  ;;  %p50_p1 = scmp.ne.s32.totalorder %s1287_s19, %s1283_s18  ;;  %s1299_s22 = sphi %s1341_s22, %s15_s22   ;;  %s1295_s21 = sphi %s1339_s21, %s1482_s21   ;;  %s1291_s20 = sphi %s1337_s20, %s1481_s20   ;;  %s1287_s19 = sphi %s1335_s19, %s1480_s19   ;;  %s1283_s18 = sphi %s1333_s18, %s1479_s18  }
   0x4   : > { %p28_p0 = scmp.ge.s32.totalorder %s27_s23, 6  ;;  %p51_p2 = scmp.eq.s32.totalorder %s1299_s22, 0 }
   0x5   : > { %s43_s25 = sadd.s32 1, %s1287_s19  ;;  %p1069_p5 = scmp.ge.s32.totalorder %s1299_s22, 6 }
   0x6   : > { %s1484_s23 = smov (%p28_p0, %s27_s23), 0  ;;  %p52_p3 = por %p51_p2, %p50_p1 }
   0x7   : > { %s39_s24 = ssub.s32 %s1295_s21, %s1484_s23  ;;  %243 = sbr.rel (%p1069_p5) target bundleno = 19 (0x13), region = 28 }
   0x8   : > { %p41_p4 = scmp.eq.s32.totalorder %s39_s24, 0 }
   0xa   : > { %s1368_s26 = scalar_select %p41_p4, %s1287_s19, %s43_s25  }
   0xc   : > { %246 = sbr.rel (!%p52_p3) target bundleno = 19 (0x13), region = 32  ;;  %s248_s27 = sand.u32 (%p52_p3), 1, %s1287_s19  }
   0xd   : > { %s1137_s28 = smul.u32 (%p52_p3), 12, %s1295_s21 }
   0xe   : > { %s1141_s29 = smul.u32 (%p52_p3), 24, %s248_s27 }
   0xf   : > { %s256_s7 = scalar_lea.vmem (%p52_p3), %s1473_s0, %s1137_s28 }
  0x10   : > { %v271_v0 = vld [vmem:[%s256_s7] sm:$0xff] (%p52_p3)  ;;  %v273_v1 = vld [vmem:[%s256_s7 + $0x48] sm:$0xff] (%p52_p3)  ;;  %s250_s8 = scalar_lea.vmem (%p52_p3), [#allocation3], %s1141_s29  ;;  %v1073_v3 = vld [vmem:[%s256_s7 + $0x50] sm:$0xf] (%p52_p3) }
  0x11   : > { %v1071_v2 = vld [vmem:[%s256_s7 + $0x8] sm:$0xf]  ;;  %272 = vst [vmem:[%s250_s8] sm:$0xff] %v271_v0  ;;  %274 = vst [vmem:[%s250_s8 + $0xc] sm:$0xff] %v273_v1 }
  0x12   : > { %1072 = vst [vmem:[%s250_s8 + $0x8] sm:$0xf] %v1071_v2  ;;  %1074 = vst [vmem:[%s250_s8 + $0x14] sm:$0xf] %v1073_v3 }
  0x13 PF: > { %p1075_p6 = scmp.ge.s32.totalorder %s1299_s22, 1  ;;  %p306_p7 = scmp.lt.s32.totalorder %s1299_s22, 7 }
  0x15   : > { %p307_p8 = pnand %p1075_p6, %p306_p7 }
  0x16   : > { %s313_s9 = sand.u32 (!%p307_p8), 1, %s1283_s18   ;;  %s375_s10 = smul.u32 (!%p307_p8), 48, %s1291_s20 }
  0x17   : > { %310 = sbr.rel (%p307_p8) target bundleno = 324 (0x144), region = 62  ;;  %p1078_p10 = scmp.ne.s32.totalorder (!%p307_p8), %s1291_s20, 0 }
  0x18   : > { %s1142_s11 = smul.u32 (!%p307_p8), 24, %s313_s9  ;;  %p377_p9 = scmp.lt.s32.totalorder (!%p307_p8), %s375_s10, 287 }
  0x1a   : > { %s1385_s16 = scalar_lea.vmem (!%p307_p8), [#allocation3], %s1142_s11 }
  0x1c   : > { %s1486_s10 = smov (!%p377_p9, %s375_s10), 287  ;;  %425 = sbr.rel (%p1078_p10) target bundleno = 36 (0x24), region = 70 }
  0x1d   : > { %s1138_s12 = sshll.u32 %s1486_s10, 3 }
  0x1e   : > { %s1383_s15 = scalar_lea.vmem %s1474_s1, %s1138_s12 }
  0x21   : > { %v1301_v4 = vmov 0.0  }
  0x22   : > { %426 = vst [vmem:[#allocation2 + $0x10] sm:$0xff] %v1301_v4  ;;  %427 = vst [vmem:[#allocation2] sm:$0xff] %v1301_v4 }
  0x23   : > { %428 = vst [vmem:[#allocation2 + $0x18] sm:$0xff] %v1301_v4  ;;  %429 = vst [vmem:[#allocation2 + $0x8] sm:$0xff] %v1301_v4 }
  0x24 PF: > { %v1185_v5 = vld [vmem:[%s1383_s15 + $0x74] ss:$8 sps:$4 sm:$0xff]   ;;  %v1187_v6 = vld [vmem:[%s1383_s15 + $0x70] ss:$8 sps:$4 sm:$0xff]   ;;  %v1302_v7 = vmov 0   ;;  %p1130_p11 = scmp.ne.s32.totalorder %s1291_s20, 5 }
  0x25   : > { %817 = vmatprep.mubr.bf16.mxu1 %v1302_v7  ;;  %742 = vmatprep.subr.bf16.mxu0 %v1185_v5  ;;  %v1188_v8 = vld [vmem:[%s1383_s15 + $0x64] ss:$8 sps:$4 sm:$0xff]   ;;  %v1190_v9 = vld [vmem:[%s1383_s15 + $0x60] ss:$8 sps:$4 sm:$0xff]   ;;  %v1191_v10 = vld [vmem:[%s1383_s15 + $0x54] ss:$8 sps:$4 sm:$0xff]  }
  0x26   : > { %743 = vmatpush1.bf16.msra.mxu0 %v1187_v6  ;;  %v1193_v11 = vld [vmem:[%s1383_s15 + $0x50] ss:$8 sps:$4 sm:$0xff]   ;;  %v1194_v12 = vld [vmem:[%s1383_s15 + $0x44] ss:$8 sps:$4 sm:$0xff]   ;;  %v1206_v13 = vld [vmem:[%s1383_s15 + $0x174] ss:$8 sps:$4 sm:$0xff]  }
  0x27   : > { %744 = vmatprep.subr.bf16.mxu0 %v1188_v8  ;;  %v1208_v14 = vld [vmem:[%s1383_s15 + $0x170] ss:$8 sps:$4 sm:$0xff]   ;;  %v1196_v15 = vld [vmem:[%s1383_s15 + $0x40] ss:$8 sps:$4 sm:$0xff]   ;;  %v1197_v16 = vld [vmem:[%s1383_s15 + $0x34] ss:$8 sps:$4 sm:$0xff]   ;;  %785 = vmatprep.subr.bf16.mxu1 %v1206_v13 }
  0x28   : > { %v1212_v17 = vld [vmem:[%s1383_s15 + $0x164] ss:$8 sps:$4 sm:$0xff]   ;;  %786 = vmatpush1.bf16.msra.mxu1 %v1208_v14  ;;  %v1214_v18 = vld [vmem:[%s1383_s15 + $0x160] ss:$8 sps:$4 sm:$0xff]   ;;  %v1199_v19 = vld [vmem:[%s1383_s15 + $0x30] ss:$8 sps:$4 sm:$0xff]  }
  0x29   : > { %787 = vmatprep.subr.bf16.mxu1 %v1212_v17  ;;  %v1218_v20 = vld [vmem:[%s1383_s15 + $0x154] ss:$8 sps:$4 sm:$0xff]   ;;  %v1200_v21 = vld [vmem:[%s1383_s15 + $0x24] ss:$8 sps:$4 sm:$0xff]   ;;  %v1220_v22 = vld [vmem:[%s1383_s15 + $0x150] ss:$8 sps:$4 sm:$0xff]  }
  0x2a   : > { %745 = vmatpush1.bf16.msra.mxu0 %v1190_v9  ;;  %v1224_v23 = vld [vmem:[%s1383_s15 + $0x144] ss:$8 sps:$4 sm:$0xff]   ;;  %v1202_v24 = vld [vmem:[%s1383_s15 + $0x20] ss:$8 sps:$4 sm:$0xff]   ;;  %v1203_v25 = vld [vmem:[%s1383_s15 + $0x14] ss:$8 sps:$4 sm:$0xff]  }
  0x2b   : > { %746 = vmatprep.subr.bf16.mxu0 %v1191_v10  ;;  %v1226_v26 = vld [vmem:[%s1383_s15 + $0x140] ss:$8 sps:$4 sm:$0xff]   ;;  %v1230_v27 = vld [vmem:[%s1383_s15 + $0x134] ss:$8 sps:$4 sm:$0xff]   ;;  %v1205_v28 = vld [vmem:[%s1383_s15 + $0x10] ss:$8 sps:$4 sm:$0xff]  }
  0x2c   : > { %788 = vmatpush1.bf16.msra.mxu1 %v1214_v18  ;;  %v1209_v29 = vld [vmem:[%s1383_s15 + $0x4] ss:$8 sps:$4 sm:$0xff]   ;;  %v1232_v30 = vld [vmem:[%s1383_s15 + $0x130] ss:$8 sps:$4 sm:$0xff]   ;;  %v1211_v32 = vld [vmem:[%s1383_s15] ss:$8 sps:$4 sm:$0xff]  }
  0x2d   : > { %789 = vmatprep.subr.bf16.mxu1 %v1218_v20  ;;  %v1236_v31 = vld [vmem:[%s1383_s15 + $0x124] ss:$8 sps:$4 sm:$0xff]   ;;  %v1215_v33 = vld [vmem:[%s1383_s15 + $0xf4] ss:$8 sps:$4 sm:$0xff]   ;;  %v1238_v34 = vld [vmem:[%s1383_s15 + $0x120] ss:$8 sps:$4 sm:$0xff]  }
  0x2e   : > { %747 = vmatpush1.bf16.msra.mxu0 %v1193_v11  ;;  %v1242_v35 = vld [vmem:[%s1383_s15 + $0x114] ss:$8 sps:$4 sm:$0xff]   ;;  %v1217_v36 = vld [vmem:[%s1383_s15 + $0xf0] ss:$8 sps:$4 sm:$0xff]   ;;  %v1221_v37 = vld [vmem:[%s1383_s15 + $0xe4] ss:$8 sps:$4 sm:$0xff]  }
  0x2f   : > { %748 = vmatprep.subr.bf16.mxu0 %v1194_v12  ;;  %v1244_v38 = vld [vmem:[%s1383_s15 + $0x110] ss:$8 sps:$4 sm:$0xff]   ;;  %v1248_v39 = vld [vmem:[%s1383_s15 + $0x104] ss:$8 sps:$4 sm:$0xff]   ;;  %v1223_v41 = vld [vmem:[%s1383_s15 + $0xe0] ss:$8 sps:$4 sm:$0xff]  }
  0x30   : > { %790 = vmatpush1.bf16.msra.mxu1 %v1220_v22  ;;  %v1260_v40 = vld [vmem:[%s1385_s16 + $0x4] ss:$12 sps:$4 sm:$0xff]   ;;  %v1254_v46 = vld [vmem:[%s1385_s16 + $0x8] ss:$12 sps:$4 sm:$0xff]   ;;  %v1258_v56 = vld [vmem:[%s1385_s16] ss:$12 sps:$4 sm:$0xff]  }
  0x31   : > { %791 = vmatprep.subr.bf16.mxu1 %v1224_v23  ;;  %v1227_v42 = vld [vmem:[%s1383_s15 + $0xd4] ss:$8 sps:$4 sm:$0xff]   ;;  %774 = vmatprep.mubr.bf16.mxu0 %v1260_v40  ;;  %v1250_v43 = vld [vmem:[%s1383_s15 + $0x100] ss:$8 sps:$4 sm:$0xff]   ;;  %v1229_v44 = vld [vmem:[%s1383_s15 + $0xd0] ss:$8 sps:$4 sm:$0xff]  }
  0x32   : > { %749 = vmatpush1.bf16.msra.mxu0 %v1196_v15  ;;  %v1233_v45 = vld [vmem:[%s1383_s15 + $0xc4] ss:$8 sps:$4 sm:$0xff]   ;;  %v1235_v47 = vld [vmem:[%s1383_s15 + $0xc0] ss:$8 sps:$4 sm:$0xff]   ;;  %v1239_v48 = vld [vmem:[%s1383_s15 + $0xb4] ss:$8 sps:$4 sm:$0xff]  }
  0x33   : > { %750 = vmatprep.subr.bf16.mxu0 %v1197_v16  ;;  %v1241_v49 = vld [vmem:[%s1383_s15 + $0xb0] ss:$8 sps:$4 sm:$0xff]   ;;  %v1245_v50 = vld [vmem:[%s1383_s15 + $0xa4] ss:$8 sps:$4 sm:$0xff]   ;;  %v1247_v51 = vld [vmem:[%s1383_s15 + $0xa0] ss:$8 sps:$4 sm:$0xff]  }
  0x34   : > { %792 = vmatpush1.bf16.msra.mxu1 %v1226_v26  ;;  %v1251_v52 = vld [vmem:[%s1383_s15 + $0x94] ss:$8 sps:$4 sm:$0xff]   ;;  %v1253_v53 = vld [vmem:[%s1383_s15 + $0x90] ss:$8 sps:$4 sm:$0xff]   ;;  %v1255_v54 = vld [vmem:[%s1383_s15 + $0x84] ss:$8 sps:$4 sm:$0xff]  }
  0x35   : > { %793 = vmatprep.subr.bf16.mxu1 %v1230_v27  ;;  %v1257_v55 = vld [vmem:[%s1383_s15 + $0x80] ss:$8 sps:$4 sm:$0xff]   ;;  %v430_v59 = vld [vmem:[#allocation2 + $0x10] sm:$0xff]  ;;  %v432_v3 = vld [vmem:[#allocation2 + $0x18] sm:$0xff] }
  0x36   : > { %751 = vmatpush1.bf16.msra.mxu0 %v1199_v19  ;;  %v431_v63 = vld [vmem:[#allocation2] sm:$0xff]  ;;  %v433_v8 = vld [vmem:[#allocation2 + $0x8] sm:$0xff] }
  0x37   : > { %752 = vmatprep.subr.bf16.mxu0 %v1200_v21 }
  0x38   : > { %794 = vmatpush1.bf16.msra.mxu1 %v1232_v30 }
  0x39   : > { %795 = vmatprep.subr.bf16.mxu1 %v1236_v31 }
  0x3a   : > { %753 = vmatpush1.bf16.msra.mxu0 %v1202_v24 }
  0x3b   : > { %754 = vmatprep.subr.bf16.mxu0 %v1203_v25 }
  0x3c   : > { %796 = vmatpush1.bf16.msra.mxu1 %v1238_v34 }
  0x3d   : > { %797 = vmatprep.subr.bf16.mxu1 %v1242_v35 }
  0x3e   : > { %755 = vmatpush1.bf16.msra.mxu0 %v1205_v28 }
  0x3f   : > { %756 = vmatprep.subr.bf16.mxu0 %v1209_v29 }
  0x40   : > { %798 = vmatpush1.bf16.msra.mxu1 %v1244_v38 }
  0x41   : > { %799 = vmatprep.subr.bf16.mxu1 %v1248_v39 }
  0x42   : > { %757 = vmatpush1.bf16.msra.mxu0 %v1211_v32 }
  0x43   : > { %758 = vmatprep.subr.bf16.mxu0 %v1215_v33 }
  0x44   : > { %800 = vmatpush1.bf16.msra.mxu1 %v1250_v43 }
  0x46   : > { %759 = vmatpush2.bf16.msra.mxu0 %v1217_v36 }
  0x47   : > { %760 = vmatprep.subr.bf16.mxu0 %v1221_v37  ;;  %818 = vmatmul.mubr.bf16.vlgmr.msra.gmra.mxu1 %v1254_v46 }
  0x4a   : > { %761 = vmatpush2.bf16.msra.mxu0 %v1223_v41 }
  0x4b   : > { %762 = vmatprep.subr.bf16.mxu0 %v1227_v42 }
  0x4e   : > { %763 = vmatpush2.bf16.msra.mxu0 %v1229_v44 }
  0x4f   : > { %764 = vmatprep.subr.bf16.mxu0 %v1233_v45 }
  0x52   : > { %765 = vmatpush2.bf16.msra.mxu0 %v1235_v47 }
  0x53   : > { %766 = vmatprep.subr.bf16.mxu0 %v1239_v48 }
  0x56   : > { %767 = vmatpush2.bf16.msra.mxu0 %v1241_v49 }
  0x57   : > { %768 = vmatprep.subr.bf16.mxu0 %v1245_v50 }
  0x5a   : > { %769 = vmatpush2.bf16.msra.mxu0 %v1247_v51 }
  0x5b   : > { %770 = vmatprep.subr.bf16.mxu0 %v1251_v52 }
  0x5e   : > { %771 = vmatpush2.bf16.msra.mxu0 %v1253_v53 }
  0x5f   : > { %772 = vmatprep.subr.bf16.mxu0 %v1255_v54 }
  0x62   : > { %773 = vmatpush2.bf16.msra.mxu0 %v1257_v55 }
  0x65   : > { %775 = vmatmul.mubr.bf16.vlgmr.msra.gmra.mxu0 %v1258_v56 }
 0x107   : > { %v819_v57 = vpop.f32.mrf.mxu1 }
 0x109   : > { %v821_v58 = vpop.f32.mrf.mxu1 }
 0x10b   : > { %v823_v62 = vpop.f32.mrf.mxu1 }
 0x10d   : > { %v825_v7 = vpop.f32.mrf.mxu1 }
 0x125   : > { %v776_v60 = vpop.f32.mrf.mxu0 }
 0x126   : > { %v820_v61 = vadd.f32 %v819_v57, %v776_v60 }
 0x127   : > { %v778_v0 = vpop.f32.mrf.mxu0 }
 0x128   : > { %v828_v1 = vadd.f32 %v820_v61, %v430_v59  ;;  %v822_v2 = vadd.f32 %v821_v58, %v778_v0 }
 0x129   : > { %v780_v4 = vpop.f32.mrf.mxu0 }
 0x12a   : > { %832 = vst [vmem:[#allocation2 + $0x10] sm:$0xff] %v828_v1  ;;  %v829_v5 = vadd.f32 %v822_v2, %v431_v63  ;;  %v824_v6 = vadd.f32 %v823_v62, %v780_v4 }
 0x12b   : > { %v782_v9 = vpop.f32.mrf.mxu0 }
 0x12c   : > { %833 = vst [vmem:[#allocation2] sm:$0xff] %v829_v5  ;;  %v830_v10 = vadd.f32 %v824_v6, %v432_v3  ;;  %v826_v11 = vadd.f32 %v825_v7, %v782_v9  ;;  %839 = sbr.rel (%p1130_p11) target bundleno = 324 (0x144), region = 74 }
 0x12e   : > { %834 = vst [vmem:[#allocation2 + $0x18] sm:$0xff] %v830_v10  ;;  %v831_v12 = vadd.f32 %v826_v11, %v433_v8 }
 0x130   : > { %835 = vst [vmem:[#allocation2 + $0x8] sm:$0xff] %v831_v12 }
 0x131   : > { %v846_v13 = vlaneseq  ;;  %v844_v15 = vld [vmem:[%s1475_s2] sm:$0x3]  ;;  %v840_v17 = vld [vmem:[#allocation2 + $0x10] sm:$0xff]  ;;  %v877_v21 = vld [vmem:[%s1477_s4 + $0x8] sm:$0xff] }
 0x132   : > { %v860_v16 = vld [vmem:[%s1476_s3] sm:$0x3]  ;;  %v880_v31 = vunpack.c.l.bf16 %v877_v21  ;;  %v881_v32 = vunpack.c.h.bf16 %v877_v21 }
 0x133   : > { %v847_v14 = vshrl.u32 %v846_v13, 7  ;;  %v876_v20 = vld [vmem:[%s1477_s4] sm:$0xff] }
 0x134   : > { %v841_v22 = vld [vmem:[#allocation2] sm:$0xff]  ;;  %v878_v29 = vunpack.c.l.bf16 %v876_v20  ;;  %v879_v30 = vunpack.c.h.bf16 %v876_v20 }
 0x135   : > { %v848_v18 = vsub.s32 0, %v847_v14  ;;  %v852_v19 = vsub.s32 1, %v847_v14  ;;  %v842_v23 = vld [vmem:[#allocation2 + $0x18] sm:$0xff] }
 0x137   : > { %v843_v24 = vld [vmem:[#allocation2 + $0x8] sm:$0xff]  ;;  %v849_v25 = vrot.slane %v844_v15, %v848_v18  ;;  %v853_v26 = vrot.slane %v844_v15, %v852_v19  ;;  %v865_v27 = vrot.slane %v860_v16, %v848_v18  ;;  %v869_v28 = vrot.slane %v860_v16, %v852_v19 }
 0x139   : > { %v856_v33 = vmul.f32 %v849_v25, %v840_v17  ;;  %v857_v34 = vmul.f32 %v853_v26, %v841_v22  ;;  %v858_v35 = vmul.f32 %v849_v25, %v842_v23  ;;  %v859_v36 = vmul.f32 %v853_v26, %v843_v24 }
 0x13b   : > { %v872_v37 = vadd.f32 %v865_v27, %v856_v33  ;;  %v873_v38 = vadd.f32 %v869_v28, %v857_v34  ;;  %v874_v39 = vadd.f32 %v865_v27, %v858_v35  ;;  %v875_v40 = vadd.f32 %v869_v28, %v859_v36 }
 0x13d   : > { %v882_v41 = vadd.f32 %v878_v29, %v872_v37  ;;  %v883_v42 = vadd.f32 %v879_v30, %v873_v38  ;;  %v884_v43 = vadd.f32 %v880_v31, %v874_v39  ;;  %v885_v44 = vadd.f32 %v881_v32, %v875_v40 }
 0x13f   : > { %v886_v45 = vmax.f32 %v882_v41, 0.0  ;;  %v887_v46 = vmax.f32 %v883_v42, 0.0  ;;  %v888_v47 = vmax.f32 %v884_v43, 0.0  ;;  %v889_v48 = vmax.f32 %v885_v44, 0.0 }
 0x141   : > { %v1139_v49 = vpack.c.bf16 %v887_v46, %v886_v45  ;;  %v1140_v50 = vpack.c.bf16 %v889_v48, %v888_v47 }
 0x143   : > { %902 = vst [vmem:[%s1478_s5] sm:$0xff] %v1139_v49  ;;  %903 = vst [vmem:[%s1478_s5 + $0x8] sm:$0xff] %v1140_v50 }
 0x144 PF: > { %s15_s22 = sadd.s32 1, %s1299_s22   ;;  %s1479_s18 = smov %s1287_s19 }
 0x145   : > { %p12_p12 = scmp.ge.s32.totalorder %s15_s22, 8   ;;  %s1480_s19 = smov %s1368_s26 }
 0x146   : > { %s1481_s20 = smov %s1295_s21  ;;  %s1482_s21 = smov %s1484_s23 }
 0x147   :  { %14 = sbr.rel (!%p12_p12) target bundleno = 3 (0x3), region = 127 }

// kernel: violence_classifier_forward.36
= control target key start
LH: loop header
LB: loop body
LE: loop exit
PB: predicated region body
PF: predicated region fallthrough
CT: control target
= control target key end

     0   :  { %s1228_s15 = smov 0   ;;  %s1230_s16 = smov 0   ;;  %s1362_s0 = inlined_call_operand.vmem [shape: bf16[16,2304], index: 0, kind: input, shape index: {}]   ;;  %s1363_s1 = inlined_call_operand.vmem [shape: bf16[2304,256], index: 1, kind: input, shape index: {}]   ;;  %s1364_s2 = inlined_call_operand.vmem [shape: f32[1,256], index: 2, kind: input, shape index: {}]   ;;  %s1365_s3 = inlined_call_operand.vmem [shape: f32[1,256], index: 3, kind: input, shape index: {}]   ;;  %s1366_s4 = inlined_call_operand.vmem [shape: bf16[16,256], index: 4, kind: output, shape index: {}]  }
   0x1   :  { %s1232_s17 = smov 0   ;;  %s1234_s18 = smov 0  }
   0x2   :  { %s1236_s19 = smov 0  }
   0x3 LB: > { %s26_s20 = sadd.s32 1, %s1195_s18  ;;  %p49_p1 = scmp.ne.s32.totalorder %s1187_s16, %s1183_s15  ;;  %s1199_s19 = sphi %s1236_s19, %s14_s19   ;;  %s1195_s18 = sphi %s1234_s18, %s1370_s18   ;;  %s1191_s17 = sphi %s1232_s17, %s1369_s17   ;;  %s1187_s16 = sphi %s1230_s16, %s1368_s16   ;;  %s1183_s15 = sphi %s1228_s15, %s1367_s15  }
   0x4   : > { %p27_p0 = scmp.ge.s32.totalorder %s26_s20, 6  ;;  %p50_p2 = scmp.eq.s32.totalorder %s1199_s19, 0 }
   0x5   : > { %s42_s22 = sadd.s32 1, %s1187_s16  ;;  %p969_p5 = scmp.ge.s32.totalorder %s1199_s19, 6 }
   0x6   : > { %s1372_s20 = smov (%p27_p0, %s26_s20), 0  ;;  %p51_p3 = por %p50_p2, %p49_p1 }
   0x7   : > { %s38_s21 = ssub.s32 %s1195_s18, %s1372_s20  ;;  %199 = sbr.rel (%p969_p5) target bundleno = 19 (0x13), region = 24 }
   0x8   : > { %p40_p4 = scmp.eq.s32.totalorder %s38_s21, 0 }
   0xa   : > { %s1263_s23 = scalar_select %p40_p4, %s1187_s16, %s42_s22  }
   0xc   : > { %202 = sbr.rel (!%p51_p3) target bundleno = 19 (0x13), region = 28  ;;  %s204_s24 = sand.u32 (%p51_p3), 1, %s1187_s16  }
   0xd   : > { %s1037_s25 = smul.u32 (%p51_p3), 12, %s1195_s18 }
   0xe   : > { %s1041_s26 = smul.u32 (%p51_p3), 24, %s204_s24 }
   0xf   : > { %s212_s29 = scalar_lea.vmem (%p51_p3), %s1362_s0, %s1037_s25 }
  0x10   : > { %v227_v0 = vld [vmem:[%s212_s29] sm:$0xff] (%p51_p3)  ;;  %v229_v1 = vld [vmem:[%s212_s29 + $0x48] sm:$0xff] (%p51_p3)  ;;  %s206_s30 = scalar_lea.vmem (%p51_p3), [#allocation3], %s1041_s26  ;;  %v973_v3 = vld [vmem:[%s212_s29 + $0x50] sm:$0xf] (%p51_p3) }
  0x11   : > { %v971_v2 = vld [vmem:[%s212_s29 + $0x8] sm:$0xf]  ;;  %228 = vst [vmem:[%s206_s30] sm:$0xff] %v227_v0  ;;  %230 = vst [vmem:[%s206_s30 + $0xc] sm:$0xff] %v229_v1 }
  0x12   : > { %972 = vst [vmem:[%s206_s30 + $0x8] sm:$0xf] %v971_v2  ;;  %974 = vst [vmem:[%s206_s30 + $0x14] sm:$0xf] %v973_v3 }
  0x13 PF: > { %p975_p6 = scmp.ge.s32.totalorder %s1199_s19, 1  ;;  %p262_p7 = scmp.lt.s32.totalorder %s1199_s19, 7 }
  0x15   : > { %p263_p8 = pnand %p975_p6, %p262_p7 }
  0x16   : > { %s269_s5 = sand.u32 (!%p263_p8), 1, %s1183_s15   ;;  %s319_s6 = smul.u32 (!%p263_p8), 48, %s1191_s17 }
  0x17   : > { %266 = sbr.rel (%p263_p8) target bundleno = 322 (0x142), region = 58  ;;  %p978_p10 = scmp.ne.s32.totalorder (!%p263_p8), %s1191_s17, 0 }
  0x18   : > { %s1042_s7 = smul.u32 (!%p263_p8), 24, %s269_s5  ;;  %p321_p9 = scmp.lt.s32.totalorder (!%p263_p8), %s319_s6, 287 }
  0x1a   : > { %s1280_s12 = scalar_lea.vmem (!%p263_p8), [#allocation3], %s1042_s7 }
  0x1c   : > { %s1374_s6 = smov (!%p321_p9, %s319_s6), 287  ;;  %357 = sbr.rel (%p978_p10) target bundleno = 36 (0x24), region = 66 }
  0x1d   : > { %s1038_s8 = sshll.u32 %s1374_s6, 3 }
  0x1e   : > { %s1278_s11 = scalar_lea.vmem %s1363_s1, %s1038_s8 }
  0x21   : > { %v1201_v4 = vmov 0.0  }
  0x22   : > { %358 = vst [vmem:[#allocation2 + $0x10] sm:$0xff] %v1201_v4  ;;  %359 = vst [vmem:[#allocation2] sm:$0xff] %v1201_v4 }
  0x23   : > { %360 = vst [vmem:[#allocation2 + $0x18] sm:$0xff] %v1201_v4  ;;  %361 = vst [vmem:[#allocation2 + $0x8] sm:$0xff] %v1201_v4 }
  0x24 PF: > { %v1085_v5 = vld [vmem:[%s1278_s11 + $0x74] ss:$8 sps:$4 sm:$0xff]   ;;  %v1087_v6 = vld [vmem:[%s1278_s11 + $0x70] ss:$8 sps:$4 sm:$0xff]   ;;  %v1202_v7 = vmov 0   ;;  %p1030_p11 = scmp.ne.s32.totalorder %s1191_s17, 5 }
  0x25   : > { %749 = vmatprep.mubr.bf16.mxu1 %v1202_v7  ;;  %674 = vmatprep.subr.bf16.mxu0 %v1085_v5  ;;  %v1088_v8 = vld [vmem:[%s1278_s11 + $0x64] ss:$8 sps:$4 sm:$0xff]   ;;  %v1090_v9 = vld [vmem:[%s1278_s11 + $0x60] ss:$8 sps:$4 sm:$0xff]   ;;  %v1091_v10 = vld [vmem:[%s1278_s11 + $0x54] ss:$8 sps:$4 sm:$0xff]  }
  0x26   : > { %675 = vmatpush1.bf16.msra.mxu0 %v1087_v6  ;;  %v1093_v11 = vld [vmem:[%s1278_s11 + $0x50] ss:$8 sps:$4 sm:$0xff]   ;;  %v1094_v12 = vld [vmem:[%s1278_s11 + $0x44] ss:$8 sps:$4 sm:$0xff]   ;;  %v1106_v13 = vld [vmem:[%s1278_s11 + $0x174] ss:$8 sps:$4 sm:$0xff]  }
  0x27   : > { %676 = vmatprep.subr.bf16.mxu0 %v1088_v8  ;;  %v1108_v14 = vld [vmem:[%s1278_s11 + $0x170] ss:$8 sps:$4 sm:$0xff]   ;;  %v1096_v15 = vld [vmem:[%s1278_s11 + $0x40] ss:$8 sps:$4 sm:$0xff]   ;;  %v1097_v16 = vld [vmem:[%s1278_s11 + $0x34] ss:$8 sps:$4 sm:$0xff]   ;;  %717 = vmatprep.subr.bf16.mxu1 %v1106_v13 }
  0x28   : > { %v1112_v17 = vld [vmem:[%s1278_s11 + $0x164] ss:$8 sps:$4 sm:$0xff]   ;;  %718 = vmatpush1.bf16.msra.mxu1 %v1108_v14  ;;  %v1114_v18 = vld [vmem:[%s1278_s11 + $0x160] ss:$8 sps:$4 sm:$0xff]   ;;  %v1099_v19 = vld [vmem:[%s1278_s11 + $0x30] ss:$8 sps:$4 sm:$0xff]  }
  0x29   : > { %719 = vmatprep.subr.bf16.mxu1 %v1112_v17  ;;  %v1118_v20 = vld [vmem:[%s1278_s11 + $0x154] ss:$8 sps:$4 sm:$0xff]   ;;  %v1100_v21 = vld [vmem:[%s1278_s11 + $0x24] ss:$8 sps:$4 sm:$0xff]   ;;  %v1120_v22 = vld [vmem:[%s1278_s11 + $0x150] ss:$8 sps:$4 sm:$0xff]  }
  0x2a   : > { %677 = vmatpush1.bf16.msra.mxu0 %v1090_v9  ;;  %v1124_v23 = vld [vmem:[%s1278_s11 + $0x144] ss:$8 sps:$4 sm:$0xff]   ;;  %v1102_v24 = vld [vmem:[%s1278_s11 + $0x20] ss:$8 sps:$4 sm:$0xff]   ;;  %v1103_v25 = vld [vmem:[%s1278_s11 + $0x14] ss:$8 sps:$4 sm:$0xff]  }
  0x2b   : > { %678 = vmatprep.subr.bf16.mxu0 %v1091_v10  ;;  %v1126_v26 = vld [vmem:[%s1278_s11 + $0x140] ss:$8 sps:$4 sm:$0xff]   ;;  %v1130_v27 = vld [vmem:[%s1278_s11 + $0x134] ss:$8 sps:$4 sm:$0xff]   ;;  %v1105_v28 = vld [vmem:[%s1278_s11 + $0x10] ss:$8 sps:$4 sm:$0xff]  }
  0x2c   : > { %720 = vmatpush1.bf16.msra.mxu1 %v1114_v18  ;;  %v1109_v29 = vld [vmem:[%s1278_s11 + $0x4] ss:$8 sps:$4 sm:$0xff]   ;;  %v1132_v30 = vld [vmem:[%s1278_s11 + $0x130] ss:$8 sps:$4 sm:$0xff]   ;;  %v1111_v32 = vld [vmem:[%s1278_s11] ss:$8 sps:$4 sm:$0xff]  }
  0x2d   : > { %721 = vmatprep.subr.bf16.mxu1 %v1118_v20  ;;  %v1136_v31 = vld [vmem:[%s1278_s11 + $0x124] ss:$8 sps:$4 sm:$0xff]   ;;  %v1115_v33 = vld [vmem:[%s1278_s11 + $0xf4] ss:$8 sps:$4 sm:$0xff]   ;;  %v1138_v34 = vld [vmem:[%s1278_s11 + $0x120] ss:$8 sps:$4 sm:$0xff]  }
  0x2e   : > { %679 = vmatpush1.bf16.msra.mxu0 %v1093_v11  ;;  %v1142_v35 = vld [vmem:[%s1278_s11 + $0x114] ss:$8 sps:$4 sm:$0xff]   ;;  %v1117_v36 = vld [vmem:[%s1278_s11 + $0xf0] ss:$8 sps:$4 sm:$0xff]   ;;  %v1121_v37 = vld [vmem:[%s1278_s11 + $0xe4] ss:$8 sps:$4 sm:$0xff]  }
  0x2f   : > { %680 = vmatprep.subr.bf16.mxu0 %v1094_v12  ;;  %v1144_v38 = vld [vmem:[%s1278_s11 + $0x110] ss:$8 sps:$4 sm:$0xff]   ;;  %v1148_v39 = vld [vmem:[%s1278_s11 + $0x104] ss:$8 sps:$4 sm:$0xff]   ;;  %v1123_v41 = vld [vmem:[%s1278_s11 + $0xe0] ss:$8 sps:$4 sm:$0xff]  }
  0x30   : > { %722 = vmatpush1.bf16.msra.mxu1 %v1120_v22  ;;  %v1160_v40 = vld [vmem:[%s1280_s12 + $0x4] ss:$12 sps:$4 sm:$0xff]   ;;  %v1154_v46 = vld [vmem:[%s1280_s12 + $0x8] ss:$12 sps:$4 sm:$0xff]   ;;  %v1158_v56 = vld [vmem:[%s1280_s12] ss:$12 sps:$4 sm:$0xff]  }
  0x31   : > { %723 = vmatprep.subr.bf16.mxu1 %v1124_v23  ;;  %v1127_v42 = vld [vmem:[%s1278_s11 + $0xd4] ss:$8 sps:$4 sm:$0xff]   ;;  %706 = vmatprep.mubr.bf16.mxu0 %v1160_v40  ;;  %v1150_v43 = vld [vmem:[%s1278_s11 + $0x100] ss:$8 sps:$4 sm:$0xff]   ;;  %v1129_v44 = vld [vmem:[%s1278_s11 + $0xd0] ss:$8 sps:$4 sm:$0xff]  }
  0x32   : > { %681 = vmatpush1.bf16.msra.mxu0 %v1096_v15  ;;  %v1133_v45 = vld [vmem:[%s1278_s11 + $0xc4] ss:$8 sps:$4 sm:$0xff]   ;;  %v1135_v47 = vld [vmem:[%s1278_s11 + $0xc0] ss:$8 sps:$4 sm:$0xff]   ;;  %v1139_v48 = vld [vmem:[%s1278_s11 + $0xb4] ss:$8 sps:$4 sm:$0xff]  }
  0x33   : > { %682 = vmatprep.subr.bf16.mxu0 %v1097_v16  ;;  %v1141_v49 = vld [vmem:[%s1278_s11 + $0xb0] ss:$8 sps:$4 sm:$0xff]   ;;  %v1145_v50 = vld [vmem:[%s1278_s11 + $0xa4] ss:$8 sps:$4 sm:$0xff]   ;;  %v1147_v51 = vld [vmem:[%s1278_s11 + $0xa0] ss:$8 sps:$4 sm:$0xff]  }
  0x34   : > { %724 = vmatpush1.bf16.msra.mxu1 %v1126_v26  ;;  %v1151_v52 = vld [vmem:[%s1278_s11 + $0x94] ss:$8 sps:$4 sm:$0xff]   ;;  %v1153_v53 = vld [vmem:[%s1278_s11 + $0x90] ss:$8 sps:$4 sm:$0xff]   ;;  %v1155_v54 = vld [vmem:[%s1278_s11 + $0x84] ss:$8 sps:$4 sm:$0xff]  }
  0x35   : > { %725 = vmatprep.subr.bf16.mxu1 %v1130_v27  ;;  %v1157_v55 = vld [vmem:[%s1278_s11 + $0x80] ss:$8 sps:$4 sm:$0xff]   ;;  %v362_v59 = vld [vmem:[#allocation2 + $0x10] sm:$0xff]  ;;  %v364_v3 = vld [vmem:[#allocation2 + $0x18] sm:$0xff] }
  0x36   : > { %683 = vmatpush1.bf16.msra.mxu0 %v1099_v19  ;;  %v363_v63 = vld [vmem:[#allocation2] sm:$0xff]  ;;  %v365_v8 = vld [vmem:[#allocation2 + $0x8] sm:$0xff] }
  0x37   : > { %684 = vmatprep.subr.bf16.mxu0 %v1100_v21 }
  0x38   : > { %726 = vmatpush1.bf16.msra.mxu1 %v1132_v30 }
  0x39   : > { %727 = vmatprep.subr.bf16.mxu1 %v1136_v31 }
  0x3a   : > { %685 = vmatpush1.bf16.msra.mxu0 %v1102_v24 }
  0x3b   : > { %686 = vmatprep.subr.bf16.mxu0 %v1103_v25 }
  0x3c   : > { %728 = vmatpush1.bf16.msra.mxu1 %v1138_v34 }
  0x3d   : > { %729 = vmatprep.subr.bf16.mxu1 %v1142_v35 }
  0x3e   : > { %687 = vmatpush1.bf16.msra.mxu0 %v1105_v28 }
  0x3f   : > { %688 = vmatprep.subr.bf16.mxu0 %v1109_v29 }
  0x40   : > { %730 = vmatpush1.bf16.msra.mxu1 %v1144_v38 }
  0x41   : > { %731 = vmatprep.subr.bf16.mxu1 %v1148_v39 }
  0x42   : > { %689 = vmatpush1.bf16.msra.mxu0 %v1111_v32 }
  0x43   : > { %690 = vmatprep.subr.bf16.mxu0 %v1115_v33 }
  0x44   : > { %732 = vmatpush1.bf16.msra.mxu1 %v1150_v43 }
  0x46   : > { %691 = vmatpush2.bf16.msra.mxu0 %v1117_v36 }
  0x47   : > { %692 = vmatprep.subr.bf16.mxu0 %v1121_v37  ;;  %750 = vmatmul.mubr.bf16.vlgmr.msra.gmra.mxu1 %v1154_v46 }
  0x4a   : > { %693 = vmatpush2.bf16.msra.mxu0 %v1123_v41 }
  0x4b   : > { %694 = vmatprep.subr.bf16.mxu0 %v1127_v42 }
  0x4e   : > { %695 = vmatpush2.bf16.msra.mxu0 %v1129_v44 }
  0x4f   : > { %696 = vmatprep.subr.bf16.mxu0 %v1133_v45 }
  0x52   : > { %697 = vmatpush2.bf16.msra.mxu0 %v1135_v47 }
  0x53   : > { %698 = vmatprep.subr.bf16.mxu0 %v1139_v48 }
  0x56   : > { %699 = vmatpush2.bf16.msra.mxu0 %v1141_v49 }
  0x57   : > { %700 = vmatprep.subr.bf16.mxu0 %v1145_v50 }
  0x5a   : > { %701 = vmatpush2.bf16.msra.mxu0 %v1147_v51 }
  0x5b   : > { %702 = vmatprep.subr.bf16.mxu0 %v1151_v52 }
  0x5e   : > { %703 = vmatpush2.bf16.msra.mxu0 %v1153_v53 }
  0x5f   : > { %704 = vmatprep.subr.bf16.mxu0 %v1155_v54 }
  0x62   : > { %705 = vmatpush2.bf16.msra.mxu0 %v1157_v55 }
  0x65   : > { %707 = vmatmul.mubr.bf16.vlgmr.msra.gmra.mxu0 %v1158_v56 }
 0x107   : > { %v751_v57 = vpop.f32.mrf.mxu1 }
 0x109   : > { %v753_v58 = vpop.f32.mrf.mxu1 }
 0x10b   : > { %v755_v62 = vpop.f32.mrf.mxu1 }
 0x10d   : > { %v757_v7 = vpop.f32.mrf.mxu1 }
 0x125   : > { %v708_v60 = vpop.f32.mrf.mxu0 }
 0x126   : > { %v752_v61 = vadd.f32 %v751_v57, %v708_v60 }
 0x127   : > { %v710_v0 = vpop.f32.mrf.mxu0 }
 0x128   : > { %v760_v1 = vadd.f32 %v752_v61, %v362_v59  ;;  %v754_v2 = vadd.f32 %v753_v58, %v710_v0 }
 0x129   : > { %v712_v4 = vpop.f32.mrf.mxu0 }
 0x12a   : > { %764 = vst [vmem:[#allocation2 + $0x10] sm:$0xff] %v760_v1  ;;  %v761_v5 = vadd.f32 %v754_v2, %v363_v63  ;;  %v756_v6 = vadd.f32 %v755_v62, %v712_v4 }
 0x12b   : > { %v714_v9 = vpop.f32.mrf.mxu0 }
 0x12c   : > { %765 = vst [vmem:[#allocation2] sm:$0xff] %v761_v5  ;;  %v762_v10 = vadd.f32 %v756_v6, %v364_v3  ;;  %v758_v11 = vadd.f32 %v757_v7, %v714_v9  ;;  %771 = sbr.rel (%p1030_p11) target bundleno = 322 (0x142), region = 70 }
 0x12e   : > { %766 = vst [vmem:[#allocation2 + $0x18] sm:$0xff] %v762_v10  ;;  %v763_v12 = vadd.f32 %v758_v11, %v365_v8 }
 0x130   : > { %767 = vst [vmem:[#allocation2 + $0x8] sm:$0xff] %v763_v12 }
 0x131   : > { %v778_v13 = vlaneseq  ;;  %v776_v15 = vld [vmem:[%s1364_s2] sm:$0x3]  ;;  %v772_v17 = vld [vmem:[#allocation2 + $0x10] sm:$0xff] }
 0x132   : > { %v792_v16 = vld [vmem:[%s1365_s3] sm:$0x3] }
 0x133   : > { %v779_v14 = vshrl.u32 %v778_v13, 7  ;;  %v773_v20 = vld [vmem:[#allocation2] sm:$0xff] }
 0x135   : > { %v780_v18 = vsub.s32 0, %v779_v14  ;;  %v784_v19 = vsub.s32 1, %v779_v14  ;;  %v774_v21 = vld [vmem:[#allocation2 + $0x18] sm:$0xff] }
 0x137   : > { %v775_v22 = vld [vmem:[#allocation2 + $0x8] sm:$0xff]  ;;  %v781_v23 = vrot.slane %v776_v15, %v780_v18  ;;  %v785_v24 = vrot.slane %v776_v15, %v784_v19  ;;  %v797_v25 = vrot.slane %v792_v16, %v780_v18  ;;  %v801_v26 = vrot.slane %v792_v16, %v784_v19 }
 0x139   : > { %v788_v27 = vmul.f32 %v781_v23, %v772_v17  ;;  %v789_v28 = vmul.f32 %v785_v24, %v773_v20  ;;  %v790_v29 = vmul.f32 %v781_v23, %v774_v21  ;;  %v791_v30 = vmul.f32 %v785_v24, %v775_v22 }
 0x13b   : > { %v804_v31 = vadd.f32 %v797_v25, %v788_v27  ;;  %v805_v32 = vadd.f32 %v801_v26, %v789_v28  ;;  %v806_v33 = vadd.f32 %v797_v25, %v790_v29  ;;  %v807_v34 = vadd.f32 %v801_v26, %v791_v30 }
 0x13d   : > { %v808_v35 = vmax.f32 %v804_v31, 0.0  ;;  %v809_v36 = vmax.f32 %v805_v32, 0.0  ;;  %v810_v37 = vmax.f32 %v806_v33, 0.0  ;;  %v811_v38 = vmax.f32 %v807_v34, 0.0 }
 0x13f   : > { %v1039_v39 = vpack.c.bf16 %v809_v36, %v808_v35  ;;  %v1040_v40 = vpack.c.bf16 %v811_v38, %v810_v37 }
 0x141   : > { %824 = vst [vmem:[%s1366_s4] sm:$0xff] %v1039_v39  ;;  %825 = vst [vmem:[%s1366_s4 + $0x8] sm:$0xff] %v1040_v40 }
 0x142 PF: > { %s14_s19 = sadd.s32 1, %s1199_s19   ;;  %s1367_s15 = smov %s1187_s16 }
 0x143   : > { %p11_p12 = scmp.ge.s32.totalorder %s14_s19, 8   ;;  %s1368_s16 = smov %s1263_s23 }
 0x144   : > { %s1369_s17 = smov %s1195_s18  ;;  %s1370_s18 = smov %s1372_s20 }
 0x145   :  { %13 = sbr.rel (!%p11_p12) target bundleno = 3 (0x3), region = 120 }

// kernel: violence_classifier_forward.39
= control target key start
LH: loop header
LB: loop body
LE: loop exit
PB: predicated region body
PF: predicated region fallthrough
CT: control target
= control target key end

     0   :  { %s1898_s0 = inlined_call_operand.vmem [shape: bf16[16,2304], index: 0, kind: input, shape index: {}]   ;;  %s1899_s1 = inlined_call_operand.vmem [shape: bf16[2304,512], index: 1, kind: input, shape index: {}]   ;;  %s1900_s2 = inlined_call_operand.vmem [shape: f32[1,512], index: 2, kind: input, shape index: {}]   ;;  %s1901_s3 = inlined_call_operand.vmem [shape: f32[1,512], index: 3, kind: input, shape index: {}]   ;;  %s1902_s4 = inlined_call_operand.vmem [shape: bf16[16,512], index: 4, kind: output, shape index: {}]  }
   0x1   :  { %1905 = sst [smem:[#allocation8_spill]] %s1898_s0 }
   0x2   :  { %1906 = sst [smem:[#allocation9_spill]] %s1899_s1 }
   0x3   :  { %s1556_s15 = smov 0   ;;  %s1558_s16 = smov 0  }
   0x4   :  { %s1560_s17 = smov 0   ;;  %s1562_s18 = smov 0  }
   0x5   :  { %s1564_s19 = smov 0   ;;  %s1566_s20 = smov 0  }
   0x6   :  { %s1568_s21 = smov 0   ;;  %s1570_s22 = smov 0  }
   0x7   :  { %s1572_s23 = smov 0   ;;  %s1574_s24 = smov 0  }
   0x8   :  { %s1576_s25 = smov 0  }
   0x9 LB: > { %s1190_s26 = sadd.s32 4294967295, %s1527_s25   ;;  %s26_s27 = sadd.s32 1, %s1519_s23  ;;  %s1527_s25 = sphi %s1576_s25, %s14_s25   ;;  %s1523_s24 = sphi %s1574_s24, %s1925_s24   ;;  %s1519_s23 = sphi %s1572_s23, %s1924_s23   ;;  %s1515_s22 = sphi %s1570_s22, %s1923_s22   ;;  %s1511_s21 = sphi %s1568_s21, %s1922_s21   ;;  %s1507_s20 = sphi %s1566_s20, %s1921_s20   ;;  %s1503_s19 = sphi %s1564_s19, %s1920_s19   ;;  %s1499_s18 = sphi %s1562_s18, %s1919_s18   ;;  %s1495_s17 = sphi %s1560_s17, %s1918_s17   ;;  %s1491_s16 = sphi %s1558_s16, %s1917_s16   ;;  %s1487_s15 = sphi %s1556_s15, %s1916_s15  }
   0xa   : > { %p27_p0 = scmp.ge.s32.totalorder %s26_s27, 6  ;;  %s29_s28 = sadd.s32 1, %s1523_s24 }
   0xb   : > { %s42_s29 = sadd.s32 1, %s1507_s20  ;;  %p49_p1 = scmp.ne.s32.totalorder %s1507_s20, %s1503_s19 }
   0xc   : > { %s1927_s27 = smov (%p27_p0, %s26_s27), 0  ;;  %s1929_s28 = smov (!%p27_p0, %s29_s28), %s1523_s24 }
   0xd   : > { %1907 = sst [smem:[#allocation6_spill]] %s1927_s27  ;;  %s38_s30 = ssub.s32 %s1519_s23, %s1927_s27 }
   0xe   : > { %p50_p2 = scmp.eq.s32.totalorder %s1527_s25, 0  ;;  %p31_p3 = scmp.ge.s32.totalorder %s1929_s28, 2 }
   0xf   : > { %p40_p4 = scmp.eq.s32.totalorder %s38_s30, 0  ;;  %s70_s6 = sadd.s32 1, %s1499_s18 }
  0x10   : > { %p1623_p5 = por %p50_p2, %p49_p1  ;;  %s1931_s28 = smov (%p31_p3, %s1929_s28), 0 }
  0x11   : > { %1909 = sst [smem:[#allocation7_spill]] %s1931_s28  ;;  %s66_s8 = ssub.s32 %s1523_s24, %s1931_s28 }
  0x12   : > { %s1631_s7 = scalar_select %p40_p4, %s1507_s20, %s42_s29  }
  0x13   : > { %p77_p6 = scmp.ne.s32.totalorder %s1499_s18, %s1495_s17  ;;  %s67_s9 = sor.u32 %s66_s8, %s38_s30 }
  0x14   : > { %p148_p7 = scmp.eq.s32.totalorder %s66_s8, 0  ;;  %p68_p8 = scmp.eq.s32.totalorder %s67_s9, 0 }
  0x15   : > { %p1637_p9 = por %p77_p6, %p50_p2  ;;  %s150_s11 = sadd.s32 1, %s1491_s16 }
  0x16   : > { %p160_p10 = scmp.ne.s32.totalorder %s1491_s16, %s1487_s15  ;;  %p161_p11 = scmp.eq.s32.totalorder %s1190_s26, 11 }
  0x17   : > { %s1645_s12 = scalar_select %p68_p8, %s1499_s18, %s70_s6  }
  0x18   : > { %s1648_s13 = scalar_select %p148_p7, %s1491_s16, %s150_s11  }
  0x19   : > { %p1650_p12 = por %p161_p11, %p160_p10  ;;  %p1193_p13 = scmp.ge.s32.totalorder %s1527_s25, 12 }
  0x1b   : > { %183 = sbr.rel (%p1193_p13) target bundleno = 77 (0x4d), region = 16 }
  0x20   : > { %186 = sbr.rel (!%p1623_p5) target bundleno = 43 (0x2b), region = 20  ;;  %s188_s29 = sand.u32 (%p1623_p5), 1, %s1507_s20  }
  0x21   : > { %s1266_s30 = smul.u32 (%p1623_p5), 12, %s1519_s23  ;;  %s1912_s0 = sld [smem:[#allocation8_spill]] (%p1623_p5) }
  0x22   : > { %s1271_s8 = smul.u32 (%p1623_p5), 24, %s188_s29 }
  0x24   : > { %s190_s26 = scalar_lea.vmem (%p1623_p5), [#allocation3], %s1271_s8 }
  0x27   : > { %s196_s11 = scalar_lea.vmem %s1912_s0, %s1266_s30 }
  0x28   : > { %v211_v0 = vld [vmem:[%s196_s11] sm:$0xff]  ;;  %v213_v1 = vld [vmem:[%s196_s11 + $0x48] sm:$0xff]  ;;  %v1197_v3 = vld [vmem:[%s196_s11 + $0x50] sm:$0xf] }
  0x29   : > { %v1195_v2 = vld [vmem:[%s196_s11 + $0x8] sm:$0xf]  ;;  %212 = vst [vmem:[%s190_s26] sm:$0xff] %v211_v0  ;;  %214 = vst [vmem:[%s190_s26 + $0xc] sm:$0xff] %v213_v1 }
  0x2a   : > { %1196 = vst [vmem:[%s190_s26 + $0x8] sm:$0xf] %v1195_v2  ;;  %1198 = vst [vmem:[%s190_s26 + $0x14] sm:$0xf] %v1197_v3 }
  0x2b PF: > { %232 = sbr.rel (!%p1637_p9) target bundleno = 77 (0x4d), region = 46  ;;  %s234_s5 = sand.u32 (%p1637_p9), 1, %s1499_s18  }
  0x2c   : > { %s1272_s29 = smul.u32 (%p1637_p9), 384, %s234_s5  ;;  %s1199_s6 = sshll.u32 (%p1637_p9), %s1523_s24, 1 }
  0x2d   : > { %s1267_s30 = smul.u32 (%p1637_p9), 192, %s1519_s23  ;;  %s1913_s1 = sld [smem:[#allocation9_spill]] (%p1637_p9) }
  0x2e   : > { %s1675_s10 = scalar_lea.vmem (%p1637_p9), [#allocation4], %s1272_s29 }
  0x2f   : > { %s240_s9 = sadd.s32 (%p1637_p9), %s1267_s30, %s1199_s6 }
  0x30   : > { %s1201_s0 = sshll.u32 %s240_s9, 2 }
  0x33   : > { %s1670_s27 = scalar_lea.vmem %s1913_s1, %s1201_s0 }
  0x34   : > { %v365_v4 = vld [vmem:[%s1670_s27] sm:$0xff]  ;;  %v367_v5 = vld [vmem:[%s1670_s27 + $0x10] sm:$0xff] }
  0x35   : > { %v369_v6 = vld [vmem:[%s1670_s27 + $0x20] sm:$0xff]  ;;  %366 = vst [vmem:[%s1675_s10] sm:$0xff] %v365_v4  ;;  %368 = vst [vmem:[%s1675_s10 + $0x8] sm:$0xff] %v367_v5  ;;  %v371_v7 = vld [vmem:[%s1670_s27 + $0x30] sm:$0xff] }
  0x36   : > { %370 = vst [vmem:[%s1675_s10 + $0x10] sm:$0xff] %v369_v6  ;;  %v373_v8 = vld [vmem:[%s1670_s27 + $0x40] sm:$0xff]  ;;  %v375_v9 = vld [vmem:[%s1670_s27 + $0x50] sm:$0xff]  ;;  %372 = vst [vmem:[%s1675_s10 + $0x18] sm:$0xff] %v371_v7 }
  0x37   : > { %374 = vst [vmem:[%s1675_s10 + $0x20] sm:$0xff] %v373_v8  ;;  %376 = vst [vmem:[%s1675_s10 + $0x28] sm:$0xff] %v375_v9  ;;  %v377_v10 = vld [vmem:[%s1670_s27 + $0x60] sm:$0xff]  ;;  %v379_v11 = vld [vmem:[%s1670_s27 + $0x70] sm:$0xff] }
  0x38   : > { %v381_v12 = vld [vmem:[%s1670_s27 + $0x80] sm:$0xff]  ;;  %378 = vst [vmem:[%s1675_s10 + $0x30] sm:$0xff] %v377_v10  ;;  %380 = vst [vmem:[%s1675_s10 + $0x38] sm:$0xff] %v379_v11  ;;  %v383_v13 = vld [vmem:[%s1670_s27 + $0x90] sm:$0xff] }
  0x39   : > { %382 = vst [vmem:[%s1675_s10 + $0x40] sm:$0xff] %v381_v12  ;;  %v385_v14 = vld [vmem:[%s1670_s27 + $0xa0] sm:$0xff]  ;;  %v387_v15 = vld [vmem:[%s1670_s27 + $0xb0] sm:$0xff]  ;;  %384 = vst [vmem:[%s1675_s10 + $0x48] sm:$0xff] %v383_v13 }
  0x3a   : > { %386 = vst [vmem:[%s1675_s10 + $0x50] sm:$0xff] %v385_v14  ;;  %388 = vst [vmem:[%s1675_s10 + $0x58] sm:$0xff] %v387_v15  ;;  %v389_v16 = vld [vmem:[%s1670_s27 + $0xc0] sm:$0xff]  ;;  %v391_v17 = vld [vmem:[%s1670_s27 + $0xd0] sm:$0xff] }
  0x3b   : > { %v393_v18 = vld [vmem:[%s1670_s27 + $0xe0] sm:$0xff]  ;;  %390 = vst [vmem:[%s1675_s10 + $0x60] sm:$0xff] %v389_v16  ;;  %392 = vst [vmem:[%s1675_s10 + $0x68] sm:$0xff] %v391_v17  ;;  %v395_v19 = vld [vmem:[%s1670_s27 + $0xf0] sm:$0xff] }
  0x3c   : > { %394 = vst [vmem:[%s1675_s10 + $0x70] sm:$0xff] %v393_v18  ;;  %v397_v20 = vld [vmem:[%s1670_s27 + $0x100] sm:$0xff]  ;;  %v399_v21 = vld [vmem:[%s1670_s27 + $0x110] sm:$0xff]  ;;  %396 = vst [vmem:[%s1675_s10 + $0x78] sm:$0xff] %v395_v19 }
  0x3d   : > { %398 = vst [vmem:[%s1675_s10 + $0x80] sm:$0xff] %v397_v20  ;;  %400 = vst [vmem:[%s1675_s10 + $0x88] sm:$0xff] %v399_v21  ;;  %v401_v22 = vld [vmem:[%s1670_s27 + $0x120] sm:$0xff]  ;;  %v403_v23 = vld [vmem:[%s1670_s27 + $0x130] sm:$0xff] }
  0x3e   : > { %v405_v24 = vld [vmem:[%s1670_s27 + $0x140] sm:$0xff]  ;;  %402 = vst [vmem:[%s1675_s10 + $0x90] sm:$0xff] %v401_v22  ;;  %404 = vst [vmem:[%s1675_s10 + $0x98] sm:$0xff] %v403_v23  ;;  %v407_v25 = vld [vmem:[%s1670_s27 + $0x150] sm:$0xff] }
  0x3f   : > { %406 = vst [vmem:[%s1675_s10 + $0xa0] sm:$0xff] %v405_v24  ;;  %v409_v26 = vld [vmem:[%s1670_s27 + $0x160] sm:$0xff]  ;;  %v411_v27 = vld [vmem:[%s1670_s27 + $0x170] sm:$0xff]  ;;  %408 = vst [vmem:[%s1675_s10 + $0xa8] sm:$0xff] %v407_v25 }
  0x40   : > { %410 = vst [vmem:[%s1675_s10 + $0xb0] sm:$0xff] %v409_v26  ;;  %412 = vst [vmem:[%s1675_s10 + $0xb8] sm:$0xff] %v411_v27  ;;  %v413_v28 = vld [vmem:[%s1670_s27 + $0x180] sm:$0xff]  ;;  %v415_v29 = vld [vmem:[%s1670_s27 + $0x190] sm:$0xff] }
  0x41   : > { %v417_v30 = vld [vmem:[%s1670_s27 + $0x1a0] sm:$0xff]  ;;  %414 = vst [vmem:[%s1675_s10 + $0xc0] sm:$0xff] %v413_v28  ;;  %416 = vst [vmem:[%s1675_s10 + $0xc8] sm:$0xff] %v415_v29  ;;  %v419_v31 = vld [vmem:[%s1670_s27 + $0x1b0] sm:$0xff] }
  0x42   : > { %418 = vst [vmem:[%s1675_s10 + $0xd0] sm:$0xff] %v417_v30  ;;  %v421_v32 = vld [vmem:[%s1670_s27 + $0x1c0] sm:$0xff]  ;;  %v423_v33 = vld [vmem:[%s1670_s27 + $0x1d0] sm:$0xff]  ;;  %420 = vst [vmem:[%s1675_s10 + $0xd8] sm:$0xff] %v419_v31 }
  0x43   : > { %422 = vst [vmem:[%s1675_s10 + $0xe0] sm:$0xff] %v421_v32  ;;  %424 = vst [vmem:[%s1675_s10 + $0xe8] sm:$0xff] %v423_v33  ;;  %v425_v34 = vld [vmem:[%s1670_s27 + $0x1e0] sm:$0xff]  ;;  %v427_v35 = vld [vmem:[%s1670_s27 + $0x1f0] sm:$0xff] }
  0x44   : > { %v429_v36 = vld [vmem:[%s1670_s27 + $0x200] sm:$0xff]  ;;  %426 = vst [vmem:[%s1675_s10 + $0xf0] sm:$0xff] %v425_v34  ;;  %428 = vst [vmem:[%s1675_s10 + $0xf8] sm:$0xff] %v427_v35  ;;  %v431_v37 = vld [vmem:[%s1670_s27 + $0x210] sm:$0xff] }
  0x45   : > { %430 = vst [vmem:[%s1675_s10 + $0x100] sm:$0xff] %v429_v36  ;;  %v433_v38 = vld [vmem:[%s1670_s27 + $0x220] sm:$0xff]  ;;  %v435_v39 = vld [vmem:[%s1670_s27 + $0x230] sm:$0xff]  ;;  %432 = vst [vmem:[%s1675_s10 + $0x108] sm:$0xff] %v431_v37 }
  0x46   : > { %434 = vst [vmem:[%s1675_s10 + $0x110] sm:$0xff] %v433_v38  ;;  %436 = vst [vmem:[%s1675_s10 + $0x118] sm:$0xff] %v435_v39  ;;  %v437_v40 = vld [vmem:[%s1670_s27 + $0x240] sm:$0xff]  ;;  %v439_v41 = vld [vmem:[%s1670_s27 + $0x250] sm:$0xff] }
  0x47   : > { %v441_v42 = vld [vmem:[%s1670_s27 + $0x260] sm:$0xff]  ;;  %438 = vst [vmem:[%s1675_s10 + $0x120] sm:$0xff] %v437_v40  ;;  %440 = vst [vmem:[%s1675_s10 + $0x128] sm:$0xff] %v439_v41  ;;  %v443_v43 = vld [vmem:[%s1670_s27 + $0x270] sm:$0xff] }
  0x48   : > { %442 = vst [vmem:[%s1675_s10 + $0x130] sm:$0xff] %v441_v42  ;;  %v445_v44 = vld [vmem:[%s1670_s27 + $0x280] sm:$0xff]  ;;  %v447_v45 = vld [vmem:[%s1670_s27 + $0x290] sm:$0xff]  ;;  %444 = vst [vmem:[%s1675_s10 + $0x138] sm:$0xff] %v443_v43 }
  0x49   : > { %446 = vst [vmem:[%s1675_s10 + $0x140] sm:$0xff] %v445_v44  ;;  %448 = vst [vmem:[%s1675_s10 + $0x148] sm:$0xff] %v447_v45  ;;  %v449_v46 = vld [vmem:[%s1670_s27 + $0x2a0] sm:$0xff]  ;;  %v451_v47 = vld [vmem:[%s1670_s27 + $0x2b0] sm:$0xff] }
  0x4a   : > { %v453_v48 = vld [vmem:[%s1670_s27 + $0x2c0] sm:$0xff]  ;;  %450 = vst [vmem:[%s1675_s10 + $0x150] sm:$0xff] %v449_v46  ;;  %452 = vst [vmem:[%s1675_s10 + $0x158] sm:$0xff] %v451_v47  ;;  %v455_v49 = vld [vmem:[%s1670_s27 + $0x2d0] sm:$0xff] }
  0x4b   : > { %454 = vst [vmem:[%s1675_s10 + $0x160] sm:$0xff] %v453_v48  ;;  %v457_v50 = vld [vmem:[%s1670_s27 + $0x2e0] sm:$0xff]  ;;  %v459_v51 = vld [vmem:[%s1670_s27 + $0x2f0] sm:$0xff]  ;;  %456 = vst [vmem:[%s1675_s10 + $0x168] sm:$0xff] %v455_v49 }
  0x4c   : > { %458 = vst [vmem:[%s1675_s10 + $0x170] sm:$0xff] %v457_v50  ;;  %460 = vst [vmem:[%s1675_s10 + $0x178] sm:$0xff] %v459_v51 }
  0x4d PF: > { %p1202_p0 = scmp.ge.s32.totalorder %s1527_s25, 1  ;;  %p481_p1 = scmp.lt.s32.totalorder %s1527_s25, 13 }
  0x4f   : > { %p482_p2 = pnand %p1202_p0, %p481_p1 }
  0x50   : > { %s488_s0 = sand.u32 (!%p482_p2), 1, %s1503_s19   ;;  %s495_s28 = sand.u32 (!%p482_p2), 1, %s1495_s17  }
  0x51   : > { %485 = sbr.rel (%p482_p2) target bundleno = 390 (0x186), region = 92  ;;  %s528_s26 = sand.u32 (!%p482_p2), 1, %s1487_s15  }
  0x52   : > { %s1273_s11 = smul.u32 (!%p482_p2), 24, %s488_s0  ;;  %s1203_s5 = sshll.u32 (!%p482_p2), %s528_s26, 4 }
  0x53   : > { %s1274_s27 = smul.u32 (!%p482_p2), 384, %s495_s28  ;;  %s1204_s29 = sshll.u32 (!%p482_p2), %s1515_s22, 1 }
  0x54   : > { %p536_p3 = scmp.lt.s32.totalorder (!%p482_p2), %s1204_s29, 3  ;;  %s1786_s19 = scalar_lea.vmem (!%p482_p2), [#allocation3], %s1273_s11 }
  0x55   : > { %s1788_s17 = scalar_lea.vmem (!%p482_p2), [#allocation4], %s1274_s27  ;;  %s1790_s15 = scalar_lea.vmem (!%p482_p2), [#allocation5], %s1203_s5 }
  0x56   : > { %s1933_s29 = smov (!%p536_p3, %s1204_s29), 3  ;;  %p1206_p4 = scmp.ne.s32.totalorder %s1511_s21, 0 }
  0x57   : > { %s538_s9 = scalar_lea.vmem %s1900_s2, %s1933_s29  ;;  %s543_s1 = scalar_lea.vmem %s1901_s3, %s1933_s29 }
  0x58   : > { %551 = sbr.rel (%p1206_p4) target bundleno = 96 (0x60), region = 104 }
  0x5d   : > { %v1529_v52 = vmov 0.0  }
  0x5e   : > { %552 = vst [vmem:[#allocation2 + $0x10] sm:$0xff] %v1529_v52  ;;  %553 = vst [vmem:[#allocation2] sm:$0xff] %v1529_v52 }
  0x5f   : > { %554 = vst [vmem:[#allocation2 + $0x18] sm:$0xff] %v1529_v52  ;;  %555 = vst [vmem:[#allocation2 + $0x8] sm:$0xff] %v1529_v52 }
  0x60 PF: > { %v1365_v53 = vld [vmem:[%s1788_s17 + $0x74] ss:$8 sps:$4 sm:$0xff]   ;;  %v1367_v54 = vld [vmem:[%s1788_s17 + $0x70] ss:$8 sps:$4 sm:$0xff]   ;;  %v1530_v55 = vmov 0   ;;  %p1258_p5 = scmp.ne.s32.totalorder %s1511_s21, 5 }
  0x61   : > { %943 = vmatprep.mubr.bf16.mxu1 %v1530_v55  ;;  %868 = vmatprep.subr.bf16.mxu0 %v1365_v53  ;;  %v1368_v56 = vld [vmem:[%s1788_s17 + $0x64] ss:$8 sps:$4 sm:$0xff]   ;;  %v1370_v57 = vld [vmem:[%s1788_s17 + $0x60] ss:$8 sps:$4 sm:$0xff]   ;;  %v1371_v58 = vld [vmem:[%s1788_s17 + $0x54] ss:$8 sps:$4 sm:$0xff]  }
  0x62   : > { %869 = vmatpush1.bf16.msra.mxu0 %v1367_v54  ;;  %v1373_v59 = vld [vmem:[%s1788_s17 + $0x50] ss:$8 sps:$4 sm:$0xff]   ;;  %v1374_v60 = vld [vmem:[%s1788_s17 + $0x44] ss:$8 sps:$4 sm:$0xff]   ;;  %v1386_v61 = vld [vmem:[%s1788_s17 + $0x174] ss:$8 sps:$4 sm:$0xff]  }
  0x63   : > { %870 = vmatprep.subr.bf16.mxu0 %v1368_v56  ;;  %v1388_v62 = vld [vmem:[%s1788_s17 + $0x170] ss:$8 sps:$4 sm:$0xff]   ;;  %v1376_v63 = vld [vmem:[%s1788_s17 + $0x40] ss:$8 sps:$4 sm:$0xff]   ;;  %v1377_v0 = vld [vmem:[%s1788_s17 + $0x34] ss:$8 sps:$4 sm:$0xff]   ;;  %911 = vmatprep.subr.bf16.mxu1 %v1386_v61 }
  0x64   : > { %v1392_v1 = vld [vmem:[%s1788_s17 + $0x164] ss:$8 sps:$4 sm:$0xff]   ;;  %912 = vmatpush1.bf16.msra.mxu1 %v1388_v62  ;;  %v1394_v2 = vld [vmem:[%s1788_s17 + $0x160] ss:$8 sps:$4 sm:$0xff]   ;;  %v1379_v3 = vld [vmem:[%s1788_s17 + $0x30] ss:$8 sps:$4 sm:$0xff]  }
  0x65   : > { %913 = vmatprep.subr.bf16.mxu1 %v1392_v1  ;;  %v1398_v4 = vld [vmem:[%s1788_s17 + $0x154] ss:$8 sps:$4 sm:$0xff]   ;;  %v1380_v5 = vld [vmem:[%s1788_s17 + $0x24] ss:$8 sps:$4 sm:$0xff]   ;;  %v1400_v6 = vld [vmem:[%s1788_s17 + $0x150] ss:$8 sps:$4 sm:$0xff]  }
  0x66   : > { %871 = vmatpush1.bf16.msra.mxu0 %v1370_v57  ;;  %v1404_v7 = vld [vmem:[%s1788_s17 + $0x144] ss:$8 sps:$4 sm:$0xff]   ;;  %v1382_v8 = vld [vmem:[%s1788_s17 + $0x20] ss:$8 sps:$4 sm:$0xff]   ;;  %v1383_v9 = vld [vmem:[%s1788_s17 + $0x14] ss:$8 sps:$4 sm:$0xff]  }
  0x67   : > { %872 = vmatprep.subr.bf16.mxu0 %v1371_v58  ;;  %v1406_v10 = vld [vmem:[%s1788_s17 + $0x140] ss:$8 sps:$4 sm:$0xff]   ;;  %v1410_v11 = vld [vmem:[%s1788_s17 + $0x134] ss:$8 sps:$4 sm:$0xff]   ;;  %v1385_v12 = vld [vmem:[%s1788_s17 + $0x10] ss:$8 sps:$4 sm:$0xff]  }
  0x68   : > { %914 = vmatpush1.bf16.msra.mxu1 %v1394_v2  ;;  %v1389_v13 = vld [vmem:[%s1788_s17 + $0x4] ss:$8 sps:$4 sm:$0xff]   ;;  %v1412_v14 = vld [vmem:[%s1788_s17 + $0x130] ss:$8 sps:$4 sm:$0xff]   ;;  %v1391_v16 = vld [vmem:[%s1788_s17] ss:$8 sps:$4 sm:$0xff]  }
  0x69   : > { %915 = vmatprep.subr.bf16.mxu1 %v1398_v4  ;;  %v1416_v15 = vld [vmem:[%s1788_s17 + $0x124] ss:$8 sps:$4 sm:$0xff]   ;;  %v1395_v17 = vld [vmem:[%s1788_s17 + $0xf4] ss:$8 sps:$4 sm:$0xff]   ;;  %v1418_v18 = vld [vmem:[%s1788_s17 + $0x120] ss:$8 sps:$4 sm:$0xff]  }
  0x6a   : > { %873 = vmatpush1.bf16.msra.mxu0 %v1373_v59  ;;  %v1422_v19 = vld [vmem:[%s1788_s17 + $0x114] ss:$8 sps:$4 sm:$0xff]   ;;  %v1397_v20 = vld [vmem:[%s1788_s17 + $0xf0] ss:$8 sps:$4 sm:$0xff]   ;;  %v1401_v21 = vld [vmem:[%s1788_s17 + $0xe4] ss:$8 sps:$4 sm:$0xff]  }
  0x6b   : > { %874 = vmatprep.subr.bf16.mxu0 %v1374_v60  ;;  %v1424_v22 = vld [vmem:[%s1788_s17 + $0x110] ss:$8 sps:$4 sm:$0xff]   ;;  %v1428_v23 = vld [vmem:[%s1788_s17 + $0x104] ss:$8 sps:$4 sm:$0xff]   ;;  %v1403_v25 = vld [vmem:[%s1788_s17 + $0xe0] ss:$8 sps:$4 sm:$0xff]  }
  0x6c   : > { %916 = vmatpush1.bf16.msra.mxu1 %v1400_v6  ;;  %v1440_v24 = vld [vmem:[%s1786_s19 + $0x4] ss:$12 sps:$4 sm:$0xff]   ;;  %v1434_v30 = vld [vmem:[%s1786_s19 + $0x8] ss:$12 sps:$4 sm:$0xff]   ;;  %v1438_v40 = vld [vmem:[%s1786_s19] ss:$12 sps:$4 sm:$0xff]  }
  0x6d   : > { %917 = vmatprep.subr.bf16.mxu1 %v1404_v7  ;;  %v1407_v26 = vld [vmem:[%s1788_s17 + $0xd4] ss:$8 sps:$4 sm:$0xff]   ;;  %900 = vmatprep.mubr.bf16.mxu0 %v1440_v24  ;;  %v1430_v27 = vld [vmem:[%s1788_s17 + $0x100] ss:$8 sps:$4 sm:$0xff]   ;;  %v1409_v28 = vld [vmem:[%s1788_s17 + $0xd0] ss:$8 sps:$4 sm:$0xff]  }
  0x6e   : > { %875 = vmatpush1.bf16.msra.mxu0 %v1376_v63  ;;  %v1413_v29 = vld [vmem:[%s1788_s17 + $0xc4] ss:$8 sps:$4 sm:$0xff]   ;;  %v1415_v31 = vld [vmem:[%s1788_s17 + $0xc0] ss:$8 sps:$4 sm:$0xff]   ;;  %v1419_v32 = vld [vmem:[%s1788_s17 + $0xb4] ss:$8 sps:$4 sm:$0xff]  }
  0x6f   : > { %876 = vmatprep.subr.bf16.mxu0 %v1377_v0  ;;  %v1421_v33 = vld [vmem:[%s1788_s17 + $0xb0] ss:$8 sps:$4 sm:$0xff]   ;;  %v1425_v34 = vld [vmem:[%s1788_s17 + $0xa4] ss:$8 sps:$4 sm:$0xff]   ;;  %v1427_v35 = vld [vmem:[%s1788_s17 + $0xa0] ss:$8 sps:$4 sm:$0xff]  }
  0x70   : > { %918 = vmatpush1.bf16.msra.mxu1 %v1406_v10  ;;  %v1431_v36 = vld [vmem:[%s1788_s17 + $0x94] ss:$8 sps:$4 sm:$0xff]   ;;  %v1433_v37 = vld [vmem:[%s1788_s17 + $0x90] ss:$8 sps:$4 sm:$0xff]   ;;  %v1435_v38 = vld [vmem:[%s1788_s17 + $0x84] ss:$8 sps:$4 sm:$0xff]  }
  0x71   : > { %919 = vmatprep.subr.bf16.mxu1 %v1410_v11  ;;  %v1437_v39 = vld [vmem:[%s1788_s17 + $0x80] ss:$8 sps:$4 sm:$0xff]   ;;  %v557_v47 = vld [vmem:[#allocation2] sm:$0xff]  ;;  %v559_v56 = vld [vmem:[#allocation2 + $0x8] sm:$0xff] }
  0x72   : > { %877 = vmatpush1.bf16.msra.mxu0 %v1379_v3  ;;  %v556_v43 = vld [vmem:[#allocation2 + $0x10] sm:$0xff]  ;;  %v558_v51 = vld [vmem:[#allocation2 + $0x18] sm:$0xff] }
  0x73   : > { %878 = vmatprep.subr.bf16.mxu0 %v1380_v5 }
  0x74   : > { %920 = vmatpush1.bf16.msra.mxu1 %v1412_v14 }
  0x75   : > { %921 = vmatprep.subr.bf16.mxu1 %v1416_v15 }
  0x76   : > { %879 = vmatpush1.bf16.msra.mxu0 %v1382_v8 }
  0x77   : > { %880 = vmatprep.subr.bf16.mxu0 %v1383_v9 }
  0x78   : > { %922 = vmatpush1.bf16.msra.mxu1 %v1418_v18 }
  0x79   : > { %923 = vmatprep.subr.bf16.mxu1 %v1422_v19 }
  0x7a   : > { %881 = vmatpush1.bf16.msra.mxu0 %v1385_v12 }
  0x7b   : > { %882 = vmatprep.subr.bf16.mxu0 %v1389_v13 }
  0x7c   : > { %924 = vmatpush1.bf16.msra.mxu1 %v1424_v22 }
  0x7d   : > { %925 = vmatprep.subr.bf16.mxu1 %v1428_v23 }
  0x7e   : > { %883 = vmatpush1.bf16.msra.mxu0 %v1391_v16 }
  0x7f   : > { %884 = vmatprep.subr.bf16.mxu0 %v1395_v17 }
  0x80   : > { %926 = vmatpush1.bf16.msra.mxu1 %v1430_v27 }
  0x82   : > { %885 = vmatpush2.bf16.msra.mxu0 %v1397_v20 }
  0x83   : > { %886 = vmatprep.subr.bf16.mxu0 %v1401_v21  ;;  %944 = vmatmul.mubr.bf16.vlgmr.msra.gmra.mxu1 %v1434_v30 }
  0x86   : > { %887 = vmatpush2.bf16.msra.mxu0 %v1403_v25 }
  0x87   : > { %888 = vmatprep.subr.bf16.mxu0 %v1407_v26 }
  0x8a   : > { %889 = vmatpush2.bf16.msra.mxu0 %v1409_v28 }
  0x8b   : > { %890 = vmatprep.subr.bf16.mxu0 %v1413_v29 }
  0x8e   : > { %891 = vmatpush2.bf16.msra.mxu0 %v1415_v31 }
  0x8f   : > { %892 = vmatprep.subr.bf16.mxu0 %v1419_v32 }
  0x92   : > { %893 = vmatpush2.bf16.msra.mxu0 %v1421_v33 }
  0x93   : > { %894 = vmatprep.subr.bf16.mxu0 %v1425_v34 }
  0x96   : > { %895 = vmatpush2.bf16.msra.mxu0 %v1427_v35 }
  0x97   : > { %896 = vmatprep.subr.bf16.mxu0 %v1431_v36 }
  0x9a   : > { %897 = vmatpush2.bf16.msra.mxu0 %v1433_v37 }
  0x9b   : > { %898 = vmatprep.subr.bf16.mxu0 %v1435_v38 }
  0x9e   : > { %899 = vmatpush2.bf16.msra.mxu0 %v1437_v39 }
  0xa1   : > { %901 = vmatmul.mubr.bf16.vlgmr.msra.gmra.mxu0 %v1438_v40 }
 0x143   : > { %v945_v41 = vpop.f32.mrf.mxu1 }
 0x145   : > { %v947_v42 = vpop.f32.mrf.mxu1 }
 0x147   : > { %v949_v46 = vpop.f32.mrf.mxu1 }
 0x149   : > { %v951_v55 = vpop.f32.mrf.mxu1 }
 0x161   : > { %v902_v44 = vpop.f32.mrf.mxu0 }
 0x162   : > { %v946_v45 = vadd.f32 %v945_v41, %v902_v44 }
 0x163   : > { %v904_v48 = vpop.f32.mrf.mxu0 }
 0x164   : > { %v954_v49 = vadd.f32 %v946_v45, %v556_v43  ;;  %v948_v50 = vadd.f32 %v947_v42, %v904_v48 }
 0x165   : > { %v906_v52 = vpop.f32.mrf.mxu0 }
 0x166   : > { %958 = vst [vmem:[#allocation2 + $0x10] sm:$0xff] %v954_v49  ;;  %v955_v53 = vadd.f32 %v948_v50, %v557_v47  ;;  %v950_v54 = vadd.f32 %v949_v46, %v906_v52 }
 0x167   : > { %v908_v57 = vpop.f32.mrf.mxu0 }
 0x168   : > { %959 = vst [vmem:[#allocation2] sm:$0xff] %v955_v53  ;;  %v956_v58 = vadd.f32 %v950_v54, %v558_v51  ;;  %v952_v59 = vadd.f32 %v951_v55, %v908_v57  ;;  %965 = sbr.rel (%p1258_p5) target bundleno = 382 (0x17e), region = 108 }
 0x16a   : > { %960 = vst [vmem:[#allocation2 + $0x18] sm:$0xff] %v956_v58  ;;  %v957_v60 = vadd.f32 %v952_v59, %v559_v56 }
 0x16c   : > { %961 = vst [vmem:[#allocation2 + $0x8] sm:$0xff] %v957_v60 }
 0x16d   : > { %v972_v61 = vlaneseq  ;;  %v970_v63 = vld [vmem:[%s538_s9] sm:$0x3]  ;;  %v966_v1 = vld [vmem:[#allocation2 + $0x10] sm:$0xff] }
 0x16e   : > { %v986_v0 = vld [vmem:[%s543_s1] sm:$0x3] }
 0x16f   : > { %v973_v62 = vshrl.u32 %v972_v61, 7  ;;  %v967_v4 = vld [vmem:[#allocation2] sm:$0xff] }
 0x171   : > { %v974_v2 = vsub.s32 0, %v973_v62  ;;  %v978_v3 = vsub.s32 1, %v973_v62  ;;  %v968_v5 = vld [vmem:[#allocation2 + $0x18] sm:$0xff] }
 0x173   : > { %v969_v6 = vld [vmem:[#allocation2 + $0x8] sm:$0xff]  ;;  %v975_v7 = vrot.slane %v970_v63, %v974_v2  ;;  %v979_v8 = vrot.slane %v970_v63, %v978_v3  ;;  %v991_v9 = vrot.slane %v986_v0, %v974_v2  ;;  %v995_v10 = vrot.slane %v986_v0, %v978_v3 }
 0x175   : > { %v982_v11 = vmul.f32 %v975_v7, %v966_v1  ;;  %v983_v12 = vmul.f32 %v979_v8, %v967_v4  ;;  %v984_v13 = vmul.f32 %v975_v7, %v968_v5  ;;  %v985_v14 = vmul.f32 %v979_v8, %v969_v6 }
 0x177   : > { %v998_v15 = vadd.f32 %v991_v9, %v982_v11  ;;  %v999_v16 = vadd.f32 %v995_v10, %v983_v12  ;;  %v1000_v17 = vadd.f32 %v991_v9, %v984_v13  ;;  %v1001_v18 = vadd.f32 %v995_v10, %v985_v14 }
 0x179   : > { %v1002_v19 = vmax.f32 %v998_v15, 0.0  ;;  %v1003_v20 = vmax.f32 %v999_v16, 0.0  ;;  %v1004_v21 = vmax.f32 %v1000_v17, 0.0  ;;  %v1005_v22 = vmax.f32 %v1001_v18, 0.0 }
 0x17b   : > { %v1268_v23 = vpack.c.bf16 %v1003_v20, %v1002_v19  ;;  %v1269_v24 = vpack.c.bf16 %v1005_v22, %v1004_v21 }
 0x17d   : > { %1018 = vst [vmem:[%s1790_s15] sm:$0xff] %v1268_v23  ;;  %1019 = vst [vmem:[%s1790_s15 + $0x8] sm:$0xff] %v1269_v24 }
 0x17e PF: > { %1026 = sbr.rel (!%p1650_p12) target bundleno = 390 (0x186), region = 112  ;;  %s1270_s1 = sshll.u32 (%p1650_p12), %s1515_s22, 3 }
 0x17f   : > { %s1032_s5 = scalar_lea.vmem (%p1650_p12), %s1902_s4, %s1270_s1 }
 0x184   : > { %v1063_v25 = vld [vmem:[%s1790_s15] sm:$0xff]  ;;  %v1065_v26 = vld [vmem:[%s1790_s15 + $0x8] sm:$0xff] }
 0x185   : > { %1064 = vst [vmem:[%s1032_s5] sm:$0xff] %v1063_v25  ;;  %1066 = vst [vmem:[%s1032_s5 + $0x10] sm:$0xff] %v1065_v26 }
 0x186 PF: > { %s14_s25 = sadd.s32 1, %s1527_s25   ;;  %s1914_s14 = sld [smem:[#allocation6_spill]] }
 0x187   : > { %p11_p6 = scmp.ge.s32.totalorder %s14_s25, 14   ;;  %s1915_s29 = sld [smem:[#allocation7_spill]] }
 0x188   : > { %s1916_s15 = smov %s1491_s16  ;;  %s1917_s16 = smov %s1648_s13 }
 0x189   : > { %s1918_s17 = smov %s1499_s18  ;;  %s1919_s18 = smov %s1645_s12 }
 0x18a   : > { %s1920_s19 = smov %s1507_s20  ;;  %s1921_s20 = smov %s1631_s7 }
 0x18b   : > { %s1922_s21 = smov %s1519_s23  ;;  %s1923_s22 = smov %s1523_s24 }
 0x18c   : > { %s1924_s23 = smov %s1914_s14  ;;  %13 = sbr.rel (!%p11_p6) target bundleno = 9 (0x9), region = 201 }
 0x18d   : > { %s1925_s24 = smov %s1915_s29 }

// kernel: violence_classifier_forward.38
= control target key start
LH: loop header
LB: loop body
LE: loop exit
PB: predicated region body
PF: predicated region fallthrough
CT: control target
= control target key end

     0   :  { %s1158_s15 = smov 0   ;;  %s1160_s16 = smov 0   ;;  %s1349_s0 = inlined_call_operand.vmem [shape: bf16[16,256], index: 0, kind: input, shape index: {}]   ;;  %s1350_s1 = inlined_call_operand.vmem [shape: bf16[256,512], index: 1, kind: input, shape index: {}]   ;;  %s1351_s2 = inlined_call_operand.vmem [shape: f32[1,512], index: 2, kind: input, shape index: {}]   ;;  %s1352_s3 = inlined_call_operand.vmem [shape: f32[1,512], index: 3, kind: input, shape index: {}]   ;;  %s1353_s4 = inlined_call_operand.vmem [shape: bf16[16,512], index: 4, kind: output, shape index: {}]  }
   0x1   :  { %s1162_s17 = smov 0   ;;  %s1164_s18 = smov 0  }
   0x2   :  { %s1166_s19 = smov 0  }
   0x3 LB: > { %s29_s20 = sadd.s32 1, %s1127_s18  ;;  %s944_s21 = sadd.s32 4294967295, %s1131_s19   ;;  %s1131_s19 = sphi %s1166_s19, %s14_s19   ;;  %s1127_s18 = sphi %s1164_s18, %s1358_s18   ;;  %s1123_s17 = sphi %s1162_s17, %s1357_s17   ;;  %s1119_s16 = sphi %s1160_s16, %s1356_s16   ;;  %s1115_s15 = sphi %s1158_s15, %s1355_s15  }
   0x4   : > { %p31_p0 = scmp.ge.s32.totalorder %s29_s20, 2  ;;  %p77_p1 = scmp.ne.s32.totalorder %s1119_s16, %s1115_s15 }
   0x5   : > { %p78_p2 = scmp.eq.s32.totalorder %s1131_s19, 0  ;;  %p161_p4 = scmp.eq.s32.totalorder %s944_s21, 1 }
   0x6   : > { %s1360_s20 = smov (%p31_p0, %s29_s20), 0  ;;  %s70_s23 = sadd.s32 1, %s1119_s16 }
   0x7   : > { %p79_p3 = por %p78_p2, %p77_p1  ;;  %s66_s22 = ssub.s32 %s1127_s18, %s1360_s20 }
   0x8   : > { %p68_p5 = scmp.eq.s32.totalorder %s66_s22, 0  ;;  %p1193_p6 = por %p161_p4, %p77_p1 }
   0x9   : > { %p948_p7 = scmp.ge.s32.totalorder %s1131_s19, 2 }
   0xa   : > { %s1198_s25 = scalar_select %p68_p5, %s1119_s16, %s70_s23  }
   0xb   : > { %198 = sbr.rel (%p948_p7) target bundleno = 36 (0x24), region = 20 }
  0x10   : > { %201 = sbr.rel (!%p79_p3) target bundleno = 36 (0x24), region = 24  ;;  %s203_s26 = sand.u32 (%p79_p3), 1, %s1119_s16  }
  0x11   : > { %s998_s27 = sshll.u32 (%p79_p3), %s1127_s18, 3  ;;  %s949_s28 = sshll.u32 (%p79_p3), %s203_s26, 8 }
  0x12   : > { %s1206_s5 = scalar_lea.vmem (%p79_p3), %s1350_s1, %s998_s27  ;;  %s1211_s6 = scalar_lea.vmem (%p79_p3), [#allocation3], %s949_s28 }
  0x13   : > { %v302_v0 = vld [vmem:[%s1206_s5] sm:$0xff] (%p79_p3)  ;;  %v304_v1 = vld [vmem:[%s1206_s5 + $0x10] sm:$0xff] (%p79_p3) }
  0x14   : > { %v306_v2 = vld [vmem:[%s1206_s5 + $0x20] sm:$0xff] (%p79_p3)  ;;  %303 = vst [vmem:[%s1211_s6] sm:$0xff] (%p79_p3), %v302_v0  ;;  %305 = vst [vmem:[%s1211_s6 + $0x8] sm:$0xff] (%p79_p3), %v304_v1  ;;  %v308_v3 = vld [vmem:[%s1206_s5 + $0x30] sm:$0xff] (%p79_p3) }
  0x15   : > { %307 = vst [vmem:[%s1211_s6 + $0x10] sm:$0xff] %v306_v2  ;;  %v310_v4 = vld [vmem:[%s1206_s5 + $0x40] sm:$0xff]  ;;  %v312_v5 = vld [vmem:[%s1206_s5 + $0x50] sm:$0xff]  ;;  %309 = vst [vmem:[%s1211_s6 + $0x18] sm:$0xff] %v308_v3 }
  0x16   : > { %311 = vst [vmem:[%s1211_s6 + $0x20] sm:$0xff] %v310_v4  ;;  %313 = vst [vmem:[%s1211_s6 + $0x28] sm:$0xff] %v312_v5  ;;  %v314_v6 = vld [vmem:[%s1206_s5 + $0x60] sm:$0xff]  ;;  %v316_v7 = vld [vmem:[%s1206_s5 + $0x70] sm:$0xff] }
  0x17   : > { %v318_v8 = vld [vmem:[%s1206_s5 + $0x80] sm:$0xff]  ;;  %315 = vst [vmem:[%s1211_s6 + $0x30] sm:$0xff] %v314_v6  ;;  %317 = vst [vmem:[%s1211_s6 + $0x38] sm:$0xff] %v316_v7  ;;  %v320_v9 = vld [vmem:[%s1206_s5 + $0x90] sm:$0xff] }
  0x18   : > { %319 = vst [vmem:[%s1211_s6 + $0x40] sm:$0xff] %v318_v8  ;;  %v322_v10 = vld [vmem:[%s1206_s5 + $0xa0] sm:$0xff]  ;;  %v324_v11 = vld [vmem:[%s1206_s5 + $0xb0] sm:$0xff]  ;;  %321 = vst [vmem:[%s1211_s6 + $0x48] sm:$0xff] %v320_v9 }
  0x19   : > { %323 = vst [vmem:[%s1211_s6 + $0x50] sm:$0xff] %v322_v10  ;;  %325 = vst [vmem:[%s1211_s6 + $0x58] sm:$0xff] %v324_v11  ;;  %v326_v12 = vld [vmem:[%s1206_s5 + $0xc0] sm:$0xff]  ;;  %v328_v13 = vld [vmem:[%s1206_s5 + $0xd0] sm:$0xff] }
  0x1a   : > { %v330_v14 = vld [vmem:[%s1206_s5 + $0xe0] sm:$0xff]  ;;  %327 = vst [vmem:[%s1211_s6 + $0x60] sm:$0xff] %v326_v12  ;;  %329 = vst [vmem:[%s1211_s6 + $0x68] sm:$0xff] %v328_v13  ;;  %v332_v15 = vld [vmem:[%s1206_s5 + $0xf0] sm:$0xff] }
  0x1b   : > { %331 = vst [vmem:[%s1211_s6 + $0x70] sm:$0xff] %v330_v14  ;;  %v334_v16 = vld [vmem:[%s1206_s5 + $0x100] sm:$0xff]  ;;  %v336_v17 = vld [vmem:[%s1206_s5 + $0x110] sm:$0xff]  ;;  %333 = vst [vmem:[%s1211_s6 + $0x78] sm:$0xff] %v332_v15 }
  0x1c   : > { %335 = vst [vmem:[%s1211_s6 + $0x80] sm:$0xff] %v334_v16  ;;  %337 = vst [vmem:[%s1211_s6 + $0x88] sm:$0xff] %v336_v17  ;;  %v338_v18 = vld [vmem:[%s1206_s5 + $0x120] sm:$0xff]  ;;  %v340_v19 = vld [vmem:[%s1206_s5 + $0x130] sm:$0xff] }
  0x1d   : > { %v342_v20 = vld [vmem:[%s1206_s5 + $0x140] sm:$0xff]  ;;  %339 = vst [vmem:[%s1211_s6 + $0x90] sm:$0xff] %v338_v18  ;;  %341 = vst [vmem:[%s1211_s6 + $0x98] sm:$0xff] %v340_v19  ;;  %v344_v21 = vld [vmem:[%s1206_s5 + $0x150] sm:$0xff] }
  0x1e   : > { %343 = vst [vmem:[%s1211_s6 + $0xa0] sm:$0xff] %v342_v20  ;;  %v346_v22 = vld [vmem:[%s1206_s5 + $0x160] sm:$0xff]  ;;  %v348_v23 = vld [vmem:[%s1206_s5 + $0x170] sm:$0xff]  ;;  %345 = vst [vmem:[%s1211_s6 + $0xa8] sm:$0xff] %v344_v21 }
  0x1f   : > { %347 = vst [vmem:[%s1211_s6 + $0xb0] sm:$0xff] %v346_v22  ;;  %349 = vst [vmem:[%s1211_s6 + $0xb8] sm:$0xff] %v348_v23  ;;  %v350_v24 = vld [vmem:[%s1206_s5 + $0x180] sm:$0xff]  ;;  %v352_v25 = vld [vmem:[%s1206_s5 + $0x190] sm:$0xff] }
  0x20   : > { %v354_v26 = vld [vmem:[%s1206_s5 + $0x1a0] sm:$0xff]  ;;  %351 = vst [vmem:[%s1211_s6 + $0xc0] sm:$0xff] %v350_v24  ;;  %353 = vst [vmem:[%s1211_s6 + $0xc8] sm:$0xff] %v352_v25  ;;  %v356_v27 = vld [vmem:[%s1206_s5 + $0x1b0] sm:$0xff] }
  0x21   : > { %355 = vst [vmem:[%s1211_s6 + $0xd0] sm:$0xff] %v354_v26  ;;  %v358_v28 = vld [vmem:[%s1206_s5 + $0x1c0] sm:$0xff]  ;;  %v360_v29 = vld [vmem:[%s1206_s5 + $0x1d0] sm:$0xff]  ;;  %357 = vst [vmem:[%s1211_s6 + $0xd8] sm:$0xff] %v356_v27 }
  0x22   : > { %359 = vst [vmem:[%s1211_s6 + $0xe0] sm:$0xff] %v358_v28  ;;  %361 = vst [vmem:[%s1211_s6 + $0xe8] sm:$0xff] %v360_v29  ;;  %v362_v30 = vld [vmem:[%s1206_s5 + $0x1e0] sm:$0xff]  ;;  %v364_v31 = vld [vmem:[%s1206_s5 + $0x1f0] sm:$0xff] }
  0x23   : > { %363 = vst [vmem:[%s1211_s6 + $0xf0] sm:$0xff] %v362_v30  ;;  %365 = vst [vmem:[%s1211_s6 + $0xf8] sm:$0xff] %v364_v31 }
  0x24 PF: > { %p952_p8 = scmp.ge.s32.totalorder %s1131_s19, 1  ;;  %p386_p9 = scmp.lt.s32.totalorder %s1131_s19, 3 }
  0x26   : > { %p387_p10 = pnand %p952_p8, %p386_p9 }
  0x27   : > { %s393_s7 = sand.u32 (!%p387_p10), 1, %s1115_s15   ;;  %s955_s14 = sshll.u32 (!%p387_p10), %s1123_s17, 1 }
  0x28   : > { %390 = sbr.rel (%p387_p10) target bundleno = 324 (0x144), region = 70  ;;  %s953_s8 = sshll.u32 (!%p387_p10), %s393_s7, 8 }
  0x29   : > { %s1282_s11 = scalar_lea.vmem (!%p387_p10), [#allocation3], %s953_s8  ;;  %p450_p11 = scmp.lt.s32.totalorder (!%p387_p10), %s955_s14, 3 }
  0x2a   : > { %s954_s29 = sshll.u32 (!%p387_p10), %s393_s7, 4 }
  0x2b   : > { %s434_s30 = scalar_lea.vmem (!%p387_p10), [#allocation4], %s954_s29 }
  0x2d   : > { %v1092_v32 = vld [vmem:[%s1349_s0 + $0x4] ss:$8 sps:$4 sm:$0xff]   ;;  %v1042_v33 = vld [vmem:[%s1282_s11 + $0x74] ss:$8 sps:$4 sm:$0xff]   ;;  %v1044_v34 = vld [vmem:[%s1282_s11 + $0x70] ss:$8 sps:$4 sm:$0xff]   ;;  %v737_v2 = vlaneseq }
  0x2e   : > { %709 = vmatprep.mubr.bf16.mxu0 %v1092_v32  ;;  %677 = vmatprep.subr.bf16.mxu0 %v1042_v33  ;;  %v1045_v35 = vld [vmem:[%s1282_s11 + $0x64] ss:$8 sps:$4 sm:$0xff]   ;;  %v1047_v36 = vld [vmem:[%s1282_s11 + $0x60] ss:$8 sps:$4 sm:$0xff]   ;;  %v1048_v37 = vld [vmem:[%s1282_s11 + $0x54] ss:$8 sps:$4 sm:$0xff]  }
  0x2f   : > { %678 = vmatpush1.bf16.msra.mxu0 %v1044_v34  ;;  %v1050_v38 = vld [vmem:[%s1282_s11 + $0x50] ss:$8 sps:$4 sm:$0xff]   ;;  %v1051_v39 = vld [vmem:[%s1282_s11 + $0x44] ss:$8 sps:$4 sm:$0xff]   ;;  %v1053_v40 = vld [vmem:[%s1282_s11 + $0x40] ss:$8 sps:$4 sm:$0xff]  }
  0x30   : > { %679 = vmatprep.subr.bf16.mxu0 %v1045_v35  ;;  %v1054_v41 = vld [vmem:[%s1282_s11 + $0x34] ss:$8 sps:$4 sm:$0xff]   ;;  %v1056_v42 = vld [vmem:[%s1282_s11 + $0x30] ss:$8 sps:$4 sm:$0xff]   ;;  %v1057_v43 = vld [vmem:[%s1282_s11 + $0x24] ss:$8 sps:$4 sm:$0xff]  }
  0x31   : > { %v1059_v44 = vld [vmem:[%s1282_s11 + $0x20] ss:$8 sps:$4 sm:$0xff]   ;;  %v1060_v45 = vld [vmem:[%s1282_s11 + $0x14] ss:$8 sps:$4 sm:$0xff]   ;;  %v1062_v46 = vld [vmem:[%s1282_s11 + $0x10] ss:$8 sps:$4 sm:$0xff]  }
  0x32   : > { %v1063_v47 = vld [vmem:[%s1282_s11 + $0x4] ss:$8 sps:$4 sm:$0xff]   ;;  %v1065_v48 = vld [vmem:[%s1282_s11] ss:$8 sps:$4 sm:$0xff]   ;;  %v1066_v49 = vld [vmem:[%s1282_s11 + $0xf4] ss:$8 sps:$4 sm:$0xff]  }
  0x33   : > { %680 = vmatpush1.bf16.msra.mxu0 %v1047_v36  ;;  %v1068_v50 = vld [vmem:[%s1282_s11 + $0xf0] ss:$8 sps:$4 sm:$0xff]   ;;  %v1069_v51 = vld [vmem:[%s1282_s11 + $0xe4] ss:$8 sps:$4 sm:$0xff]   ;;  %v1071_v52 = vld [vmem:[%s1282_s11 + $0xe0] ss:$8 sps:$4 sm:$0xff]  }
  0x34   : > { %681 = vmatprep.subr.bf16.mxu0 %v1048_v37  ;;  %v1072_v53 = vld [vmem:[%s1282_s11 + $0xd4] ss:$8 sps:$4 sm:$0xff]   ;;  %v1074_v54 = vld [vmem:[%s1282_s11 + $0xd0] ss:$8 sps:$4 sm:$0xff]   ;;  %v1075_v55 = vld [vmem:[%s1282_s11 + $0xc4] ss:$8 sps:$4 sm:$0xff]  }
  0x35   : > { %v1077_v56 = vld [vmem:[%s1282_s11 + $0xc0] ss:$8 sps:$4 sm:$0xff]   ;;  %v1078_v57 = vld [vmem:[%s1282_s11 + $0xb4] ss:$8 sps:$4 sm:$0xff]   ;;  %v1080_v58 = vld [vmem:[%s1282_s11 + $0xb0] ss:$8 sps:$4 sm:$0xff]  }
  0x36   : > { %v1081_v59 = vld [vmem:[%s1282_s11 + $0xa4] ss:$8 sps:$4 sm:$0xff]   ;;  %v1083_v60 = vld [vmem:[%s1282_s11 + $0xa0] ss:$8 sps:$4 sm:$0xff]   ;;  %v1084_v61 = vld [vmem:[%s1282_s11 + $0x94] ss:$8 sps:$4 sm:$0xff]  }
  0x37   : > { %682 = vmatpush1.bf16.msra.mxu0 %v1050_v38  ;;  %v1086_v62 = vld [vmem:[%s1282_s11 + $0x90] ss:$8 sps:$4 sm:$0xff]   ;;  %v1087_v63 = vld [vmem:[%s1282_s11 + $0x84] ss:$8 sps:$4 sm:$0xff]   ;;  %v1089_v0 = vld [vmem:[%s1282_s11 + $0x80] ss:$8 sps:$4 sm:$0xff]  }
  0x38   : > { %683 = vmatprep.subr.bf16.mxu0 %v1051_v39  ;;  %v1090_v1 = vld [vmem:[%s1349_s0] ss:$8 sps:$4 sm:$0xff]   ;;  %s1362_s14 = smov (!%p450_p11, %s955_s14), 3  ;;  %v738_v3 = vshrl.u32 %v737_v2, 7  ;;  %s1001_s15 = sshll.u32 (%p1193_p6), %s1123_s17, 3 }
  0x39   : > { %s452_s23 = scalar_lea.vmem %s1351_s2, %s1362_s14  ;;  %s457_s28 = scalar_lea.vmem %s1352_s3, %s1362_s14 }
  0x3a   : > { %v739_v4 = vsub.s32 0, %v738_v3  ;;  %v735_v5 = vld [vmem:[%s452_s23] sm:$0x3]  ;;  %v743_v6 = vsub.s32 1, %v738_v3  ;;  %s793_s7 = scalar_lea.vmem (%p1193_p6), %s1353_s4, %s1001_s15 }
  0x3b   : > { %684 = vmatpush1.bf16.msra.mxu0 %v1053_v40  ;;  %v751_v8 = vld [vmem:[%s457_s28] sm:$0x3] }
  0x3c   : > { %685 = vmatprep.subr.bf16.mxu0 %v1054_v41  ;;  %v740_v7 = vrot.slane %v735_v5, %v739_v4  ;;  %v744_v9 = vrot.slane %v735_v5, %v743_v6  ;;  %v756_v12 = vrot.slane %v751_v8, %v739_v4  ;;  %v760_v13 = vrot.slane %v751_v8, %v743_v6 }
  0x3f   : > { %686 = vmatpush1.bf16.msra.mxu0 %v1056_v42 }
  0x40   : > { %687 = vmatprep.subr.bf16.mxu0 %v1057_v43 }
  0x43   : > { %688 = vmatpush1.bf16.msra.mxu0 %v1059_v44 }
  0x44   : > { %689 = vmatprep.subr.bf16.mxu0 %v1060_v45 }
  0x47   : > { %690 = vmatpush1.bf16.msra.mxu0 %v1062_v46 }
  0x48   : > { %691 = vmatprep.subr.bf16.mxu0 %v1063_v47 }
  0x4b   : > { %692 = vmatpush1.bf16.msra.mxu0 %v1065_v48 }
  0x4c   : > { %693 = vmatprep.subr.bf16.mxu0 %v1066_v49 }
  0x4f   : > { %694 = vmatpush2.bf16.msra.mxu0 %v1068_v50 }
  0x50   : > { %695 = vmatprep.subr.bf16.mxu0 %v1069_v51 }
  0x53   : > { %696 = vmatpush2.bf16.msra.mxu0 %v1071_v52 }
  0x54   : > { %697 = vmatprep.subr.bf16.mxu0 %v1072_v53 }
  0x57   : > { %698 = vmatpush2.bf16.msra.mxu0 %v1074_v54 }
  0x58   : > { %699 = vmatprep.subr.bf16.mxu0 %v1075_v55 }
  0x5b   : > { %700 = vmatpush2.bf16.msra.mxu0 %v1077_v56 }
  0x5c   : > { %701 = vmatprep.subr.bf16.mxu0 %v1078_v57 }
  0x5f   : > { %702 = vmatpush2.bf16.msra.mxu0 %v1080_v58 }
  0x60   : > { %703 = vmatprep.subr.bf16.mxu0 %v1081_v59 }
  0x63   : > { %704 = vmatpush2.bf16.msra.mxu0 %v1083_v60 }
  0x64   : > { %705 = vmatprep.subr.bf16.mxu0 %v1084_v61 }
  0x67   : > { %706 = vmatpush2.bf16.msra.mxu0 %v1086_v62 }
  0x68   : > { %707 = vmatprep.subr.bf16.mxu0 %v1087_v63 }
  0x6b   : > { %708 = vmatpush2.bf16.msra.mxu0 %v1089_v0 }
  0x6e   : > { %710 = vmatmul.mubr.bf16.vlgmr.msra.gmra.mxu0 %v1090_v1 }
 0x12e   : > { %v711_v10 = vpop.f32.mrf.mxu0 }
 0x12f   : > { %v747_v11 = vmul.f32 %v740_v7, %v711_v10 }
 0x130   : > { %v713_v14 = vpop.f32.mrf.mxu0 }
 0x131   : > { %v748_v15 = vmul.f32 %v744_v9, %v713_v14  ;;  %v763_v17 = vadd.f32 %v756_v12, %v747_v11 }
 0x132   : > { %v715_v16 = vpop.f32.mrf.mxu0 }
 0x133   : > { %v764_v18 = vadd.f32 %v760_v13, %v748_v15  ;;  %v749_v19 = vmul.f32 %v740_v7, %v715_v16 }
 0x134   : > { %v717_v20 = vpop.f32.mrf.mxu0 }
 0x135   : > { %v999_v21 = vpack.c.bf16 %v764_v18, %v763_v17  ;;  %v750_v22 = vmul.f32 %v744_v9, %v717_v20  ;;  %v765_v23 = vadd.f32 %v756_v12, %v749_v19 }
 0x137   : > { %779 = vst [vmem:[%s434_s30] sm:$0xff] %v999_v21  ;;  %v766_v24 = vadd.f32 %v760_v13, %v750_v22  ;;  %787 = sbr.rel (!%p1193_p6) target bundleno = 324 (0x144), region = 86 }
 0x139   : > { %v1000_v25 = vpack.c.bf16 %v766_v24, %v765_v23 }
 0x13b   : > { %780 = vst [vmem:[%s434_s30 + $0x8] sm:$0xff] %v1000_v25 }
 0x13e   : > { %v824_v26 = vld [vmem:[%s434_s30] sm:$0xff] }
 0x13f   : > { %825 = vst [vmem:[%s793_s7] sm:$0xff] %v824_v26 }
 0x142   : > { %v826_v27 = vld [vmem:[%s434_s30 + $0x8] sm:$0xff] }
 0x143   : > { %827 = vst [vmem:[%s793_s7 + $0x10] sm:$0xff] %v826_v27 }
 0x144 PF: > { %s14_s19 = sadd.s32 1, %s1131_s19   ;;  %s1355_s15 = smov %s1119_s16 }
 0x145   : > { %p11_p12 = scmp.ge.s32.totalorder %s14_s19, 4   ;;  %s1356_s16 = smov %s1198_s25 }
 0x146   : > { %s1357_s17 = smov %s1127_s18  ;;  %s1358_s18 = smov %s1360_s20 }
 0x147   :  { %13 = sbr.rel (!%p11_p12) target bundleno = 3 (0x3), region = 164 }

// kernel: violence_classifier_forward.40
= control target key start
LH: loop header
LB: loop body
LE: loop exit
PB: predicated region body
PF: predicated region fallthrough
CT: control target
= control target key end

     0   :  { %s2295_s0 = inlined_call_operand.vmem [shape: bf16[16,4608], index: 0, kind: input, shape index: {}]   ;;  %s2296_s1 = inlined_call_operand.vmem [shape: bf16[4608,512], index: 1, kind: input, shape index: {}]   ;;  %s2297_s2 = inlined_call_operand.vmem [shape: f32[1,512], index: 2, kind: input, shape index: {}]   ;;  %s2298_s3 = inlined_call_operand.vmem [shape: f32[1,512], index: 3, kind: input, shape index: {}]   ;;  %s2299_s4 = inlined_call_operand.vmem [shape: bf16[16,512], index: 4, kind: input, shape index: {}]   ;;  %s2300_s5 = inlined_call_operand.vmem [shape: bf16[16,512], index: 5, kind: output, shape index: {}]  }
   0x1   :  { %2304 = sst [smem:[#allocation11_spill]] %s2295_s0 }
   0x2   :  { %s1879_s18 = smov 0   ;;  %s1881_s19 = smov 0  }
   0x3   :  { %s1883_s20 = smov 0   ;;  %s1885_s21 = smov 0  }
   0x4   :  { %s1887_s22 = smov 0   ;;  %s1889_s23 = smov 0  }
   0x5   :  { %s1891_s24 = smov 0   ;;  %s1893_s25 = smov 0  }
   0x6   :  { %s1895_s26 = smov 0   ;;  %s1897_s27 = smov 0  }
   0x7   :  { %s1899_s28 = smov 0  }
   0x8 LB: > { %2305 = sst [smem:[#allocation7_spill]] %s1826_s23  ;;  %s1464_s29 = sadd.s32 4294967295, %s1846_s28   ;;  %s1846_s28 = sphi %s1899_s28, %s15_s28   ;;  %s1842_s27 = sphi %s1897_s27, %s2325_s27   ;;  %s1838_s26 = sphi %s1895_s26, %s2324_s26   ;;  %s1834_s25 = sphi %s1893_s25, %s2323_s25   ;;  %s1830_s24 = sphi %s1891_s24, %s2322_s24   ;;  %s1826_s23 = sphi %s1889_s23, %s2315_s23   ;;  %s1822_s22 = sphi %s1887_s22, %s2314_s22   ;;  %s1818_s21 = sphi %s1885_s21, %s2321_s21   ;;  %s1814_s20 = sphi %s1883_s20, %s2320_s20   ;;  %s1810_s19 = sphi %s1881_s19, %s2319_s19   ;;  %s1806_s18 = sphi %s1879_s18, %s2318_s18  }
   0x9   : > { %s27_s30 = sadd.s32 1, %s1838_s26  ;;  %s30_s6 = sadd.s32 1, %s1842_s27 }
   0xa   : > { %p28_p0 = scmp.ge.s32.totalorder %s27_s30, 9  ;;  %s43_s7 = sadd.s32 1, %s1826_s23 }
   0xb   : > { %p50_p1 = scmp.ne.s32.totalorder %s1826_s23, %s1822_s22  ;;  %p51_p2 = scmp.eq.s32.totalorder %s1846_s28, 0 }
   0xc   : > { %s2327_s30 = smov (%p28_p0, %s27_s30), 0  ;;  %s2329_s6 = smov (!%p28_p0, %s30_s6), %s1842_s27 }
   0xd   : > { %2306 = sst [smem:[#allocation8_spill]] %s2327_s30  ;;  %s39_s8 = ssub.s32 %s1838_s26, %s2327_s30 }
   0xe   : > { %p32_p3 = scmp.ge.s32.totalorder %s2329_s6, 2  ;;  %p41_p4 = scmp.eq.s32.totalorder %s39_s8, 0 }
   0xf   : > { %p1948_p5 = por %p51_p2, %p50_p1  ;;  %s71_s10 = sadd.s32 1, %s1818_s21 }
  0x10   : > { %s2331_s6 = smov (%p32_p3, %s2329_s6), 0  ;;  %p78_p6 = scmp.ne.s32.totalorder %s1818_s21, %s1814_s20 }
  0x11   : > { %2308 = sst [smem:[#allocation9_spill]] %s2331_s6  ;;  %s67_s12 = ssub.s32 %s1842_s27, %s2331_s6 }
  0x12   : > { %s1956_s11 = scalar_select %p41_p4, %s1826_s23, %s43_s7  }
  0x13   : > { %s68_s13 = sor.u32 %s67_s12, %s39_s8  ;;  %p149_p7 = scmp.eq.s32.totalorder %s67_s12, 0 }
  0x14   : > { %2309 = sst [smem:[#allocation10_spill]] %s1956_s11  ;;  %p69_p8 = scmp.eq.s32.totalorder %s68_s13, 0 }
  0x15   : > { %p1964_p9 = por %p78_p6, %p51_p2  ;;  %s151_s15 = sadd.s32 1, %s1810_s19 }
  0x16   : > { %p158_p10 = scmp.ne.s32.totalorder %s1810_s19, %s1806_s18  ;;  %p190_p12 = scmp.eq.s32.totalorder %s1464_s29, 17 }
  0x17   : > { %s1972_s16 = scalar_select %p69_p8, %s1818_s21, %s71_s10  }
  0x18   : > { %s1975_s17 = scalar_select %p149_p7, %s1810_s19, %s151_s15  }
  0x19   : > { %p1979_p11 = por %p158_p10, %p51_p2  ;;  %p1983_p13 = por %p190_p12, %p158_p10 }
  0x1a   : > { %p1467_p0 = scmp.ge.s32.totalorder %s1846_s28, 18 }
  0x1c   : > { %212 = sbr.rel (%p1467_p0) target bundleno = 89 (0x59), region = 16 }
  0x21   : > { %215 = sbr.rel (!%p1948_p5) target bundleno = 45 (0x2d), region = 20  ;;  %s217_s10 = sand.u32 (%p1948_p5), 1, %s1826_s23  }
  0x22   : > { %s1563_s12 = sshll.u32 (%p1948_p5), %s1838_s26, 4  ;;  %s1468_s13 = sshll.u32 (%p1948_p5), %s217_s10, 5 }
  0x23   : > { %s2313_s0 = sld [smem:[#allocation11_spill]] (%p1948_p5)  ;;  %s219_s29 = scalar_lea.vmem (%p1948_p5), [#allocation3], %s1468_s13 }
  0x29   : > { %s225_s30 = scalar_lea.vmem %s2313_s0, %s1563_s12 }
  0x2a   : > { %v238_v0 = vld [vmem:[%s225_s30] sm:$0xff]  ;;  %v240_v1 = vld [vmem:[%s225_s30 + $0x8] sm:$0xff]  ;;  %v242_v2 = vld [vmem:[%s225_s30 + $0x90] sm:$0xff] }
  0x2b   : > { %239 = vst [vmem:[%s219_s29] sm:$0xff] %v238_v0  ;;  %241 = vst [vmem:[%s219_s29 + $0x8] sm:$0xff] %v240_v1  ;;  %v244_v3 = vld [vmem:[%s225_s30 + $0x98] sm:$0xff] }
  0x2c   : > { %243 = vst [vmem:[%s219_s29 + $0x10] sm:$0xff] %v242_v2  ;;  %245 = vst [vmem:[%s219_s29 + $0x18] sm:$0xff] %v244_v3 }
  0x2d PF: > { %251 = sbr.rel (!%p1964_p9) target bundleno = 84 (0x54), region = 43  ;;  %s253_s9 = sand.u32 (%p1964_p9), 1, %s1818_s21  }
  0x2e   : > { %s1473_s10 = sshll.u32 (%p1964_p9), %s1842_s27, 1  ;;  %s1471_s6 = sshll.u32 (%p1964_p9), %s253_s9, 9 }
  0x2f   : > { %s1564_s12 = sshll.u32 (%p1964_p9), %s1838_s26, 8  ;;  %s2008_s30 = scalar_lea.vmem (%p1964_p9), [#allocation4], %s1471_s6 }
  0x30   : > { %s259_s15 = sadd.s32 (%p1964_p9), %s1564_s12, %s1473_s10 }
  0x31   : > { %s1475_s0 = sshll.u32 (%p1964_p9), %s259_s15, 2 }
  0x32   : > { %s2003_s23 = scalar_lea.vmem %s2296_s1, %s1475_s0 }
  0x33   : > { %v416_v4 = vld [vmem:[%s2003_s23] sm:$0xff]  ;;  %v418_v5 = vld [vmem:[%s2003_s23 + $0x10] sm:$0xff] }
  0x34   : > { %v420_v6 = vld [vmem:[%s2003_s23 + $0x20] sm:$0xff]  ;;  %417 = vst [vmem:[%s2008_s30] sm:$0xff] %v416_v4  ;;  %419 = vst [vmem:[%s2008_s30 + $0x8] sm:$0xff] %v418_v5  ;;  %v422_v7 = vld [vmem:[%s2003_s23 + $0x30] sm:$0xff] }
  0x35   : > { %421 = vst [vmem:[%s2008_s30 + $0x10] sm:$0xff] %v420_v6  ;;  %v424_v8 = vld [vmem:[%s2003_s23 + $0x40] sm:$0xff]  ;;  %v426_v9 = vld [vmem:[%s2003_s23 + $0x50] sm:$0xff]  ;;  %423 = vst [vmem:[%s2008_s30 + $0x18] sm:$0xff] %v422_v7 }
  0x36   : > { %425 = vst [vmem:[%s2008_s30 + $0x20] sm:$0xff] %v424_v8  ;;  %427 = vst [vmem:[%s2008_s30 + $0x28] sm:$0xff] %v426_v9  ;;  %v428_v10 = vld [vmem:[%s2003_s23 + $0x60] sm:$0xff]  ;;  %v430_v11 = vld [vmem:[%s2003_s23 + $0x70] sm:$0xff] }
  0x37   : > { %v432_v12 = vld [vmem:[%s2003_s23 + $0x80] sm:$0xff]  ;;  %429 = vst [vmem:[%s2008_s30 + $0x30] sm:$0xff] %v428_v10  ;;  %431 = vst [vmem:[%s2008_s30 + $0x38] sm:$0xff] %v430_v11  ;;  %v434_v13 = vld [vmem:[%s2003_s23 + $0x90] sm:$0xff] }
  0x38   : > { %433 = vst [vmem:[%s2008_s30 + $0x40] sm:$0xff] %v432_v12  ;;  %v436_v14 = vld [vmem:[%s2003_s23 + $0xa0] sm:$0xff]  ;;  %v438_v15 = vld [vmem:[%s2003_s23 + $0xb0] sm:$0xff]  ;;  %435 = vst [vmem:[%s2008_s30 + $0x48] sm:$0xff] %v434_v13 }
  0x39   : > { %437 = vst [vmem:[%s2008_s30 + $0x50] sm:$0xff] %v436_v14  ;;  %439 = vst [vmem:[%s2008_s30 + $0x58] sm:$0xff] %v438_v15  ;;  %v440_v16 = vld [vmem:[%s2003_s23 + $0xc0] sm:$0xff]  ;;  %v442_v17 = vld [vmem:[%s2003_s23 + $0xd0] sm:$0xff] }
  0x3a   : > { %v444_v18 = vld [vmem:[%s2003_s23 + $0xe0] sm:$0xff]  ;;  %441 = vst [vmem:[%s2008_s30 + $0x60] sm:$0xff] %v440_v16  ;;  %443 = vst [vmem:[%s2008_s30 + $0x68] sm:$0xff] %v442_v17  ;;  %v446_v19 = vld [vmem:[%s2003_s23 + $0xf0] sm:$0xff] }
  0x3b   : > { %445 = vst [vmem:[%s2008_s30 + $0x70] sm:$0xff] %v444_v18  ;;  %v448_v20 = vld [vmem:[%s2003_s23 + $0x100] sm:$0xff]  ;;  %v450_v21 = vld [vmem:[%s2003_s23 + $0x110] sm:$0xff]  ;;  %447 = vst [vmem:[%s2008_s30 + $0x78] sm:$0xff] %v446_v19 }
  0x3c   : > { %449 = vst [vmem:[%s2008_s30 + $0x80] sm:$0xff] %v448_v20  ;;  %451 = vst [vmem:[%s2008_s30 + $0x88] sm:$0xff] %v450_v21  ;;  %v452_v22 = vld [vmem:[%s2003_s23 + $0x120] sm:$0xff]  ;;  %v454_v23 = vld [vmem:[%s2003_s23 + $0x130] sm:$0xff] }
  0x3d   : > { %v456_v24 = vld [vmem:[%s2003_s23 + $0x140] sm:$0xff]  ;;  %453 = vst [vmem:[%s2008_s30 + $0x90] sm:$0xff] %v452_v22  ;;  %455 = vst [vmem:[%s2008_s30 + $0x98] sm:$0xff] %v454_v23  ;;  %v458_v25 = vld [vmem:[%s2003_s23 + $0x150] sm:$0xff] }
  0x3e   : > { %457 = vst [vmem:[%s2008_s30 + $0xa0] sm:$0xff] %v456_v24  ;;  %v460_v26 = vld [vmem:[%s2003_s23 + $0x160] sm:$0xff]  ;;  %v462_v27 = vld [vmem:[%s2003_s23 + $0x170] sm:$0xff]  ;;  %459 = vst [vmem:[%s2008_s30 + $0xa8] sm:$0xff] %v458_v25 }
  0x3f   : > { %461 = vst [vmem:[%s2008_s30 + $0xb0] sm:$0xff] %v460_v26  ;;  %463 = vst [vmem:[%s2008_s30 + $0xb8] sm:$0xff] %v462_v27  ;;  %v464_v28 = vld [vmem:[%s2003_s23 + $0x180] sm:$0xff]  ;;  %v466_v29 = vld [vmem:[%s2003_s23 + $0x190] sm:$0xff] }
  0x40   : > { %v468_v30 = vld [vmem:[%s2003_s23 + $0x1a0] sm:$0xff]  ;;  %465 = vst [vmem:[%s2008_s30 + $0xc0] sm:$0xff] %v464_v28  ;;  %467 = vst [vmem:[%s2008_s30 + $0xc8] sm:$0xff] %v466_v29  ;;  %v470_v31 = vld [vmem:[%s2003_s23 + $0x1b0] sm:$0xff] }
  0x41   : > { %469 = vst [vmem:[%s2008_s30 + $0xd0] sm:$0xff] %v468_v30  ;;  %v472_v32 = vld [vmem:[%s2003_s23 + $0x1c0] sm:$0xff]  ;;  %v474_v33 = vld [vmem:[%s2003_s23 + $0x1d0] sm:$0xff]  ;;  %471 = vst [vmem:[%s2008_s30 + $0xd8] sm:$0xff] %v470_v31 }
  0x42   : > { %473 = vst [vmem:[%s2008_s30 + $0xe0] sm:$0xff] %v472_v32  ;;  %475 = vst [vmem:[%s2008_s30 + $0xe8] sm:$0xff] %v474_v33  ;;  %v476_v34 = vld [vmem:[%s2003_s23 + $0x1e0] sm:$0xff]  ;;  %v478_v35 = vld [vmem:[%s2003_s23 + $0x1f0] sm:$0xff] }
  0x43   : > { %v480_v36 = vld [vmem:[%s2003_s23 + $0x200] sm:$0xff]  ;;  %477 = vst [vmem:[%s2008_s30 + $0xf0] sm:$0xff] %v476_v34  ;;  %479 = vst [vmem:[%s2008_s30 + $0xf8] sm:$0xff] %v478_v35  ;;  %v482_v37 = vld [vmem:[%s2003_s23 + $0x210] sm:$0xff] }
  0x44   : > { %481 = vst [vmem:[%s2008_s30 + $0x100] sm:$0xff] %v480_v36  ;;  %v484_v38 = vld [vmem:[%s2003_s23 + $0x220] sm:$0xff]  ;;  %v486_v39 = vld [vmem:[%s2003_s23 + $0x230] sm:$0xff]  ;;  %483 = vst [vmem:[%s2008_s30 + $0x108] sm:$0xff] %v482_v37 }
  0x45   : > { %485 = vst [vmem:[%s2008_s30 + $0x110] sm:$0xff] %v484_v38  ;;  %487 = vst [vmem:[%s2008_s30 + $0x118] sm:$0xff] %v486_v39  ;;  %v488_v40 = vld [vmem:[%s2003_s23 + $0x240] sm:$0xff]  ;;  %v490_v41 = vld [vmem:[%s2003_s23 + $0x250] sm:$0xff] }
  0x46   : > { %v492_v42 = vld [vmem:[%s2003_s23 + $0x260] sm:$0xff]  ;;  %489 = vst [vmem:[%s2008_s30 + $0x120] sm:$0xff] %v488_v40  ;;  %491 = vst [vmem:[%s2008_s30 + $0x128] sm:$0xff] %v490_v41  ;;  %v494_v43 = vld [vmem:[%s2003_s23 + $0x270] sm:$0xff] }
  0x47   : > { %493 = vst [vmem:[%s2008_s30 + $0x130] sm:$0xff] %v492_v42  ;;  %v496_v44 = vld [vmem:[%s2003_s23 + $0x280] sm:$0xff]  ;;  %v498_v45 = vld [vmem:[%s2003_s23 + $0x290] sm:$0xff]  ;;  %495 = vst [vmem:[%s2008_s30 + $0x138] sm:$0xff] %v494_v43 }
  0x48   : > { %497 = vst [vmem:[%s2008_s30 + $0x140] sm:$0xff] %v496_v44  ;;  %499 = vst [vmem:[%s2008_s30 + $0x148] sm:$0xff] %v498_v45  ;;  %v500_v46 = vld [vmem:[%s2003_s23 + $0x2a0] sm:$0xff]  ;;  %v502_v47 = vld [vmem:[%s2003_s23 + $0x2b0] sm:$0xff] }
  0x49   : > { %v504_v48 = vld [vmem:[%s2003_s23 + $0x2c0] sm:$0xff]  ;;  %501 = vst [vmem:[%s2008_s30 + $0x150] sm:$0xff] %v500_v46  ;;  %503 = vst [vmem:[%s2008_s30 + $0x158] sm:$0xff] %v502_v47  ;;  %v506_v49 = vld [vmem:[%s2003_s23 + $0x2d0] sm:$0xff] }
  0x4a   : > { %505 = vst [vmem:[%s2008_s30 + $0x160] sm:$0xff] %v504_v48  ;;  %v508_v50 = vld [vmem:[%s2003_s23 + $0x2e0] sm:$0xff]  ;;  %v510_v51 = vld [vmem:[%s2003_s23 + $0x2f0] sm:$0xff]  ;;  %507 = vst [vmem:[%s2008_s30 + $0x168] sm:$0xff] %v506_v49 }
  0x4b   : > { %509 = vst [vmem:[%s2008_s30 + $0x170] sm:$0xff] %v508_v50  ;;  %511 = vst [vmem:[%s2008_s30 + $0x178] sm:$0xff] %v510_v51  ;;  %v512_v52 = vld [vmem:[%s2003_s23 + $0x300] sm:$0xff]  ;;  %v514_v53 = vld [vmem:[%s2003_s23 + $0x310] sm:$0xff] }
  0x4c   : > { %v516_v54 = vld [vmem:[%s2003_s23 + $0x320] sm:$0xff]  ;;  %513 = vst [vmem:[%s2008_s30 + $0x180] sm:$0xff] %v512_v52  ;;  %515 = vst [vmem:[%s2008_s30 + $0x188] sm:$0xff] %v514_v53  ;;  %v518_v55 = vld [vmem:[%s2003_s23 + $0x330] sm:$0xff] }
  0x4d   : > { %517 = vst [vmem:[%s2008_s30 + $0x190] sm:$0xff] %v516_v54  ;;  %v520_v56 = vld [vmem:[%s2003_s23 + $0x340] sm:$0xff]  ;;  %v522_v57 = vld [vmem:[%s2003_s23 + $0x350] sm:$0xff]  ;;  %519 = vst [vmem:[%s2008_s30 + $0x198] sm:$0xff] %v518_v55 }
  0x4e   : > { %521 = vst [vmem:[%s2008_s30 + $0x1a0] sm:$0xff] %v520_v56  ;;  %523 = vst [vmem:[%s2008_s30 + $0x1a8] sm:$0xff] %v522_v57  ;;  %v524_v58 = vld [vmem:[%s2003_s23 + $0x360] sm:$0xff]  ;;  %v526_v59 = vld [vmem:[%s2003_s23 + $0x370] sm:$0xff] }
  0x4f   : > { %v528_v60 = vld [vmem:[%s2003_s23 + $0x380] sm:$0xff]  ;;  %525 = vst [vmem:[%s2008_s30 + $0x1b0] sm:$0xff] %v524_v58  ;;  %527 = vst [vmem:[%s2008_s30 + $0x1b8] sm:$0xff] %v526_v59  ;;  %v530_v61 = vld [vmem:[%s2003_s23 + $0x390] sm:$0xff] }
  0x50   : > { %529 = vst [vmem:[%s2008_s30 + $0x1c0] sm:$0xff] %v528_v60  ;;  %v532_v62 = vld [vmem:[%s2003_s23 + $0x3a0] sm:$0xff]  ;;  %v534_v63 = vld [vmem:[%s2003_s23 + $0x3b0] sm:$0xff]  ;;  %531 = vst [vmem:[%s2008_s30 + $0x1c8] sm:$0xff] %v530_v61 }
  0x51   : > { %533 = vst [vmem:[%s2008_s30 + $0x1d0] sm:$0xff] %v532_v62  ;;  %535 = vst [vmem:[%s2008_s30 + $0x1d8] sm:$0xff] %v534_v63  ;;  %v536_v0 = vld [vmem:[%s2003_s23 + $0x3c0] sm:$0xff]  ;;  %v538_v1 = vld [vmem:[%s2003_s23 + $0x3d0] sm:$0xff] }
  0x52   : > { %v540_v2 = vld [vmem:[%s2003_s23 + $0x3e0] sm:$0xff]  ;;  %537 = vst [vmem:[%s2008_s30 + $0x1e0] sm:$0xff] %v536_v0  ;;  %539 = vst [vmem:[%s2008_s30 + $0x1e8] sm:$0xff] %v538_v1  ;;  %v542_v3 = vld [vmem:[%s2003_s23 + $0x3f0] sm:$0xff] }
  0x53   : > { %541 = vst [vmem:[%s2008_s30 + $0x1f0] sm:$0xff] %v540_v2  ;;  %543 = vst [vmem:[%s2008_s30 + $0x1f8] sm:$0xff] %v542_v3 }
  0x54 PF: > { %565 = sbr.rel (!%p1979_p11) target bundleno = 89 (0x59), region = 89  ;;  %s567_s0 = sand.u32 (%p1979_p11), 1, %s1810_s19  }
  0x55   : > { %s1565_s11 = sshll.u32 (%p1979_p11), %s1842_s27, 3  ;;  %s1476_s14 = sshll.u32 (%p1979_p11), %s567_s0, 4 }
  0x56   : > { %s575_s10 = scalar_lea.vmem (%p1979_p11), %s2299_s4, %s1565_s11  ;;  %s569_s6 = scalar_lea.vmem (%p1979_p11), [#allocation5], %s1476_s14 }
  0x57   : > { %v606_v4 = vld [vmem:[%s575_s10] sm:$0xff] (%p1979_p11)  ;;  %v608_v5 = vld [vmem:[%s575_s10 + $0x10] sm:$0xff] (%p1979_p11) }
  0x58   : > { %607 = vst [vmem:[%s569_s6] sm:$0xff] (%p1979_p11), %v606_v4  ;;  %609 = vst [vmem:[%s569_s6 + $0x8] sm:$0xff] (%p1979_p11), %v608_v5 }
  0x59 PF: > { %p1479_p1 = scmp.ge.s32.totalorder %s1846_s28, 1  ;;  %p614_p2 = scmp.lt.s32.totalorder %s1846_s28, 19 }
  0x5b   : > { %p615_p3 = pnand %p1479_p1, %p614_p2 }
  0x5c   : > { %s621_s23 = sand.u32 (!%p615_p3), 1, %s1822_s22   ;;  %s628_s7 = sand.u32 (!%p615_p3), 1, %s1814_s20  }
  0x5d   : > { %618 = sbr.rel (%p615_p3) target bundleno = 407 (0x197), region = 127  ;;  %s1480_s12 = sshll.u32 (!%p615_p3), %s621_s23, 5 }
  0x5e   : > { %s1481_s15 = sshll.u32 (!%p615_p3), %s628_s7, 9  ;;  %s635_s13 = sand.u32 (!%p615_p3), 1, %s1806_s18  }
  0x5f   : > { %s1484_s30 = sshll.u32 (!%p615_p3), %s1834_s25, 1  ;;  %s2148_s0 = sshll.u32 (!%p615_p3), %s635_s13, 4 }
  0x60   : > { %p682_p4 = scmp.lt.s32.totalorder (!%p615_p3), %s1484_s30, 3  ;;  %s2160_s10 = scalar_lea.vmem (!%p615_p3), [#allocation3], %s1480_s12 }
  0x61   : > { %s2162_s18 = scalar_lea.vmem (!%p615_p3), [#allocation4], %s1481_s15  ;;  %s637_s6 = scalar_lea.vmem (!%p615_p3), [#allocation5], %s2148_s0 }
  0x62   : > { %s2333_s30 = smov (!%p682_p4, %s1484_s30), 3  ;;  %s2166_s23 = scalar_lea.vmem [#allocation6], %s2148_s0 }
  0x63   : > { %s684_s29 = scalar_lea.vmem %s2297_s2, %s2333_s30  ;;  %s689_s20 = scalar_lea.vmem %s2298_s3, %s2333_s30 }
  0x64   : > { %p1486_p5 = scmp.ne.s32.totalorder %s1830_s24, 0 }
  0x66   : > { %698 = sbr.rel (%p1486_p5) target bundleno = 110 (0x6e), region = 143 }
  0x6b   : > { %v1848_v6 = vmov 0.0  }
  0x6c   : > { %699 = vst [vmem:[#allocation2 + $0x10] sm:$0xff] %v1848_v6  ;;  %700 = vst [vmem:[#allocation2] sm:$0xff] %v1848_v6 }
  0x6d   : > { %701 = vst [vmem:[#allocation2 + $0x18] sm:$0xff] %v1848_v6  ;;  %702 = vst [vmem:[#allocation2 + $0x8] sm:$0xff] %v1848_v6 }
  0x6e PF: > { %v1658_v7 = vld [vmem:[%s2162_s18 + $0x74] ss:$8 sps:$4 sm:$0xff]   ;;  %v1662_v9 = vld [vmem:[%s2162_s18 + $0x70] ss:$8 sps:$4 sm:$0xff]   ;;  %v1664_v11 = vld [vmem:[%s2162_s18 + $0x64] ss:$8 sps:$4 sm:$0xff]  }
  0x6f   : > { %v1660_v8 = vld [vmem:[%s2162_s18 + $0x174] ss:$8 sps:$4 sm:$0xff]   ;;  %1115 = vmatprep.subr.bf16.mxu0 %v1658_v7  ;;  %v1663_v10 = vld [vmem:[%s2162_s18 + $0x170] ss:$8 sps:$4 sm:$0xff]   ;;  %v1666_v12 = vld [vmem:[%s2162_s18 + $0x164] ss:$8 sps:$4 sm:$0xff]  }
  0x70   : > { %1158 = vmatprep.subr.bf16.mxu1 %v1660_v8  ;;  %1116 = vmatpush1.bf16.msra.mxu0 %v1662_v9  ;;  %v1668_v13 = vld [vmem:[%s2162_s18 + $0x60] ss:$8 sps:$4 sm:$0xff]   ;;  %v1670_v15 = vld [vmem:[%s2162_s18 + $0x54] ss:$8 sps:$4 sm:$0xff]   ;;  %v1674_v17 = vld [vmem:[%s2162_s18 + $0x50] ss:$8 sps:$4 sm:$0xff]  }
  0x71   : > { %1159 = vmatpush1.bf16.msra.mxu1 %v1663_v10  ;;  %1117 = vmatprep.subr.bf16.mxu0 %v1664_v11  ;;  %v1669_v14 = vld [vmem:[%s2162_s18 + $0x160] ss:$8 sps:$4 sm:$0xff]   ;;  %v1672_v16 = vld [vmem:[%s2162_s18 + $0x154] ss:$8 sps:$4 sm:$0xff]   ;;  %v1675_v18 = vld [vmem:[%s2162_s18 + $0x150] ss:$8 sps:$4 sm:$0xff]  }
  0x72   : > { %1160 = vmatprep.subr.bf16.mxu1 %v1666_v12  ;;  %v1676_v19 = vld [vmem:[%s2162_s18 + $0x44] ss:$8 sps:$4 sm:$0xff]   ;;  %v1680_v21 = vld [vmem:[%s2162_s18 + $0x40] ss:$8 sps:$4 sm:$0xff]   ;;  %v1682_v23 = vld [vmem:[%s2162_s18 + $0x34] ss:$8 sps:$4 sm:$0xff]  }
  0x73   : > { %v1678_v20 = vld [vmem:[%s2162_s18 + $0x144] ss:$8 sps:$4 sm:$0xff]   ;;  %v1681_v22 = vld [vmem:[%s2162_s18 + $0x140] ss:$8 sps:$4 sm:$0xff]   ;;  %v1684_v24 = vld [vmem:[%s2162_s18 + $0x134] ss:$8 sps:$4 sm:$0xff]  }
  0x74   : > { %1118 = vmatpush1.bf16.msra.mxu0 %v1668_v13  ;;  %v1686_v25 = vld [vmem:[%s2162_s18 + $0x30] ss:$8 sps:$4 sm:$0xff]   ;;  %v1688_v27 = vld [vmem:[%s2162_s18 + $0x24] ss:$8 sps:$4 sm:$0xff]   ;;  %v1692_v29 = vld [vmem:[%s2162_s18 + $0x20] ss:$8 sps:$4 sm:$0xff]  }
  0x75   : > { %1161 = vmatpush1.bf16.msra.mxu1 %v1669_v14  ;;  %1119 = vmatprep.subr.bf16.mxu0 %v1670_v15  ;;  %v1687_v26 = vld [vmem:[%s2162_s18 + $0x130] ss:$8 sps:$4 sm:$0xff]   ;;  %v1690_v28 = vld [vmem:[%s2162_s18 + $0x124] ss:$8 sps:$4 sm:$0xff]   ;;  %v1693_v30 = vld [vmem:[%s2162_s18 + $0x120] ss:$8 sps:$4 sm:$0xff]  }
  0x76   : > { %1162 = vmatprep.subr.bf16.mxu1 %v1672_v16  ;;  %v1694_v31 = vld [vmem:[%s2162_s18 + $0x14] ss:$8 sps:$4 sm:$0xff]   ;;  %v1698_v33 = vld [vmem:[%s2162_s18 + $0x10] ss:$8 sps:$4 sm:$0xff]   ;;  %v1700_v35 = vld [vmem:[%s2162_s18 + $0x4] ss:$8 sps:$4 sm:$0xff]  }
  0x77   : > { %v1696_v32 = vld [vmem:[%s2162_s18 + $0x114] ss:$8 sps:$4 sm:$0xff]   ;;  %v1699_v34 = vld [vmem:[%s2162_s18 + $0x110] ss:$8 sps:$4 sm:$0xff]   ;;  %v1702_v36 = vld [vmem:[%s2162_s18 + $0x104] ss:$8 sps:$4 sm:$0xff]  }
  0x78   : > { %1120 = vmatpush1.bf16.msra.mxu0 %v1674_v17  ;;  %v1704_v37 = vld [vmem:[%s2162_s18] ss:$8 sps:$4 sm:$0xff]   ;;  %v1706_v39 = vld [vmem:[%s2162_s18 + $0xf4] ss:$8 sps:$4 sm:$0xff]   ;;  %v1710_v41 = vld [vmem:[%s2162_s18 + $0xf0] ss:$8 sps:$4 sm:$0xff]  }
  0x79   : > { %1163 = vmatpush1.bf16.msra.mxu1 %v1675_v18  ;;  %1121 = vmatprep.subr.bf16.mxu0 %v1676_v19  ;;  %v1705_v38 = vld [vmem:[%s2162_s18 + $0x100] ss:$8 sps:$4 sm:$0xff]   ;;  %v1708_v40 = vld [vmem:[%s2162_s18 + $0x1f4] ss:$8 sps:$4 sm:$0xff]   ;;  %v1711_v42 = vld [vmem:[%s2162_s18 + $0x1f0] ss:$8 sps:$4 sm:$0xff]  }
  0x7a   : > { %1164 = vmatprep.subr.bf16.mxu1 %v1678_v20  ;;  %v1712_v43 = vld [vmem:[%s2162_s18 + $0xe4] ss:$8 sps:$4 sm:$0xff]   ;;  %v1716_v45 = vld [vmem:[%s2162_s18 + $0xe0] ss:$8 sps:$4 sm:$0xff]   ;;  %v1718_v47 = vld [vmem:[%s2162_s18 + $0xd4] ss:$8 sps:$4 sm:$0xff]  }
  0x7b   : > { %v1714_v44 = vld [vmem:[%s2162_s18 + $0x1e4] ss:$8 sps:$4 sm:$0xff]   ;;  %v1717_v46 = vld [vmem:[%s2162_s18 + $0x1e0] ss:$8 sps:$4 sm:$0xff]   ;;  %v1720_v48 = vld [vmem:[%s2162_s18 + $0x1d4] ss:$8 sps:$4 sm:$0xff]  }
  0x7c   : > { %1122 = vmatpush1.bf16.msra.mxu0 %v1680_v21  ;;  %v1722_v49 = vld [vmem:[%s2162_s18 + $0xd0] ss:$8 sps:$4 sm:$0xff]   ;;  %v1724_v51 = vld [vmem:[%s2162_s18 + $0xc4] ss:$8 sps:$4 sm:$0xff]   ;;  %v1728_v53 = vld [vmem:[%s2162_s18 + $0xc0] ss:$8 sps:$4 sm:$0xff]  }
  0x7d   : > { %1165 = vmatpush1.bf16.msra.mxu1 %v1681_v22  ;;  %1123 = vmatprep.subr.bf16.mxu0 %v1682_v23  ;;  %v1723_v50 = vld [vmem:[%s2162_s18 + $0x1d0] ss:$8 sps:$4 sm:$0xff]   ;;  %v1726_v52 = vld [vmem:[%s2162_s18 + $0x1c4] ss:$8 sps:$4 sm:$0xff]   ;;  %v1729_v55 = vld [vmem:[%s2162_s18 + $0x1c0] ss:$8 sps:$4 sm:$0xff]  }
  0x7e   : > { %1166 = vmatprep.subr.bf16.mxu1 %v1684_v24  ;;  %v1756_v54 = vld [vmem:[%s2160_s10 + $0x4] ss:$16 sps:$4 sm:$0xff]   ;;  %v1759_v58 = vld [vmem:[%s2160_s10 + $0xc] ss:$16 sps:$4 sm:$0xff]   ;;  %v1734_v59 = vld [vmem:[%s2162_s18 + $0xb0] ss:$8 sps:$4 sm:$0xff]  }
  0x7f   : > { %v1730_v56 = vld [vmem:[%s2162_s18 + $0xb4] ss:$8 sps:$4 sm:$0xff]   ;;  %1147 = vmatprep.mubr.bf16.mxu0 %v1756_v54  ;;  %1190 = vmatprep.mubr.bf16.mxu1 %v1759_v58  ;;  %v1735_v60 = vld [vmem:[%s2162_s18 + $0x1b0] ss:$8 sps:$4 sm:$0xff]   ;;  %v1736_v61 = vld [vmem:[%s2162_s18 + $0xa4] ss:$8 sps:$4 sm:$0xff]  }
  0x80   : > { %1124 = vmatpush1.bf16.msra.mxu0 %v1686_v25  ;;  %v1732_v57 = vld [vmem:[%s2162_s18 + $0x1b4] ss:$8 sps:$4 sm:$0xff]   ;;  %v1738_v62 = vld [vmem:[%s2162_s18 + $0x1a4] ss:$8 sps:$4 sm:$0xff]   ;;  %v1740_v63 = vld [vmem:[%s2162_s18 + $0xa0] ss:$8 sps:$4 sm:$0xff]  }
  0x81   : > { %1167 = vmatpush1.bf16.msra.mxu1 %v1687_v26  ;;  %1125 = vmatprep.subr.bf16.mxu0 %v1688_v27  ;;  %v1741_v0 = vld [vmem:[%s2162_s18 + $0x1a0] ss:$8 sps:$4 sm:$0xff]   ;;  %v1742_v1 = vld [vmem:[%s2162_s18 + $0x94] ss:$8 sps:$4 sm:$0xff]   ;;  %v1746_v3 = vld [vmem:[%s2162_s18 + $0x90] ss:$8 sps:$4 sm:$0xff]  }
  0x82   : > { %1168 = vmatprep.subr.bf16.mxu1 %v1690_v28  ;;  %v1744_v2 = vld [vmem:[%s2162_s18 + $0x194] ss:$8 sps:$4 sm:$0xff]   ;;  %v1747_v4 = vld [vmem:[%s2162_s18 + $0x190] ss:$8 sps:$4 sm:$0xff]   ;;  %v1748_v5 = vld [vmem:[%s2162_s18 + $0x84] ss:$8 sps:$4 sm:$0xff]  }
  0x83   : > { %v1750_v6 = vld [vmem:[%s2162_s18 + $0x184] ss:$8 sps:$4 sm:$0xff]   ;;  %v1752_v7 = vld [vmem:[%s2162_s18 + $0x80] ss:$8 sps:$4 sm:$0xff]   ;;  %v703_v12 = vld [vmem:[#allocation2 + $0x10] sm:$0xff]  ;;  %p1555_p6 = scmp.ne.s32.totalorder %s1830_s24, 8 }
  0x84   : > { %1126 = vmatpush1.bf16.msra.mxu0 %v1692_v29  ;;  %v1753_v8 = vld [vmem:[%s2162_s18 + $0x180] ss:$8 sps:$4 sm:$0xff]   ;;  %v705_v21 = vld [vmem:[#allocation2 + $0x18] sm:$0xff] }
  0x85   : > { %1169 = vmatpush1.bf16.msra.mxu1 %v1693_v30  ;;  %1127 = vmatprep.subr.bf16.mxu0 %v1694_v31  ;;  %v1754_v9 = vld [vmem:[%s2160_s10] ss:$16 sps:$4 sm:$0xff]   ;;  %v1757_v10 = vld [vmem:[%s2160_s10 + $0x8] ss:$16 sps:$4 sm:$0xff]  }
  0x86   : > { %1170 = vmatprep.subr.bf16.mxu1 %v1696_v32  ;;  %v704_v16 = vld [vmem:[#allocation2] sm:$0xff]  ;;  %v706_v26 = vld [vmem:[#allocation2 + $0x8] sm:$0xff] }
  0x88   : > { %1128 = vmatpush1.bf16.msra.mxu0 %v1698_v33 }
  0x89   : > { %1171 = vmatpush1.bf16.msra.mxu1 %v1699_v34  ;;  %1129 = vmatprep.subr.bf16.mxu0 %v1700_v35 }
  0x8a   : > { %1172 = vmatprep.subr.bf16.mxu1 %v1702_v36 }
  0x8c   : > { %1130 = vmatpush1.bf16.msra.mxu0 %v1704_v37 }
  0x8d   : > { %1173 = vmatpush1.bf16.msra.mxu1 %v1705_v38  ;;  %1131 = vmatprep.subr.bf16.mxu0 %v1706_v39 }
  0x8e   : > { %1174 = vmatprep.subr.bf16.mxu1 %v1708_v40 }
  0x90   : > { %1132 = vmatpush2.bf16.msra.mxu0 %v1710_v41 }
  0x91   : > { %1175 = vmatpush2.bf16.msra.mxu1 %v1711_v42  ;;  %1133 = vmatprep.subr.bf16.mxu0 %v1712_v43 }
  0x92   : > { %1176 = vmatprep.subr.bf16.mxu1 %v1714_v44 }
  0x94   : > { %1134 = vmatpush2.bf16.msra.mxu0 %v1716_v45 }
  0x95   : > { %1177 = vmatpush2.bf16.msra.mxu1 %v1717_v46  ;;  %1135 = vmatprep.subr.bf16.mxu0 %v1718_v47 }
  0x96   : > { %1178 = vmatprep.subr.bf16.mxu1 %v1720_v48 }
  0x98   : > { %1136 = vmatpush2.bf16.msra.mxu0 %v1722_v49 }
  0x99   : > { %1179 = vmatpush2.bf16.msra.mxu1 %v1723_v50  ;;  %1137 = vmatprep.subr.bf16.mxu0 %v1724_v51 }
  0x9a   : > { %1180 = vmatprep.subr.bf16.mxu1 %v1726_v52 }
  0x9c   : > { %1138 = vmatpush2.bf16.msra.mxu0 %v1728_v53 }
  0x9d   : > { %1181 = vmatpush2.bf16.msra.mxu1 %v1729_v55  ;;  %1139 = vmatprep.subr.bf16.mxu0 %v1730_v56 }
  0x9e   : > { %1182 = vmatprep.subr.bf16.mxu1 %v1732_v57 }
  0xa0   : > { %1140 = vmatpush2.bf16.msra.mxu0 %v1734_v59 }
  0xa1   : > { %1183 = vmatpush2.bf16.msra.mxu1 %v1735_v60  ;;  %1141 = vmatprep.subr.bf16.mxu0 %v1736_v61 }
  0xa2   : > { %1184 = vmatprep.subr.bf16.mxu1 %v1738_v62 }
  0xa4   : > { %1142 = vmatpush2.bf16.msra.mxu0 %v1740_v63 }
  0xa5   : > { %1185 = vmatpush2.bf16.msra.mxu1 %v1741_v0  ;;  %1143 = vmatprep.subr.bf16.mxu0 %v1742_v1 }
  0xa6   : > { %1186 = vmatprep.subr.bf16.mxu1 %v1744_v2 }
  0xa8   : > { %1144 = vmatpush2.bf16.msra.mxu0 %v1746_v3 }
  0xa9   : > { %1187 = vmatpush2.bf16.msra.mxu1 %v1747_v4  ;;  %1145 = vmatprep.subr.bf16.mxu0 %v1748_v5 }
  0xaa   : > { %1188 = vmatprep.subr.bf16.mxu1 %v1750_v6 }
  0xac   : > { %1146 = vmatpush2.bf16.msra.mxu0 %v1752_v7 }
  0xad   : > { %1189 = vmatpush2.bf16.msra.mxu1 %v1753_v8 }
  0xaf   : > { %1148 = vmatmul.mubr.bf16.vlgmr.msra.gmra.mxu0 %v1754_v9 }
  0xb0   : > { %1191 = vmatmul.mubr.bf16.vlgmr.msra.gmra.mxu1 %v1757_v10 }
 0x16f   : > { %v1149_v11 = vpop.f32.mrf.mxu0 }
 0x170   : > { %v1192_v13 = vpop.f32.mrf.mxu1 }
 0x171   : > { %v1193_v14 = vadd.f32 %v1192_v13, %v1149_v11  ;;  %v1151_v15 = vpop.f32.mrf.mxu0 }
 0x172   : > { %v1194_v17 = vpop.f32.mrf.mxu1 }
 0x173   : > { %v1201_v18 = vadd.f32 %v1193_v14, %v703_v12  ;;  %v1195_v19 = vadd.f32 %v1194_v17, %v1151_v15  ;;  %v1153_v20 = vpop.f32.mrf.mxu0 }
 0x174   : > { %v1196_v22 = vpop.f32.mrf.mxu1 }
 0x175   : > { %1205 = vst [vmem:[#allocation2 + $0x10] sm:$0xff] %v1201_v18  ;;  %v1202_v23 = vadd.f32 %v1195_v19, %v704_v16  ;;  %v1197_v24 = vadd.f32 %v1196_v22, %v1153_v20  ;;  %v1155_v25 = vpop.f32.mrf.mxu0 }
 0x176   : > { %v1198_v27 = vpop.f32.mrf.mxu1 }
 0x177   : > { %1206 = vst [vmem:[#allocation2] sm:$0xff] %v1202_v23  ;;  %v1203_v28 = vadd.f32 %v1197_v24, %v705_v21  ;;  %v1199_v29 = vadd.f32 %v1198_v27, %v1155_v25  ;;  %1212 = sbr.rel (%p1555_p6) target bundleno = 399 (0x18f), region = 147 }
 0x179   : > { %1207 = vst [vmem:[#allocation2 + $0x18] sm:$0xff] %v1203_v28  ;;  %v1204_v30 = vadd.f32 %v1199_v29, %v706_v26 }
 0x17b   : > { %1208 = vst [vmem:[#allocation2 + $0x8] sm:$0xff] %v1204_v30 }
 0x17c   : > { %v1219_v31 = vlaneseq  ;;  %v1217_v33 = vld [vmem:[%s684_s29] sm:$0x3]  ;;  %v1213_v35 = vld [vmem:[#allocation2 + $0x10] sm:$0xff]  ;;  %v1250_v39 = vld [vmem:[%s637_s6 + $0x8] sm:$0xff] }
 0x17d   : > { %v1233_v34 = vld [vmem:[%s689_s20] sm:$0x3]  ;;  %v1253_v49 = vunpack.c.l.bf16 %v1250_v39  ;;  %v1254_v50 = vunpack.c.h.bf16 %v1250_v39 }
 0x17e   : > { %v1220_v32 = vshrl.u32 %v1219_v31, 7  ;;  %v1249_v38 = vld [vmem:[%s637_s6] sm:$0xff] }
 0x17f   : > { %v1214_v40 = vld [vmem:[#allocation2] sm:$0xff]  ;;  %v1251_v47 = vunpack.c.l.bf16 %v1249_v38  ;;  %v1252_v48 = vunpack.c.h.bf16 %v1249_v38 }
 0x180   : > { %v1221_v36 = vsub.s32 0, %v1220_v32  ;;  %v1225_v37 = vsub.s32 1, %v1220_v32  ;;  %v1215_v41 = vld [vmem:[#allocation2 + $0x18] sm:$0xff] }
 0x182   : > { %v1216_v42 = vld [vmem:[#allocation2 + $0x8] sm:$0xff]  ;;  %v1222_v43 = vrot.slane %v1217_v33, %v1221_v36  ;;  %v1226_v44 = vrot.slane %v1217_v33, %v1225_v37  ;;  %v1238_v45 = vrot.slane %v1233_v34, %v1221_v36  ;;  %v1242_v46 = vrot.slane %v1233_v34, %v1225_v37 }
 0x184   : > { %v1229_v51 = vmul.f32 %v1222_v43, %v1213_v35  ;;  %v1230_v52 = vmul.f32 %v1226_v44, %v1214_v40  ;;  %v1231_v53 = vmul.f32 %v1222_v43, %v1215_v41  ;;  %v1232_v54 = vmul.f32 %v1226_v44, %v1216_v42 }
 0x186   : > { %v1245_v55 = vadd.f32 %v1238_v45, %v1229_v51  ;;  %v1246_v56 = vadd.f32 %v1242_v46, %v1230_v52  ;;  %v1247_v57 = vadd.f32 %v1238_v45, %v1231_v53  ;;  %v1248_v58 = vadd.f32 %v1242_v46, %v1232_v54 }
 0x188   : > { %v1255_v59 = vadd.f32 %v1251_v47, %v1245_v55  ;;  %v1256_v60 = vadd.f32 %v1252_v48, %v1246_v56  ;;  %v1257_v61 = vadd.f32 %v1253_v49, %v1247_v57  ;;  %v1258_v62 = vadd.f32 %v1254_v50, %v1248_v58 }
 0x18a   : > { %v1259_v63 = vmax.f32 %v1255_v59, 0.0  ;;  %v1260_v0 = vmax.f32 %v1256_v60, 0.0  ;;  %v1261_v1 = vmax.f32 %v1257_v61, 0.0  ;;  %v1262_v2 = vmax.f32 %v1258_v62, 0.0 }
 0x18c   : > { %v1566_v3 = vpack.c.bf16 %v1260_v0, %v1259_v63  ;;  %v1567_v4 = vpack.c.bf16 %v1262_v2, %v1261_v1 }
 0x18e   : > { %1275 = vst [vmem:[%s2166_s23] sm:$0xff] %v1566_v3  ;;  %1276 = vst [vmem:[%s2166_s23 + $0x8] sm:$0xff] %v1567_v4 }
 0x18f PF: > { %1283 = sbr.rel (!%p1983_p13) target bundleno = 407 (0x197), region = 151  ;;  %s1568_s24 = sshll.u32 (%p1983_p13), %s1834_s25, 3 }
 0x190   : > { %s1289_s11 = scalar_lea.vmem (%p1983_p13), %s2300_s5, %s1568_s24 }
 0x195   : > { %v1320_v5 = vld [vmem:[%s2166_s23] sm:$0xff]  ;;  %v1322_v6 = vld [vmem:[%s2166_s23 + $0x8] sm:$0xff] }
 0x196   : > { %1321 = vst [vmem:[%s1289_s11] sm:$0xff] %v1320_v5  ;;  %1323 = vst [vmem:[%s1289_s11 + $0x10] sm:$0xff] %v1322_v6 }
 0x197 PF: > { %s15_s28 = sadd.s32 1, %s1846_s28   ;;  %s2314_s22 = sld [smem:[#allocation7_spill]] }
 0x198   : > { %p12_p7 = scmp.ge.s32.totalorder %s15_s28, 20   ;;  %s2315_s23 = sld [smem:[#allocation10_spill]] }
 0x199   : > { %s2316_s8 = sld [smem:[#allocation8_spill]]  ;;  %s2318_s18 = smov %s1810_s19 }
 0x19a   : > { %s2317_s14 = sld [smem:[#allocation9_spill]]  ;;  %s2319_s19 = smov %s1975_s17 }
 0x19b   : > { %s2320_s20 = smov %s1818_s21  ;;  %s2321_s21 = smov %s1972_s16 }
 0x19c   : > { %s2322_s24 = smov %s1838_s26  ;;  %s2323_s25 = smov %s1842_s27 }
 0x19d   :  { %14 = sbr.rel (!%p12_p7) target bundleno = 8 (0x8), region = 242 }
 0x19f   : > { %s2324_s26 = smov %s2316_s8 }
 0x1a0   : > { %s2325_s27 = smov %s2317_s14 }

// kernel: violence_classifier_forward.41
= control target key start
LH: loop header
LB: loop body
LE: loop exit
PB: predicated region body
PF: predicated region fallthrough
CT: control target
= control target key end

     0   :  { %s2135_s0 = inlined_call_operand.vmem [shape: bf16[16,4608], index: 0, kind: input, shape index: {}]   ;;  %s2136_s1 = inlined_call_operand.vmem [shape: bf16[4608,512], index: 1, kind: input, shape index: {}]   ;;  %s2137_s2 = inlined_call_operand.vmem [shape: f32[1,512], index: 2, kind: input, shape index: {}]   ;;  %s2138_s3 = inlined_call_operand.vmem [shape: f32[1,512], index: 3, kind: input, shape index: {}]   ;;  %s2139_s4 = inlined_call_operand.vmem [shape: bf16[16,512], index: 4, kind: output, shape index: {}]  }
   0x1   :  { %2142 = sst [smem:[#allocation8_spill]] %s2135_s0 }
   0x2   :  { %2143 = sst [smem:[#allocation9_spill]] %s2136_s1 }
   0x3   :  { %s1744_s15 = smov 0   ;;  %s1746_s16 = smov 0  }
   0x4   :  { %s1748_s17 = smov 0   ;;  %s1750_s18 = smov 0  }
   0x5   :  { %s1752_s19 = smov 0   ;;  %s1754_s20 = smov 0  }
   0x6   :  { %s1756_s21 = smov 0   ;;  %s1758_s22 = smov 0  }
   0x7   :  { %s1760_s23 = smov 0   ;;  %s1762_s24 = smov 0  }
   0x8   :  { %s1764_s25 = smov 0  }
   0x9 LB: > { %s1339_s26 = sadd.s32 4294967295, %s1716_s25   ;;  %s26_s27 = sadd.s32 1, %s1708_s23  ;;  %s1716_s25 = sphi %s1764_s25, %s14_s25   ;;  %s1712_s24 = sphi %s1762_s24, %s2162_s24   ;;  %s1708_s23 = sphi %s1760_s23, %s2161_s23   ;;  %s1704_s22 = sphi %s1758_s22, %s2160_s22   ;;  %s1700_s21 = sphi %s1756_s21, %s2159_s21   ;;  %s1696_s20 = sphi %s1754_s20, %s2158_s20   ;;  %s1692_s19 = sphi %s1752_s19, %s2157_s19   ;;  %s1688_s18 = sphi %s1750_s18, %s2156_s18   ;;  %s1684_s17 = sphi %s1748_s17, %s2155_s17   ;;  %s1680_s16 = sphi %s1746_s16, %s2154_s16   ;;  %s1676_s15 = sphi %s1744_s15, %s2153_s15  }
   0xa   : > { %p27_p0 = scmp.ge.s32.totalorder %s26_s27, 9  ;;  %s29_s28 = sadd.s32 1, %s1712_s24 }
   0xb   : > { %s42_s29 = sadd.s32 1, %s1696_s20  ;;  %p49_p1 = scmp.ne.s32.totalorder %s1696_s20, %s1692_s19 }
   0xc   : > { %s2164_s27 = smov (%p27_p0, %s26_s27), 0  ;;  %s2166_s28 = smov (!%p27_p0, %s29_s28), %s1712_s24 }
   0xd   : > { %2144 = sst [smem:[#allocation6_spill]] %s2164_s27  ;;  %s38_s30 = ssub.s32 %s1708_s23, %s2164_s27 }
   0xe   : > { %p50_p2 = scmp.eq.s32.totalorder %s1716_s25, 0  ;;  %p31_p3 = scmp.ge.s32.totalorder %s2166_s28, 2 }
   0xf   : > { %p40_p4 = scmp.eq.s32.totalorder %s38_s30, 0  ;;  %s70_s6 = sadd.s32 1, %s1688_s18 }
  0x10   : > { %p1811_p5 = por %p50_p2, %p49_p1  ;;  %s2168_s28 = smov (%p31_p3, %s2166_s28), 0 }
  0x11   : > { %2146 = sst [smem:[#allocation7_spill]] %s2168_s28  ;;  %s66_s8 = ssub.s32 %s1712_s24, %s2168_s28 }
  0x12   : > { %s1819_s7 = scalar_select %p40_p4, %s1696_s20, %s42_s29  }
  0x13   : > { %p77_p6 = scmp.ne.s32.totalorder %s1688_s18, %s1684_s17  ;;  %s67_s9 = sor.u32 %s66_s8, %s38_s30 }
  0x14   : > { %p148_p7 = scmp.eq.s32.totalorder %s66_s8, 0  ;;  %p68_p8 = scmp.eq.s32.totalorder %s67_s9, 0 }
  0x15   : > { %p1825_p9 = por %p77_p6, %p50_p2  ;;  %s150_s11 = sadd.s32 1, %s1680_s16 }
  0x16   : > { %p160_p10 = scmp.ne.s32.totalorder %s1680_s16, %s1676_s15  ;;  %p161_p11 = scmp.eq.s32.totalorder %s1339_s26, 17 }
  0x17   : > { %s1833_s12 = scalar_select %p68_p8, %s1688_s18, %s70_s6  }
  0x18   : > { %s1836_s13 = scalar_select %p148_p7, %s1680_s16, %s150_s11  }
  0x19   : > { %p1838_p12 = por %p161_p11, %p160_p10  ;;  %p1342_p13 = scmp.ge.s32.totalorder %s1716_s25, 18 }
  0x1b   : > { %183 = sbr.rel (%p1342_p13) target bundleno = 86 (0x56), region = 16 }
  0x20   : > { %186 = sbr.rel (!%p1811_p5) target bundleno = 44 (0x2c), region = 20  ;;  %s188_s29 = sand.u32 (%p1811_p5), 1, %s1696_s20  }
  0x21   : > { %s1434_s30 = sshll.u32 (%p1811_p5), %s1708_s23, 4  ;;  %s1343_s8 = sshll.u32 (%p1811_p5), %s188_s29, 5 }
  0x22   : > { %s2149_s0 = sld [smem:[#allocation8_spill]] (%p1811_p5)  ;;  %s190_s26 = scalar_lea.vmem (%p1811_p5), [#allocation3], %s1343_s8 }
  0x28   : > { %s196_s11 = scalar_lea.vmem %s2149_s0, %s1434_s30 }
  0x29   : > { %v209_v0 = vld [vmem:[%s196_s11] sm:$0xff]  ;;  %v211_v1 = vld [vmem:[%s196_s11 + $0x8] sm:$0xff]  ;;  %v213_v2 = vld [vmem:[%s196_s11 + $0x90] sm:$0xff] }
  0x2a   : > { %210 = vst [vmem:[%s190_s26] sm:$0xff] %v209_v0  ;;  %212 = vst [vmem:[%s190_s26 + $0x8] sm:$0xff] %v211_v1  ;;  %v215_v3 = vld [vmem:[%s196_s11 + $0x98] sm:$0xff] }
  0x2b   : > { %214 = vst [vmem:[%s190_s26 + $0x10] sm:$0xff] %v213_v2  ;;  %216 = vst [vmem:[%s190_s26 + $0x18] sm:$0xff] %v215_v3 }
  0x2c PF: > { %222 = sbr.rel (!%p1825_p9) target bundleno = 86 (0x56), region = 43  ;;  %s224_s5 = sand.u32 (%p1825_p9), 1, %s1688_s18  }
  0x2d   : > { %s1348_s29 = sshll.u32 (%p1825_p9), %s1712_s24, 1  ;;  %s1346_s6 = sshll.u32 (%p1825_p9), %s224_s5, 9 }
  0x2e   : > { %s1435_s30 = sshll.u32 (%p1825_p9), %s1708_s23, 8  ;;  %s2150_s1 = sld [smem:[#allocation9_spill]] (%p1825_p9) }
  0x2f   : > { %s230_s9 = sadd.s32 (%p1825_p9), %s1435_s30, %s1348_s29  ;;  %s1863_s10 = scalar_lea.vmem (%p1825_p9), [#allocation4], %s1346_s6 }
  0x30   : > { %s1350_s0 = sshll.u32 (%p1825_p9), %s230_s9, 2 }
  0x34   : > { %s1858_s27 = scalar_lea.vmem %s2150_s1, %s1350_s0 }
  0x35   : > { %v387_v4 = vld [vmem:[%s1858_s27] sm:$0xff]  ;;  %v389_v5 = vld [vmem:[%s1858_s27 + $0x10] sm:$0xff] }
  0x36   : > { %v391_v6 = vld [vmem:[%s1858_s27 + $0x20] sm:$0xff]  ;;  %388 = vst [vmem:[%s1863_s10] sm:$0xff] %v387_v4  ;;  %390 = vst [vmem:[%s1863_s10 + $0x8] sm:$0xff] %v389_v5  ;;  %v393_v7 = vld [vmem:[%s1858_s27 + $0x30] sm:$0xff] }
  0x37   : > { %392 = vst [vmem:[%s1863_s10 + $0x10] sm:$0xff] %v391_v6  ;;  %v395_v8 = vld [vmem:[%s1858_s27 + $0x40] sm:$0xff]  ;;  %v397_v9 = vld [vmem:[%s1858_s27 + $0x50] sm:$0xff]  ;;  %394 = vst [vmem:[%s1863_s10 + $0x18] sm:$0xff] %v393_v7 }
  0x38   : > { %396 = vst [vmem:[%s1863_s10 + $0x20] sm:$0xff] %v395_v8  ;;  %398 = vst [vmem:[%s1863_s10 + $0x28] sm:$0xff] %v397_v9  ;;  %v399_v10 = vld [vmem:[%s1858_s27 + $0x60] sm:$0xff]  ;;  %v401_v11 = vld [vmem:[%s1858_s27 + $0x70] sm:$0xff] }
  0x39   : > { %v403_v12 = vld [vmem:[%s1858_s27 + $0x80] sm:$0xff]  ;;  %400 = vst [vmem:[%s1863_s10 + $0x30] sm:$0xff] %v399_v10  ;;  %402 = vst [vmem:[%s1863_s10 + $0x38] sm:$0xff] %v401_v11  ;;  %v405_v13 = vld [vmem:[%s1858_s27 + $0x90] sm:$0xff] }
  0x3a   : > { %404 = vst [vmem:[%s1863_s10 + $0x40] sm:$0xff] %v403_v12  ;;  %v407_v14 = vld [vmem:[%s1858_s27 + $0xa0] sm:$0xff]  ;;  %v409_v15 = vld [vmem:[%s1858_s27 + $0xb0] sm:$0xff]  ;;  %406 = vst [vmem:[%s1863_s10 + $0x48] sm:$0xff] %v405_v13 }
  0x3b   : > { %408 = vst [vmem:[%s1863_s10 + $0x50] sm:$0xff] %v407_v14  ;;  %410 = vst [vmem:[%s1863_s10 + $0x58] sm:$0xff] %v409_v15  ;;  %v411_v16 = vld [vmem:[%s1858_s27 + $0xc0] sm:$0xff]  ;;  %v413_v17 = vld [vmem:[%s1858_s27 + $0xd0] sm:$0xff] }
  0x3c   : > { %v415_v18 = vld [vmem:[%s1858_s27 + $0xe0] sm:$0xff]  ;;  %412 = vst [vmem:[%s1863_s10 + $0x60] sm:$0xff] %v411_v16  ;;  %414 = vst [vmem:[%s1863_s10 + $0x68] sm:$0xff] %v413_v17  ;;  %v417_v19 = vld [vmem:[%s1858_s27 + $0xf0] sm:$0xff] }
  0x3d   : > { %416 = vst [vmem:[%s1863_s10 + $0x70] sm:$0xff] %v415_v18  ;;  %v419_v20 = vld [vmem:[%s1858_s27 + $0x100] sm:$0xff]  ;;  %v421_v21 = vld [vmem:[%s1858_s27 + $0x110] sm:$0xff]  ;;  %418 = vst [vmem:[%s1863_s10 + $0x78] sm:$0xff] %v417_v19 }
  0x3e   : > { %420 = vst [vmem:[%s1863_s10 + $0x80] sm:$0xff] %v419_v20  ;;  %422 = vst [vmem:[%s1863_s10 + $0x88] sm:$0xff] %v421_v21  ;;  %v423_v22 = vld [vmem:[%s1858_s27 + $0x120] sm:$0xff]  ;;  %v425_v23 = vld [vmem:[%s1858_s27 + $0x130] sm:$0xff] }
  0x3f   : > { %v427_v24 = vld [vmem:[%s1858_s27 + $0x140] sm:$0xff]  ;;  %424 = vst [vmem:[%s1863_s10 + $0x90] sm:$0xff] %v423_v22  ;;  %426 = vst [vmem:[%s1863_s10 + $0x98] sm:$0xff] %v425_v23  ;;  %v429_v25 = vld [vmem:[%s1858_s27 + $0x150] sm:$0xff] }
  0x40   : > { %428 = vst [vmem:[%s1863_s10 + $0xa0] sm:$0xff] %v427_v24  ;;  %v431_v26 = vld [vmem:[%s1858_s27 + $0x160] sm:$0xff]  ;;  %v433_v27 = vld [vmem:[%s1858_s27 + $0x170] sm:$0xff]  ;;  %430 = vst [vmem:[%s1863_s10 + $0xa8] sm:$0xff] %v429_v25 }
  0x41   : > { %432 = vst [vmem:[%s1863_s10 + $0xb0] sm:$0xff] %v431_v26  ;;  %434 = vst [vmem:[%s1863_s10 + $0xb8] sm:$0xff] %v433_v27  ;;  %v435_v28 = vld [vmem:[%s1858_s27 + $0x180] sm:$0xff]  ;;  %v437_v29 = vld [vmem:[%s1858_s27 + $0x190] sm:$0xff] }
  0x42   : > { %v439_v30 = vld [vmem:[%s1858_s27 + $0x1a0] sm:$0xff]  ;;  %436 = vst [vmem:[%s1863_s10 + $0xc0] sm:$0xff] %v435_v28  ;;  %438 = vst [vmem:[%s1863_s10 + $0xc8] sm:$0xff] %v437_v29  ;;  %v441_v31 = vld [vmem:[%s1858_s27 + $0x1b0] sm:$0xff] }
  0x43   : > { %440 = vst [vmem:[%s1863_s10 + $0xd0] sm:$0xff] %v439_v30  ;;  %v443_v32 = vld [vmem:[%s1858_s27 + $0x1c0] sm:$0xff]  ;;  %v445_v33 = vld [vmem:[%s1858_s27 + $0x1d0] sm:$0xff]  ;;  %442 = vst [vmem:[%s1863_s10 + $0xd8] sm:$0xff] %v441_v31 }
  0x44   : > { %444 = vst [vmem:[%s1863_s10 + $0xe0] sm:$0xff] %v443_v32  ;;  %446 = vst [vmem:[%s1863_s10 + $0xe8] sm:$0xff] %v445_v33  ;;  %v447_v34 = vld [vmem:[%s1858_s27 + $0x1e0] sm:$0xff]  ;;  %v449_v35 = vld [vmem:[%s1858_s27 + $0x1f0] sm:$0xff] }
  0x45   : > { %v451_v36 = vld [vmem:[%s1858_s27 + $0x200] sm:$0xff]  ;;  %448 = vst [vmem:[%s1863_s10 + $0xf0] sm:$0xff] %v447_v34  ;;  %450 = vst [vmem:[%s1863_s10 + $0xf8] sm:$0xff] %v449_v35  ;;  %v453_v37 = vld [vmem:[%s1858_s27 + $0x210] sm:$0xff] }
  0x46   : > { %452 = vst [vmem:[%s1863_s10 + $0x100] sm:$0xff] %v451_v36  ;;  %v455_v38 = vld [vmem:[%s1858_s27 + $0x220] sm:$0xff]  ;;  %v457_v39 = vld [vmem:[%s1858_s27 + $0x230] sm:$0xff]  ;;  %454 = vst [vmem:[%s1863_s10 + $0x108] sm:$0xff] %v453_v37 }
  0x47   : > { %456 = vst [vmem:[%s1863_s10 + $0x110] sm:$0xff] %v455_v38  ;;  %458 = vst [vmem:[%s1863_s10 + $0x118] sm:$0xff] %v457_v39  ;;  %v459_v40 = vld [vmem:[%s1858_s27 + $0x240] sm:$0xff]  ;;  %v461_v41 = vld [vmem:[%s1858_s27 + $0x250] sm:$0xff] }
  0x48   : > { %v463_v42 = vld [vmem:[%s1858_s27 + $0x260] sm:$0xff]  ;;  %460 = vst [vmem:[%s1863_s10 + $0x120] sm:$0xff] %v459_v40  ;;  %462 = vst [vmem:[%s1863_s10 + $0x128] sm:$0xff] %v461_v41  ;;  %v465_v43 = vld [vmem:[%s1858_s27 + $0x270] sm:$0xff] }
  0x49   : > { %464 = vst [vmem:[%s1863_s10 + $0x130] sm:$0xff] %v463_v42  ;;  %v467_v44 = vld [vmem:[%s1858_s27 + $0x280] sm:$0xff]  ;;  %v469_v45 = vld [vmem:[%s1858_s27 + $0x290] sm:$0xff]  ;;  %466 = vst [vmem:[%s1863_s10 + $0x138] sm:$0xff] %v465_v43 }
  0x4a   : > { %468 = vst [vmem:[%s1863_s10 + $0x140] sm:$0xff] %v467_v44  ;;  %470 = vst [vmem:[%s1863_s10 + $0x148] sm:$0xff] %v469_v45  ;;  %v471_v46 = vld [vmem:[%s1858_s27 + $0x2a0] sm:$0xff]  ;;  %v473_v47 = vld [vmem:[%s1858_s27 + $0x2b0] sm:$0xff] }
  0x4b   : > { %v475_v48 = vld [vmem:[%s1858_s27 + $0x2c0] sm:$0xff]  ;;  %472 = vst [vmem:[%s1863_s10 + $0x150] sm:$0xff] %v471_v46  ;;  %474 = vst [vmem:[%s1863_s10 + $0x158] sm:$0xff] %v473_v47  ;;  %v477_v49 = vld [vmem:[%s1858_s27 + $0x2d0] sm:$0xff] }
  0x4c   : > { %476 = vst [vmem:[%s1863_s10 + $0x160] sm:$0xff] %v475_v48  ;;  %v479_v50 = vld [vmem:[%s1858_s27 + $0x2e0] sm:$0xff]  ;;  %v481_v51 = vld [vmem:[%s1858_s27 + $0x2f0] sm:$0xff]  ;;  %478 = vst [vmem:[%s1863_s10 + $0x168] sm:$0xff] %v477_v49 }
  0x4d   : > { %480 = vst [vmem:[%s1863_s10 + $0x170] sm:$0xff] %v479_v50  ;;  %482 = vst [vmem:[%s1863_s10 + $0x178] sm:$0xff] %v481_v51  ;;  %v483_v52 = vld [vmem:[%s1858_s27 + $0x300] sm:$0xff]  ;;  %v485_v53 = vld [vmem:[%s1858_s27 + $0x310] sm:$0xff] }
  0x4e   : > { %v487_v54 = vld [vmem:[%s1858_s27 + $0x320] sm:$0xff]  ;;  %484 = vst [vmem:[%s1863_s10 + $0x180] sm:$0xff] %v483_v52  ;;  %486 = vst [vmem:[%s1863_s10 + $0x188] sm:$0xff] %v485_v53  ;;  %v489_v55 = vld [vmem:[%s1858_s27 + $0x330] sm:$0xff] }
  0x4f   : > { %488 = vst [vmem:[%s1863_s10 + $0x190] sm:$0xff] %v487_v54  ;;  %v491_v56 = vld [vmem:[%s1858_s27 + $0x340] sm:$0xff]  ;;  %v493_v57 = vld [vmem:[%s1858_s27 + $0x350] sm:$0xff]  ;;  %490 = vst [vmem:[%s1863_s10 + $0x198] sm:$0xff] %v489_v55 }
  0x50   : > { %492 = vst [vmem:[%s1863_s10 + $0x1a0] sm:$0xff] %v491_v56  ;;  %494 = vst [vmem:[%s1863_s10 + $0x1a8] sm:$0xff] %v493_v57  ;;  %v495_v58 = vld [vmem:[%s1858_s27 + $0x360] sm:$0xff]  ;;  %v497_v59 = vld [vmem:[%s1858_s27 + $0x370] sm:$0xff] }
  0x51   : > { %v499_v60 = vld [vmem:[%s1858_s27 + $0x380] sm:$0xff]  ;;  %496 = vst [vmem:[%s1863_s10 + $0x1b0] sm:$0xff] %v495_v58  ;;  %498 = vst [vmem:[%s1863_s10 + $0x1b8] sm:$0xff] %v497_v59  ;;  %v501_v61 = vld [vmem:[%s1858_s27 + $0x390] sm:$0xff] }
  0x52   : > { %500 = vst [vmem:[%s1863_s10 + $0x1c0] sm:$0xff] %v499_v60  ;;  %v503_v62 = vld [vmem:[%s1858_s27 + $0x3a0] sm:$0xff]  ;;  %v505_v63 = vld [vmem:[%s1858_s27 + $0x3b0] sm:$0xff]  ;;  %502 = vst [vmem:[%s1863_s10 + $0x1c8] sm:$0xff] %v501_v61 }
  0x53   : > { %504 = vst [vmem:[%s1863_s10 + $0x1d0] sm:$0xff] %v503_v62  ;;  %506 = vst [vmem:[%s1863_s10 + $0x1d8] sm:$0xff] %v505_v63  ;;  %v507_v0 = vld [vmem:[%s1858_s27 + $0x3c0] sm:$0xff]  ;;  %v509_v1 = vld [vmem:[%s1858_s27 + $0x3d0] sm:$0xff] }
  0x54   : > { %v511_v2 = vld [vmem:[%s1858_s27 + $0x3e0] sm:$0xff]  ;;  %508 = vst [vmem:[%s1863_s10 + $0x1e0] sm:$0xff] %v507_v0  ;;  %510 = vst [vmem:[%s1863_s10 + $0x1e8] sm:$0xff] %v509_v1  ;;  %v513_v3 = vld [vmem:[%s1858_s27 + $0x3f0] sm:$0xff] }
  0x55   : > { %512 = vst [vmem:[%s1863_s10 + $0x1f0] sm:$0xff] %v511_v2  ;;  %514 = vst [vmem:[%s1863_s10 + $0x1f8] sm:$0xff] %v513_v3 }
  0x56 PF: > { %p1351_p0 = scmp.ge.s32.totalorder %s1716_s25, 1  ;;  %p535_p1 = scmp.lt.s32.totalorder %s1716_s25, 19 }
  0x58   : > { %p536_p2 = pnand %p1351_p0, %p535_p1 }
  0x59   : > { %s542_s0 = sand.u32 (!%p536_p2), 1, %s1692_s19   ;;  %s549_s28 = sand.u32 (!%p536_p2), 1, %s1684_s17  }
  0x5a   : > { %539 = sbr.rel (%p536_p2) target bundleno = 400 (0x190), region = 89  ;;  %s1352_s11 = sshll.u32 (!%p536_p2), %s542_s0, 5 }
  0x5b   : > { %s1353_s26 = sshll.u32 (!%p536_p2), %s549_s28, 9  ;;  %s582_s5 = sand.u32 (!%p536_p2), 1, %s1676_s15  }
  0x5c   : > { %s1355_s29 = sshll.u32 (!%p536_p2), %s1704_s22, 1  ;;  %s1354_s27 = sshll.u32 (!%p536_p2), %s582_s5, 4 }
  0x5d   : > { %p590_p3 = scmp.lt.s32.totalorder (!%p536_p2), %s1355_s29, 3  ;;  %s2006_s19 = scalar_lea.vmem (!%p536_p2), [#allocation3], %s1352_s11 }
  0x5e   : > { %s2008_s17 = scalar_lea.vmem (!%p536_p2), [#allocation4], %s1353_s26  ;;  %s2010_s15 = scalar_lea.vmem (!%p536_p2), [#allocation5], %s1354_s27 }
  0x5f   : > { %s2170_s29 = smov (!%p590_p3, %s1355_s29), 3  ;;  %p1357_p4 = scmp.ne.s32.totalorder %s1700_s21, 0 }
  0x60   : > { %s592_s9 = scalar_lea.vmem %s2137_s2, %s2170_s29  ;;  %s597_s1 = scalar_lea.vmem %s2138_s3, %s2170_s29 }
  0x61   : > { %604 = sbr.rel (%p1357_p4) target bundleno = 105 (0x69), region = 101 }
  0x66   : > { %v1718_v4 = vmov 0.0  }
  0x67   : > { %605 = vst [vmem:[#allocation2 + $0x10] sm:$0xff] %v1718_v4  ;;  %606 = vst [vmem:[#allocation2] sm:$0xff] %v1718_v4 }
  0x68   : > { %607 = vst [vmem:[#allocation2 + $0x18] sm:$0xff] %v1718_v4  ;;  %608 = vst [vmem:[#allocation2 + $0x8] sm:$0xff] %v1718_v4 }
  0x69 PF: > { %v1528_v5 = vld [vmem:[%s2008_s17 + $0x74] ss:$8 sps:$4 sm:$0xff]   ;;  %v1532_v7 = vld [vmem:[%s2008_s17 + $0x70] ss:$8 sps:$4 sm:$0xff]   ;;  %v1534_v9 = vld [vmem:[%s2008_s17 + $0x64] ss:$8 sps:$4 sm:$0xff]  }
  0x6a   : > { %v1530_v6 = vld [vmem:[%s2008_s17 + $0x174] ss:$8 sps:$4 sm:$0xff]   ;;  %1021 = vmatprep.subr.bf16.mxu0 %v1528_v5  ;;  %v1533_v8 = vld [vmem:[%s2008_s17 + $0x170] ss:$8 sps:$4 sm:$0xff]   ;;  %v1536_v10 = vld [vmem:[%s2008_s17 + $0x164] ss:$8 sps:$4 sm:$0xff]  }
  0x6b   : > { %1064 = vmatprep.subr.bf16.mxu1 %v1530_v6  ;;  %1022 = vmatpush1.bf16.msra.mxu0 %v1532_v7  ;;  %v1538_v11 = vld [vmem:[%s2008_s17 + $0x60] ss:$8 sps:$4 sm:$0xff]   ;;  %v1540_v13 = vld [vmem:[%s2008_s17 + $0x54] ss:$8 sps:$4 sm:$0xff]   ;;  %v1544_v15 = vld [vmem:[%s2008_s17 + $0x50] ss:$8 sps:$4 sm:$0xff]  }
  0x6c   : > { %1065 = vmatpush1.bf16.msra.mxu1 %v1533_v8  ;;  %1023 = vmatprep.subr.bf16.mxu0 %v1534_v9  ;;  %v1539_v12 = vld [vmem:[%s2008_s17 + $0x160] ss:$8 sps:$4 sm:$0xff]   ;;  %v1542_v14 = vld [vmem:[%s2008_s17 + $0x154] ss:$8 sps:$4 sm:$0xff]   ;;  %v1545_v16 = vld [vmem:[%s2008_s17 + $0x150] ss:$8 sps:$4 sm:$0xff]  }
  0x6d   : > { %1066 = vmatprep.subr.bf16.mxu1 %v1536_v10  ;;  %v1546_v17 = vld [vmem:[%s2008_s17 + $0x44] ss:$8 sps:$4 sm:$0xff]   ;;  %v1550_v19 = vld [vmem:[%s2008_s17 + $0x40] ss:$8 sps:$4 sm:$0xff]   ;;  %v1552_v21 = vld [vmem:[%s2008_s17 + $0x34] ss:$8 sps:$4 sm:$0xff]  }
  0x6e   : > { %v1548_v18 = vld [vmem:[%s2008_s17 + $0x144] ss:$8 sps:$4 sm:$0xff]   ;;  %v1551_v20 = vld [vmem:[%s2008_s17 + $0x140] ss:$8 sps:$4 sm:$0xff]   ;;  %v1554_v22 = vld [vmem:[%s2008_s17 + $0x134] ss:$8 sps:$4 sm:$0xff]  }
  0x6f   : > { %1024 = vmatpush1.bf16.msra.mxu0 %v1538_v11  ;;  %v1556_v23 = vld [vmem:[%s2008_s17 + $0x30] ss:$8 sps:$4 sm:$0xff]   ;;  %v1558_v25 = vld [vmem:[%s2008_s17 + $0x24] ss:$8 sps:$4 sm:$0xff]   ;;  %v1562_v27 = vld [vmem:[%s2008_s17 + $0x20] ss:$8 sps:$4 sm:$0xff]  }
  0x70   : > { %1067 = vmatpush1.bf16.msra.mxu1 %v1539_v12  ;;  %1025 = vmatprep.subr.bf16.mxu0 %v1540_v13  ;;  %v1557_v24 = vld [vmem:[%s2008_s17 + $0x130] ss:$8 sps:$4 sm:$0xff]   ;;  %v1560_v26 = vld [vmem:[%s2008_s17 + $0x124] ss:$8 sps:$4 sm:$0xff]   ;;  %v1563_v28 = vld [vmem:[%s2008_s17 + $0x120] ss:$8 sps:$4 sm:$0xff]  }
  0x71   : > { %1068 = vmatprep.subr.bf16.mxu1 %v1542_v14  ;;  %v1564_v29 = vld [vmem:[%s2008_s17 + $0x14] ss:$8 sps:$4 sm:$0xff]   ;;  %v1568_v31 = vld [vmem:[%s2008_s17 + $0x10] ss:$8 sps:$4 sm:$0xff]   ;;  %v1570_v33 = vld [vmem:[%s2008_s17 + $0x4] ss:$8 sps:$4 sm:$0xff]  }
  0x72   : > { %v1566_v30 = vld [vmem:[%s2008_s17 + $0x114] ss:$8 sps:$4 sm:$0xff]   ;;  %v1569_v32 = vld [vmem:[%s2008_s17 + $0x110] ss:$8 sps:$4 sm:$0xff]   ;;  %v1572_v34 = vld [vmem:[%s2008_s17 + $0x104] ss:$8 sps:$4 sm:$0xff]  }
  0x73   : > { %1026 = vmatpush1.bf16.msra.mxu0 %v1544_v15  ;;  %v1574_v35 = vld [vmem:[%s2008_s17] ss:$8 sps:$4 sm:$0xff]   ;;  %v1576_v37 = vld [vmem:[%s2008_s17 + $0xf4] ss:$8 sps:$4 sm:$0xff]   ;;  %v1580_v39 = vld [vmem:[%s2008_s17 + $0xf0] ss:$8 sps:$4 sm:$0xff]  }
  0x74   : > { %1069 = vmatpush1.bf16.msra.mxu1 %v1545_v16  ;;  %1027 = vmatprep.subr.bf16.mxu0 %v1546_v17  ;;  %v1575_v36 = vld [vmem:[%s2008_s17 + $0x100] ss:$8 sps:$4 sm:$0xff]   ;;  %v1578_v38 = vld [vmem:[%s2008_s17 + $0x1f4] ss:$8 sps:$4 sm:$0xff]   ;;  %v1581_v40 = vld [vmem:[%s2008_s17 + $0x1f0] ss:$8 sps:$4 sm:$0xff]  }
  0x75   : > { %1070 = vmatprep.subr.bf16.mxu1 %v1548_v18  ;;  %v1582_v41 = vld [vmem:[%s2008_s17 + $0xe4] ss:$8 sps:$4 sm:$0xff]   ;;  %v1586_v43 = vld [vmem:[%s2008_s17 + $0xe0] ss:$8 sps:$4 sm:$0xff]   ;;  %v1588_v45 = vld [vmem:[%s2008_s17 + $0xd4] ss:$8 sps:$4 sm:$0xff]  }
  0x76   : > { %v1584_v42 = vld [vmem:[%s2008_s17 + $0x1e4] ss:$8 sps:$4 sm:$0xff]   ;;  %v1587_v44 = vld [vmem:[%s2008_s17 + $0x1e0] ss:$8 sps:$4 sm:$0xff]   ;;  %v1590_v46 = vld [vmem:[%s2008_s17 + $0x1d4] ss:$8 sps:$4 sm:$0xff]  }
  0x77   : > { %1028 = vmatpush1.bf16.msra.mxu0 %v1550_v19  ;;  %v1592_v47 = vld [vmem:[%s2008_s17 + $0xd0] ss:$8 sps:$4 sm:$0xff]   ;;  %v1594_v49 = vld [vmem:[%s2008_s17 + $0xc4] ss:$8 sps:$4 sm:$0xff]   ;;  %v1598_v51 = vld [vmem:[%s2008_s17 + $0xc0] ss:$8 sps:$4 sm:$0xff]  }
  0x78   : > { %1071 = vmatpush1.bf16.msra.mxu1 %v1551_v20  ;;  %1029 = vmatprep.subr.bf16.mxu0 %v1552_v21  ;;  %v1593_v48 = vld [vmem:[%s2008_s17 + $0x1d0] ss:$8 sps:$4 sm:$0xff]   ;;  %v1596_v50 = vld [vmem:[%s2008_s17 + $0x1c4] ss:$8 sps:$4 sm:$0xff]   ;;  %v1599_v53 = vld [vmem:[%s2008_s17 + $0x1c0] ss:$8 sps:$4 sm:$0xff]  }
  0x79   : > { %1072 = vmatprep.subr.bf16.mxu1 %v1554_v22  ;;  %v1626_v52 = vld [vmem:[%s2006_s19 + $0x4] ss:$16 sps:$4 sm:$0xff]   ;;  %v1629_v56 = vld [vmem:[%s2006_s19 + $0xc] ss:$16 sps:$4 sm:$0xff]   ;;  %v1604_v57 = vld [vmem:[%s2008_s17 + $0xb0] ss:$8 sps:$4 sm:$0xff]  }
  0x7a   : > { %v1600_v54 = vld [vmem:[%s2008_s17 + $0xb4] ss:$8 sps:$4 sm:$0xff]   ;;  %1053 = vmatprep.mubr.bf16.mxu0 %v1626_v52  ;;  %1096 = vmatprep.mubr.bf16.mxu1 %v1629_v56  ;;  %v1605_v58 = vld [vmem:[%s2008_s17 + $0x1b0] ss:$8 sps:$4 sm:$0xff]   ;;  %v1606_v59 = vld [vmem:[%s2008_s17 + $0xa4] ss:$8 sps:$4 sm:$0xff]  }
  0x7b   : > { %1030 = vmatpush1.bf16.msra.mxu0 %v1556_v23  ;;  %v1602_v55 = vld [vmem:[%s2008_s17 + $0x1b4] ss:$8 sps:$4 sm:$0xff]   ;;  %v1608_v60 = vld [vmem:[%s2008_s17 + $0x1a4] ss:$8 sps:$4 sm:$0xff]   ;;  %v1610_v61 = vld [vmem:[%s2008_s17 + $0xa0] ss:$8 sps:$4 sm:$0xff]  }
  0x7c   : > { %1073 = vmatpush1.bf16.msra.mxu1 %v1557_v24  ;;  %1031 = vmatprep.subr.bf16.mxu0 %v1558_v25  ;;  %v1611_v62 = vld [vmem:[%s2008_s17 + $0x1a0] ss:$8 sps:$4 sm:$0xff]   ;;  %v1612_v63 = vld [vmem:[%s2008_s17 + $0x94] ss:$8 sps:$4 sm:$0xff]   ;;  %v1616_v1 = vld [vmem:[%s2008_s17 + $0x90] ss:$8 sps:$4 sm:$0xff]  }
  0x7d   : > { %1074 = vmatprep.subr.bf16.mxu1 %v1560_v26  ;;  %v1614_v0 = vld [vmem:[%s2008_s17 + $0x194] ss:$8 sps:$4 sm:$0xff]   ;;  %v1617_v2 = vld [vmem:[%s2008_s17 + $0x190] ss:$8 sps:$4 sm:$0xff]   ;;  %v1618_v3 = vld [vmem:[%s2008_s17 + $0x84] ss:$8 sps:$4 sm:$0xff]  }
  0x7e   : > { %v1620_v4 = vld [vmem:[%s2008_s17 + $0x184] ss:$8 sps:$4 sm:$0xff]   ;;  %v1622_v5 = vld [vmem:[%s2008_s17 + $0x80] ss:$8 sps:$4 sm:$0xff]   ;;  %v609_v10 = vld [vmem:[#allocation2 + $0x10] sm:$0xff]  ;;  %p1426_p5 = scmp.ne.s32.totalorder %s1700_s21, 8 }
  0x7f   : > { %1032 = vmatpush1.bf16.msra.mxu0 %v1562_v27  ;;  %v1623_v6 = vld [vmem:[%s2008_s17 + $0x180] ss:$8 sps:$4 sm:$0xff]   ;;  %v611_v19 = vld [vmem:[#allocation2 + $0x18] sm:$0xff] }
  0x80   : > { %1075 = vmatpush1.bf16.msra.mxu1 %v1563_v28  ;;  %1033 = vmatprep.subr.bf16.mxu0 %v1564_v29  ;;  %v1624_v7 = vld [vmem:[%s2006_s19] ss:$16 sps:$4 sm:$0xff]   ;;  %v1627_v8 = vld [vmem:[%s2006_s19 + $0x8] ss:$16 sps:$4 sm:$0xff]  }
  0x81   : > { %1076 = vmatprep.subr.bf16.mxu1 %v1566_v30  ;;  %v610_v14 = vld [vmem:[#allocation2] sm:$0xff]  ;;  %v612_v24 = vld [vmem:[#allocation2 + $0x8] sm:$0xff] }
  0x83   : > { %1034 = vmatpush1.bf16.msra.mxu0 %v1568_v31 }
  0x84   : > { %1077 = vmatpush1.bf16.msra.mxu1 %v1569_v32  ;;  %1035 = vmatprep.subr.bf16.mxu0 %v1570_v33 }
  0x85   : > { %1078 = vmatprep.subr.bf16.mxu1 %v1572_v34 }
  0x87   : > { %1036 = vmatpush1.bf16.msra.mxu0 %v1574_v35 }
  0x88   : > { %1079 = vmatpush1.bf16.msra.mxu1 %v1575_v36  ;;  %1037 = vmatprep.subr.bf16.mxu0 %v1576_v37 }
  0x89   : > { %1080 = vmatprep.subr.bf16.mxu1 %v1578_v38 }
  0x8b   : > { %1038 = vmatpush2.bf16.msra.mxu0 %v1580_v39 }
  0x8c   : > { %1081 = vmatpush2.bf16.msra.mxu1 %v1581_v40  ;;  %1039 = vmatprep.subr.bf16.mxu0 %v1582_v41 }
  0x8d   : > { %1082 = vmatprep.subr.bf16.mxu1 %v1584_v42 }
  0x8f   : > { %1040 = vmatpush2.bf16.msra.mxu0 %v1586_v43 }
  0x90   : > { %1083 = vmatpush2.bf16.msra.mxu1 %v1587_v44  ;;  %1041 = vmatprep.subr.bf16.mxu0 %v1588_v45 }
  0x91   : > { %1084 = vmatprep.subr.bf16.mxu1 %v1590_v46 }
  0x93   : > { %1042 = vmatpush2.bf16.msra.mxu0 %v1592_v47 }
  0x94   : > { %1085 = vmatpush2.bf16.msra.mxu1 %v1593_v48  ;;  %1043 = vmatprep.subr.bf16.mxu0 %v1594_v49 }
  0x95   : > { %1086 = vmatprep.subr.bf16.mxu1 %v1596_v50 }
  0x97   : > { %1044 = vmatpush2.bf16.msra.mxu0 %v1598_v51 }
  0x98   : > { %1087 = vmatpush2.bf16.msra.mxu1 %v1599_v53  ;;  %1045 = vmatprep.subr.bf16.mxu0 %v1600_v54 }
  0x99   : > { %1088 = vmatprep.subr.bf16.mxu1 %v1602_v55 }
  0x9b   : > { %1046 = vmatpush2.bf16.msra.mxu0 %v1604_v57 }
  0x9c   : > { %1089 = vmatpush2.bf16.msra.mxu1 %v1605_v58  ;;  %1047 = vmatprep.subr.bf16.mxu0 %v1606_v59 }
  0x9d   : > { %1090 = vmatprep.subr.bf16.mxu1 %v1608_v60 }
  0x9f   : > { %1048 = vmatpush2.bf16.msra.mxu0 %v1610_v61 }
  0xa0   : > { %1091 = vmatpush2.bf16.msra.mxu1 %v1611_v62  ;;  %1049 = vmatprep.subr.bf16.mxu0 %v1612_v63 }
  0xa1   : > { %1092 = vmatprep.subr.bf16.mxu1 %v1614_v0 }
  0xa3   : > { %1050 = vmatpush2.bf16.msra.mxu0 %v1616_v1 }
  0xa4   : > { %1093 = vmatpush2.bf16.msra.mxu1 %v1617_v2  ;;  %1051 = vmatprep.subr.bf16.mxu0 %v1618_v3 }
  0xa5   : > { %1094 = vmatprep.subr.bf16.mxu1 %v1620_v4 }
  0xa7   : > { %1052 = vmatpush2.bf16.msra.mxu0 %v1622_v5 }
  0xa8   : > { %1095 = vmatpush2.bf16.msra.mxu1 %v1623_v6 }
  0xaa   : > { %1054 = vmatmul.mubr.bf16.vlgmr.msra.gmra.mxu0 %v1624_v7 }
  0xab   : > { %1097 = vmatmul.mubr.bf16.vlgmr.msra.gmra.mxu1 %v1627_v8 }
 0x16a   : > { %v1055_v9 = vpop.f32.mrf.mxu0 }
 0x16b   : > { %v1098_v11 = vpop.f32.mrf.mxu1 }
 0x16c   : > { %v1099_v12 = vadd.f32 %v1098_v11, %v1055_v9  ;;  %v1057_v13 = vpop.f32.mrf.mxu0 }
 0x16d   : > { %v1100_v15 = vpop.f32.mrf.mxu1 }
 0x16e   : > { %v1107_v16 = vadd.f32 %v1099_v12, %v609_v10  ;;  %v1101_v17 = vadd.f32 %v1100_v15, %v1057_v13  ;;  %v1059_v18 = vpop.f32.mrf.mxu0 }
 0x16f   : > { %v1102_v20 = vpop.f32.mrf.mxu1 }
 0x170   : > { %1111 = vst [vmem:[#allocation2 + $0x10] sm:$0xff] %v1107_v16  ;;  %v1108_v21 = vadd.f32 %v1101_v17, %v610_v14  ;;  %v1103_v22 = vadd.f32 %v1102_v20, %v1059_v18  ;;  %v1061_v23 = vpop.f32.mrf.mxu0 }
 0x171   : > { %v1104_v25 = vpop.f32.mrf.mxu1 }
 0x172   : > { %1112 = vst [vmem:[#allocation2] sm:$0xff] %v1108_v21  ;;  %v1109_v26 = vadd.f32 %v1103_v22, %v611_v19  ;;  %v1105_v27 = vadd.f32 %v1104_v25, %v1061_v23  ;;  %1118 = sbr.rel (%p1426_p5) target bundleno = 392 (0x188), region = 105 }
 0x174   : > { %1113 = vst [vmem:[#allocation2 + $0x18] sm:$0xff] %v1109_v26  ;;  %v1110_v28 = vadd.f32 %v1105_v27, %v612_v24 }
 0x176   : > { %1114 = vst [vmem:[#allocation2 + $0x8] sm:$0xff] %v1110_v28 }
 0x177   : > { %v1125_v29 = vlaneseq  ;;  %v1123_v31 = vld [vmem:[%s592_s9] sm:$0x3]  ;;  %v1119_v33 = vld [vmem:[#allocation2 + $0x10] sm:$0xff] }
 0x178   : > { %v1139_v32 = vld [vmem:[%s597_s1] sm:$0x3] }
 0x179   : > { %v1126_v30 = vshrl.u32 %v1125_v29, 7  ;;  %v1120_v36 = vld [vmem:[#allocation2] sm:$0xff] }
 0x17b   : > { %v1127_v34 = vsub.s32 0, %v1126_v30  ;;  %v1131_v35 = vsub.s32 1, %v1126_v30  ;;  %v1121_v37 = vld [vmem:[#allocation2 + $0x18] sm:$0xff] }
 0x17d   : > { %v1122_v38 = vld [vmem:[#allocation2 + $0x8] sm:$0xff]  ;;  %v1128_v39 = vrot.slane %v1123_v31, %v1127_v34  ;;  %v1132_v40 = vrot.slane %v1123_v31, %v1131_v35  ;;  %v1144_v41 = vrot.slane %v1139_v32, %v1127_v34  ;;  %v1148_v42 = vrot.slane %v1139_v32, %v1131_v35 }
 0x17f   : > { %v1135_v43 = vmul.f32 %v1128_v39, %v1119_v33  ;;  %v1136_v44 = vmul.f32 %v1132_v40, %v1120_v36  ;;  %v1137_v45 = vmul.f32 %v1128_v39, %v1121_v37  ;;  %v1138_v46 = vmul.f32 %v1132_v40, %v1122_v38 }
 0x181   : > { %v1151_v47 = vadd.f32 %v1144_v41, %v1135_v43  ;;  %v1152_v48 = vadd.f32 %v1148_v42, %v1136_v44  ;;  %v1153_v49 = vadd.f32 %v1144_v41, %v1137_v45  ;;  %v1154_v50 = vadd.f32 %v1148_v42, %v1138_v46 }
 0x183   : > { %v1155_v51 = vmax.f32 %v1151_v47, 0.0  ;;  %v1156_v52 = vmax.f32 %v1152_v48, 0.0  ;;  %v1157_v53 = vmax.f32 %v1153_v49, 0.0  ;;  %v1158_v54 = vmax.f32 %v1154_v50, 0.0 }
 0x185   : > { %v1436_v55 = vpack.c.bf16 %v1156_v52, %v1155_v51  ;;  %v1437_v56 = vpack.c.bf16 %v1158_v54, %v1157_v53 }
 0x187   : > { %1171 = vst [vmem:[%s2010_s15] sm:$0xff] %v1436_v55  ;;  %1172 = vst [vmem:[%s2010_s15 + $0x8] sm:$0xff] %v1437_v56 }
 0x188 PF: > { %1179 = sbr.rel (!%p1838_p12) target bundleno = 400 (0x190), region = 109  ;;  %s1438_s1 = sshll.u32 (%p1838_p12), %s1704_s22, 3 }
 0x189   : > { %s1185_s29 = scalar_lea.vmem (%p1838_p12), %s2139_s4, %s1438_s1 }
 0x18e   : > { %v1216_v57 = vld [vmem:[%s2010_s15] sm:$0xff]  ;;  %v1218_v58 = vld [vmem:[%s2010_s15 + $0x8] sm:$0xff] }
 0x18f   : > { %1217 = vst [vmem:[%s1185_s29] sm:$0xff] %v1216_v57  ;;  %1219 = vst [vmem:[%s1185_s29 + $0x10] sm:$0xff] %v1218_v58 }
 0x190 PF: > { %s14_s25 = sadd.s32 1, %s1716_s25   ;;  %s2151_s14 = sld [smem:[#allocation6_spill]] }
 0x191   : > { %p11_p6 = scmp.ge.s32.totalorder %s14_s25, 20   ;;  %s2152_s27 = sld [smem:[#allocation7_spill]] }
 0x192   : > { %s2153_s15 = smov %s1680_s16  ;;  %s2154_s16 = smov %s1836_s13 }
 0x193   : > { %s2155_s17 = smov %s1688_s18  ;;  %s2156_s18 = smov %s1833_s12 }
 0x194   : > { %s2157_s19 = smov %s1696_s20  ;;  %s2158_s20 = smov %s1819_s7 }
 0x195   : > { %s2159_s21 = smov %s1708_s23  ;;  %s2160_s22 = smov %s1712_s24 }
 0x196   : > { %s2161_s23 = smov %s2151_s14  ;;  %13 = sbr.rel (!%p11_p6) target bundleno = 9 (0x9), region = 192 }
 0x197   : > { %s2162_s24 = smov %s2152_s27 }

// kernel: violence_classifier_forward.43
= control target key start
LH: loop header
LB: loop body
LE: loop exit
PB: predicated region body
PF: predicated region fallthrough
CT: control target
= control target key end

     0   :  { %v94_v32 = vlaneseq  ;;  %s614_s0 = inlined_call_operand.vmem [shape: bf16[2,1,512], index: 0, kind: input, shape index: {}]   ;;  %s615_s1 = inlined_call_operand.vmem [shape: f32[512,128], index: 1, kind: input, shape index: {}]   ;;  %s616_s2 = inlined_call_operand.vmem [shape: f32[1,128], index: 2, kind: input, shape index: {}]   ;;  %s617_s3 = inlined_call_operand.hbm [shape: f32[2,128], index: 3, kind: output, shape index: {}]  }
   0x1   :  { %v52_v0 = vld [vmem:[%s615_s1 + $0xf8] sm:$0xff]  ;;  %v51_v4 = vld [vmem:[%s615_s1 + $0xf0] sm:$0xff]  ;;  %v50_v8 = vld [vmem:[%s615_s1 + $0xe8] sm:$0xff] }
   0x2   :  { %v84_v1 = vld [vmem:[%s615_s1 + $0x1f8] sm:$0xff]  ;;  %295 = vmatprep.subr.mxu0 %v52_v0  ;;  %v83_v5 = vld [vmem:[%s615_s1 + $0x1f0] sm:$0xff]  ;;  %v82_v9 = vld [vmem:[%s615_s1 + $0x1e8] sm:$0xff]  ;;  %v95_v41 = vshrl.u32 %v94_v32, 7 }
   0x3   :  { %v36_v2 = vld [vmem:[%s615_s1 + $0x78] sm:$0xff]  ;;  %330 = vmatprep.subr.mxu1 %v84_v1  ;;  %v35_v6 = vld [vmem:[%s615_s1 + $0x70] sm:$0xff]  ;;  %v34_v10 = vld [vmem:[%s615_s1 + $0x68] sm:$0xff] }
   0x4   :  { %v68_v3 = vld [vmem:[%s615_s1 + $0x178] sm:$0xff]  ;;  %296 = vmatpush3.msra.mxu0 %v36_v2  ;;  %v67_v7 = vld [vmem:[%s615_s1 + $0x170] sm:$0xff]  ;;  %v66_v11 = vld [vmem:[%s615_s1 + $0x168] sm:$0xff]  ;;  %v100_v51 = vsub.s32 2, %v95_v41 }
   0x5   :  { %331 = vmatpush3.msra.mxu1 %v68_v3  ;;  %297 = vmatprep.subr.mxu0 %v51_v4  ;;  %v49_v12 = vld [vmem:[%s615_s1 + $0xe0] sm:$0xff]  ;;  %v48_v16 = vld [vmem:[%s615_s1 + $0xd8] sm:$0xff]  ;;  %v47_v20 = vld [vmem:[%s615_s1 + $0xd0] sm:$0xff] }
   0x6   :  { %332 = vmatprep.subr.mxu1 %v83_v5  ;;  %298 = vmatpush3.msra.mxu0 %v35_v6  ;;  %v81_v13 = vld [vmem:[%s615_s1 + $0x1e0] sm:$0xff]  ;;  %v80_v17 = vld [vmem:[%s615_s1 + $0x1d8] sm:$0xff]  ;;  %v79_v21 = vld [vmem:[%s615_s1 + $0x1d0] sm:$0xff] }
   0x7   :  { %333 = vmatpush3.msra.mxu1 %v67_v7  ;;  %299 = vmatprep.subr.mxu0 %v50_v8  ;;  %v33_v14 = vld [vmem:[%s615_s1 + $0x60] sm:$0xff]  ;;  %v32_v18 = vld [vmem:[%s615_s1 + $0x58] sm:$0xff]  ;;  %v31_v22 = vld [vmem:[%s615_s1 + $0x50] sm:$0xff] }
   0x8   :  { %334 = vmatprep.subr.mxu1 %v82_v9  ;;  %v65_v15 = vld [vmem:[%s615_s1 + $0x160] sm:$0xff]  ;;  %300 = vmatpush3.msra.mxu0 %v34_v10  ;;  %v64_v19 = vld [vmem:[%s615_s1 + $0x158] sm:$0xff]  ;;  %v63_v23 = vld [vmem:[%s615_s1 + $0x150] sm:$0xff] }
   0x9   :  { %335 = vmatpush3.msra.mxu1 %v66_v11  ;;  %301 = vmatprep.subr.mxu0 %v49_v12  ;;  %v46_v24 = vld [vmem:[%s615_s1 + $0xc8] sm:$0xff]  ;;  %v45_v28 = vld [vmem:[%s615_s1 + $0xc0] sm:$0xff]  ;;  %v44_v33 = vld [vmem:[%s615_s1 + $0xb8] sm:$0xff] }
   0xa   :  { %336 = vmatprep.subr.mxu1 %v81_v13  ;;  %302 = vmatpush3.msra.mxu0 %v33_v14  ;;  %v78_v25 = vld [vmem:[%s615_s1 + $0x1c8] sm:$0xff]  ;;  %v77_v29 = vld [vmem:[%s615_s1 + $0x1c0] sm:$0xff]  ;;  %v76_v34 = vld [vmem:[%s615_s1 + $0x1b8] sm:$0xff] }
   0xb   :  { %337 = vmatpush3.msra.mxu1 %v65_v15  ;;  %303 = vmatprep.subr.mxu0 %v48_v16  ;;  %v30_v26 = vld [vmem:[%s615_s1 + $0x48] sm:$0xff]  ;;  %v29_v30 = vld [vmem:[%s615_s1 + $0x40] sm:$0xff]  ;;  %v28_v35 = vld [vmem:[%s615_s1 + $0x38] sm:$0xff] }
   0xc   :  { %338 = vmatprep.subr.mxu1 %v80_v17  ;;  %304 = vmatpush3.msra.mxu0 %v32_v18  ;;  %v62_v27 = vld [vmem:[%s615_s1 + $0x148] sm:$0xff]  ;;  %v61_v31 = vld [vmem:[%s615_s1 + $0x140] sm:$0xff]  ;;  %v60_v36 = vld [vmem:[%s615_s1 + $0x138] sm:$0xff] }
   0xd   :  { %339 = vmatpush3.msra.mxu1 %v64_v19  ;;  %305 = vmatprep.subr.mxu0 %v47_v20  ;;  %v43_v37 = vld [vmem:[%s615_s1 + $0xb0] sm:$0xff]  ;;  %v42_v42 = vld [vmem:[%s615_s1 + $0xa8] sm:$0xff]  ;;  %v41_v46 = vld [vmem:[%s615_s1 + $0xa0] sm:$0xff] }
   0xe   :  { %340 = vmatprep.subr.mxu1 %v79_v21  ;;  %306 = vmatpush3.msra.mxu0 %v31_v22  ;;  %v75_v38 = vld [vmem:[%s615_s1 + $0x1b0] sm:$0xff]  ;;  %v74_v43 = vld [vmem:[%s615_s1 + $0x1a8] sm:$0xff]  ;;  %v73_v47 = vld [vmem:[%s615_s1 + $0x1a0] sm:$0xff] }
   0xf   :  { %341 = vmatpush3.msra.mxu1 %v63_v23  ;;  %307 = vmatprep.subr.mxu0 %v46_v24  ;;  %v27_v39 = vld [vmem:[%s615_s1 + $0x30] sm:$0xff]  ;;  %v26_v44 = vld [vmem:[%s615_s1 + $0x28] sm:$0xff]  ;;  %v25_v48 = vld [vmem:[%s615_s1 + $0x20] sm:$0xff] }
  0x10   :  { %342 = vmatprep.subr.mxu1 %v78_v25  ;;  %308 = vmatpush3.msra.mxu0 %v30_v26  ;;  %v59_v40 = vld [vmem:[%s615_s1 + $0x130] sm:$0xff]  ;;  %v58_v45 = vld [vmem:[%s615_s1 + $0x128] sm:$0xff]  ;;  %v57_v49 = vld [vmem:[%s615_s1 + $0x120] sm:$0xff] }
  0x11   :  { %343 = vmatpush3.msra.mxu1 %v62_v27  ;;  %309 = vmatprep.subr.mxu0 %v45_v28  ;;  %v292_v50 = vld [vmem:[%s614_s0] sm:$0xff]  }
  0x12   :  { %344 = vmatprep.subr.mxu1 %v77_v29  ;;  %310 = vmatpush3.msra.mxu0 %v29_v30 }
  0x13   :  { %345 = vmatpush3.msra.mxu1 %v61_v31  ;;  %311 = vmatprep.subr.mxu0 %v44_v33 }
  0x14   :  { %346 = vmatprep.subr.mxu1 %v76_v34  ;;  %312 = vmatpush3.msra.mxu0 %v28_v35 }
  0x15   :  { %347 = vmatpush3.msra.mxu1 %v60_v36  ;;  %313 = vmatprep.subr.mxu0 %v43_v37 }
  0x16   :  { %348 = vmatprep.subr.mxu1 %v75_v38  ;;  %314 = vmatpush3.msra.mxu0 %v27_v39 }
  0x17   :  { %349 = vmatpush3.msra.mxu1 %v59_v40  ;;  %315 = vmatprep.subr.mxu0 %v42_v42 }
  0x18   :  { %350 = vmatprep.subr.mxu1 %v74_v43 }
  0x19   :  { %8 = vsyncpa [#allocation3], 0  ;;  %316 = vmatpush3.msra.mxu0 %v26_v44  ;;  %351 = vmatpush3.msra.mxu1 %v58_v45  ;;  %v40_v52 = vld [vmem:[%s615_s1 + $0x98] sm:$0xff]  ;;  %v293_v54 = vunpack.c.l.bf16 %v292_v50  ;;  %v294_v55 = vunpack.c.h.bf16 %v292_v50  ;;  %v108_v56 = vsub.s32 6, %v95_v41  ;;  %v96_v57 = vsub.s32 0, %v95_v41  ;;  %v39_v61 = vld [vmem:[%s615_s1 + $0x90] sm:$0xff] }
  0x1a   :  { %v72_v53 = vld [vmem:[%s615_s1 + $0x198] sm:$0xff]  ;;  %317 = vmatprep.subr.mxu0 %v41_v46  ;;  %352 = vmatprep.subr.mxu1 %v73_v47  ;;  %v104_v60 = vsub.s32 4, %v95_v41  ;;  %v71_v62 = vld [vmem:[%s615_s1 + $0x190] sm:$0xff]  ;;  %v38_v3 = vld [vmem:[%s615_s1 + $0x88] sm:$0xff]  ;;  %vm126_vm0 = vcmask 1041409  }
  0x1b   :  { %v24_v58 = vld [vmem:[%s615_s1 + $0x18] sm:$0xff]  ;;  %318 = vmatpush3.msra.mxu0 %v25_v48  ;;  %353 = vmatpush3.msra.mxu1 %v57_v49  ;;  %v23_v63 = vld [vmem:[%s615_s1 + $0x10] sm:$0xff]  ;;  %v101_v1 = vrot.slane %v293_v54, %v100_v51  ;;  %v117_v2 = vrot.slane %v294_v55, %v100_v51  ;;  %v70_v4 = vld [vmem:[%s615_s1 + $0x188] sm:$0xff]  ;;  %v109_v5 = vrot.slane %v293_v54, %v108_v56 }
  0x1c   :  { %v56_v59 = vld [vmem:[%s615_s1 + $0x118] sm:$0xff]  ;;  %319 = vmatprep.subr.mxu0 %v40_v52  ;;  %354 = vmatprep.subr.mxu1 %v72_v53  ;;  %v55_v0 = vld [vmem:[%s615_s1 + $0x110] sm:$0xff]  ;;  %v125_v6 = vrot.slane %v294_v55, %v108_v56  ;;  %v97_v7 = vrot.slane %v293_v54, %v96_v57  ;;  %v22_v8 = vld [vmem:[%s615_s1 + $0x8] sm:$0xff]  ;;  %v113_v10 = vrot.slane %v294_v55, %v96_v57 }
  0x1d   :  { %320 = vmatpush3.msra.mxu0 %v24_v58  ;;  %355 = vmatpush3.msra.mxu1 %v56_v59  ;;  %v54_v9 = vld [vmem:[%s615_s1 + $0x108] sm:$0xff]  ;;  %v105_v11 = vrot.slane %v293_v54, %v104_v60  ;;  %v121_v12 = vrot.slane %v294_v55, %v104_v60  ;;  %v37_v13 = vld [vmem:[%s615_s1 + $0x80] sm:$0xff]  ;;  %v128_v16 = vsel %vm126_vm0, %v117_v2, %v101_v1 }
  0x1e   :  { %321 = vmatprep.subr.mxu0 %v39_v61  ;;  %356 = vmatprep.subr.mxu1 %v71_v62  ;;  %v69_v14 = vld [vmem:[%s615_s1 + $0x180] sm:$0xff]  ;;  %v130_v18 = vsel %vm126_vm0, %v125_v6, %v109_v5  ;;  %v127_v19 = vsel %vm126_vm0, %v113_v10, %v97_v7 }
  0x1f   :  { %322 = vmatpush3.msra.mxu0 %v23_v63  ;;  %357 = vmatpush3.msra.mxu1 %v55_v0  ;;  %v21_v15 = vld [vmem:[%s615_s1] sm:$0xff]  ;;  %v129_v20 = vsel %vm126_vm0, %v121_v12, %v105_v11 }
  0x20   :  { %323 = vmatprep.subr.mxu0 %v38_v3  ;;  %358 = vmatprep.subr.mxu1 %v70_v4  ;;  %v53_v17 = vld [vmem:[%s615_s1 + $0x100] sm:$0xff]  ;;  %s388_s1 = smov [#allocation2]  }
  0x21   :  { %324 = vmatpush3.msra.mxu0 %v22_v8  ;;  %359 = vmatpush3.msra.mxu1 %v54_v9  ;;  %v290_v23 = vld [vmem:[%s616_s2] ss:$0 sm:$0xff]  ;;  %s282_s7 = sshll.u32 %s388_s1, 4  ;;  %s283_s7 = int_to_ptr.vmem [resolvable:$true] %s282_s7 }
  0x22   :  { %325 = vmatprep.subr.mxu0 %v37_v13  ;;  %360 = vmatprep.subr.mxu1 %v69_v14  ;;  %s366_s8 = scalar_lea.vmem %s283_s7, 32  ;;  %p371_p1 = scmp.lt.s32.totalorder %s283_s7, %s283_s7 }
  0x23   :  { %326 = vmatpush3.msra.mxu0 %v21_v15  ;;  %199 = vmatprep.mubr.f32.mxu0 %v128_v16  ;;  %p367_p0 = scmp.ne.s32.totalorder %s283_s7, %s366_s8  ;;  %p372_p2 = scmp.lt.s32.totalorder %s366_s8, %s366_s8 }
  0x24   :  { %361 = vmatpush3.msra.mxu1 %v53_v17  ;;  %269 = vmatprep.mubr.f32.mxu1 %v130_v18 }
  0x25   :  { %200 = vmatmul.mubr.f32.vlgmr.msra.gmra.mxu0 %v127_v19  ;;  %270 = vmatmul.mubr.f32.vlgmr.msra.gmra.mxu1 %v129_v20  ;;  %p373_p3 = por %p372_p2, %p371_p1 }
  0x27   :  { %p374_p4 = pnand %p373_p3, %p367_p0 }
  0xe5   :  { %v327_v21 = vpop.f32.mrf.mxu0  ;;  %v362_v22 = vpop.f32.mrf.mxu1 }
  0xe7   :  { %v328_v24 = vpop.f32.mrf.mxu0  ;;  %v363_v25 = vpop.f32.mrf.mxu1 }
  0xe8   :  { %v329_v26 = vadd.f32 %v328_v24, %v327_v21  ;;  %v364_v28 = vadd.f32 %v363_v25, %v362_v22 }
  0xea   :  { %v202_v27 = vadd.f32 %v329_v26, %v290_v23 }
  0xec   :  { %v272_v29 = vadd.f32 %v364_v28, %v202_v27 }
  0xee   :  { %275 = vst [vmem:[#allocation2] sm:$0x3] %v272_v29 }
  0xef   :  { %377 = shalt.err (!%p374_p4)
}
  0xf0   :  { %285 = dma.vmem_to_hbm [thread:$0]  %s283_s7, 32, %s617_s3, [#allocation3]  }
  0xf1   :  { %386 = dma.done.wait [#allocation3], 32  }
  0xf2   :  { %387 = vsyncadd [#allocation3], 4294967264 }
  0xf3   :  { %289 = vsyncpa [#allocation3], 1 }

</bundles_post_ra>
